<compile_context>
chip_gen: v6e
topology: v6e:2x2x1
jax: 0.10.0
libtpu: 0.0.40
codegen_flags: <defaults>
</compile_context>

<pallas_src>
import math

import jax
import jax.numpy as jnp
from jax.experimental import pallas as pl
from jax.experimental.pallas import tpu as pltpu

BN_EPS = 1e-5


# ----------------------------------------------------------------------------
# In-kernel building blocks (operate on VMEM-resident values / scratch refs)
# ----------------------------------------------------------------------------

def _batchnorm_rows(h):
    """Training-mode BatchNorm1d (gamma=1, beta=0, biased var) over (R, C) rows."""
    mean = jnp.mean(h, axis=0, keepdims=True)
    var = jnp.mean(jnp.square(h - mean), axis=0, keepdims=True)
    return (h - mean) * jax.lax.rsqrt(var + BN_EPS)


def _degree_inv(adj_v, add_loop):
    """1 / clamp(rowsum(adj) [+1 if add_loop], 1), exact (no approx reciprocal)."""
    B, N, _ = adj_v.shape
    if adj_v.dtype == jnp.bfloat16:
        # f32-accumulating MXU matvec: exact integer degrees, no f32 adj copy.
        ones = jnp.ones((N, 1), jnp.bfloat16)
        deg = jnp.dot(adj_v.reshape(B * N, N), ones,
                      preferred_element_type=jnp.float32).reshape(B, N, 1)
    else:
        deg = jnp.sum(adj_v, axis=-1, keepdims=True)
    if add_loop:
        deg = deg + 1.0
    return 1.0 / jnp.maximum(deg, 1.0)


def _sage_relu_bn(x_bf, adj_bf, deg_inv, w, b, add_loop):
    """DenseSAGEConv + ReLU + BatchNorm1d.  x_bf: (B,N,Cin) bf16 -> (B,N,Cout) f32."""
    B, N, cin = x_bf.shape
    cout = w.shape[-1]
    w_bf = w.astype(jnp.bfloat16)
    if cin < 16:
        # Reassociate ((adj@x + x)*d)@W == (adj@(x@W) + x@W)*d for tiny Cin:
        # the big NxN matmul then emits `cout` columns instead of a
        # 3->128 lane-padded operand.
        xw = jnp.dot(x_bf.reshape(B * N, cin), w_bf,
                     preferred_element_type=jnp.float32).reshape(B, N, cout)
        agg = jnp.einsum('bnm,bmc->bnc', adj_bf, xw.astype(jnp.bfloat16),
                         preferred_element_type=jnp.float32)
        if add_loop:
            agg = agg + xw                       # folded self-loop (adj diag == 0)
        h = (agg * deg_inv).reshape(B * N, cout) + b
    else:
        agg = jnp.einsum('bnm,bmc->bnc', adj_bf, x_bf,
                         preferred_element_type=jnp.float32)
        if add_loop:
            agg = agg + x_bf                     # bf16 -> f32 promotion
        agg = agg * deg_inv
        h = jnp.dot(agg.reshape(B * N, cin).astype(jnp.bfloat16), w_bf,
                    preferred_element_type=jnp.float32) + b
    h = jnp.maximum(h, 0.0)                      # ReLU
    h = _batchnorm_rows(h)                       # BN (batch statistics)
    return h.reshape(B, N, cout)


def _gnn_chain(x_bf, adj_bf, deg_inv, wp, add_loop, slab_ref=None):
    """Three fused SAGE+ReLU+BN layers.

    If `slab_ref` is given, the f32 layer outputs are written into contiguous
    column ranges of it (so downstream consumers see a single concatenated
    slab and run one K=(sum of widths) matmul).  Returns the f32 outputs.
    """
    outs = []
    xin = x_bf
    off = 0
    for (w, b) in wp:
        h = _sage_relu_bn(xin, adj_bf, deg_inv, w, b, add_loop)
        xin = h.astype(jnp.bfloat16)             # single cast, reused by next conv
        c = h.shape[-1]
        if slab_ref is not None:
            slab_ref[:, :, off:off + c] = h
        off += c
        outs.append(h)
    return outs


# ----------------------------------------------------------------------------
# Stage kernels
# ----------------------------------------------------------------------------

def _make_pool_stage_kernel(add_loop):
    """gnn_pool (lin=True) + gnn_embed (lin=False) + dense_diff_pool, fused."""
    def kernel(x_ref, adj_ref,
               pw1, pb1, pw2, pb2, pw3, pb3, plw, plb,      # pool-GNN params
               ew1, eb1, ew2, eb2, ew3, eb3,                 # embed-GNN params
               xo_ref, ao_ref,                               # outputs
               pslab_ref, eslab_ref):                        # VMEM concat slabs
        B, N, _ = x_ref.shape
        x_bf = x_ref[...].astype(jnp.bfloat16)
        adj_v = adj_ref[...]
        adj_bf = adj_v if adj_v.dtype == jnp.bfloat16 else adj_v.astype(jnp.bfloat16)
        deg_inv = _degree_inv(adj_v, add_loop)

        # --- pool GNN -> assignment s = softmax(relu(lin(cat(x1,x2,x3))))
        _gnn_chain(x_bf, adj_bf, deg_inv,
                   ((pw1[...], pb1[...]), (pw2[...], pb2[...]),
                    (pw3[...], pb3[...])),
                   add_loop, slab_ref=pslab_ref)
        fp = pslab_ref.shape[-1]
        cat_p = pslab_ref[...].reshape(B * N, fp).astype(jnp.bfloat16)
        s_pre = jnp.dot(cat_p, plw[...].astype(jnp.bfloat16),
                        preferred_element_type=jnp.float32) + plb[...]
        s = jax.nn.softmax(jnp.maximum(s_pre, 0.0), axis=-1)
        s_bf = s.reshape(B, N, -1).astype(jnp.bfloat16)

        # --- embed GNN (x1|x2|x3 written into one contiguous slab)
        _gnn_chain(x_bf, adj_bf, deg_inv,
                   ((ew1[...], eb1[...]), (ew2[...], eb2[...]),
                    (ew3[...], eb3[...])),
                   add_loop, slab_ref=eslab_ref)
        cat_e = eslab_ref[...].astype(jnp.bfloat16)          # (B, N, Fe)

        # --- dense_diff_pool: x' = s^T x (one full-width store), adj' = s^T adj s
        xo_ref[...] = jnp.einsum('bnk,bnc->bkc', s_bf, cat_e,
                                 preferred_element_type=jnp.float32)
        t = jnp.einsum('bnk,bnm->bkm', s_bf, adj_bf,
                       preferred_element_type=jnp.float32)
        ao_ref[...] = jnp.einsum('bkm,bmc->bkc', t.astype(jnp.bfloat16), s_bf,
                                 preferred_element_type=jnp.float32)
    return kernel


def _final_stage_kernel(x_ref, adj_ref,
                        ew1, eb1, ew2, eb2, ew3, eb3,
                        l1w, l1b, l2w, l2b,
                        o_ref):
    """gnn3_embed + mean over nodes + relu(lin1) + lin2, fused."""
    x_bf = x_ref[...].astype(jnp.bfloat16)
    adj_v = adj_ref[...]
    adj_bf = adj_v if adj_v.dtype == jnp.bfloat16 else adj_v.astype(jnp.bfloat16)
    deg_inv = _degree_inv(adj_v, add_loop=False)

    hs = _gnn_chain(x_bf, adj_bf, deg_inv,
                    ((ew1[...], eb1[...]), (ew2[...], eb2[...]),
                     (ew3[...], eb3[...])),
                    add_loop=False)

    # mean readout + relu(lin1) + lin2 — tiny f32 matmuls
    w1 = l1w[...]
    acc = None
    off = 0
    for h in hs:
        c = h.shape[-1]
        term = jnp.dot(jnp.mean(h, axis=1), w1[off:off + c],
                       preferred_element_type=jnp.float32)
        acc = term if acc is None else acc + term
        off += c
    h = jnp.maximum(acc + l1b[...], 0.0)
    o_ref[...] = jnp.dot(h, l2w[...], preferred_element_type=jnp.float32) + l2b[...]


# ----------------------------------------------------------------------------
# pallas_call wrapper: whole-array, no grid (single-buffered)
# ----------------------------------------------------------------------------

_COMPILER_PARAMS = None


def _vmem_limit_bytes():
    """Per-generation VMEM request; leave headroom for Mosaic internal scratch."""
    try:
        info = pltpu.get_tpu_info()
    except Exception:
        return None
    cap = None
    for name in ("vmem_capacity_bytes", "vmem_size_bytes", "vmem_bytes"):
        cap = getattr(info, name, None)
        if cap:
            break
    if not cap:
        return None
    return int(max(32 * 1024 * 1024,
                   min(cap - 16 * 1024 * 1024, 112 * 1024 * 1024)))


def _compiler_params():
    global _COMPILER_PARAMS
    if _COMPILER_PARAMS is None:
        limit = _vmem_limit_bytes()
        _COMPILER_PARAMS = (pltpu.CompilerParams(vmem_limit_bytes=limit)
                            if limit else pltpu.CompilerParams())
    return _COMPILER_PARAMS


def _whole_array_call(kernel, out_shape, scratch_shapes, *inputs):
    # No grid: a single whole-array invocation, so there is no pipelining
    # machinery and no default double-buffering of the whole-array blocks.
    return pl.pallas_call(
        kernel,
        out_shape=out_shape,
        scratch_shapes=tuple(scratch_shapes),
        compiler_params=_compiler_params(),
    )(*inputs)


# ----------------------------------------------------------------------------
# Model glue
# ----------------------------------------------------------------------------

_CONV_KEYS = ('conv1_w', 'conv1_b', 'conv2_w', 'conv2_b', 'conv3_w', 'conv3_b')


def _gnn_args(p, lin):
    args = [p[k] for k in _CONV_KEYS]
    if lin:
        args += [p['lin_w'], p['lin_b']]
    return args


def _chain_width(p):
    return sum(p[k].shape[1] for k in ('conv1_w', 'conv2_w', 'conv3_w'))


def pool_stage(x, adj, pool_p, embed_p, add_loop):
    B, N, _ = x.shape
    C = pool_p['conv3_w'].shape[1]                   # number of clusters
    Fp = _chain_width(pool_p)                        # 2*hidden + C
    Fe = _chain_width(embed_p)                       # 3*hidden
    kernel = _make_pool_stage_kernel(add_loop)
    x_out, adj_out = _whole_array_call(
        kernel,
        (jax.ShapeDtypeStruct((B, C, Fe), jnp.float32),
         jax.ShapeDtypeStruct((B, C, C), jnp.float32)),
        [pltpu.VMEM((B, N, Fp), jnp.float32),        # pool-chain concat slab
         pltpu.VMEM((B, N, Fe), jnp.float32)],       # embed-chain concat slab
        x, adj, *_gnn_args(pool_p, lin=True), *_gnn_args(embed_p, lin=False))
    return x_out, adj_out


def final_stage(x, adj, embed_p, lin1_w, lin1_b, lin2_w, lin2_b):
    B = x.shape[0]
    return _whole_array_call(
        _final_stage_kernel,
        jax.ShapeDtypeStruct((B, 1), jnp.float32),
        [],
        x, adj, *_gnn_args(embed_p, lin=False), lin1_w, lin1_b, lin2_w, lin2_b)


@jax.jit
def net_forward(params, x, adj):
    # Binary (0/1) adjacency with zero diagonal -> bf16 cast is exact; halves
    # HBM traffic and VMEM residency of the largest stage-1 operand.
    adj_bf = adj.astype(jnp.bfloat16)
    x2, adj2 = pool_stage(x, adj_bf, params['gnn1_pool'], params['gnn1_embed'],
                          add_loop=True)
    # Coarsened adjacencies are small and non-binary: keep them f32.
    x3, adj3 = pool_stage(x2, adj2, params['gnn2_pool'], params['gnn2_embed'],
                          add_loop=False)
    return final_stage(x3, adj3, params['gnn3_embed'],
                       params['lin1_w'], params['lin1_b'],
                       params['lin2_w'], params['lin2_b'])


# ----------------------------------------------------------------------------
# Deterministic parameter initialization (synthetic weights, shapes per __init__)
# ----------------------------------------------------------------------------

def init_gnn_params(key, in_ch, hidden, out_ch, lin):
    ks = jax.random.split(key, 8)
    p = {
        'conv1_w': jax.random.normal(ks[0], (in_ch, hidden), jnp.float32) * 0.1,
        'conv1_b': jax.random.normal(ks[1], (1, hidden), jnp.float32) * 0.01,
        'conv2_w': jax.random.normal(ks[2], (hidden, hidden), jnp.float32) * 0.1,
        'conv2_b': jax.random.normal(ks[3], (1, hidden), jnp.float32) * 0.01,
        'conv3_w': jax.random.normal(ks[4], (hidden, out_ch), jnp.float32) * 0.1,
        'conv3_b': jax.random.normal(ks[5], (1, out_ch), jnp.float32) * 0.01,
    }
    if lin:
        fin = 2 * hidden + out_ch
        p['lin_w'] = jax.random.normal(ks[6], (fin, out_ch), jnp.float32) * 0.1
        p['lin_b'] = jax.random.normal(ks[7], (1, out_ch), jnp.float32) * 0.01
    return p


def init_net_params(key, max_nodes, in_channels=3, hidden=64):
    n1 = math.ceil(0.25 * max_nodes)     # clusters after first diff-pool
    n2 = math.ceil(0.25 * n1)            # clusters after second diff-pool
    ks = jax.random.split(key, 9)
    return {
        'gnn1_pool':  init_gnn_params(ks[0], in_channels, hidden, n1, lin=True),
        'gnn1_embed': init_gnn_params(ks[1], in_channels, hidden, hidden, lin=False),
        'gnn2_pool':  init_gnn_params(ks[2], 3 * hidden, hidden, n2, lin=True),
        'gnn2_embed': init_gnn_params(ks[3], 3 * hidden, hidden, hidden, lin=False),
        'gnn3_embed': init_gnn_params(ks[4], 3 * hidden, hidden, hidden, lin=False),
        'lin1_w': jax.random.normal(ks[5], (3 * hidden, hidden), jnp.float32) * 0.1,
        'lin1_b': jax.random.normal(ks[6], (1, hidden), jnp.float32) * 0.01,
        'lin2_w': jax.random.normal(ks[7], (hidden, 1), jnp.float32) * 0.1,
        'lin2_b': jax.random.normal(ks[8], (1, 1), jnp.float32) * 0.01,
    }


# ----------------------------------------------------------------------------
if __name__ == "__main__":
    # Small, module-consistent shapes: the reference uses max_nodes=2000; we
    # scale it down (MAX_NODES=64 -> 16 -> 4 clusters) so the demo is tiny.
    MAX_NODES = 64
    B, N, IN_CH = 2, MAX_NODES, 3

    key = jax.random.PRNGKey(0)
    k_par, k_x, k_adj = jax.random.split(key, 3)

    params = init_net_params(k_par, MAX_NODES, in_channels=IN_CH, hidden=64)

    x = jax.random.normal(k_x, (B, N, IN_CH), jnp.float32)
    # random symmetric binary adjacency with zero diagonal (self-loops are
    # folded into the SAGE kernel for the add_loop=True stage)
    a = jax.random.bernoulli(k_adj, 0.15, (B, N, N)).astype(jnp.float32)
    adj = jnp.maximum(a, jnp.swapaxes(a, 1, 2))
    adj = adj * (1.0 - jnp.eye(N, dtype=jnp.float32)[None])

    out = net_forward(params, x, adj)
    out = jax.block_until_ready(out)
    assert out.shape == (B, 1), out.shape
    print("KERNEL_OK")
</pallas_src>

<mosaic_0001>
module attributes {stable_mosaic.version = 11 : i64} {
  func.func @kernel(%arg0: memref<2x16x192xf32, #tpu.memory_space<vmem>>, %arg1: memref<2x16x16xf32, #tpu.memory_space<vmem>>, %arg2: memref<192x64xf32, #tpu.memory_space<vmem>>, %arg3: memref<1x64xf32, #tpu.memory_space<vmem>>, %arg4: memref<64x64xf32, #tpu.memory_space<vmem>>, %arg5: memref<1x64xf32, #tpu.memory_space<vmem>>, %arg6: memref<64x4xf32, #tpu.memory_space<vmem>>, %arg7: memref<1x4xf32, #tpu.memory_space<vmem>>, %arg8: memref<132x4xf32, #tpu.memory_space<vmem>>, %arg9: memref<1x4xf32, #tpu.memory_space<vmem>>, %arg10: memref<192x64xf32, #tpu.memory_space<vmem>>, %arg11: memref<1x64xf32, #tpu.memory_space<vmem>>, %arg12: memref<64x64xf32, #tpu.memory_space<vmem>>, %arg13: memref<1x64xf32, #tpu.memory_space<vmem>>, %arg14: memref<64x64xf32, #tpu.memory_space<vmem>>, %arg15: memref<1x64xf32, #tpu.memory_space<vmem>>, %arg16: memref<2x4x192xf32, #tpu.memory_space<vmem>>, %arg17: memref<2x4x4xf32, #tpu.memory_space<vmem>>, %arg18: memref<2x16x132xf32, #tpu.memory_space<vmem>>, %arg19: memref<2x16x192xf32, #tpu.memory_space<vmem>>) attributes {dimension_semantics = [], scalar_prefetch = 0 : i64, scratch_operands = 2 : i64, tpu.core_type = #tpu.core_type<tc>} {
    %c0 = arith.constant 0 : index
    %c0_0 = arith.constant 0 : index
    %c0_1 = arith.constant 0 : index
    %0 = vector.load %arg0[%c0, %c0_0, %c0_1] : memref<2x16x192xf32, #tpu.memory_space<vmem>>, vector<2x16x192xf32>
    %1 = arith.truncf %0 : vector<2x16x192xf32> to vector<2x16x192xbf16>
    %c0_2 = arith.constant 0 : index
    %c0_3 = arith.constant 0 : index
    %c0_4 = arith.constant 0 : index
    %2 = vector.load %arg1[%c0_2, %c0_3, %c0_4] : memref<2x16x16xf32, #tpu.memory_space<vmem>>, vector<2x16x16xf32>
    %3 = arith.truncf %2 : vector<2x16x16xf32> to vector<2x16x16xbf16>
    %cst = arith.constant dense<0.000000e+00> : vector<2x16xf32>
    %4 = vector.multi_reduction <add>, %2, %cst [2] : vector<2x16x16xf32> to vector<2x16xf32>
    %5 = vector.shape_cast %4 : vector<2x16xf32> to vector<2x16x1xf32>
    %cst_5 = arith.constant 1.000000e+00 : f32
    %6 = vector.broadcast %cst_5 : f32 to vector<2x16x1xf32>
    %7 = arith.maximumf %5, %6 : vector<2x16x1xf32>
    %cst_6 = arith.constant 1.000000e+00 : f32
    %8 = vector.broadcast %cst_6 : f32 to vector<2x16x1xf32>
    %9 = arith.divf %8, %7 : vector<2x16x1xf32>
    %c0_7 = arith.constant 0 : index
    %c0_8 = arith.constant 0 : index
    %10 = vector.load %arg2[%c0_7, %c0_8] : memref<192x64xf32, #tpu.memory_space<vmem>>, vector<192x64xf32>
    %c0_9 = arith.constant 0 : index
    %c0_10 = arith.constant 0 : index
    %11 = vector.load %arg3[%c0_9, %c0_10] : memref<1x64xf32, #tpu.memory_space<vmem>>, vector<1x64xf32>
    %c0_11 = arith.constant 0 : index
    %c0_12 = arith.constant 0 : index
    %12 = vector.load %arg4[%c0_11, %c0_12] : memref<64x64xf32, #tpu.memory_space<vmem>>, vector<64x64xf32>
    %c0_13 = arith.constant 0 : index
    %c0_14 = arith.constant 0 : index
    %13 = vector.load %arg5[%c0_13, %c0_14] : memref<1x64xf32, #tpu.memory_space<vmem>>, vector<1x64xf32>
    %c0_15 = arith.constant 0 : index
    %c0_16 = arith.constant 0 : index
    %14 = vector.load %arg6[%c0_15, %c0_16] : memref<64x4xf32, #tpu.memory_space<vmem>>, vector<64x4xf32>
    %c0_17 = arith.constant 0 : index
    %c0_18 = arith.constant 0 : index
    %15 = vector.load %arg7[%c0_17, %c0_18] : memref<1x4xf32, #tpu.memory_space<vmem>>, vector<1x4xf32>
    %16 = arith.truncf %10 : vector<192x64xf32> to vector<192x64xbf16>
    "tpu.trace_start"() <{level = 10 : i32, message = "bnm,bmc->bnc"}> : () -> ()
    %cst_19 = arith.constant dense<0.000000e+00> : vector<2x16x192xf32>
    %17 = tpu.matmul %3, %1, %cst_19 {dimension_numbers = #tpu.dot_dimension_numbers<[2], [1], [1], [2], [0, 0, 0, 1, 1, 2], [0], [0]>} : vector<2x16x16xbf16>, vector<2x16x192xbf16>, vector<2x16x192xf32> -> vector<2x16x192xf32>
    "tpu.trace_stop"() : () -> ()
    %18 = vector.broadcast %9 : vector<2x16x1xf32> to vector<2x16x192xf32>
    %19 = arith.mulf %17, %18 : vector<2x16x192xf32>
    %20 = vector.shape_cast %19 : vector<2x16x192xf32> to vector<32x192xf32>
    %21 = arith.truncf %20 : vector<32x192xf32> to vector<32x192xbf16>
    %cst_20 = arith.constant dense<0.000000e+00> : vector<32x64xf32>
    %22 = tpu.matmul %21, %16, %cst_20 {dimension_numbers = #tpu.dot_dimension_numbers<[1], [0], [0], [1], [0, 0, 1, 1], [], []>} : vector<32x192xbf16>, vector<192x64xbf16>, vector<32x64xf32> -> vector<32x64xf32>
    %23 = vector.broadcast %11 : vector<1x64xf32> to vector<32x64xf32>
    %24 = arith.addf %22, %23 : vector<32x64xf32>
    %cst_21 = arith.constant 0.000000e+00 : f32
    %25 = vector.broadcast %cst_21 : f32 to vector<32x64xf32>
    %26 = arith.maximumf %24, %25 : vector<32x64xf32>
    %cst_22 = arith.constant dense<0.000000e+00> : vector<64xf32>
    %27 = vector.multi_reduction <add>, %26, %cst_22 [0] : vector<32x64xf32> to vector<64xf32>
    %28 = vector.shape_cast %27 : vector<64xf32> to vector<1x64xf32>
    %cst_23 = arith.constant 3.200000e+01 : f32
    %29 = vector.broadcast %cst_23 : f32 to vector<1x64xf32>
    %30 = arith.divf %28, %29 : vector<1x64xf32>
    %31 = vector.broadcast %30 : vector<1x64xf32> to vector<32x64xf32>
    %32 = arith.subf %26, %31 : vector<32x64xf32>
    %33 = arith.mulf %32, %32 : vector<32x64xf32>
    %cst_24 = arith.constant dense<0.000000e+00> : vector<64xf32>
    %34 = vector.multi_reduction <add>, %33, %cst_24 [0] : vector<32x64xf32> to vector<64xf32>
    %35 = vector.shape_cast %34 : vector<64xf32> to vector<1x64xf32>
    %cst_25 = arith.constant 3.200000e+01 : f32
    %36 = vector.broadcast %cst_25 : f32 to vector<1x64xf32>
    %37 = arith.divf %35, %36 : vector<1x64xf32>
    %38 = vector.broadcast %30 : vector<1x64xf32> to vector<32x64xf32>
    %39 = arith.subf %26, %38 : vector<32x64xf32>
    %cst_26 = arith.constant 9.99999974E-6 : f32
    %40 = vector.broadcast %cst_26 : f32 to vector<1x64xf32>
    %41 = arith.addf %37, %40 : vector<1x64xf32>
    %42 = math.rsqrt %41 : vector<1x64xf32>
    %43 = vector.broadcast %42 : vector<1x64xf32> to vector<32x64xf32>
    %44 = arith.mulf %39, %43 : vector<32x64xf32>
    %45 = vector.shape_cast %44 : vector<32x64xf32> to vector<2x16x64xf32>
    %46 = arith.truncf %45 : vector<2x16x64xf32> to vector<2x16x64xbf16>
    %c0_27 = arith.constant 0 : index
    %c0_28 = arith.constant 0 : index
    %c0_29 = arith.constant 0 : index
    %47 = vector.load %arg18[%c0_27, %c0_28, %c0_29] : memref<2x16x132xf32, #tpu.memory_space<vmem>>, vector<2x16x64xf32>
    tpu.vector_store %arg18[%c0_27, %c0_28, %c0_29], %45 {strides = array<i32>} : memref<2x16x132xf32, #tpu.memory_space<vmem>>, vector<2x16x64xf32>,
    %48 = arith.truncf %12 : vector<64x64xf32> to vector<64x64xbf16>
    "tpu.trace_start"() <{level = 10 : i32, message = "bnm,bmc->bnc"}> : () -> ()
    %cst_30 = arith.constant dense<0.000000e+00> : vector<2x16x64xf32>
    %49 = tpu.matmul %3, %46, %cst_30 {dimension_numbers = #tpu.dot_dimension_numbers<[2], [1], [1], [2], [0, 0, 0, 1, 1, 2], [0], [0]>} : vector<2x16x16xbf16>, vector<2x16x64xbf16>, vector<2x16x64xf32> -> vector<2x16x64xf32>
    "tpu.trace_stop"() : () -> ()
    %50 = vector.broadcast %9 : vector<2x16x1xf32> to vector<2x16x64xf32>
    %51 = arith.mulf %49, %50 : vector<2x16x64xf32>
    %52 = vector.shape_cast %51 : vector<2x16x64xf32> to vector<32x64xf32>
    %53 = arith.truncf %52 : vector<32x64xf32> to vector<32x64xbf16>
    %cst_31 = arith.constant dense<0.000000e+00> : vector<32x64xf32>
    %54 = tpu.matmul %53, %48, %cst_31 {dimension_numbers = #tpu.dot_dimension_numbers<[1], [0], [0], [1], [0, 0, 1, 1], [], []>} : vector<32x64xbf16>, vector<64x64xbf16>, vector<32x64xf32> -> vector<32x64xf32>
    %55 = vector.broadcast %13 : vector<1x64xf32> to vector<32x64xf32>
    %56 = arith.addf %54, %55 : vector<32x64xf32>
    %cst_32 = arith.constant 0.000000e+00 : f32
    %57 = vector.broadcast %cst_32 : f32 to vector<32x64xf32>
    %58 = arith.maximumf %56, %57 : vector<32x64xf32>
    %cst_33 = arith.constant dense<0.000000e+00> : vector<64xf32>
    %59 = vector.multi_reduction <add>, %58, %cst_33 [0] : vector<32x64xf32> to vector<64xf32>
    %60 = vector.shape_cast %59 : vector<64xf32> to vector<1x64xf32>
    %cst_34 = arith.constant 3.200000e+01 : f32
    %61 = vector.broadcast %cst_34 : f32 to vector<1x64xf32>
    %62 = arith.divf %60, %61 : vector<1x64xf32>
    %63 = vector.broadcast %62 : vector<1x64xf32> to vector<32x64xf32>
    %64 = arith.subf %58, %63 : vector<32x64xf32>
    %65 = arith.mulf %64, %64 : vector<32x64xf32>
    %cst_35 = arith.constant dense<0.000000e+00> : vector<64xf32>
    %66 = vector.multi_reduction <add>, %65, %cst_35 [0] : vector<32x64xf32> to vector<64xf32>
    %67 = vector.shape_cast %66 : vector<64xf32> to vector<1x64xf32>
    %cst_36 = arith.constant 3.200000e+01 : f32
    %68 = vector.broadcast %cst_36 : f32 to vector<1x64xf32>
    %69 = arith.divf %67, %68 : vector<1x64xf32>
    %70 = vector.broadcast %62 : vector<1x64xf32> to vector<32x64xf32>
    %71 = arith.subf %58, %70 : vector<32x64xf32>
    %cst_37 = arith.constant 9.99999974E-6 : f32
    %72 = vector.broadcast %cst_37 : f32 to vector<1x64xf32>
    %73 = arith.addf %69, %72 : vector<1x64xf32>
    %74 = math.rsqrt %73 : vector<1x64xf32>
    %75 = vector.broadcast %74 : vector<1x64xf32> to vector<32x64xf32>
    %76 = arith.mulf %71, %75 : vector<32x64xf32>
    %77 = vector.shape_cast %76 : vector<32x64xf32> to vector<2x16x64xf32>
    %78 = arith.truncf %77 : vector<2x16x64xf32> to vector<2x16x64xbf16>
    %c0_38 = arith.constant 0 : index
    %c0_39 = arith.constant 0 : index
    %c64 = arith.constant 64 : index
    %79 = vector.load %arg18[%c0_38, %c0_39, %c64] : memref<2x16x132xf32, #tpu.memory_space<vmem>>, vector<2x16x64xf32>
    tpu.vector_store %arg18[%c0_38, %c0_39, %c64], %77 {strides = array<i32>} : memref<2x16x132xf32, #tpu.memory_space<vmem>>, vector<2x16x64xf32>,
    %80 = arith.truncf %14 : vector<64x4xf32> to vector<64x4xbf16>
    "tpu.trace_start"() <{level = 10 : i32, message = "bnm,bmc->bnc"}> : () -> ()
    %cst_40 = arith.constant dense<0.000000e+00> : vector<2x16x64xf32>
    %81 = tpu.matmul %3, %78, %cst_40 {dimension_numbers = #tpu.dot_dimension_numbers<[2], [1], [1], [2], [0, 0, 0, 1, 1, 2], [0], [0]>} : vector<2x16x16xbf16>, vector<2x16x64xbf16>, vector<2x16x64xf32> -> vector<2x16x64xf32>
    "tpu.trace_stop"() : () -> ()
    %82 = vector.broadcast %9 : vector<2x16x1xf32> to vector<2x16x64xf32>
    %83 = arith.mulf %81, %82 : vector<2x16x64xf32>
    %84 = vector.shape_cast %83 : vector<2x16x64xf32> to vector<32x64xf32>
    %85 = arith.truncf %84 : vector<32x64xf32> to vector<32x64xbf16>
    %cst_41 = arith.constant dense<0.000000e+00> : vector<32x4xf32>
    %86 = tpu.matmul %85, %80, %cst_41 {dimension_numbers = #tpu.dot_dimension_numbers<[1], [0], [0], [1], [0, 0, 1, 1], [], []>} : vector<32x64xbf16>, vector<64x4xbf16>, vector<32x4xf32> -> vector<32x4xf32>
    %87 = vector.broadcast %15 : vector<1x4xf32> to vector<32x4xf32>
    %88 = arith.addf %86, %87 : vector<32x4xf32>
    %cst_42 = arith.constant 0.000000e+00 : f32
    %89 = vector.broadcast %cst_42 : f32 to vector<32x4xf32>
    %90 = arith.maximumf %88, %89 : vector<32x4xf32>
    %cst_43 = arith.constant dense<0.000000e+00> : vector<4xf32>
    %91 = vector.multi_reduction <add>, %90, %cst_43 [0] : vector<32x4xf32> to vector<4xf32>
    %92 = vector.shape_cast %91 : vector<4xf32> to vector<1x4xf32>
    %cst_44 = arith.constant 3.200000e+01 : f32
    %93 = vector.broadcast %cst_44 : f32 to vector<1x4xf32>
    %94 = arith.divf %92, %93 : vector<1x4xf32>
    %95 = vector.broadcast %94 : vector<1x4xf32> to vector<32x4xf32>
    %96 = arith.subf %90, %95 : vector<32x4xf32>
    %97 = arith.mulf %96, %96 : vector<32x4xf32>
    %cst_45 = arith.constant dense<0.000000e+00> : vector<4xf32>
    %98 = vector.multi_reduction <add>, %97, %cst_45 [0] : vector<32x4xf32> to vector<4xf32>
    %99 = vector.shape_cast %98 : vector<4xf32> to vector<1x4xf32>
    %cst_46 = arith.constant 3.200000e+01 : f32
    %100 = vector.broadcast %cst_46 : f32 to vector<1x4xf32>
    %101 = arith.divf %99, %100 : vector<1x4xf32>
    %102 = vector.broadcast %94 : vector<1x4xf32> to vector<32x4xf32>
    %103 = arith.subf %90, %102 : vector<32x4xf32>
    %cst_47 = arith.constant 9.99999974E-6 : f32
    %104 = vector.broadcast %cst_47 : f32 to vector<1x4xf32>
    %105 = arith.addf %101, %104 : vector<1x4xf32>
    %106 = math.rsqrt %105 : vector<1x4xf32>
    %107 = vector.broadcast %106 : vector<1x4xf32> to vector<32x4xf32>
    %108 = arith.mulf %103, %107 : vector<32x4xf32>
    %109 = vector.shape_cast %108 : vector<32x4xf32> to vector<2x16x4xf32>
    %c0_48 = arith.constant 0 : index
    %c0_49 = arith.constant 0 : index
    %c128 = arith.constant 128 : index
    %110 = vector.load %arg18[%c0_48, %c0_49, %c128] : memref<2x16x132xf32, #tpu.memory_space<vmem>>, vector<2x16x4xf32>
    tpu.vector_store %arg18[%c0_48, %c0_49, %c128], %109 {strides = array<i32>} : memref<2x16x132xf32, #tpu.memory_space<vmem>>, vector<2x16x4xf32>,
    %c0_50 = arith.constant 0 : index
    %c0_51 = arith.constant 0 : index
    %c0_52 = arith.constant 0 : index
    %111 = vector.load %arg18[%c0_50, %c0_51, %c0_52] : memref<2x16x132xf32, #tpu.memory_space<vmem>>, vector<2x16x132xf32>
    %112 = vector.shape_cast %111 : vector<2x16x132xf32> to vector<32x132xf32>
    %113 = arith.truncf %112 : vector<32x132xf32> to vector<32x132xbf16>
    %c0_53 = arith.constant 0 : index
    %c0_54 = arith.constant 0 : index
    %114 = vector.load %arg8[%c0_53, %c0_54] : memref<132x4xf32, #tpu.memory_space<vmem>>, vector<132x4xf32>
    %115 = arith.truncf %114 : vector<132x4xf32> to vector<132x4xbf16>
    %cst_55 = arith.constant dense<0.000000e+00> : vector<32x4xf32>
    %116 = tpu.matmul %113, %115, %cst_55 {dimension_numbers = #tpu.dot_dimension_numbers<[1], [0], [0], [1], [0, 0, 1, 1], [], []>} : vector<32x132xbf16>, vector<132x4xbf16>, vector<32x4xf32> -> vector<32x4xf32>
    %c0_56 = arith.constant 0 : index
    %c0_57 = arith.constant 0 : index
    %117 = vector.load %arg9[%c0_56, %c0_57] : memref<1x4xf32, #tpu.memory_space<vmem>>, vector<1x4xf32>
    %118 = vector.broadcast %117 : vector<1x4xf32> to vector<32x4xf32>
    %119 = arith.addf %116, %118 : vector<32x4xf32>
    %cst_58 = arith.constant 0.000000e+00 : f32
    %120 = vector.broadcast %cst_58 : f32 to vector<32x4xf32>
    %121 = arith.maximumf %119, %120 : vector<32x4xf32>
    %cst_59 = arith.constant dense<0xFF800000> : vector<32xf32>
    %122 = vector.multi_reduction <maximumf>, %121, %cst_59 [1] : vector<32x4xf32> to vector<32xf32>
    %cst_60 = arith.constant 0xFF800000 : f32
    %123 = vector.broadcast %cst_60 : f32 to vector<32xf32>
    %124 = arith.maximumf %123, %122 : vector<32xf32>
    %125 = vector.shape_cast %124 : vector<32xf32> to vector<32x1xf32>
    %126 = vector.broadcast %125 : vector<32x1xf32> to vector<32x4xf32>
    %127 = arith.subf %121, %126 : vector<32x4xf32>
    %128 = math.exp %127 : vector<32x4xf32>
    %cst_61 = arith.constant dense<0.000000e+00> : vector<32xf32>
    %129 = vector.multi_reduction <add>, %128, %cst_61 [1] : vector<32x4xf32> to vector<32xf32>
    %130 = vector.shape_cast %129 : vector<32xf32> to vector<32x1xf32>
    %131 = vector.broadcast %130 : vector<32x1xf32> to vector<32x4xf32>
    %132 = arith.divf %128, %131 : vector<32x4xf32>
    %133 = vector.shape_cast %132 : vector<32x4xf32> to vector<2x16x4xf32>
    %134 = arith.truncf %133 : vector<2x16x4xf32> to vector<2x16x4xbf16>
    %c0_62 = arith.constant 0 : index
    %c0_63 = arith.constant 0 : index
    %135 = vector.load %arg10[%c0_62, %c0_63] : memref<192x64xf32, #tpu.memory_space<vmem>>, vector<192x64xf32>
    %c0_64 = arith.constant 0 : index
    %c0_65 = arith.constant 0 : index
    %136 = vector.load %arg11[%c0_64, %c0_65] : memref<1x64xf32, #tpu.memory_space<vmem>>, vector<1x64xf32>
    %c0_66 = arith.constant 0 : index
    %c0_67 = arith.constant 0 : index
    %137 = vector.load %arg12[%c0_66, %c0_67] : memref<64x64xf32, #tpu.memory_space<vmem>>, vector<64x64xf32>
    %c0_68 = arith.constant 0 : index
    %c0_69 = arith.constant 0 : index
    %138 = vector.load %arg13[%c0_68, %c0_69] : memref<1x64xf32, #tpu.memory_space<vmem>>, vector<1x64xf32>
    %c0_70 = arith.constant 0 : index
    %c0_71 = arith.constant 0 : index
    %139 = vector.load %arg14[%c0_70, %c0_71] : memref<64x64xf32, #tpu.memory_space<vmem>>, vector<64x64xf32>
    %c0_72 = arith.constant 0 : index
    %c0_73 = arith.constant 0 : index
    %140 = vector.load %arg15[%c0_72, %c0_73] : memref<1x64xf32, #tpu.memory_space<vmem>>, vector<1x64xf32>
    %141 = arith.truncf %135 : vector<192x64xf32> to vector<192x64xbf16>
    "tpu.trace_start"() <{level = 10 : i32, message = "bnm,bmc->bnc"}> : () -> ()
    %cst_74 = arith.constant dense<0.000000e+00> : vector<2x16x192xf32>
    %142 = tpu.matmul %3, %1, %cst_74 {dimension_numbers = #tpu.dot_dimension_numbers<[2], [1], [1], [2], [0, 0, 0, 1, 1, 2], [0], [0]>} : vector<2x16x16xbf16>, vector<2x16x192xbf16>, vector<2x16x192xf32> -> vector<2x16x192xf32>
    "tpu.trace_stop"() : () -> ()
    %143 = vector.broadcast %9 : vector<2x16x1xf32> to vector<2x16x192xf32>
    %144 = arith.mulf %142, %143 : vector<2x16x192xf32>
    %145 = vector.shape_cast %144 : vector<2x16x192xf32> to vector<32x192xf32>
    %146 = arith.truncf %145 : vector<32x192xf32> to vector<32x192xbf16>
    %cst_75 = arith.constant dense<0.000000e+00> : vector<32x64xf32>
    %147 = tpu.matmul %146, %141, %cst_75 {dimension_numbers = #tpu.dot_dimension_numbers<[1], [0], [0], [1], [0, 0, 1, 1], [], []>} : vector<32x192xbf16>, vector<192x64xbf16>, vector<32x64xf32> -> vector<32x64xf32>
    %148 = vector.broadcast %136 : vector<1x64xf32> to vector<32x64xf32>
    %149 = arith.addf %147, %148 : vector<32x64xf32>
    %cst_76 = arith.constant 0.000000e+00 : f32
    %150 = vector.broadcast %cst_76 : f32 to vector<32x64xf32>
    %151 = arith.maximumf %149, %150 : vector<32x64xf32>
    %cst_77 = arith.constant dense<0.000000e+00> : vector<64xf32>
    %152 = vector.multi_reduction <add>, %151, %cst_77 [0] : vector<32x64xf32> to vector<64xf32>
    %153 = vector.shape_cast %152 : vector<64xf32> to vector<1x64xf32>
    %cst_78 = arith.constant 3.200000e+01 : f32
    %154 = vector.broadcast %cst_78 : f32 to vector<1x64xf32>
    %155 = arith.divf %153, %154 : vector<1x64xf32>
    %156 = vector.broadcast %155 : vector<1x64xf32> to vector<32x64xf32>
    %157 = arith.subf %151, %156 : vector<32x64xf32>
    %158 = arith.mulf %157, %157 : vector<32x64xf32>
    %cst_79 = arith.constant dense<0.000000e+00> : vector<64xf32>
    %159 = vector.multi_reduction <add>, %158, %cst_79 [0] : vector<32x64xf32> to vector<64xf32>
    %160 = vector.shape_cast %159 : vector<64xf32> to vector<1x64xf32>
    %cst_80 = arith.constant 3.200000e+01 : f32
    %161 = vector.broadcast %cst_80 : f32 to vector<1x64xf32>
    %162 = arith.divf %160, %161 : vector<1x64xf32>
    %163 = vector.broadcast %155 : vector<1x64xf32> to vector<32x64xf32>
    %164 = arith.subf %151, %163 : vector<32x64xf32>
    %cst_81 = arith.constant 9.99999974E-6 : f32
    %165 = vector.broadcast %cst_81 : f32 to vector<1x64xf32>
    %166 = arith.addf %162, %165 : vector<1x64xf32>
    %167 = math.rsqrt %166 : vector<1x64xf32>
    %168 = vector.broadcast %167 : vector<1x64xf32> to vector<32x64xf32>
    %169 = arith.mulf %164, %168 : vector<32x64xf32>
    %170 = vector.shape_cast %169 : vector<32x64xf32> to vector<2x16x64xf32>
    %171 = arith.truncf %170 : vector<2x16x64xf32> to vector<2x16x64xbf16>
    %c0_82 = arith.constant 0 : index
    %c0_83 = arith.constant 0 : index
    %c0_84 = arith.constant 0 : index
    %172 = vector.load %arg19[%c0_82, %c0_83, %c0_84] : memref<2x16x192xf32, #tpu.memory_space<vmem>>, vector<2x16x64xf32>
    tpu.vector_store %arg19[%c0_82, %c0_83, %c0_84], %170 {strides = array<i32>} : memref<2x16x192xf32, #tpu.memory_space<vmem>>, vector<2x16x64xf32>,
    %173 = arith.truncf %137 : vector<64x64xf32> to vector<64x64xbf16>
    "tpu.trace_start"() <{level = 10 : i32, message = "bnm,bmc->bnc"}> : () -> ()
    %cst_85 = arith.constant dense<0.000000e+00> : vector<2x16x64xf32>
    %174 = tpu.matmul %3, %171, %cst_85 {dimension_numbers = #tpu.dot_dimension_numbers<[2], [1], [1], [2], [0, 0, 0, 1, 1, 2], [0], [0]>} : vector<2x16x16xbf16>, vector<2x16x64xbf16>, vector<2x16x64xf32> -> vector<2x16x64xf32>
    "tpu.trace_stop"() : () -> ()
    %175 = vector.broadcast %9 : vector<2x16x1xf32> to vector<2x16x64xf32>
    %176 = arith.mulf %174, %175 : vector<2x16x64xf32>
    %177 = vector.shape_cast %176 : vector<2x16x64xf32> to vector<32x64xf32>
    %178 = arith.truncf %177 : vector<32x64xf32> to vector<32x64xbf16>
    %cst_86 = arith.constant dense<0.000000e+00> : vector<32x64xf32>
    %179 = tpu.matmul %178, %173, %cst_86 {dimension_numbers = #tpu.dot_dimension_numbers<[1], [0], [0], [1], [0, 0, 1, 1], [], []>} : vector<32x64xbf16>, vector<64x64xbf16>, vector<32x64xf32> -> vector<32x64xf32>
    %180 = vector.broadcast %138 : vector<1x64xf32> to vector<32x64xf32>
    %181 = arith.addf %179, %180 : vector<32x64xf32>
    %cst_87 = arith.constant 0.000000e+00 : f32
    %182 = vector.broadcast %cst_87 : f32 to vector<32x64xf32>
    %183 = arith.maximumf %181, %182 : vector<32x64xf32>
    %cst_88 = arith.constant dense<0.000000e+00> : vector<64xf32>
    %184 = vector.multi_reduction <add>, %183, %cst_88 [0] : vector<32x64xf32> to vector<64xf32>
    %185 = vector.shape_cast %184 : vector<64xf32> to vector<1x64xf32>
    %cst_89 = arith.constant 3.200000e+01 : f32
    %186 = vector.broadcast %cst_89 : f32 to vector<1x64xf32>
    %187 = arith.divf %185, %186 : vector<1x64xf32>
    %188 = vector.broadcast %187 : vector<1x64xf32> to vector<32x64xf32>
    %189 = arith.subf %183, %188 : vector<32x64xf32>
    %190 = arith.mulf %189, %189 : vector<32x64xf32>
    %cst_90 = arith.constant dense<0.000000e+00> : vector<64xf32>
    %191 = vector.multi_reduction <add>, %190, %cst_90 [0] : vector<32x64xf32> to vector<64xf32>
    %192 = vector.shape_cast %191 : vector<64xf32> to vector<1x64xf32>
    %cst_91 = arith.constant 3.200000e+01 : f32
    %193 = vector.broadcast %cst_91 : f32 to vector<1x64xf32>
    %194 = arith.divf %192, %193 : vector<1x64xf32>
    %195 = vector.broadcast %187 : vector<1x64xf32> to vector<32x64xf32>
    %196 = arith.subf %183, %195 : vector<32x64xf32>
    %cst_92 = arith.constant 9.99999974E-6 : f32
    %197 = vector.broadcast %cst_92 : f32 to vector<1x64xf32>
    %198 = arith.addf %194, %197 : vector<1x64xf32>
    %199 = math.rsqrt %198 : vector<1x64xf32>
    %200 = vector.broadcast %199 : vector<1x64xf32> to vector<32x64xf32>
    %201 = arith.mulf %196, %200 : vector<32x64xf32>
    %202 = vector.shape_cast %201 : vector<32x64xf32> to vector<2x16x64xf32>
    %203 = arith.truncf %202 : vector<2x16x64xf32> to vector<2x16x64xbf16>
    %c0_93 = arith.constant 0 : index
    %c0_94 = arith.constant 0 : index
    %c64_95 = arith.constant 64 : index
    %204 = vector.load %arg19[%c0_93, %c0_94, %c64_95] : memref<2x16x192xf32, #tpu.memory_space<vmem>>, vector<2x16x64xf32>
    tpu.vector_store %arg19[%c0_93, %c0_94, %c64_95], %202 {strides = array<i32>} : memref<2x16x192xf32, #tpu.memory_space<vmem>>, vector<2x16x64xf32>,
    %205 = arith.truncf %139 : vector<64x64xf32> to vector<64x64xbf16>
    "tpu.trace_start"() <{level = 10 : i32, message = "bnm,bmc->bnc"}> : () -> ()
    %cst_96 = arith.constant dense<0.000000e+00> : vector<2x16x64xf32>
    %206 = tpu.matmul %3, %203, %cst_96 {dimension_numbers = #tpu.dot_dimension_numbers<[2], [1], [1], [2], [0, 0, 0, 1, 1, 2], [0], [0]>} : vector<2x16x16xbf16>, vector<2x16x64xbf16>, vector<2x16x64xf32> -> vector<2x16x64xf32>
    "tpu.trace_stop"() : () -> ()
    %207 = vector.broadcast %9 : vector<2x16x1xf32> to vector<2x16x64xf32>
    %208 = arith.mulf %206, %207 : vector<2x16x64xf32>
    %209 = vector.shape_cast %208 : vector<2x16x64xf32> to vector<32x64xf32>
    %210 = arith.truncf %209 : vector<32x64xf32> to vector<32x64xbf16>
    %cst_97 = arith.constant dense<0.000000e+00> : vector<32x64xf32>
    %211 = tpu.matmul %210, %205, %cst_97 {dimension_numbers = #tpu.dot_dimension_numbers<[1], [0], [0], [1], [0, 0, 1, 1], [], []>} : vector<32x64xbf16>, vector<64x64xbf16>, vector<32x64xf32> -> vector<32x64xf32>
    %212 = vector.broadcast %140 : vector<1x64xf32> to vector<32x64xf32>
    %213 = arith.addf %211, %212 : vector<32x64xf32>
    %cst_98 = arith.constant 0.000000e+00 : f32
    %214 = vector.broadcast %cst_98 : f32 to vector<32x64xf32>
    %215 = arith.maximumf %213, %214 : vector<32x64xf32>
    %cst_99 = arith.constant dense<0.000000e+00> : vector<64xf32>
    %216 = vector.multi_reduction <add>, %215, %cst_99 [0] : vector<32x64xf32> to vector<64xf32>
    %217 = vector.shape_cast %216 : vector<64xf32> to vector<1x64xf32>
    %cst_100 = arith.constant 3.200000e+01 : f32
    %218 = vector.broadcast %cst_100 : f32 to vector<1x64xf32>
    %219 = arith.divf %217, %218 : vector<1x64xf32>
    %220 = vector.broadcast %219 : vector<1x64xf32> to vector<32x64xf32>
    %221 = arith.subf %215, %220 : vector<32x64xf32>
    %222 = arith.mulf %221, %221 : vector<32x64xf32>
    %cst_101 = arith.constant dense<0.000000e+00> : vector<64xf32>
    %223 = vector.multi_reduction <add>, %222, %cst_101 [0] : vector<32x64xf32> to vector<64xf32>
    %224 = vector.shape_cast %223 : vector<64xf32> to vector<1x64xf32>
    %cst_102 = arith.constant 3.200000e+01 : f32
    %225 = vector.broadcast %cst_102 : f32 to vector<1x64xf32>
    %226 = arith.divf %224, %225 : vector<1x64xf32>
    %227 = vector.broadcast %219 : vector<1x64xf32> to vector<32x64xf32>
    %228 = arith.subf %215, %227 : vector<32x64xf32>
    %cst_103 = arith.constant 9.99999974E-6 : f32
    %229 = vector.broadcast %cst_103 : f32 to vector<1x64xf32>
    %230 = arith.addf %226, %229 : vector<1x64xf32>
    %231 = math.rsqrt %230 : vector<1x64xf32>
    %232 = vector.broadcast %231 : vector<1x64xf32> to vector<32x64xf32>
    %233 = arith.mulf %228, %232 : vector<32x64xf32>
    %234 = vector.shape_cast %233 : vector<32x64xf32> to vector<2x16x64xf32>
    %c0_104 = arith.constant 0 : index
    %c0_105 = arith.constant 0 : index
    %c128_106 = arith.constant 128 : index
    %235 = vector.load %arg19[%c0_104, %c0_105, %c128_106] : memref<2x16x192xf32, #tpu.memory_space<vmem>>, vector<2x16x64xf32>
    tpu.vector_store %arg19[%c0_104, %c0_105, %c128_106], %234 {strides = array<i32>} : memref<2x16x192xf32, #tpu.memory_space<vmem>>, vector<2x16x64xf32>,
    %c0_107 = arith.constant 0 : index
    %c0_108 = arith.constant 0 : index
    %c0_109 = arith.constant 0 : index
    %236 = vector.load %arg19[%c0_107, %c0_108, %c0_109] : memref<2x16x192xf32, #tpu.memory_space<vmem>>, vector<2x16x192xf32>
    %237 = arith.truncf %236 : vector<2x16x192xf32> to vector<2x16x192xbf16>
    "tpu.trace_start"() <{level = 10 : i32, message = "bnk,bnc->bkc"}> : () -> ()
    %cst_110 = arith.constant dense<0.000000e+00> : vector<2x4x192xf32>
    %238 = tpu.matmul %134, %237, %cst_110 {dimension_numbers = #tpu.dot_dimension_numbers<[1], [1], [2], [2], [0, 0, 0, 2, 1, 2], [0], [0]>} : vector<2x16x4xbf16>, vector<2x16x192xbf16>, vector<2x4x192xf32> -> vector<2x4x192xf32>
    "tpu.trace_stop"() : () -> ()
    %c0_111 = arith.constant 0 : index
    %c0_112 = arith.constant 0 : index
    %c0_113 = arith.constant 0 : index
    %239 = vector.load %arg16[%c0_111, %c0_112, %c0_113] : memref<2x4x192xf32, #tpu.memory_space<vmem>>, vector<2x4x192xf32>
    tpu.vector_store %arg16[%c0_111, %c0_112, %c0_113], %238 {strides = array<i32>} : memref<2x4x192xf32, #tpu.memory_space<vmem>>, vector<2x4x192xf32>,
    "tpu.trace_start"() <{level = 10 : i32, message = "bnk,bnm->bkm"}> : () -> ()
    %cst_114 = arith.constant dense<0.000000e+00> : vector<2x4x16xf32>
    %240 = tpu.matmul %134, %3, %cst_114 {dimension_numbers = #tpu.dot_dimension_numbers<[1], [1], [2], [2], [0, 0, 0, 2, 1, 2], [0], [0]>} : vector<2x16x4xbf16>, vector<2x16x16xbf16>, vector<2x4x16xf32> -> vector<2x4x16xf32>
    "tpu.trace_stop"() : () -> ()
    %241 = arith.truncf %240 : vector<2x4x16xf32> to vector<2x4x16xbf16>
    "tpu.trace_start"() <{level = 10 : i32, message = "bkm,bmc->bkc"}> : () -> ()
    %cst_115 = arith.constant dense<0.000000e+00> : vector<2x4x4xf32>
    %242 = tpu.matmul %241, %134, %cst_115 {dimension_numbers = #tpu.dot_dimension_numbers<[2], [1], [1], [2], [0, 0, 0, 1, 1, 2], [0], [0]>} : vector<2x4x16xbf16>, vector<2x16x4xbf16>, vector<2x4x4xf32> -> vector<2x4x4xf32>
    "tpu.trace_stop"() : () -> ()
    %c0_116 = arith.constant 0 : index
    %c0_117 = arith.constant 0 : index
    %c0_118 = arith.constant 0 : index
    %243 = vector.load %arg17[%c0_116, %c0_117, %c0_118] : memref<2x4x4xf32, #tpu.memory_space<vmem>>, vector<2x4x4xf32>
    tpu.vector_store %arg17[%c0_116, %c0_117, %c0_118], %242 {strides = array<i32>} : memref<2x4x4xf32, #tpu.memory_space<vmem>>, vector<2x4x4xf32>,
    return
  }
}

module attributes {stable_mosaic.version = 11 : i64} {
  func.func @kernel(%arg0: memref<2x64x3xf32, #tpu.memory_space<vmem>>, %arg1: memref<2x64x64xbf16, #tpu.memory_space<vmem>>, %arg2: memref<3x64xf32, #tpu.memory_space<vmem>>, %arg3: memref<1x64xf32, #tpu.memory_space<vmem>>, %arg4: memref<64x64xf32, #tpu.memory_space<vmem>>, %arg5: memref<1x64xf32, #tpu.memory_space<vmem>>, %arg6: memref<64x16xf32, #tpu.memory_space<vmem>>, %arg7: memref<1x16xf32, #tpu.memory_space<vmem>>, %arg8: memref<144x16xf32, #tpu.memory_space<vmem>>, %arg9: memref<1x16xf32, #tpu.memory_space<vmem>>, %arg10: memref<3x64xf32, #tpu.memory_space<vmem>>, %arg11: memref<1x64xf32, #tpu.memory_space<vmem>>, %arg12: memref<64x64xf32, #tpu.memory_space<vmem>>, %arg13: memref<1x64xf32, #tpu.memory_space<vmem>>, %arg14: memref<64x64xf32, #tpu.memory_space<vmem>>, %arg15: memref<1x64xf32, #tpu.memory_space<vmem>>, %arg16: memref<2x16x192xf32, #tpu.memory_space<vmem>>, %arg17: memref<2x16x16xf32, #tpu.memory_space<vmem>>, %arg18: memref<2x64x144xf32, #tpu.memory_space<vmem>>, %arg19: memref<2x64x192xf32, #tpu.memory_space<vmem>>) attributes {dimension_semantics = [], scalar_prefetch = 0 : i64, scratch_operands = 2 : i64, tpu.core_type = #tpu.core_type<tc>} {
    %c0 = arith.constant 0 : index
    %c0_0 = arith.constant 0 : index
    %c0_1 = arith.constant 0 : index
    %0 = vector.load %arg0[%c0, %c0_0, %c0_1] : memref<2x64x3xf32, #tpu.memory_space<vmem>>, vector<2x64x3xf32>
    %1 = arith.truncf %0 : vector<2x64x3xf32> to vector<2x64x3xbf16>
    %c0_2 = arith.constant 0 : index
    %c0_3 = arith.constant 0 : index
    %c0_4 = arith.constant 0 : index
    %2 = vector.load %arg1[%c0_2, %c0_3, %c0_4] : memref<2x64x64xbf16, #tpu.memory_space<vmem>>, vector<2x64x64xbf16>
    %cst = arith.constant 1.000000e+00 : bf16
    %3 = vector.broadcast %cst : bf16 to vector<64x1xbf16>
    %4 = vector.shape_cast %2 : vector<2x64x64xbf16> to vector<128x64xbf16>
    %cst_5 = arith.constant dense<0.000000e+00> : vector<128x1xf32>
    %5 = tpu.matmul %4, %3, %cst_5 {dimension_numbers = #tpu.dot_dimension_numbers<[1], [0], [0], [1], [0, 0, 1, 1], [], []>} : vector<128x64xbf16>, vector<64x1xbf16>, vector<128x1xf32> -> vector<128x1xf32>
    %6 = vector.shape_cast %5 : vector<128x1xf32> to vector<2x64x1xf32>
    %cst_6 = arith.constant 1.000000e+00 : f32
    %7 = vector.broadcast %cst_6 : f32 to vector<2x64x1xf32>
    %8 = arith.addf %6, %7 : vector<2x64x1xf32>
    %cst_7 = arith.constant 1.000000e+00 : f32
    %9 = vector.broadcast %cst_7 : f32 to vector<2x64x1xf32>
    %10 = arith.maximumf %8, %9 : vector<2x64x1xf32>
    %cst_8 = arith.constant 1.000000e+00 : f32
    %11 = vector.broadcast %cst_8 : f32 to vector<2x64x1xf32>
    %12 = arith.divf %11, %10 : vector<2x64x1xf32>
    %c0_9 = arith.constant 0 : index
    %c0_10 = arith.constant 0 : index
    %13 = vector.load %arg2[%c0_9, %c0_10] : memref<3x64xf32, #tpu.memory_space<vmem>>, vector<3x64xf32>
    %c0_11 = arith.constant 0 : index
    %c0_12 = arith.constant 0 : index
    %14 = vector.load %arg3[%c0_11, %c0_12] : memref<1x64xf32, #tpu.memory_space<vmem>>, vector<1x64xf32>
    %c0_13 = arith.constant 0 : index
    %c0_14 = arith.constant 0 : index
    %15 = vector.load %arg4[%c0_13, %c0_14] : memref<64x64xf32, #tpu.memory_space<vmem>>, vector<64x64xf32>
    %c0_15 = arith.constant 0 : index
    %c0_16 = arith.constant 0 : index
    %16 = vector.load %arg5[%c0_15, %c0_16] : memref<1x64xf32, #tpu.memory_space<vmem>>, vector<1x64xf32>
    %c0_17 = arith.constant 0 : index
    %c0_18 = arith.constant 0 : index
    %17 = vector.load %arg6[%c0_17, %c0_18] : memref<64x16xf32, #tpu.memory_space<vmem>>, vector<64x16xf32>
    %c0_19 = arith.constant 0 : index
    %c0_20 = arith.constant 0 : index
    %18 = vector.load %arg7[%c0_19, %c0_20] : memref<1x16xf32, #tpu.memory_space<vmem>>, vector<1x16xf32>
    %19 = arith.truncf %13 : vector<3x64xf32> to vector<3x64xbf16>
    %20 = vector.shape_cast %1 : vector<2x64x3xbf16> to vector<128x3xbf16>
    %cst_21 = arith.constant dense<0.000000e+00> : vector<128x64xf32>
    %21 = tpu.matmul %20, %19, %cst_21 {dimension_numbers = #tpu.dot_dimension_numbers<[1], [0], [0], [1], [0, 0, 1, 1], [], []>} : vector<128x3xbf16>, vector<3x64xbf16>, vector<128x64xf32> -> vector<128x64xf32>
    %22 = vector.shape_cast %21 : vector<128x64xf32> to vector<2x64x64xf32>
    %23 = arith.truncf %22 : vector<2x64x64xf32> to vector<2x64x64xbf16>
    "tpu.trace_start"() <{level = 10 : i32, message = "bnm,bmc->bnc"}> : () -> ()
    %cst_22 = arith.constant dense<0.000000e+00> : vector<2x64x64xf32>
    %24 = tpu.matmul %2, %23, %cst_22 {dimension_numbers = #tpu.dot_dimension_numbers<[2], [1], [1], [2], [0, 0, 0, 1, 1, 2], [0], [0]>} : vector<2x64x64xbf16>, vector<2x64x64xbf16>, vector<2x64x64xf32> -> vector<2x64x64xf32>
    "tpu.trace_stop"() : () -> ()
    %25 = arith.addf %24, %22 : vector<2x64x64xf32>
    %26 = vector.broadcast %12 : vector<2x64x1xf32> to vector<2x64x64xf32>
    %27 = arith.mulf %25, %26 : vector<2x64x64xf32>
    %28 = vector.shape_cast %27 : vector<2x64x64xf32> to vector<128x64xf32>
    %29 = vector.broadcast %14 : vector<1x64xf32> to vector<128x64xf32>
    %30 = arith.addf %28, %29 : vector<128x64xf32>
    %cst_23 = arith.constant 0.000000e+00 : f32
    %31 = vector.broadcast %cst_23 : f32 to vector<128x64xf32>
    %32 = arith.maximumf %30, %31 : vector<128x64xf32>
    %cst_24 = arith.constant dense<0.000000e+00> : vector<64xf32>
    %33 = vector.multi_reduction <add>, %32, %cst_24 [0] : vector<128x64xf32> to vector<64xf32>
    %34 = vector.shape_cast %33 : vector<64xf32> to vector<1x64xf32>
    %cst_25 = arith.constant 1.280000e+02 : f32
    %35 = vector.broadcast %cst_25 : f32 to vector<1x64xf32>
    %36 = arith.divf %34, %35 : vector<1x64xf32>
    %37 = vector.broadcast %36 : vector<1x64xf32> to vector<128x64xf32>
    %38 = arith.subf %32, %37 : vector<128x64xf32>
    %39 = arith.mulf %38, %38 : vector<128x64xf32>
    %cst_26 = arith.constant dense<0.000000e+00> : vector<64xf32>
    %40 = vector.multi_reduction <add>, %39, %cst_26 [0] : vector<128x64xf32> to vector<64xf32>
    %41 = vector.shape_cast %40 : vector<64xf32> to vector<1x64xf32>
    %cst_27 = arith.constant 1.280000e+02 : f32
    %42 = vector.broadcast %cst_27 : f32 to vector<1x64xf32>
    %43 = arith.divf %41, %42 : vector<1x64xf32>
    %44 = vector.broadcast %36 : vector<1x64xf32> to vector<128x64xf32>
    %45 = arith.subf %32, %44 : vector<128x64xf32>
    %cst_28 = arith.constant 9.99999974E-6 : f32
    %46 = vector.broadcast %cst_28 : f32 to vector<1x64xf32>
    %47 = arith.addf %43, %46 : vector<1x64xf32>
    %48 = math.rsqrt %47 : vector<1x64xf32>
    %49 = vector.broadcast %48 : vector<1x64xf32> to vector<128x64xf32>
    %50 = arith.mulf %45, %49 : vector<128x64xf32>
    %51 = vector.shape_cast %50 : vector<128x64xf32> to vector<2x64x64xf32>
    %52 = arith.truncf %51 : vector<2x64x64xf32> to vector<2x64x64xbf16>
    %c0_29 = arith.constant 0 : index
    %c0_30 = arith.constant 0 : index
    %c0_31 = arith.constant 0 : index
    %53 = vector.load %arg18[%c0_29, %c0_30, %c0_31] : memref<2x64x144xf32, #tpu.memory_space<vmem>>, vector<2x64x64xf32>
    tpu.vector_store %arg18[%c0_29, %c0_30, %c0_31], %51 {strides = array<i32>} : memref<2x64x144xf32, #tpu.memory_space<vmem>>, vector<2x64x64xf32>,
    %54 = arith.truncf %15 : vector<64x64xf32> to vector<64x64xbf16>
    "tpu.trace_start"() <{level = 10 : i32, message = "bnm,bmc->bnc"}> : () -> ()
    %cst_32 = arith.constant dense<0.000000e+00> : vector<2x64x64xf32>
    %55 = tpu.matmul %2, %52, %cst_32 {dimension_numbers = #tpu.dot_dimension_numbers<[2], [1], [1], [2], [0, 0, 0, 1, 1, 2], [0], [0]>} : vector<2x64x64xbf16>, vector<2x64x64xbf16>, vector<2x64x64xf32> -> vector<2x64x64xf32>
    "tpu.trace_stop"() : () -> ()
    %56 = arith.extf %52 : vector<2x64x64xbf16> to vector<2x64x64xf32>
    %57 = arith.addf %55, %56 : vector<2x64x64xf32>
    %58 = vector.broadcast %12 : vector<2x64x1xf32> to vector<2x64x64xf32>
    %59 = arith.mulf %57, %58 : vector<2x64x64xf32>
    %60 = vector.shape_cast %59 : vector<2x64x64xf32> to vector<128x64xf32>
    %61 = arith.truncf %60 : vector<128x64xf32> to vector<128x64xbf16>
    %cst_33 = arith.constant dense<0.000000e+00> : vector<128x64xf32>
    %62 = tpu.matmul %61, %54, %cst_33 {dimension_numbers = #tpu.dot_dimension_numbers<[1], [0], [0], [1], [0, 0, 1, 1], [], []>} : vector<128x64xbf16>, vector<64x64xbf16>, vector<128x64xf32> -> vector<128x64xf32>
    %63 = vector.broadcast %16 : vector<1x64xf32> to vector<128x64xf32>
    %64 = arith.addf %62, %63 : vector<128x64xf32>
    %cst_34 = arith.constant 0.000000e+00 : f32
    %65 = vector.broadcast %cst_34 : f32 to vector<128x64xf32>
    %66 = arith.maximumf %64, %65 : vector<128x64xf32>
    %cst_35 = arith.constant dense<0.000000e+00> : vector<64xf32>
    %67 = vector.multi_reduction <add>, %66, %cst_35 [0] : vector<128x64xf32> to vector<64xf32>
    %68 = vector.shape_cast %67 : vector<64xf32> to vector<1x64xf32>
    %cst_36 = arith.constant 1.280000e+02 : f32
    %69 = vector.broadcast %cst_36 : f32 to vector<1x64xf32>
    %70 = arith.divf %68, %69 : vector<1x64xf32>
    %71 = vector.broadcast %70 : vector<1x64xf32> to vector<128x64xf32>
    %72 = arith.subf %66, %71 : vector<128x64xf32>
    %73 = arith.mulf %72, %72 : vector<128x64xf32>
    %cst_37 = arith.constant dense<0.000000e+00> : vector<64xf32>
    %74 = vector.multi_reduction <add>, %73, %cst_37 [0] : vector<128x64xf32> to vector<64xf32>
    %75 = vector.shape_cast %74 : vector<64xf32> to vector<1x64xf32>
    %cst_38 = arith.constant 1.280000e+02 : f32
    %76 = vector.broadcast %cst_38 : f32 to vector<1x64xf32>
    %77 = arith.divf %75, %76 : vector<1x64xf32>
    %78 = vector.broadcast %70 : vector<1x64xf32> to vector<128x64xf32>
    %79 = arith.subf %66, %78 : vector<128x64xf32>
    %cst_39 = arith.constant 9.99999974E-6 : f32
    %80 = vector.broadcast %cst_39 : f32 to vector<1x64xf32>
    %81 = arith.addf %77, %80 : vector<1x64xf32>
    %82 = math.rsqrt %81 : vector<1x64xf32>
    %83 = vector.broadcast %82 : vector<1x64xf32> to vector<128x64xf32>
    %84 = arith.mulf %79, %83 : vector<128x64xf32>
    %85 = vector.shape_cast %84 : vector<128x64xf32> to vector<2x64x64xf32>
    %86 = arith.truncf %85 : vector<2x64x64xf32> to vector<2x64x64xbf16>
    %c0_40 = arith.constant 0 : index
    %c0_41 = arith.constant 0 : index
    %c64 = arith.constant 64 : index
    %87 = vector.load %arg18[%c0_40, %c0_41, %c64] : memref<2x64x144xf32, #tpu.memory_space<vmem>>, vector<2x64x64xf32>
    tpu.vector_store %arg18[%c0_40, %c0_41, %c64], %85 {strides = array<i32>} : memref<2x64x144xf32, #tpu.memory_space<vmem>>, vector<2x64x64xf32>,
    %88 = arith.truncf %17 : vector<64x16xf32> to vector<64x16xbf16>
    "tpu.trace_start"() <{level = 10 : i32, message = "bnm,bmc->bnc"}> : () -> ()
    %cst_42 = arith.constant dense<0.000000e+00> : vector<2x64x64xf32>
    %89 = tpu.matmul %2, %86, %cst_42 {dimension_numbers = #tpu.dot_dimension_numbers<[2], [1], [1], [2], [0, 0, 0, 1, 1, 2], [0], [0]>} : vector<2x64x64xbf16>, vector<2x64x64xbf16>, vector<2x64x64xf32> -> vector<2x64x64xf32>
    "tpu.trace_stop"() : () -> ()
    %90 = arith.extf %86 : vector<2x64x64xbf16> to vector<2x64x64xf32>
    %91 = arith.addf %89, %90 : vector<2x64x64xf32>
    %92 = vector.broadcast %12 : vector<2x64x1xf32> to vector<2x64x64xf32>
    %93 = arith.mulf %91, %92 : vector<2x64x64xf32>
    %94 = vector.shape_cast %93 : vector<2x64x64xf32> to vector<128x64xf32>
    %95 = arith.truncf %94 : vector<128x64xf32> to vector<128x64xbf16>
    %cst_43 = arith.constant dense<0.000000e+00> : vector<128x16xf32>
    %96 = tpu.matmul %95, %88, %cst_43 {dimension_numbers = #tpu.dot_dimension_numbers<[1], [0], [0], [1], [0, 0, 1, 1], [], []>} : vector<128x64xbf16>, vector<64x16xbf16>, vector<128x16xf32> -> vector<128x16xf32>
    %97 = vector.broadcast %18 : vector<1x16xf32> to vector<128x16xf32>
    %98 = arith.addf %96, %97 : vector<128x16xf32>
    %cst_44 = arith.constant 0.000000e+00 : f32
    %99 = vector.broadcast %cst_44 : f32 to vector<128x16xf32>
    %100 = arith.maximumf %98, %99 : vector<128x16xf32>
    %cst_45 = arith.constant dense<0.000000e+00> : vector<16xf32>
    %101 = vector.multi_reduction <add>, %100, %cst_45 [0] : vector<128x16xf32> to vector<16xf32>
    %102 = vector.shape_cast %101 : vector<16xf32> to vector<1x16xf32>
    %cst_46 = arith.constant 1.280000e+02 : f32
    %103 = vector.broadcast %cst_46 : f32 to vector<1x16xf32>
    %104 = arith.divf %102, %103 : vector<1x16xf32>
    %105 = vector.broadcast %104 : vector<1x16xf32> to vector<128x16xf32>
    %106 = arith.subf %100, %105 : vector<128x16xf32>
    %107 = arith.mulf %106, %106 : vector<128x16xf32>
    %cst_47 = arith.constant dense<0.000000e+00> : vector<16xf32>
    %108 = vector.multi_reduction <add>, %107, %cst_47 [0] : vector<128x16xf32> to vector<16xf32>
    %109 = vector.shape_cast %108 : vector<16xf32> to vector<1x16xf32>
    %cst_48 = arith.constant 1.280000e+02 : f32
    %110 = vector.broadcast %cst_48 : f32 to vector<1x16xf32>
    %111 = arith.divf %109, %110 : vector<1x16xf32>
    %112 = vector.broadcast %104 : vector<1x16xf32> to vector<128x16xf32>
    %113 = arith.subf %100, %112 : vector<128x16xf32>
    %cst_49 = arith.constant 9.99999974E-6 : f32
    %114 = vector.broadcast %cst_49 : f32 to vector<1x16xf32>
    %115 = arith.addf %111, %114 : vector<1x16xf32>
    %116 = math.rsqrt %115 : vector<1x16xf32>
    %117 = vector.broadcast %116 : vector<1x16xf32> to vector<128x16xf32>
    %118 = arith.mulf %113, %117 : vector<128x16xf32>
    %119 = vector.shape_cast %118 : vector<128x16xf32> to vector<2x64x16xf32>
    %c0_50 = arith.constant 0 : index
    %c0_51 = arith.constant 0 : index
    %c128 = arith.constant 128 : index
    %120 = vector.load %arg18[%c0_50, %c0_51, %c128] : memref<2x64x144xf32, #tpu.memory_space<vmem>>, vector<2x64x16xf32>
    tpu.vector_store %arg18[%c0_50, %c0_51, %c128], %119 {strides = array<i32>} : memref<2x64x144xf32, #tpu.memory_space<vmem>>, vector<2x64x16xf32>,
    %c0_52 = arith.constant 0 : index
    %c0_53 = arith.constant 0 : index
    %c0_54 = arith.constant 0 : index
    %121 = vector.load %arg18[%c0_52, %c0_53, %c0_54] : memref<2x64x144xf32, #tpu.memory_space<vmem>>, vector<2x64x144xf32>
    %122 = vector.shape_cast %121 : vector<2x64x144xf32> to vector<128x144xf32>
    %123 = arith.truncf %122 : vector<128x144xf32> to vector<128x144xbf16>
    %c0_55 = arith.constant 0 : index
    %c0_56 = arith.constant 0 : index
    %124 = vector.load %arg8[%c0_55, %c0_56] : memref<144x16xf32, #tpu.memory_space<vmem>>, vector<144x16xf32>
    %125 = arith.truncf %124 : vector<144x16xf32> to vector<144x16xbf16>
    %cst_57 = arith.constant dense<0.000000e+00> : vector<128x16xf32>
    %126 = tpu.matmul %123, %125, %cst_57 {dimension_numbers = #tpu.dot_dimension_numbers<[1], [0], [0], [1], [0, 0, 1, 1], [], []>} : vector<128x144xbf16>, vector<144x16xbf16>, vector<128x16xf32> -> vector<128x16xf32>
    %c0_58 = arith.constant 0 : index
    %c0_59 = arith.constant 0 : index
    %127 = vector.load %arg9[%c0_58, %c0_59] : memref<1x16xf32, #tpu.memory_space<vmem>>, vector<1x16xf32>
    %128 = vector.broadcast %127 : vector<1x16xf32> to vector<128x16xf32>
    %129 = arith.addf %126, %128 : vector<128x16xf32>
    %cst_60 = arith.constant 0.000000e+00 : f32
    %130 = vector.broadcast %cst_60 : f32 to vector<128x16xf32>
    %131 = arith.maximumf %129, %130 : vector<128x16xf32>
    %cst_61 = arith.constant dense<0xFF800000> : vector<128xf32>
    %132 = vector.multi_reduction <maximumf>, %131, %cst_61 [1] : vector<128x16xf32> to vector<128xf32>
    %cst_62 = arith.constant 0xFF800000 : f32
    %133 = vector.broadcast %cst_62 : f32 to vector<128xf32>
    %134 = arith.maximumf %133, %132 : vector<128xf32>
    %135 = vector.shape_cast %134 : vector<128xf32> to vector<128x1xf32>
    %136 = vector.broadcast %135 : vector<128x1xf32> to vector<128x16xf32>
    %137 = arith.subf %131, %136 : vector<128x16xf32>
    %138 = math.exp %137 : vector<128x16xf32>
    %cst_63 = arith.constant dense<0.000000e+00> : vector<128xf32>
    %139 = vector.multi_reduction <add>, %138, %cst_63 [1] : vector<128x16xf32> to vector<128xf32>
    %140 = vector.shape_cast %139 : vector<128xf32> to vector<128x1xf32>
    %141 = vector.broadcast %140 : vector<128x1xf32> to vector<128x16xf32>
    %142 = arith.divf %138, %141 : vector<128x16xf32>
    %143 = vector.shape_cast %142 : vector<128x16xf32> to vector<2x64x16xf32>
    %144 = arith.truncf %143 : vector<2x64x16xf32> to vector<2x64x16xbf16>
    %c0_64 = arith.constant 0 : index
    %c0_65 = arith.constant 0 : index
    %145 = vector.load %arg10[%c0_64, %c0_65] : memref<3x64xf32, #tpu.memory_space<vmem>>, vector<3x64xf32>
    %c0_66 = arith.constant 0 : index
    %c0_67 = arith.constant 0 : index
    %146 = vector.load %arg11[%c0_66, %c0_67] : memref<1x64xf32, #tpu.memory_space<vmem>>, vector<1x64xf32>
    %c0_68 = arith.constant 0 : index
    %c0_69 = arith.constant 0 : index
    %147 = vector.load %arg12[%c0_68, %c0_69] : memref<64x64xf32, #tpu.memory_space<vmem>>, vector<64x64xf32>
    %c0_70 = arith.constant 0 : index
    %c0_71 = arith.constant 0 : index
    %148 = vector.load %arg13[%c0_70, %c0_71] : memref<1x64xf32, #tpu.memory_space<vmem>>, vector<1x64xf32>
    %c0_72 = arith.constant 0 : index
    %c0_73 = arith.constant 0 : index
    %149 = vector.load %arg14[%c0_72, %c0_73] : memref<64x64xf32, #tpu.memory_space<vmem>>, vector<64x64xf32>
    %c0_74 = arith.constant 0 : index
    %c0_75 = arith.constant 0 : index
    %150 = vector.load %arg15[%c0_74, %c0_75] : memref<1x64xf32, #tpu.memory_space<vmem>>, vector<1x64xf32>
    %151 = arith.truncf %145 : vector<3x64xf32> to vector<3x64xbf16>
    %152 = vector.shape_cast %1 : vector<2x64x3xbf16> to vector<128x3xbf16>
    %cst_76 = arith.constant dense<0.000000e+00> : vector<128x64xf32>
    %153 = tpu.matmul %152, %151, %cst_76 {dimension_numbers = #tpu.dot_dimension_numbers<[1], [0], [0], [1], [0, 0, 1, 1], [], []>} : vector<128x3xbf16>, vector<3x64xbf16>, vector<128x64xf32> -> vector<128x64xf32>
    %154 = vector.shape_cast %153 : vector<128x64xf32> to vector<2x64x64xf32>
    %155 = arith.truncf %154 : vector<2x64x64xf32> to vector<2x64x64xbf16>
    "tpu.trace_start"() <{level = 10 : i32, message = "bnm,bmc->bnc"}> : () -> ()
    %cst_77 = arith.constant dense<0.000000e+00> : vector<2x64x64xf32>
    %156 = tpu.matmul %2, %155, %cst_77 {dimension_numbers = #tpu.dot_dimension_numbers<[2], [1], [1], [2], [0, 0, 0, 1, 1, 2], [0], [0]>} : vector<2x64x64xbf16>, vector<2x64x64xbf16>, vector<2x64x64xf32> -> vector<2x64x64xf32>
    "tpu.trace_stop"() : () -> ()
    %157 = arith.addf %156, %154 : vector<2x64x64xf32>
    %158 = vector.broadcast %12 : vector<2x64x1xf32> to vector<2x64x64xf32>
    %159 = arith.mulf %157, %158 : vector<2x64x64xf32>
    %160 = vector.shape_cast %159 : vector<2x64x64xf32> to vector<128x64xf32>
    %161 = vector.broadcast %146 : vector<1x64xf32> to vector<128x64xf32>
    %162 = arith.addf %160, %161 : vector<128x64xf32>
    %cst_78 = arith.constant 0.000000e+00 : f32
    %163 = vector.broadcast %cst_78 : f32 to vector<128x64xf32>
    %164 = arith.maximumf %162, %163 : vector<128x64xf32>
    %cst_79 = arith.constant dense<0.000000e+00> : vector<64xf32>
    %165 = vector.multi_reduction <add>, %164, %cst_79 [0] : vector<128x64xf32> to vector<64xf32>
    %166 = vector.shape_cast %165 : vector<64xf32> to vector<1x64xf32>
    %cst_80 = arith.constant 1.280000e+02 : f32
    %167 = vector.broadcast %cst_80 : f32 to vector<1x64xf32>
    %168 = arith.divf %166, %167 : vector<1x64xf32>
    %169 = vector.broadcast %168 : vector<1x64xf32> to vector<128x64xf32>
    %170 = arith.subf %164, %169 : vector<128x64xf32>
    %171 = arith.mulf %170, %170 : vector<128x64xf32>
    %cst_81 = arith.constant dense<0.000000e+00> : vector<64xf32>
    %172 = vector.multi_reduction <add>, %171, %cst_81 [0] : vector<128x64xf32> to vector<64xf32>
    %173 = vector.shape_cast %172 : vector<64xf32> to vector<1x64xf32>
    %cst_82 = arith.constant 1.280000e+02 : f32
    %174 = vector.broadcast %cst_82 : f32 to vector<1x64xf32>
    %175 = arith.divf %173, %174 : vector<1x64xf32>
    %176 = vector.broadcast %168 : vector<1x64xf32> to vector<128x64xf32>
    %177 = arith.subf %164, %176 : vector<128x64xf32>
    %cst_83 = arith.constant 9.99999974E-6 : f32
    %178 = vector.broadcast %cst_83 : f32 to vector<1x64xf32>
    %179 = arith.addf %175, %178 : vector<1x64xf32>
    %180 = math.rsqrt %179 : vector<1x64xf32>
    %181 = vector.broadcast %180 : vector<1x64xf32> to vector<128x64xf32>
    %182 = arith.mulf %177, %181 : vector<128x64xf32>
    %183 = vector.shape_cast %182 : vector<128x64xf32> to vector<2x64x64xf32>
    %184 = arith.truncf %183 : vector<2x64x64xf32> to vector<2x64x64xbf16>
    %c0_84 = arith.constant 0 : index
    %c0_85 = arith.constant 0 : index
    %c0_86 = arith.constant 0 : index
    %185 = vector.load %arg19[%c0_84, %c0_85, %c0_86] : memref<2x64x192xf32, #tpu.memory_space<vmem>>, vector<2x64x64xf32>
    tpu.vector_store %arg19[%c0_84, %c0_85, %c0_86], %183 {strides = array<i32>} : memref<2x64x192xf32, #tpu.memory_space<vmem>>, vector<2x64x64xf32>,
    %186 = arith.truncf %147 : vector<64x64xf32> to vector<64x64xbf16>
    "tpu.trace_start"() <{level = 10 : i32, message = "bnm,bmc->bnc"}> : () -> ()
    %cst_87 = arith.constant dense<0.000000e+00> : vector<2x64x64xf32>
    %187 = tpu.matmul %2, %184, %cst_87 {dimension_numbers = #tpu.dot_dimension_numbers<[2], [1], [1], [2], [0, 0, 0, 1, 1, 2], [0], [0]>} : vector<2x64x64xbf16>, vector<2x64x64xbf16>, vector<2x64x64xf32> -> vector<2x64x64xf32>
    "tpu.trace_stop"() : () -> ()
    %188 = arith.extf %184 : vector<2x64x64xbf16> to vector<2x64x64xf32>
    %189 = arith.addf %187, %188 : vector<2x64x64xf32>
    %190 = vector.broadcast %12 : vector<2x64x1xf32> to vector<2x64x64xf32>
    %191 = arith.mulf %189, %190 : vector<2x64x64xf32>
    %192 = vector.shape_cast %191 : vector<2x64x64xf32> to vector<128x64xf32>
    %193 = arith.truncf %192 : vector<128x64xf32> to vector<128x64xbf16>
    %cst_88 = arith.constant dense<0.000000e+00> : vector<128x64xf32>
    %194 = tpu.matmul %193, %186, %cst_88 {dimension_numbers = #tpu.dot_dimension_numbers<[1], [0], [0], [1], [0, 0, 1, 1], [], []>} : vector<128x64xbf16>, vector<64x64xbf16>, vector<128x64xf32> -> vector<128x64xf32>
    %195 = vector.broadcast %148 : vector<1x64xf32> to vector<128x64xf32>
    %196 = arith.addf %194, %195 : vector<128x64xf32>
    %cst_89 = arith.constant 0.000000e+00 : f32
    %197 = vector.broadcast %cst_89 : f32 to vector<128x64xf32>
    %198 = arith.maximumf %196, %197 : vector<128x64xf32>
    %cst_90 = arith.constant dense<0.000000e+00> : vector<64xf32>
    %199 = vector.multi_reduction <add>, %198, %cst_90 [0] : vector<128x64xf32> to vector<64xf32>
    %200 = vector.shape_cast %199 : vector<64xf32> to vector<1x64xf32>
    %cst_91 = arith.constant 1.280000e+02 : f32
    %201 = vector.broadcast %cst_91 : f32 to vector<1x64xf32>
    %202 = arith.divf %200, %201 : vector<1x64xf32>
    %203 = vector.broadcast %202 : vector<1x64xf32> to vector<128x64xf32>
    %204 = arith.subf %198, %203 : vector<128x64xf32>
    %205 = arith.mulf %204, %204 : vector<128x64xf32>
    %cst_92 = arith.constant dense<0.000000e+00> : vector<64xf32>
    %206 = vector.multi_reduction <add>, %205, %cst_92 [0] : vector<128x64xf32> to vector<64xf32>
    %207 = vector.shape_cast %206 : vector<64xf32> to vector<1x64xf32>
    %cst_93 = arith.constant 1.280000e+02 : f32
    %208 = vector.broadcast %cst_93 : f32 to vector<1x64xf32>
    %209 = arith.divf %207, %208 : vector<1x64xf32>
    %210 = vector.broadcast %202 : vector<1x64xf32> to vector<128x64xf32>
    %211 = arith.subf %198, %210 : vector<128x64xf32>
    %cst_94 = arith.constant 9.99999974E-6 : f32
    %212 = vector.broadcast %cst_94 : f32 to vector<1x64xf32>
    %213 = arith.addf %209, %212 : vector<1x64xf32>
    %214 = math.rsqrt %213 : vector<1x64xf32>
    %215 = vector.broadcast %214 : vector<1x64xf32> to vector<128x64xf32>
    %216 = arith.mulf %211, %215 : vector<128x64xf32>
    %217 = vector.shape_cast %216 : vector<128x64xf32> to vector<2x64x64xf32>
    %218 = arith.truncf %217 : vector<2x64x64xf32> to vector<2x64x64xbf16>
    %c0_95 = arith.constant 0 : index
    %c0_96 = arith.constant 0 : index
    %c64_97 = arith.constant 64 : index
    %219 = vector.load %arg19[%c0_95, %c0_96, %c64_97] : memref<2x64x192xf32, #tpu.memory_space<vmem>>, vector<2x64x64xf32>
    tpu.vector_store %arg19[%c0_95, %c0_96, %c64_97], %217 {strides = array<i32>} : memref<2x64x192xf32, #tpu.memory_space<vmem>>, vector<2x64x64xf32>,
    %220 = arith.truncf %149 : vector<64x64xf32> to vector<64x64xbf16>
    "tpu.trace_start"() <{level = 10 : i32, message = "bnm,bmc->bnc"}> : () -> ()
    %cst_98 = arith.constant dense<0.000000e+00> : vector<2x64x64xf32>
    %221 = tpu.matmul %2, %218, %cst_98 {dimension_numbers = #tpu.dot_dimension_numbers<[2], [1], [1], [2], [0, 0, 0, 1, 1, 2], [0], [0]>} : vector<2x64x64xbf16>, vector<2x64x64xbf16>, vector<2x64x64xf32> -> vector<2x64x64xf32>
    "tpu.trace_stop"() : () -> ()
    %222 = arith.extf %218 : vector<2x64x64xbf16> to vector<2x64x64xf32>
    %223 = arith.addf %221, %222 : vector<2x64x64xf32>
    %224 = vector.broadcast %12 : vector<2x64x1xf32> to vector<2x64x64xf32>
    %225 = arith.mulf %223, %224 : vector<2x64x64xf32>
    %226 = vector.shape_cast %225 : vector<2x64x64xf32> to vector<128x64xf32>
    %227 = arith.truncf %226 : vector<128x64xf32> to vector<128x64xbf16>
    %cst_99 = arith.constant dense<0.000000e+00> : vector<128x64xf32>
    %228 = tpu.matmul %227, %220, %cst_99 {dimension_numbers = #tpu.dot_dimension_numbers<[1], [0], [0], [1], [0, 0, 1, 1], [], []>} : vector<128x64xbf16>, vector<64x64xbf16>, vector<128x64xf32> -> vector<128x64xf32>
    %229 = vector.broadcast %150 : vector<1x64xf32> to vector<128x64xf32>
    %230 = arith.addf %228, %229 : vector<128x64xf32>
    %cst_100 = arith.constant 0.000000e+00 : f32
    %231 = vector.broadcast %cst_100 : f32 to vector<128x64xf32>
    %232 = arith.maximumf %230, %231 : vector<128x64xf32>
    %cst_101 = arith.constant dense<0.000000e+00> : vector<64xf32>
    %233 = vector.multi_reduction <add>, %232, %cst_101 [0] : vector<128x64xf32> to vector<64xf32>
    %234 = vector.shape_cast %233 : vector<64xf32> to vector<1x64xf32>
    %cst_102 = arith.constant 1.280000e+02 : f32
    %235 = vector.broadcast %cst_102 : f32 to vector<1x64xf32>
    %236 = arith.divf %234, %235 : vector<1x64xf32>
    %237 = vector.broadcast %236 : vector<1x64xf32> to vector<128x64xf32>
    %238 = arith.subf %232, %237 : vector<128x64xf32>
    %239 = arith.mulf %238, %238 : vector<128x64xf32>
    %cst_103 = arith.constant dense<0.000000e+00> : vector<64xf32>
    %240 = vector.multi_reduction <add>, %239, %cst_103 [0] : vector<128x64xf32> to vector<64xf32>
    %241 = vector.shape_cast %240 : vector<64xf32> to vector<1x64xf32>
    %cst_104 = arith.constant 1.280000e+02 : f32
    %242 = vector.broadcast %cst_104 : f32 to vector<1x64xf32>
    %243 = arith.divf %241, %242 : vector<1x64xf32>
    %244 = vector.broadcast %236 : vector<1x64xf32> to vector<128x64xf32>
    %245 = arith.subf %232, %244 : vector<128x64xf32>
    %cst_105 = arith.constant 9.99999974E-6 : f32
    %246 = vector.broadcast %cst_105 : f32 to vector<1x64xf32>
    %247 = arith.addf %243, %246 : vector<1x64xf32>
    %248 = math.rsqrt %247 : vector<1x64xf32>
    %249 = vector.broadcast %248 : vector<1x64xf32> to vector<128x64xf32>
    %250 = arith.mulf %245, %249 : vector<128x64xf32>
    %251 = vector.shape_cast %250 : vector<128x64xf32> to vector<2x64x64xf32>
    %c0_106 = arith.constant 0 : index
    %c0_107 = arith.constant 0 : index
    %c128_108 = arith.constant 128 : index
    %252 = vector.load %arg19[%c0_106, %c0_107, %c128_108] : memref<2x64x192xf32, #tpu.memory_space<vmem>>, vector<2x64x64xf32>
    tpu.vector_store %arg19[%c0_106, %c0_107, %c128_108], %251 {strides = array<i32>} : memref<2x64x192xf32, #tpu.memory_space<vmem>>, vector<2x64x64xf32>,
    %c0_109 = arith.constant 0 : index
    %c0_110 = arith.constant 0 : index
    %c0_111 = arith.constant 0 : index
    %253 = vector.load %arg19[%c0_109, %c0_110, %c0_111] : memref<2x64x192xf32, #tpu.memory_space<vmem>>, vector<2x64x192xf32>
    %254 = arith.truncf %253 : vector<2x64x192xf32> to vector<2x64x192xbf16>
    "tpu.trace_start"() <{level = 10 : i32, message = "bnk,bnc->bkc"}> : () -> ()
    %cst_112 = arith.constant dense<0.000000e+00> : vector<2x16x192xf32>
    %255 = tpu.matmul %144, %254, %cst_112 {dimension_numbers = #tpu.dot_dimension_numbers<[1], [1], [2], [2], [0, 0, 0, 2, 1, 2], [0], [0]>} : vector<2x64x16xbf16>, vector<2x64x192xbf16>, vector<2x16x192xf32> -> vector<2x16x192xf32>
    "tpu.trace_stop"() : () -> ()
    %c0_113 = arith.constant 0 : index
    %c0_114 = arith.constant 0 : index
    %c0_115 = arith.constant 0 : index
    %256 = vector.load %arg16[%c0_113, %c0_114, %c0_115] : memref<2x16x192xf32, #tpu.memory_space<vmem>>, vector<2x16x192xf32>
    tpu.vector_store %arg16[%c0_113, %c0_114, %c0_115], %255 {strides = array<i32>} : memref<2x16x192xf32, #tpu.memory_space<vmem>>, vector<2x16x192xf32>,
    "tpu.trace_start"() <{level = 10 : i32, message = "bnk,bnm->bkm"}> : () -> ()
    %cst_116 = arith.constant dense<0.000000e+00> : vector<2x16x64xf32>
    %257 = tpu.matmul %144, %2, %cst_116 {dimension_numbers = #tpu.dot_dimension_numbers<[1], [1], [2], [2], [0, 0, 0, 2, 1, 2], [0], [0]>} : vector<2x64x16xbf16>, vector<2x64x64xbf16>, vector<2x16x64xf32> -> vector<2x16x64xf32>
    "tpu.trace_stop"() : () -> ()
    %258 = arith.truncf %257 : vector<2x16x64xf32> to vector<2x16x64xbf16>
    "tpu.trace_start"() <{level = 10 : i32, message = "bkm,bmc->bkc"}> : () -> ()
    %cst_117 = arith.constant dense<0.000000e+00> : vector<2x16x16xf32>
    %259 = tpu.matmul %258, %144, %cst_117 {dimension_numbers = #tpu.dot_dimension_numbers<[2], [1], [1], [2], [0, 0, 0, 1, 1, 2], [0], [0]>} : vector<2x16x64xbf16>, vector<2x64x16xbf16>, vector<2x16x16xf32> -> vector<2x16x16xf32>
    "tpu.trace_stop"() : () -> ()
    %c0_118 = arith.constant 0 : index
    %c0_119 = arith.constant 0 : index
    %c0_120 = arith.constant 0 : index
    %260 = vector.load %arg17[%c0_118, %c0_119, %c0_120] : memref<2x16x16xf32, #tpu.memory_space<vmem>>, vector<2x16x16xf32>
    tpu.vector_store %arg17[%c0_118, %c0_119, %c0_120], %259 {strides = array<i32>} : memref<2x16x16xf32, #tpu.memory_space<vmem>>, vector<2x16x16xf32>,
    return
  }
}

module attributes {stable_mosaic.version = 11 : i64} {
  func.func @_final_stage_kernel(%arg0: memref<2x4x192xf32, #tpu.memory_space<vmem>>, %arg1: memref<2x4x4xf32, #tpu.memory_space<vmem>>, %arg2: memref<192x64xf32, #tpu.memory_space<vmem>>, %arg3: memref<1x64xf32, #tpu.memory_space<vmem>>, %arg4: memref<64x64xf32, #tpu.memory_space<vmem>>, %arg5: memref<1x64xf32, #tpu.memory_space<vmem>>, %arg6: memref<64x64xf32, #tpu.memory_space<vmem>>, %arg7: memref<1x64xf32, #tpu.memory_space<vmem>>, %arg8: memref<192x64xf32, #tpu.memory_space<vmem>>, %arg9: memref<1x64xf32, #tpu.memory_space<vmem>>, %arg10: memref<64x1xf32, #tpu.memory_space<vmem>>, %arg11: memref<1x1xf32, #tpu.memory_space<vmem>>, %arg12: memref<2x1xf32, #tpu.memory_space<vmem>>) attributes {dimension_semantics = [], scalar_prefetch = 0 : i64, scratch_operands = 0 : i64, tpu.core_type = #tpu.core_type<tc>} {
    %c0 = arith.constant 0 : index
    %c0_0 = arith.constant 0 : index
    %c0_1 = arith.constant 0 : index
    %0 = vector.load %arg0[%c0, %c0_0, %c0_1] : memref<2x4x192xf32, #tpu.memory_space<vmem>>, vector<2x4x192xf32>
    %1 = arith.truncf %0 : vector<2x4x192xf32> to vector<2x4x192xbf16>
    %c0_2 = arith.constant 0 : index
    %c0_3 = arith.constant 0 : index
    %c0_4 = arith.constant 0 : index
    %2 = vector.load %arg1[%c0_2, %c0_3, %c0_4] : memref<2x4x4xf32, #tpu.memory_space<vmem>>, vector<2x4x4xf32>
    %3 = arith.truncf %2 : vector<2x4x4xf32> to vector<2x4x4xbf16>
    %cst = arith.constant dense<0.000000e+00> : vector<2x4xf32>
    %4 = vector.multi_reduction <add>, %2, %cst [2] : vector<2x4x4xf32> to vector<2x4xf32>
    %5 = vector.shape_cast %4 : vector<2x4xf32> to vector<2x4x1xf32>
    %cst_5 = arith.constant 1.000000e+00 : f32
    %6 = vector.broadcast %cst_5 : f32 to vector<2x4x1xf32>
    %7 = arith.maximumf %5, %6 : vector<2x4x1xf32>
    %cst_6 = arith.constant 1.000000e+00 : f32
    %8 = vector.broadcast %cst_6 : f32 to vector<2x4x1xf32>
    %9 = arith.divf %8, %7 : vector<2x4x1xf32>
    %c0_7 = arith.constant 0 : index
    %c0_8 = arith.constant 0 : index
    %10 = vector.load %arg2[%c0_7, %c0_8] : memref<192x64xf32, #tpu.memory_space<vmem>>, vector<192x64xf32>
    %c0_9 = arith.constant 0 : index
    %c0_10 = arith.constant 0 : index
    %11 = vector.load %arg3[%c0_9, %c0_10] : memref<1x64xf32, #tpu.memory_space<vmem>>, vector<1x64xf32>
    %c0_11 = arith.constant 0 : index
    %c0_12 = arith.constant 0 : index
    %12 = vector.load %arg4[%c0_11, %c0_12] : memref<64x64xf32, #tpu.memory_space<vmem>>, vector<64x64xf32>
    %c0_13 = arith.constant 0 : index
    %c0_14 = arith.constant 0 : index
    %13 = vector.load %arg5[%c0_13, %c0_14] : memref<1x64xf32, #tpu.memory_space<vmem>>, vector<1x64xf32>
    %c0_15 = arith.constant 0 : index
    %c0_16 = arith.constant 0 : index
    %14 = vector.load %arg6[%c0_15, %c0_16] : memref<64x64xf32, #tpu.memory_space<vmem>>, vector<64x64xf32>
    %c0_17 = arith.constant 0 : index
    %c0_18 = arith.constant 0 : index
    %15 = vector.load %arg7[%c0_17, %c0_18] : memref<1x64xf32, #tpu.memory_space<vmem>>, vector<1x64xf32>
    %16 = arith.truncf %10 : vector<192x64xf32> to vector<192x64xbf16>
    "tpu.trace_start"() <{level = 10 : i32, message = "bnm,bmc->bnc"}> : () -> ()
    %cst_19 = arith.constant dense<0.000000e+00> : vector<2x4x192xf32>
    %17 = tpu.matmul %3, %1, %cst_19 {dimension_numbers = #tpu.dot_dimension_numbers<[2], [1], [1], [2], [0, 0, 0, 1, 1, 2], [0], [0]>} : vector<2x4x4xbf16>, vector<2x4x192xbf16>, vector<2x4x192xf32> -> vector<2x4x192xf32>
    "tpu.trace_stop"() : () -> ()
    %18 = vector.broadcast %9 : vector<2x4x1xf32> to vector<2x4x192xf32>
    %19 = arith.mulf %17, %18 : vector<2x4x192xf32>
    %20 = vector.shape_cast %19 : vector<2x4x192xf32> to vector<8x192xf32>
    %21 = arith.truncf %20 : vector<8x192xf32> to vector<8x192xbf16>
    %cst_20 = arith.constant dense<0.000000e+00> : vector<8x64xf32>
    %22 = tpu.matmul %21, %16, %cst_20 {dimension_numbers = #tpu.dot_dimension_numbers<[1], [0], [0], [1], [0, 0, 1, 1], [], []>} : vector<8x192xbf16>, vector<192x64xbf16>, vector<8x64xf32> -> vector<8x64xf32>
    %23 = vector.broadcast %11 : vector<1x64xf32> to vector<8x64xf32>
    %24 = arith.addf %22, %23 : vector<8x64xf32>
    %cst_21 = arith.constant 0.000000e+00 : f32
    %25 = vector.broadcast %cst_21 : f32 to vector<8x64xf32>
    %26 = arith.maximumf %24, %25 : vector<8x64xf32>
    %cst_22 = arith.constant dense<0.000000e+00> : vector<64xf32>
    %27 = vector.multi_reduction <add>, %26, %cst_22 [0] : vector<8x64xf32> to vector<64xf32>
    %28 = vector.shape_cast %27 : vector<64xf32> to vector<1x64xf32>
    %cst_23 = arith.constant 8.000000e+00 : f32
    %29 = vector.broadcast %cst_23 : f32 to vector<1x64xf32>
    %30 = arith.divf %28, %29 : vector<1x64xf32>
    %31 = vector.broadcast %30 : vector<1x64xf32> to vector<8x64xf32>
    %32 = arith.subf %26, %31 : vector<8x64xf32>
    %33 = arith.mulf %32, %32 : vector<8x64xf32>
    %cst_24 = arith.constant dense<0.000000e+00> : vector<64xf32>
    %34 = vector.multi_reduction <add>, %33, %cst_24 [0] : vector<8x64xf32> to vector<64xf32>
    %35 = vector.shape_cast %34 : vector<64xf32> to vector<1x64xf32>
    %cst_25 = arith.constant 8.000000e+00 : f32
    %36 = vector.broadcast %cst_25 : f32 to vector<1x64xf32>
    %37 = arith.divf %35, %36 : vector<1x64xf32>
    %38 = vector.broadcast %30 : vector<1x64xf32> to vector<8x64xf32>
    %39 = arith.subf %26, %38 : vector<8x64xf32>
    %cst_26 = arith.constant 9.99999974E-6 : f32
    %40 = vector.broadcast %cst_26 : f32 to vector<1x64xf32>
    %41 = arith.addf %37, %40 : vector<1x64xf32>
    %42 = math.rsqrt %41 : vector<1x64xf32>
    %43 = vector.broadcast %42 : vector<1x64xf32> to vector<8x64xf32>
    %44 = arith.mulf %39, %43 : vector<8x64xf32>
    %45 = vector.shape_cast %44 : vector<8x64xf32> to vector<2x4x64xf32>
    %46 = arith.truncf %45 : vector<2x4x64xf32> to vector<2x4x64xbf16>
    %47 = arith.truncf %12 : vector<64x64xf32> to vector<64x64xbf16>
    "tpu.trace_start"() <{level = 10 : i32, message = "bnm,bmc->bnc"}> : () -> ()
    %cst_27 = arith.constant dense<0.000000e+00> : vector<2x4x64xf32>
    %48 = tpu.matmul %3, %46, %cst_27 {dimension_numbers = #tpu.dot_dimension_numbers<[2], [1], [1], [2], [0, 0, 0, 1, 1, 2], [0], [0]>} : vector<2x4x4xbf16>, vector<2x4x64xbf16>, vector<2x4x64xf32> -> vector<2x4x64xf32>
    "tpu.trace_stop"() : () -> ()
    %49 = vector.broadcast %9 : vector<2x4x1xf32> to vector<2x4x64xf32>
    %50 = arith.mulf %48, %49 : vector<2x4x64xf32>
    %51 = vector.shape_cast %50 : vector<2x4x64xf32> to vector<8x64xf32>
    %52 = arith.truncf %51 : vector<8x64xf32> to vector<8x64xbf16>
    %cst_28 = arith.constant dense<0.000000e+00> : vector<8x64xf32>
    %53 = tpu.matmul %52, %47, %cst_28 {dimension_numbers = #tpu.dot_dimension_numbers<[1], [0], [0], [1], [0, 0, 1, 1], [], []>} : vector<8x64xbf16>, vector<64x64xbf16>, vector<8x64xf32> -> vector<8x64xf32>
    %54 = vector.broadcast %13 : vector<1x64xf32> to vector<8x64xf32>
    %55 = arith.addf %53, %54 : vector<8x64xf32>
    %cst_29 = arith.constant 0.000000e+00 : f32
    %56 = vector.broadcast %cst_29 : f32 to vector<8x64xf32>
    %57 = arith.maximumf %55, %56 : vector<8x64xf32>
    %cst_30 = arith.constant dense<0.000000e+00> : vector<64xf32>
    %58 = vector.multi_reduction <add>, %57, %cst_30 [0] : vector<8x64xf32> to vector<64xf32>
    %59 = vector.shape_cast %58 : vector<64xf32> to vector<1x64xf32>
    %cst_31 = arith.constant 8.000000e+00 : f32
    %60 = vector.broadcast %cst_31 : f32 to vector<1x64xf32>
    %61 = arith.divf %59, %60 : vector<1x64xf32>
    %62 = vector.broadcast %61 : vector<1x64xf32> to vector<8x64xf32>
    %63 = arith.subf %57, %62 : vector<8x64xf32>
    %64 = arith.mulf %63, %63 : vector<8x64xf32>
    %cst_32 = arith.constant dense<0.000000e+00> : vector<64xf32>
    %65 = vector.multi_reduction <add>, %64, %cst_32 [0] : vector<8x64xf32> to vector<64xf32>
    %66 = vector.shape_cast %65 : vector<64xf32> to vector<1x64xf32>
    %cst_33 = arith.constant 8.000000e+00 : f32
    %67 = vector.broadcast %cst_33 : f32 to vector<1x64xf32>
    %68 = arith.divf %66, %67 : vector<1x64xf32>
    %69 = vector.broadcast %61 : vector<1x64xf32> to vector<8x64xf32>
    %70 = arith.subf %57, %69 : vector<8x64xf32>
    %cst_34 = arith.constant 9.99999974E-6 : f32
    %71 = vector.broadcast %cst_34 : f32 to vector<1x64xf32>
    %72 = arith.addf %68, %71 : vector<1x64xf32>
    %73 = math.rsqrt %72 : vector<1x64xf32>
    %74 = vector.broadcast %73 : vector<1x64xf32> to vector<8x64xf32>
    %75 = arith.mulf %70, %74 : vector<8x64xf32>
    %76 = vector.shape_cast %75 : vector<8x64xf32> to vector<2x4x64xf32>
    %77 = arith.truncf %76 : vector<2x4x64xf32> to vector<2x4x64xbf16>
    %78 = arith.truncf %14 : vector<64x64xf32> to vector<64x64xbf16>
    "tpu.trace_start"() <{level = 10 : i32, message = "bnm,bmc->bnc"}> : () -> ()
    %cst_35 = arith.constant dense<0.000000e+00> : vector<2x4x64xf32>
    %79 = tpu.matmul %3, %77, %cst_35 {dimension_numbers = #tpu.dot_dimension_numbers<[2], [1], [1], [2], [0, 0, 0, 1, 1, 2], [0], [0]>} : vector<2x4x4xbf16>, vector<2x4x64xbf16>, vector<2x4x64xf32> -> vector<2x4x64xf32>
    "tpu.trace_stop"() : () -> ()
    %80 = vector.broadcast %9 : vector<2x4x1xf32> to vector<2x4x64xf32>
    %81 = arith.mulf %79, %80 : vector<2x4x64xf32>
    %82 = vector.shape_cast %81 : vector<2x4x64xf32> to vector<8x64xf32>
    %83 = arith.truncf %82 : vector<8x64xf32> to vector<8x64xbf16>
    %cst_36 = arith.constant dense<0.000000e+00> : vector<8x64xf32>
    %84 = tpu.matmul %83, %78, %cst_36 {dimension_numbers = #tpu.dot_dimension_numbers<[1], [0], [0], [1], [0, 0, 1, 1], [], []>} : vector<8x64xbf16>, vector<64x64xbf16>, vector<8x64xf32> -> vector<8x64xf32>
    %85 = vector.broadcast %15 : vector<1x64xf32> to vector<8x64xf32>
    %86 = arith.addf %84, %85 : vector<8x64xf32>
    %cst_37 = arith.constant 0.000000e+00 : f32
    %87 = vector.broadcast %cst_37 : f32 to vector<8x64xf32>
    %88 = arith.maximumf %86, %87 : vector<8x64xf32>
    %cst_38 = arith.constant dense<0.000000e+00> : vector<64xf32>
    %89 = vector.multi_reduction <add>, %88, %cst_38 [0] : vector<8x64xf32> to vector<64xf32>
    %90 = vector.shape_cast %89 : vector<64xf32> to vector<1x64xf32>
    %cst_39 = arith.constant 8.000000e+00 : f32
    %91 = vector.broadcast %cst_39 : f32 to vector<1x64xf32>
    %92 = arith.divf %90, %91 : vector<1x64xf32>
    %93 = vector.broadcast %92 : vector<1x64xf32> to vector<8x64xf32>
    %94 = arith.subf %88, %93 : vector<8x64xf32>
    %95 = arith.mulf %94, %94 : vector<8x64xf32>
    %cst_40 = arith.constant dense<0.000000e+00> : vector<64xf32>
    %96 = vector.multi_reduction <add>, %95, %cst_40 [0] : vector<8x64xf32> to vector<64xf32>
    %97 = vector.shape_cast %96 : vector<64xf32> to vector<1x64xf32>
    %cst_41 = arith.constant 8.000000e+00 : f32
    %98 = vector.broadcast %cst_41 : f32 to vector<1x64xf32>
    %99 = arith.divf %97, %98 : vector<1x64xf32>
    %100 = vector.broadcast %92 : vector<1x64xf32> to vector<8x64xf32>
    %101 = arith.subf %88, %100 : vector<8x64xf32>
    %cst_42 = arith.constant 9.99999974E-6 : f32
    %102 = vector.broadcast %cst_42 : f32 to vector<1x64xf32>
    %103 = arith.addf %99, %102 : vector<1x64xf32>
    %104 = math.rsqrt %103 : vector<1x64xf32>
    %105 = vector.broadcast %104 : vector<1x64xf32> to vector<8x64xf32>
    %106 = arith.mulf %101, %105 : vector<8x64xf32>
    %107 = vector.shape_cast %106 : vector<8x64xf32> to vector<2x4x64xf32>
    %c0_43 = arith.constant 0 : index
    %c0_44 = arith.constant 0 : index
    %108 = vector.load %arg8[%c0_43, %c0_44] : memref<192x64xf32, #tpu.memory_space<vmem>>, vector<192x64xf32>
    %cst_45 = arith.constant dense<0.000000e+00> : vector<2x64xf32>
    %109 = vector.multi_reduction <add>, %45, %cst_45 [1] : vector<2x4x64xf32> to vector<2x64xf32>
    %cst_46 = arith.constant 4.000000e+00 : f32
    %110 = vector.broadcast %cst_46 : f32 to vector<2x64xf32>
    %111 = arith.divf %109, %110 : vector<2x64xf32>
    %112 = vector.extract_strided_slice %108 {offsets = [0, 0], sizes = [64, 64], strides = [1, 1]} : vector<192x64xf32> to vector<64x64xf32>
    %cst_47 = arith.constant dense<0.000000e+00> : vector<2x64xf32>
    %113 = tpu.matmul %111, %112, %cst_47 {dimension_numbers = #tpu.dot_dimension_numbers<[1], [0], [0], [1], [0, 0, 1, 1], [], []>} : vector<2x64xf32>, vector<64x64xf32>, vector<2x64xf32> -> vector<2x64xf32>
    %cst_48 = arith.constant dense<0.000000e+00> : vector<2x64xf32>
    %114 = vector.multi_reduction <add>, %76, %cst_48 [1] : vector<2x4x64xf32> to vector<2x64xf32>
    %cst_49 = arith.constant 4.000000e+00 : f32
    %115 = vector.broadcast %cst_49 : f32 to vector<2x64xf32>
    %116 = arith.divf %114, %115 : vector<2x64xf32>
    %117 = vector.extract_strided_slice %108 {offsets = [64, 0], sizes = [64, 64], strides = [1, 1]} : vector<192x64xf32> to vector<64x64xf32>
    %cst_50 = arith.constant dense<0.000000e+00> : vector<2x64xf32>
    %118 = tpu.matmul %116, %117, %cst_50 {dimension_numbers = #tpu.dot_dimension_numbers<[1], [0], [0], [1], [0, 0, 1, 1], [], []>} : vector<2x64xf32>, vector<64x64xf32>, vector<2x64xf32> -> vector<2x64xf32>
    %119 = arith.addf %113, %118 : vector<2x64xf32>
    %cst_51 = arith.constant dense<0.000000e+00> : vector<2x64xf32>
    %120 = vector.multi_reduction <add>, %107, %cst_51 [1] : vector<2x4x64xf32> to vector<2x64xf32>
    %cst_52 = arith.constant 4.000000e+00 : f32
    %121 = vector.broadcast %cst_52 : f32 to vector<2x64xf32>
    %122 = arith.divf %120, %121 : vector<2x64xf32>
    %123 = vector.extract_strided_slice %108 {offsets = [128, 0], sizes = [64, 64], strides = [1, 1]} : vector<192x64xf32> to vector<64x64xf32>
    %cst_53 = arith.constant dense<0.000000e+00> : vector<2x64xf32>
    %124 = tpu.matmul %122, %123, %cst_53 {dimension_numbers = #tpu.dot_dimension_numbers<[1], [0], [0], [1], [0, 0, 1, 1], [], []>} : vector<2x64xf32>, vector<64x64xf32>, vector<2x64xf32> -> vector<2x64xf32>
    %125 = arith.addf %119, %124 : vector<2x64xf32>
    %c0_54 = arith.constant 0 : index
    %c0_55 = arith.constant 0 : index
    %126 = vector.load %arg9[%c0_54, %c0_55] : memref<1x64xf32, #tpu.memory_space<vmem>>, vector<1x64xf32>
    %127 = vector.broadcast %126 : vector<1x64xf32> to vector<2x64xf32>
    %128 = arith.addf %125, %127 : vector<2x64xf32>
    %cst_56 = arith.constant 0.000000e+00 : f32
    %129 = vector.broadcast %cst_56 : f32 to vector<2x64xf32>
    %130 = arith.maximumf %128, %129 : vector<2x64xf32>
    %c0_57 = arith.constant 0 : index
    %c0_58 = arith.constant 0 : index
    %131 = vector.load %arg10[%c0_57, %c0_58] : memref<64x1xf32, #tpu.memory_space<vmem>>, vector<64x1xf32>
    %cst_59 = arith.constant dense<0.000000e+00> : vector<2x1xf32>
    %132 = tpu.matmul %130, %131, %cst_59 {dimension_numbers = #tpu.dot_dimension_numbers<[1], [0], [0], [1], [0, 0, 1, 1], [], []>} : vector<2x64xf32>, vector<64x1xf32>, vector<2x1xf32> -> vector<2x1xf32>
    %c0_60 = arith.constant 0 : index
    %c0_61 = arith.constant 0 : index
    %133 = vector.load %arg11[%c0_60, %c0_61] : memref<1x1xf32, #tpu.memory_space<vmem>>, vector<1x1xf32>
    %134 = vector.broadcast %133 : vector<1x1xf32> to vector<2x1xf32>
    %135 = arith.addf %132, %134 : vector<2x1xf32>
    %c0_62 = arith.constant 0 : index
    %c0_63 = arith.constant 0 : index
    %136 = vector.load %arg12[%c0_62, %c0_63] : memref<2x1xf32, #tpu.memory_space<vmem>>, vector<2x1xf32>
    tpu.vector_store %arg12[%c0_62, %c0_63], %135 {strides = array<i32>} : memref<2x1xf32, #tpu.memory_space<vmem>>, vector<2x1xf32>,
    return
  }
}

</mosaic_0001>

<bundles_post_ra>
// kernel: net_forward.4
= control target key start
LH: loop header
LB: loop body
LE: loop exit
PB: predicated region body
PF: predicated region fallthrough
CT: control target
= control target key end

     0   :  { %v2108_v3 = vmov 0   ;;  %vm74_vm0 = vcmask 130048   ;;  %vm264_vm1 = vcmask 523264   ;;  %vm2110_vm2 = vmmov 0   ;;  %s2845_s0 = inlined_call_operand.vmem [shape: f32[2,16,192], index: 0, kind: input, shape index: {}]   ;;  %s2846_s1 = inlined_call_operand.vmem [shape: f32[2,16,16], index: 1, kind: input, shape index: {}]   ;;  %s2847_s2 = inlined_call_operand.vmem [shape: f32[192,64], index: 2, kind: input, shape index: {}]   ;;  %s2848_s3 = inlined_call_operand.vmem [shape: f32[1,64], index: 3, kind: input, shape index: {}]   ;;  %s2849_s4 = inlined_call_operand.vmem [shape: f32[64,64], index: 4, kind: input, shape index: {}]   ;;  %s2850_s5 = inlined_call_operand.vmem [shape: f32[1,64], index: 5, kind: input, shape index: {}]   ;;  %s2851_s6 = inlined_call_operand.vmem [shape: f32[64,4], index: 6, kind: input, shape index: {}]   ;;  %s2852_s10 = inlined_call_operand.vmem [shape: f32[192,64], index: 10, kind: input, shape index: {}]   ;;  %s2853_s8 = inlined_call_operand.vmem [shape: f32[132,4], index: 8, kind: input, shape index: {}]   ;;  %s2854_s7 = inlined_call_operand.vmem [shape: f32[1,4], index: 7, kind: input, shape index: {}]   ;;  %s2855_s11 = inlined_call_operand.vmem [shape: f32[1,64], index: 11, kind: input, shape index: {}]   ;;  %s2856_s12 = inlined_call_operand.vmem [shape: f32[64,64], index: 12, kind: input, shape index: {}]   ;;  %s2857_s9 = inlined_call_operand.vmem [shape: f32[1,4], index: 9, kind: input, shape index: {}]   ;;  %s2858_s13 = inlined_call_operand.vmem [shape: f32[1,64], index: 13, kind: input, shape index: {}]   ;;  %s2859_s14 = inlined_call_operand.vmem [shape: f32[64,64], index: 14, kind: input, shape index: {}]   ;;  %s2860_s15 = inlined_call_operand.vmem [shape: f32[1,64], index: 15, kind: input, shape index: {}]   ;;  %s2861_s16 = inlined_call_operand.vmem [shape: f32[2,4,192], index: 16, kind: output, shape index: {0}]   ;;  %s2862_s17 = inlined_call_operand.vmem [shape: f32[2,4,4], index: 17, kind: output, shape index: {1}]  }
   0x1   :  { %2865 = sst [smem:[#allocation4_spill]] %s2845_s0  ;;  %189 = vmatprep.mubr.bf16.mxu0 %v2108_v3  ;;  %235 = vmatprep.mubr.bf16.mxu1 %v2108_v3  ;;  %v113_v21 = vld [vmem:[%s2847_s2 + $0x70] sm:$0xff]  ;;  %v114_v22 = vld [vmem:[%s2847_s2 + $0x78] sm:$0xff]  ;;  %v111_v24 = vld [vmem:[%s2847_s2 + $0x60] sm:$0xff]  ;;  %vm590_vm3 = vcmask 1048064   ;;  %vm850_vm4 = vcmask 1041408  }
   0x2   :  { %2866 = sst [smem:[#allocation5_spill]] %s2846_s1  ;;  %v149_v23 = vpack.c.bf16 %v114_v22, %v113_v21  ;;  %v112_v25 = vld [vmem:[%s2847_s2 + $0x68] sm:$0xff]  ;;  %v109_v29 = vld [vmem:[%s2847_s2 + $0x50] sm:$0xff]  ;;  %v110_v30 = vld [vmem:[%s2847_s2 + $0x58] sm:$0xff]  ;;  %vm752_vm5 = vcmask 31744   ;;  %vm1679_vm6 = vcmask 1043456  }
   0x3   :  { %s2867_s26 = sld [smem:[#allocation4_spill]]  ;;  %v148_v28 = vpack.c.bf16 %v112_v25, %v111_v24  ;;  %v147_v31 = vpack.c.bf16 %v110_v30, %v109_v29  ;;  %v107_v32 = vld [vmem:[%s2847_s2 + $0x40] sm:$0xff]  ;;  %v108_v33 = vld [vmem:[%s2847_s2 + $0x48] sm:$0xff]  ;;  %v105_v35 = vld [vmem:[%s2847_s2 + $0x30] sm:$0xff]  ;;  %v2109_v30 = vmov 0.0   ;;  %vm1680_vm7 = vcmask 523268  }
   0x4   :  { %s2868_s29 = sld [smem:[#allocation5_spill]]  ;;  %v146_v34 = vpack.c.bf16 %v108_v33, %v107_v32  ;;  %v106_v36 = vld [vmem:[%s2847_s2 + $0x38] sm:$0xff]  ;;  %v103_v38 = vld [vmem:[%s2847_s2 + $0x20] sm:$0xff]  ;;  %v104_v39 = vld [vmem:[%s2847_s2 + $0x28] sm:$0xff]  ;;  %vm1852_vm9 = vcmask 27648  }
   0x5   :  { %v145_v37 = vpack.c.bf16 %v106_v36, %v105_v35  ;;  %v144_v40 = vpack.c.bf16 %v104_v39, %v103_v38  ;;  %v101_v41 = vld [vmem:[%s2847_s2 + $0x10] sm:$0xff]  ;;  %v102_v42 = vld [vmem:[%s2847_s2 + $0x18] sm:$0xff]  ;;  %v99_v44 = vld [vmem:[%s2847_s2] sm:$0xff] }
   0x6   :  { %v143_v43 = vpack.c.bf16 %v102_v42, %v101_v41  ;;  %v100_v45 = vld [vmem:[%s2847_s2 + $0x8] sm:$0xff]  ;;  %v121_v47 = vld [vmem:[%s2847_s2 + $0xb0] sm:$0xff]  ;;  %v122_v48 = vld [vmem:[%s2847_s2 + $0xb8] sm:$0xff] }
   0x7   :  { %v142_v46 = vpack.c.bf16 %v100_v45, %v99_v44  ;;  %v153_v49 = vpack.c.bf16 %v122_v48, %v121_v47  ;;  %v119_v50 = vld [vmem:[%s2847_s2 + $0xa0] sm:$0xff]  ;;  %v120_v51 = vld [vmem:[%s2847_s2 + $0xa8] sm:$0xff]  ;;  %v117_v53 = vld [vmem:[%s2847_s2 + $0x90] sm:$0xff] }
   0x8   :  { %v152_v52 = vpack.c.bf16 %v120_v51, %v119_v50  ;;  %v118_v54 = vld [vmem:[%s2847_s2 + $0x98] sm:$0xff]  ;;  %v115_v56 = vld [vmem:[%s2847_s2 + $0x80] sm:$0xff]  ;;  %v116_v57 = vld [vmem:[%s2847_s2 + $0x88] sm:$0xff] }
   0x9   :  { %v57_v0 = vld [vmem:[%s2867_s26 + $0x8] sm:$0xff]  ;;  %v59_v1 = vld [vmem:[%s2867_s26 + $0x18] sm:$0xff]  ;;  %v56_v2 = vld [vmem:[%s2867_s26] sm:$0xff]  ;;  %v151_v55 = vpack.c.bf16 %v118_v54, %v117_v53  ;;  %v150_v58 = vpack.c.bf16 %v116_v57, %v115_v56 }
   0xa   :  { %v65_v4 = vpack.c.bf16 %v59_v1, %v57_v0  ;;  %v58_v5 = vld [vmem:[%s2867_s26 + $0x10] sm:$0xff]  ;;  %v61_v6 = vld [vmem:[%s2867_s26 + $0x28] sm:$0xff]  ;;  %v63_v7 = vld [vmem:[%s2867_s26 + $0x38] sm:$0xff] }
   0xb   :  { %v64_v8 = vpack.c.bf16 %v58_v5, %v56_v2  ;;  %v67_v9 = vpack.c.bf16 %v63_v7, %v61_v6  ;;  %v60_v10 = vld [vmem:[%s2867_s26 + $0x20] sm:$0xff]  ;;  %v62_v11 = vld [vmem:[%s2867_s26 + $0x30] sm:$0xff]  ;;  %v69_v14 = vld [vmem:[%s2868_s29 + $0x8] sm:$0xff] }
   0xc   :  { %v68_v12 = vld [vmem:[%s2868_s29] sm:$0xff]  ;;  %171 = vmatprep.subr.bf16.mxu0 %v65_v4  ;;  %v66_v13 = vpack.c.bf16 %v62_v11, %v60_v10  ;;  %v70_v15 = vld [vmem:[%s2868_s29 + $0x10] sm:$0xff]  ;;  %v71_v16 = vld [vmem:[%s2868_s29 + $0x18] sm:$0xff]  ;;  %v78_v26 = vsel %vm74_vm0, %v69_v14, 0.0 }
   0xd   :  { %v75_v17 = vsel %vm74_vm0, %v68_v12, 0.0  ;;  %172 = vmatpush1.bf16.msra.mxu0 %v64_v8  ;;  %217 = vmatprep.subr.bf16.mxu1 %v67_v9  ;;  %v2241_v18 = vpack.c.bf16 %v69_v14, %v68_v12  ;;  %v2243_v19 = vpack.c.bf16 %v71_v16, %v70_v15  ;;  %v81_v20 = vsel %vm74_vm0, %v70_v15, 0.0  ;;  %v1865_v32 = vld [vmem:[%s2848_s3] ss:$0 sm:$0xff]  ;;  %vm1681_vm8 = vmor %vm1680_vm7, %vm1679_vm6 }
   0xe   :  { %218 = vmatpush1.bf16.msra.mxu1 %v66_v13  ;;  %76 = vadd.xlane.f32.xlu0 %v75_v17  ;;  %v84_v27 = vsel %vm74_vm0, %v71_v16, 0.0 }
   0xf   :  { %82 = vadd.xlane.f32.xlu1 %v81_v20  ;;  %271 = vmatprep.subr.bf16.mxu0 %v2108_v3 }
  0x10   :  { %1863 = vmatmul.mubr.msk.bf16.vlgmr.msra.gmra.mxu0 %vm74_vm0, %v2241_v18  ;;  %1948 = vmatprep.subr.bf16.mxu1 %v2109_v30 }
  0x11   :  { %1864 = vmatmul.mubr.msk.bf16.vlgmr.msra.gmra.mxu1 %vm74_vm0, %v2243_v19  ;;  %272 = vmatpush1.bf16.msra.mxu0 %v149_v23 }
  0x12   :  { %79 = vadd.xlane.f32.xlu0 %v78_v26  ;;  %273 = vmatprep.subr.bf16.mxu0 %v2108_v3 }
  0x13   :  { %85 = vadd.xlane.f32.xlu1 %v84_v27  ;;  %1950 = vmatprep.mubr.msk.bf16.mxu1 %vm2110_vm2, %v2109_v30 }
  0x15   :  { %274 = vmatpush1.bf16.msra.mxu0 %v148_v28 }
  0x16   :  { %275 = vmatprep.subr.bf16.mxu0 %v2108_v3 }
  0x19   :  { %276 = vmatpush1.bf16.msra.mxu0 %v147_v31 }
  0x1a   :  { %277 = vmatprep.subr.bf16.mxu0 %v2108_v3 }
  0x1d   :  { %278 = vmatpush1.bf16.msra.mxu0 %v146_v34 }
  0x1e   :  { %279 = vmatprep.subr.bf16.mxu0 %v2108_v3 }
  0x21   :  { %280 = vmatpush1.bf16.msra.mxu0 %v145_v37 }
  0x22   :  { %281 = vmatprep.subr.bf16.mxu0 %v2108_v3 }
  0x25   :  { %282 = vmatpush1.bf16.msra.mxu0 %v144_v40 }
  0x26   :  { %283 = vmatprep.subr.bf16.mxu0 %v2108_v3 }
  0x29   :  { %284 = vmatpush1.bf16.msra.mxu0 %v143_v43 }
  0x2a   :  { %285 = vmatprep.subr.bf16.mxu0 %v2108_v3 }
  0x2d   :  { %286 = vmatpush1.bf16.msra.mxu0 %v142_v46 }
  0x2e   :  { %295 = vmatprep.subr.bf16.mxu0 %v2108_v3 }
  0x31   :  { %296 = vmatpush2.bf16.msra.mxu0 %v153_v49 }
  0x32   :  { %297 = vmatprep.subr.bf16.mxu0 %v2108_v3 }
  0x35   :  { %298 = vmatpush2.bf16.msra.mxu0 %v152_v52 }
  0x36   :  { %299 = vmatprep.subr.bf16.mxu0 %v2108_v3 }
  0x39   :  { %300 = vmatpush2.bf16.msra.mxu0 %v151_v55 }
  0x3a   :  { %301 = vmatprep.subr.bf16.mxu0 %v2108_v3 }
  0x3d   :  { %302 = vmatpush2.bf16.msra.mxu0 %v150_v58 }
  0x97   :  { %v77_v59 = vpop.xlane.xlu0 %76 }
  0x98   :  { %v83_v60 = vpop.xlane.xlu1 %82  ;;  %v87_v1 = vmax.f32 %v77_v59, 1.0 }
  0x99   :  { %v89_v62 = vmax.f32 %v83_v60, 1.0 }
  0x9b   :  { %v80_v61 = vpop.xlane.xlu0 %79  ;;  %2072 = vrcp.f32 %v89_v62 }
  0x9c   :  { %v86_v63 = vpop.xlane.xlu1 %85  ;;  %v88_v0 = vmax.f32 %v80_v61, 1.0 }
  0x9d   :  { %v90_v2 = vmax.f32 %v86_v63, 1.0 }
  0x9e   :  { %2074 = vrcp.f32 %v88_v0 }
  0x9f   :  { %2076 = vrcp.f32 %v87_v1 }
  0xa0   :  { %2078 = vrcp.f32 %v90_v2 }
  0xa8   :  { %v2336_v6 = vpop.eup %2072 }
  0xab   :  { %v2338_v8 = vpop.eup %2074 }
  0xac   :  { %v2340_v10 = vpop.eup %2076 }
  0xad   :  { %v2342_v12 = vpop.eup %2078 }
  0xd0   :  { %v191_v4 = vpop.f32.mrf.mxu0 }
  0xd1   :  { %v237_v5 = vpop.f32.mrf.mxu1  ;;  %v246_v22 = vmul.f32 %v2340_v10, %v191_v4 }
  0xd2   :  { %v193_v7 = vpop.f32.mrf.mxu0  ;;  %v250_v27 = vmul.f32 %v2336_v6, %v237_v5 }
  0xd3   :  { %v239_v9 = vpop.f32.mrf.mxu1  ;;  %v247_v17 = vmul.f32 %v2340_v10, %v193_v7 }
  0xd4   :  { %v195_v11 = vpop.f32.mrf.mxu0  ;;  %v251_v15 = vmul.f32 %v2336_v6, %v239_v9 }
  0xd5   :  { %v241_v13 = vpop.f32.mrf.mxu1  ;;  %v248_v14 = vmul.f32 %v2338_v8, %v195_v11 }
  0xd6   :  { %v197_v16 = vpop.f32.mrf.mxu0  ;;  %v252_v28 = vmul.f32 %v2342_v12, %v241_v13 }
  0xd7   :  { %v249_v20 = vmul.f32 %v2338_v8, %v197_v16  ;;  %v243_v21 = vpop.f32.mrf.mxu1  ;;  %v2352_v25 = vpack.c.bf16 %v248_v14, %v246_v22 }
  0xd8   :  { %v253_v23 = vmul.f32 %v2342_v12, %v243_v21  ;;  %v2363_v29 = vpack.c.bf16 %v252_v28, %v250_v27 }
  0xd9   :  { %v2350_v24 = vpack.c.bf16 %v249_v20, %v247_v17 }
  0xda   :  { %v2354_v26 = vpack.c.bf16 %v253_v23, %v251_v15 }
  0xdb   :  { %1866 = vmatprep.mubr.msk.bf16.mxu0 %vm264_vm1, %v2350_v24 }
  0xdc   :  { %304 = vmatmul.mubr.bf16.vlgmr.msra.gmra.mxu0 %v2352_v25 }
  0xdd   :  { %1867 = vmatprep.mubr.msk.bf16.mxu0 %vm264_vm1, %v2354_v26 }
  0xe4   :  { %312 = vmatmul.mubr.bf16.gmra.mxu0 %v2363_v29 }
 0x19c   :  { %v305_v31 = vpop.f32.mrf.mxu0 }
 0x19d   :  { %v306_v35 = vadd.f32 %v1865_v32, %v305_v31 }
 0x19e   :  { %v307_v33 = vpop.f32.mrf.mxu0 }
 0x19f   :  { %v320_v40 = vmax.f32 %v306_v35, 0.0 }
 0x1a0   :  { %v308_v34 = vpop.f32.mrf.mxu0 }
 0x1a1   :  { %v309_v36 = vadd.f32 %v1865_v32, %v308_v34  ;;  %v324_v46 = vsel %vm264_vm1, %v320_v40, 0.0 }
 0x1a2   :  { %v310_v37 = vpop.f32.mrf.mxu0 }
 0x1a3   :  { %v321_v38 = vmax.f32 %v309_v36, 0.0 }
 0x1a4   :  { %v313_v39 = vpop.f32.mrf.mxu0 }
 0x1a5   :  { %v314_v41 = vadd.f32 %v1865_v32, %v313_v39  ;;  %v325_v43 = vsel %vm264_vm1, %v321_v38, 0.0 }
 0x1a6   :  { %v315_v42 = vpop.f32.mrf.mxu0  ;;  %v326_v49 = vadd.f32 %v325_v43, %v324_v46  ;;  %v128_v43 = vld [vmem:[%s2849_s4 + $0x20] sm:$0xff]  ;;  %v126_v46 = vld [vmem:[%s2849_s4 + $0x10] sm:$0xff] }
 0x1a7   :  { %v322_v44 = vmax.f32 %v314_v41, 0.0  ;;  %v131_v41 = vld [vmem:[%s2849_s4 + $0x38] sm:$0xff] }
 0x1a8   :  { %v316_v45 = vpop.f32.mrf.mxu0 }
 0x1a9   :  { %v327_v47 = vsel %vm264_vm1, %v322_v44, 0.0  ;;  %v317_v48 = vadd.f32 %v1865_v32, %v316_v45 }
 0x1aa   :  { %v318_v50 = vpop.f32.mrf.mxu0  ;;  %v328_v52 = vadd.f32 %v327_v47, %v326_v49  ;;  %v127_v47 = vld [vmem:[%s2849_s4 + $0x18] sm:$0xff]  ;;  %v124_v49 = vld [vmem:[%s2849_s4] sm:$0xff] }
 0x1ab   :  { %v323_v51 = vmax.f32 %v317_v48, 0.0  ;;  %v374_v48 = vpack.c.bf16 %v127_v47, %v126_v46  ;;  %v125_v50 = vld [vmem:[%s2849_s4 + $0x8] sm:$0xff] }
 0x1ad   :  { %v329_v53 = vsel %vm264_vm1, %v323_v51, 0.0 }
 0x1ae   :  { %v330_v54 = vadd.f32 %v329_v53, %v328_v52 }
 0x1b0   :  { %v331_v55 = vrot.slane %v330_v54, 4 }
 0x1b2   :  { %v332_v56 = vadd.f32 %v331_v55, %v330_v54 }
 0x1b4   :  { %v333_v57 = vrot.slane %v332_v56, 2 }
 0x1b6   :  { %v334_v58 = vadd.f32 %v333_v57, %v332_v56 }
 0x1b8   :  { %v335_v59 = vrot.slane %v334_v58, 1 }
 0x1ba   :  { %v336_v60 = vadd.f32 %v335_v59, %v334_v58 }
 0x1bc   :  { %v338_v61 = vmul.f32 0.03125, %v336_v60 }
 0x1be   :  { %v339_v62 = vsub.f32 %v320_v40, %v338_v61  ;;  %v340_v63 = vsub.f32 %v321_v38, %v338_v61  ;;  %v341_v0 = vsub.f32 %v322_v44, %v338_v61  ;;  %v342_v1 = vsub.f32 %v323_v51, %v338_v61  ;;  %v130_v40 = vld [vmem:[%s2849_s4 + $0x30] sm:$0xff]  ;;  %v129_v44 = vld [vmem:[%s2849_s4 + $0x28] sm:$0xff] }
 0x1bf   :  { %v376_v42 = vpack.c.bf16 %v131_v41, %v130_v40  ;;  %v375_v45 = vpack.c.bf16 %v129_v44, %v128_v43  ;;  %v373_v51 = vpack.c.bf16 %v125_v50, %v124_v49 }
 0x1c0   :  { %v343_v2 = vmul.f32 %v339_v62, %v339_v62  ;;  %v344_v4 = vmul.f32 %v340_v63, %v340_v63  ;;  %v345_v5 = vmul.f32 %v341_v0, %v341_v0  ;;  %v346_v7 = vmul.f32 %v342_v1, %v342_v1 }
 0x1c2   :  { %v347_v9 = vsel %vm264_vm1, %v343_v2, 0.0  ;;  %v348_v11 = vsel %vm264_vm1, %v344_v4, 0.0  ;;  %v350_v14 = vsel %vm264_vm1, %v345_v5, 0.0  ;;  %v352_v16 = vsel %vm264_vm1, %v346_v7, 0.0  ;;  %v1870_v4 = vld [vmem:[%s2850_s5] ss:$0 sm:$0xff] }
 0x1c3   :  { %v349_v13 = vadd.f32 %v348_v11, %v347_v9  ;;  %s2111_s5 = smov 64  }
 0x1c5   :  { %v351_v15 = vadd.f32 %v350_v14, %v349_v13 }
 0x1c7   :  { %v353_v17 = vadd.f32 %v352_v16, %v351_v15 }
 0x1c9   :  { %v354_v20 = vrot.slane %v353_v17, 4 }
 0x1cb   :  { %v355_v21 = vadd.f32 %v354_v20, %v353_v17 }
 0x1cd   :  { %v356_v22 = vrot.slane %v355_v21, 2 }
 0x1cf   :  { %v357_v23 = vadd.f32 %v356_v22, %v355_v21 }
 0x1d1   :  { %v358_v27 = vrot.slane %v357_v23, 1 }
 0x1d3   :  { %v359_v28 = vadd.f32 %v358_v27, %v357_v23 }
 0x1d5   :  { %v360_v31 = vmul.f32 0.03125, %v359_v28 }
 0x1d7   :  { %v361_v32 = vadd.f32 1e-05, %v360_v31 }
 0x1d9   :  { %2080 = vrsqrt.f32 %v361_v32 }
 0x1e6   :  { %v2081_v33 = vpop.eup %2080 }
 0x1e7   :  { %v365_v34 = vmul.f32 %v2081_v33, %v341_v0  ;;  %v366_v35 = vmul.f32 %v2081_v33, %v342_v1  ;;  %v363_v36 = vmul.f32 %v2081_v33, %v339_v62  ;;  %v364_v37 = vmul.f32 %v2081_v33, %v340_v63 }
 0x1e9   :  { %371 = vst.msk [vmem:[#allocation2 + $0x20] sm:$0xff] %vm264_vm1, %v365_v34  ;;  %372 = vst.msk [vmem:[#allocation2 + $0x30] sm:$0xff] %vm264_vm1, %v366_v35  ;;  %v367_v38 = vpack.c.bf16 %v364_v37, %v363_v36  ;;  %v368_v39 = vpack.c.bf16 %v366_v35, %v365_v34 }
 0x1ea   :  { %369 = vst.msk [vmem:[#allocation2] sm:$0xff] %vm264_vm1, %v363_v36  ;;  %370 = vst.msk [vmem:[#allocation2 + $0x10] sm:$0xff] %vm264_vm1, %v364_v37 }
 0x1eb   :  { %1949 = vmatpush3.bf16.msra.mxu1 %v367_v38 }
 0x1ec   :  { %1954 = vmatprep.subr.bf16.mxu1 %v2109_v30 }
 0x1ee   :  { %1951 = vmatmul.mubr.msk.bf16.vlgmr.msra.gmra.mxu1 %vm74_vm0, %v2241_v18 }
 0x1ef   :  { %1955 = vmatpush3.bf16.msra.mxu1 %v368_v39  ;;  %1956 = vmatprep.mubr.msk.bf16.mxu1 %vm2110_vm2, %v2109_v30 }
 0x1f0   :  { %1960 = vmatprep.subr.bf16.mxu1 %v376_v42 }
 0x1f6   :  { %1957 = vmatmul.mubr.msk.bf16.vlgmr.msra.gmra.mxu1 %vm74_vm0, %v2243_v19 }
 0x1f7   :  { %1961 = vmatpush3.bf16.msra.mxu1 %v376_v42 }
 0x1f8   :  { %1962 = vmatprep.subr.bf16.mxu1 %v375_v45 }
 0x1fb   :  { %1963 = vmatpush3.bf16.msra.mxu1 %v375_v45 }
 0x1fc   :  { %1964 = vmatprep.subr.bf16.mxu1 %v374_v48 }
 0x1ff   :  { %1965 = vmatpush3.bf16.msra.mxu1 %v374_v48 }
 0x200   :  { %1966 = vmatprep.subr.bf16.mxu1 %v373_v51 }
 0x203   :  { %1967 = vmatpush3.bf16.msra.mxu1 %v373_v51 }
 0x204   :  { %1972 = vmatprep.subr.bf16.mxu1 %v2109_v30 }
 0x2ae   :  { %v411_v52 = vpop.f32.mrf.mxu1 }
 0x2af   :  { %v459_v55 = vmul.f32 %v2340_v10, %v411_v52 }
 0x2b0   :  { %v1952_v53 = vpop.f32.mrf.mxu1 }
 0x2b2   :  { %v414_v54 = vpop.f32.mrf.mxu1 }
 0x2b3   :  { %v460_v56 = vmul.f32 %v2338_v8, %v414_v54 }
 0x2b4   :  { %v1953_v57 = vpop.f32.mrf.mxu1 }
 0x2b5   :  { %v463_v58 = vpack.c.bf16 %v460_v56, %v459_v55 }
 0x2b6   :  { %v452_v59 = vpop.f32.mrf.mxu1 }
 0x2b7   :  { %1968 = vmatprep.mubr.msk.bf16.mxu1 %vm264_vm1, %v463_v58  ;;  %v461_v62 = vmul.f32 %v2336_v6, %v452_v59 }
 0x2b8   :  { %v1958_v60 = vpop.f32.mrf.mxu1 }
 0x2ba   :  { %v455_v61 = vpop.f32.mrf.mxu1 }
 0x2bb   :  { %v462_v63 = vmul.f32 %v2342_v12, %v455_v61 }
 0x2bc   :  { %v1959_v0 = vpop.f32.mrf.mxu1 }
 0x2bd   :  { %v464_v1 = vpack.c.bf16 %v462_v63, %v461_v62 }
 0x2bf   :  { %1969 = vmatmul.mubr.msk.bf16.vlgmr.msra.gmra.mxu1 %vm264_vm1, %v464_v1 }
 0x2c0   :  { %1974 = vmatprep.mubr.msk.bf16.mxu1 %vm2110_vm2, %v2109_v30 }
 0x37f   :  { %v1970_v2 = vpop.f32.mrf.mxu1 }
 0x380   :  { %v520_v11 = vadd.f32 %v1970_v2, %v1870_v4 }
 0x381   :  { %v511_v5 = vpop.f32.mrf.mxu1 }
 0x382   :  { %v512_v7 = vadd.f32 %v1870_v4, %v511_v5  ;;  %v528_v17 = vmax.f32 %v520_v11, 0.0  ;;  %v139_v11 = vld [vmem:[%s2851_s6 + $0x30] sm:$0xff] }
 0x383   :  { %v1971_v9 = vpop.f32.mrf.mxu1 }
 0x384   :  { %v526_v14 = vmax.f32 %v512_v7, 0.0  ;;  %v523_v15 = vadd.f32 %v1971_v9, %v1870_v4  ;;  %v533_v28 = vsel %vm264_vm1, %v528_v17, 0.0 }
 0x385   :  { %v514_v13 = vpop.f32.mrf.mxu1 }
 0x386   :  { %v515_v16 = vadd.f32 %v1870_v4, %v514_v13  ;;  %v530_v21 = vsel %vm264_vm1, %v526_v14, 0.0  ;;  %v529_v22 = vmax.f32 %v523_v15, 0.0  ;;  %v140_v13 = vld [vmem:[%s2851_s6 + $0x38] sm:$0xff]  ;;  %v137_v15 = vld [vmem:[%s2851_s6 + $0x20] sm:$0xff] }
 0x388   :  { %v527_v20 = vmax.f32 %v515_v16, 0.0  ;;  %v535_v32 = vsel %vm264_vm1, %v529_v22, 0.0  ;;  %v138_v16 = vld [vmem:[%s2851_s6 + $0x28] sm:$0xff] }
 0x38a   :  { %v531_v23 = vsel %vm264_vm1, %v527_v20, 0.0 }
 0x38b   :  { %v532_v27 = vadd.f32 %v531_v23, %v530_v21  ;;  %v136_v21 = vld [vmem:[%s2851_s6 + $0x18] sm:$0xff]  ;;  %v133_v23 = vld [vmem:[%s2851_s6] sm:$0xff] }
 0x38d   :  { %v534_v31 = vadd.f32 %v533_v28, %v532_v27  ;;  %v134_v27 = vld [vmem:[%s2851_s6 + $0x8] sm:$0xff] }
 0x38e   :  { %v595_v28 = vpack.c.bf16 %v134_v27, %v133_v23  ;;  %v969_v27 = vld [vmem:[%s2852_s10 + $0x80] sm:$0xff] }
 0x38f   :  { %v536_v33 = vadd.f32 %v535_v32, %v534_v31 }
 0x391   :  { %v537_v34 = vrot.slane %v536_v33, 4 }
 0x393   :  { %v538_v35 = vadd.f32 %v537_v34, %v536_v33 }
 0x395   :  { %v539_v36 = vrot.slane %v538_v35, 2 }
 0x397   :  { %v540_v37 = vadd.f32 %v539_v36, %v538_v35 }
 0x399   :  { %v541_v38 = vrot.slane %v540_v37, 1 }
 0x39b   :  { %v542_v39 = vadd.f32 %v541_v38, %v540_v37 }
 0x39d   :  { %v543_v40 = vmul.f32 0.03125, %v542_v39 }
 0x39f   :  { %v544_v41 = vsub.f32 %v526_v14, %v543_v40  ;;  %v545_v42 = vsub.f32 %v527_v20, %v543_v40  ;;  %v546_v43 = vsub.f32 %v528_v17, %v543_v40  ;;  %v547_v44 = vsub.f32 %v529_v22, %v543_v40  ;;  %v135_v20 = vld [vmem:[%s2851_s6 + $0x10] sm:$0xff] }
 0x3a0   :  { %v598_v14 = vpack.c.bf16 %v140_v13, %v139_v11  ;;  %v597_v17 = vpack.c.bf16 %v138_v16, %v137_v15  ;;  %v596_v22 = vpack.c.bf16 %v136_v21, %v135_v20  ;;  %v975_v13 = vld [vmem:[%s2852_s10 + $0xb0] sm:$0xff]  ;;  %v973_v16 = vld [vmem:[%s2852_s10 + $0xa0] sm:$0xff] }
 0x3a1   :  { %v548_v45 = vmul.f32 %v544_v41, %v544_v41  ;;  %v549_v46 = vmul.f32 %v545_v42, %v545_v42  ;;  %v550_v47 = vmul.f32 %v546_v43, %v546_v43  ;;  %v551_v48 = vmul.f32 %v547_v44, %v547_v44  ;;  %v971_v21 = vld [vmem:[%s2852_s10 + $0x90] sm:$0xff] }
 0x3a2   :  { %1984 = vmatprep.subr.bf16.mxu0 %v598_v14 }
 0x3a3   :  { %v552_v49 = vsel %vm264_vm1, %v548_v45, 0.0  ;;  %v553_v50 = vsel %vm264_vm1, %v549_v46, 0.0  ;;  %v555_v52 = vsel %vm264_vm1, %v550_v47, 0.0  ;;  %v557_v54 = vsel %vm264_vm1, %v551_v48, 0.0  ;;  %1985 = vmatpush3.bf16.msra.mxu0 %v598_v14  ;;  %v968_v45 = vld [vmem:[%s2852_s10 + $0x78] sm:$0xff] }
 0x3a4   :  { %v554_v51 = vadd.f32 %v553_v50, %v552_v49  ;;  %1986 = vmatprep.subr.bf16.mxu0 %v597_v17  ;;  %v976_v14 = vld [vmem:[%s2852_s10 + $0xb8] sm:$0xff] }
 0x3a5   :  { %v1007_v15 = vpack.c.bf16 %v976_v14, %v975_v13 }
 0x3a6   :  { %v556_v53 = vadd.f32 %v555_v52, %v554_v51  ;;  %v965_v52 = vld [vmem:[%s2852_s10 + $0x60] sm:$0xff] }
 0x3a7   :  { %1987 = vmatpush3.bf16.msra.mxu0 %v597_v17  ;;  %v974_v17 = vld [vmem:[%s2852_s10 + $0xa8] sm:$0xff] }
 0x3a8   :  { %v558_v55 = vadd.f32 %v557_v54, %v556_v53  ;;  %1988 = vmatprep.subr.bf16.mxu0 %v596_v22  ;;  %v966_v53 = vld [vmem:[%s2852_s10 + $0x68] sm:$0xff]  ;;  %v1006_v20 = vpack.c.bf16 %v974_v17, %v973_v16 }
 0x3a9   :  { %v1002_v54 = vpack.c.bf16 %v966_v53, %v965_v52  ;;  %v827_v53 = vld [vmem:[%s2853_s8 + $0x80] sm:$0xf] }
 0x3aa   :  { %v559_v56 = vrot.slane %v558_v55, 4 }
 0x3ab   :  { %1989 = vmatpush3.bf16.msra.mxu0 %v596_v22  ;;  %v972_v22 = vld [vmem:[%s2852_s10 + $0x98] sm:$0xff] }
 0x3ac   :  { %v560_v57 = vadd.f32 %v559_v56, %v558_v55  ;;  %1990 = vmatprep.subr.bf16.mxu0 %v595_v28  ;;  %v963_v55 = vld [vmem:[%s2852_s10 + $0x50] sm:$0xff]  ;;  %v964_v56 = vld [vmem:[%s2852_s10 + $0x58] sm:$0xff]  ;;  %v1005_v23 = vpack.c.bf16 %v972_v22, %v971_v21 }
 0x3ae   :  { %v561_v58 = vrot.slane %v560_v57, 2 }
 0x3af   :  { %1991 = vmatpush3.bf16.msra.mxu0 %v595_v28  ;;  %v970_v28 = vld [vmem:[%s2852_s10 + $0x88] sm:$0xff] }
 0x3b0   :  { %v562_v59 = vadd.f32 %v561_v58, %v560_v57  ;;  %1014 = vmatprep.subr.bf16.mxu0 %v2108_v3  ;;  %v1001_v57 = vpack.c.bf16 %v964_v56, %v963_v55  ;;  %v961_v58 = vld [vmem:[%s2852_s10 + $0x40] sm:$0xff] }
 0x3b2   :  { %v563_v60 = vrot.slane %v562_v59, 1 }
 0x3b4   :  { %v564_v61 = vadd.f32 %v563_v60, %v562_v59  ;;  %v959_v60 = vld [vmem:[%s2852_s10 + $0x30] sm:$0xff] }
 0x3b6   :  { %v565_v62 = vmul.f32 0.03125, %v564_v61  ;;  %v960_v61 = vld [vmem:[%s2852_s10 + $0x38] sm:$0xff] }
 0x3b8   :  { %v566_v63 = vadd.f32 1e-05, %v565_v62  ;;  %v999_v62 = vpack.c.bf16 %v960_v61, %v959_v60 }
 0x3ba   :  { %2082 = vrsqrt.f32 %v566_v63  ;;  %v957_v63 = vld [vmem:[%s2852_s10 + $0x20] sm:$0xff] }
 0x3c7   :  { %v2083_v0 = vpop.eup %2082 }
 0x3c8   :  { %v569_v1 = vmul.f32 %v2083_v0, %v545_v42  ;;  %v568_v2 = vmul.f32 %v2083_v0, %v544_v41  ;;  %v570_v5 = vmul.f32 %v2083_v0, %v546_v43  ;;  %v571_v7 = vmul.f32 %v2083_v0, %v547_v44  ;;  %v967_v44 = vld [vmem:[%s2852_s10 + $0x70] sm:$0xff]  ;;  %v958_v0 = vld [vmem:[%s2852_s10 + $0x28] sm:$0xff] }
 0x3c9   :  { %v1003_v50 = vpack.c.bf16 %v968_v45, %v967_v44  ;;  %v815_v44 = vld [vmem:[%s2853_s8 + $0x20] sm:$0xff]  ;;  %v816_v45 = vld [vmem:[%s2853_s8 + $0x28] sm:$0xff] }
 0x3ca   :  { %580 = vrot.lane.b32.xlu1 %v569_v1, %s2111_s5  ;;  %578 = vrot.lane.b32.xlu0 %v568_v2, %s2111_s5  ;;  %v572_v4 = vpack.c.bf16 %v569_v1, %v568_v2  ;;  %v573_v9 = vpack.c.bf16 %v571_v7, %v570_v5  ;;  %v998_v1 = vpack.c.bf16 %v958_v0, %v957_v63  ;;  %v955_v2 = vld [vmem:[%s2852_s10 + $0x10] sm:$0xff] }
 0x3cc   :  { %1973 = vmatpush3.bf16.msra.mxu1 %v572_v4  ;;  %v956_v4 = vld [vmem:[%s2852_s10 + $0x18] sm:$0xff] }
 0x3cd   :  { %1978 = vmatprep.subr.bf16.mxu1 %v2109_v30 }
 0x3ce   :  { %582 = vrot.lane.b32.xlu1 %v570_v5, %s2111_s5  ;;  %v997_v5 = vpack.c.bf16 %v956_v4, %v955_v2 }
 0x3cf   :  { %1975 = vmatmul.mubr.msk.bf16.vlgmr.msra.gmra.mxu1 %vm74_vm0, %v2241_v18 }
 0x3d0   :  { %1979 = vmatpush3.bf16.msra.mxu1 %v573_v9  ;;  %1980 = vmatprep.mubr.msk.bf16.mxu1 %vm2110_vm2, %v2109_v30  ;;  %v954_v9 = vld [vmem:[%s2852_s10 + $0x8] sm:$0xff] }
 0x3d1   :  { %854 = vmatprep.subr.bf16.mxu1 %v2108_v3 }
 0x3d2   :  { %584 = vrot.lane.b32.xlu1 %v571_v7, %s2111_s5  ;;  %v953_v7 = vld [vmem:[%s2852_s10] sm:$0xff] }
 0x3d3   :  { %v996_v11 = vpack.c.bf16 %v954_v9, %v953_v7 }
 0x3d7   :  { %1981 = vmatmul.mubr.msk.bf16.vlgmr.msra.gmra.mxu1 %vm74_vm0, %v2243_v19 }
 0x43c   :  { %v581_v31 = vpop.permute.xlu1 %580  ;;  %v579_v32 = vpop.permute.xlu0 %578 }
 0x43d   :  { %592 = vst.msk [vmem:[#allocation2 + $0x10] sm:$0xff] %vm590_vm3, %v581_v31  ;;  %591 = vst.msk [vmem:[#allocation2] sm:$0xff] %vm590_vm3, %v579_v32  ;;  %v1004_v31 = vpack.c.bf16 %v970_v28, %v969_v27  ;;  %v825_v32 = vld [vmem:[%s2853_s8 + $0x70] sm:$0xff] }
 0x440   :  { %v583_v33 = vpop.permute.xlu1 %582 }
 0x441   :  { %593 = vst.msk [vmem:[#allocation2 + $0x20] sm:$0xff] %vm590_vm3, %v583_v33  ;;  %v826_v33 = vld [vmem:[%s2853_s8 + $0x78] sm:$0xff] }
 0x444   :  { %v585_v34 = vpop.permute.xlu1 %584 }
 0x445   :  { %594 = vst.msk [vmem:[#allocation2 + $0x30] sm:$0xff] %vm590_vm3, %v585_v34  ;;  %v835_v34 = vpack.c.bf16 %v826_v33, %v825_v32 }
 0x447   :  { %855 = vmatpush1.bf16.msra.mxu1 %v835_v34 }
 0x448   :  { %856 = vmatprep.subr.bf16.mxu1 %v2108_v3 }
 0x48f   :  { %v633_v35 = vpop.f32.mrf.mxu1 }
 0x490   :  { %v681_v38 = vmul.f32 %v2340_v10, %v633_v35  ;;  %v821_v35 = vld [vmem:[%s2853_s8 + $0x50] sm:$0xff] }
 0x491   :  { %v1976_v36 = vpop.f32.mrf.mxu1 }
 0x492   :  { %v822_v36 = vld [vmem:[%s2853_s8 + $0x58] sm:$0xff] }
 0x493   :  { %v636_v37 = vpop.f32.mrf.mxu1 }
 0x494   :  { %v682_v39 = vmul.f32 %v2338_v8, %v636_v37  ;;  %v833_v37 = vpack.c.bf16 %v822_v36, %v821_v35 }
 0x495   :  { %v1977_v40 = vpop.f32.mrf.mxu1 }
 0x496   :  { %v685_v41 = vpack.c.bf16 %v682_v39, %v681_v38  ;;  %v819_v38 = vld [vmem:[%s2853_s8 + $0x40] sm:$0xff]  ;;  %v820_v39 = vld [vmem:[%s2853_s8 + $0x48] sm:$0xff] }
 0x497   :  { %v674_v42 = vpop.f32.mrf.mxu1  ;;  %v832_v40 = vpack.c.bf16 %v820_v39, %v819_v38 }
 0x498   :  { %1992 = vmatprep.mubr.msk.bf16.mxu0 %vm264_vm1, %v685_v41  ;;  %v683_v47 = vmul.f32 %v2336_v6, %v674_v42  ;;  %v817_v41 = vld [vmem:[%s2853_s8 + $0x30] sm:$0xff]  ;;  %v818_v42 = vld [vmem:[%s2853_s8 + $0x38] sm:$0xff] }
 0x499   :  { %v1982_v43 = vpop.f32.mrf.mxu1 }
 0x49a   :  { %v831_v43 = vpack.c.bf16 %v818_v42, %v817_v41 }
 0x49b   :  { %v677_v46 = vpop.f32.mrf.mxu1 }
 0x49c   :  { %v684_v48 = vmul.f32 %v2342_v12, %v677_v46  ;;  %v830_v46 = vpack.c.bf16 %v816_v45, %v815_v44 }
 0x49d   :  { %v1983_v49 = vpop.f32.mrf.mxu1 }
 0x49e   :  { %v686_v51 = vpack.c.bf16 %v684_v48, %v683_v47  ;;  %v813_v47 = vld [vmem:[%s2853_s8 + $0x10] sm:$0xff]  ;;  %v814_v48 = vld [vmem:[%s2853_s8 + $0x18] sm:$0xff] }
 0x49f   :  { %v829_v49 = vpack.c.bf16 %v814_v48, %v813_v47  ;;  %v1881_v47 = vld [vmem:[%s2855_s11] ss:$0 sm:$0xff] }
 0x4a0   :  { %1993 = vmatmul.mubr.msk.bf16.vlgmr.msra.gmra.mxu0 %vm264_vm1, %v686_v51  ;;  %v812_v51 = vld [vmem:[%s2853_s8 + $0x8] sm:$0xff] }
 0x4a1   :  { %1015 = vmatpush1.bf16.msra.mxu0 %v1003_v50  ;;  %1882 = vmatprep.mubr.msk.bf16.mxu0 %vm264_vm1, %v2350_v24  ;;  %v962_v24 = vld [vmem:[%s2852_s10 + $0x48] sm:$0xff]  ;;  %v811_v50 = vld [vmem:[%s2853_s8] sm:$0xff] }
 0x4a2   :  { %1016 = vmatprep.subr.bf16.mxu0 %v2108_v3  ;;  %v1000_v59 = vpack.c.bf16 %v962_v24, %v961_v58  ;;  %v828_v52 = vpack.c.bf16 %v812_v51, %v811_v50 }
 0x4a5   :  { %1017 = vmatpush1.bf16.msra.mxu0 %v1002_v54  ;;  %v836_v54 = vpack.c.bf16 %v827_v53, %v827_v53 }
 0x4a6   :  { %1018 = vmatprep.subr.bf16.mxu0 %v2108_v3 }
 0x4a7   :  { %v852_v55 = vsel %vm850_vm4, %v836_v54, 0 }
 0x4a9   :  { %1019 = vmatpush1.bf16.msra.mxu0 %v1001_v57  ;;  %v1875_v57 = vld [vmem:[%s2854_s7] ss:$0 sm:$0xff] }
 0x4aa   :  { %1020 = vmatprep.subr.bf16.mxu0 %v2108_v3 }
 0x4ad   :  { %1021 = vmatpush1.bf16.msra.mxu0 %v1000_v59 }
 0x4ae   :  { %1022 = vmatprep.subr.bf16.mxu0 %v2108_v3 }
 0x4b1   :  { %1023 = vmatpush1.bf16.msra.mxu0 %v999_v62 }
 0x4b2   :  { %1024 = vmatprep.subr.bf16.mxu0 %v2108_v3 }
 0x4b5   :  { %1025 = vmatpush1.bf16.msra.mxu0 %v998_v1 }
 0x4b6   :  { %1026 = vmatprep.subr.bf16.mxu0 %v2108_v3 }
 0x4b9   :  { %1027 = vmatpush1.bf16.msra.mxu0 %v997_v5 }
 0x4ba   :  { %1028 = vmatprep.subr.bf16.mxu0 %v2108_v3 }
 0x4bd   :  { %1029 = vmatpush1.bf16.msra.mxu0 %v996_v11 }
 0x4be   :  { %1038 = vmatprep.subr.bf16.mxu0 %v2108_v3 }
 0x4c1   :  { %1039 = vmatpush2.bf16.msra.mxu0 %v1007_v15 }
 0x4c2   :  { %1040 = vmatprep.subr.bf16.mxu0 %v2108_v3 }
 0x4c5   :  { %1041 = vmatpush2.bf16.msra.mxu0 %v1006_v20 }
 0x4c6   :  { %1042 = vmatprep.subr.bf16.mxu0 %v2108_v3 }
 0x4c9   :  { %1043 = vmatpush2.bf16.msra.mxu0 %v1005_v23 }
 0x4ca   :  { %1044 = vmatprep.subr.bf16.mxu0 %v2108_v3 }
 0x4cd   :  { %1045 = vmatpush2.bf16.msra.mxu0 %v1004_v31 }
 0x4ce   :  { %2020 = vmatprep.subr.bf16.mxu0 %v2109_v30 }
 0x4d0   :  { %1047 = vmatmul.mubr.bf16.vlgmr.msra.gmra.mxu0 %v2352_v25  ;;  %v823_v25 = vld [vmem:[%s2853_s8 + $0x60] sm:$0xff] }
 0x4d1   :  { %1883 = vmatprep.mubr.msk.bf16.mxu0 %vm264_vm1, %v2354_v26  ;;  %v824_v26 = vld [vmem:[%s2853_s8 + $0x68] sm:$0xff] }
 0x4d8   :  { %1055 = vmatmul.mubr.bf16.gmra.mxu0 %v2363_v29  ;;  %v834_v29 = vpack.c.bf16 %v824_v26, %v823_v25 }
 0x4d9   :  { %2022 = vmatprep.mubr.msk.bf16.mxu0 %vm2110_vm2, %v2109_v30 }
 0x4da   :  { %857 = vmatpush1.bf16.msra.mxu1 %v834_v29 }
 0x4db   :  { %858 = vmatprep.subr.bf16.mxu1 %v2108_v3 }
 0x4de   :  { %859 = vmatpush1.bf16.msra.mxu1 %v833_v37 }
 0x4df   :  { %860 = vmatprep.subr.bf16.mxu1 %v2108_v3 }
 0x4e2   :  { %861 = vmatpush1.bf16.msra.mxu1 %v832_v40 }
 0x4e3   :  { %862 = vmatprep.subr.bf16.mxu1 %v2108_v3 }
 0x4e6   :  { %863 = vmatpush1.bf16.msra.mxu1 %v831_v43 }
 0x4e7   :  { %864 = vmatprep.subr.bf16.mxu1 %v2108_v3 }
 0x4ea   :  { %865 = vmatpush1.bf16.msra.mxu1 %v830_v46 }
 0x4eb   :  { %866 = vmatprep.subr.bf16.mxu1 %v2108_v3 }
 0x4ee   :  { %867 = vmatpush1.bf16.msra.mxu1 %v829_v49 }
 0x4ef   :  { %868 = vmatprep.subr.bf16.mxu1 %v2108_v3 }
 0x4f2   :  { %869 = vmatpush1.bf16.msra.mxu1 %v828_v52 }
 0x4f3   :  { %884 = vmatprep.subr.bf16.mxu1 %v2108_v3 }
 0x4f6   :  { %885 = vmatpush2.bf16.msra.mxu1 %v852_v55 }
 0x4f7   :  { %1996 = vmatprep.subr.bf16.mxu1 %v2109_v30 }
 0x560   :  { %v1994_v56 = vpop.f32.mrf.mxu0 }
 0x561   :  { %v742_v60 = vadd.f32 %v1994_v56, %v1875_v57 }
 0x562   :  { %v733_v58 = vpop.f32.mrf.mxu0 }
 0x563   :  { %v734_v24 = vadd.f32 %v1875_v57, %v733_v58  ;;  %v750_v1 = vmax.f32 %v742_v60, 0.0 }
 0x564   :  { %v1995_v59 = vpop.f32.mrf.mxu0 }
 0x565   :  { %v748_v62 = vmax.f32 %v734_v24, 0.0  ;;  %v745_v63 = vadd.f32 %v1995_v59, %v1875_v57  ;;  %v756_v11 = vsel %vm752_vm5, %v750_v1, 0.0 }
 0x566   :  { %v736_v61 = vpop.f32.mrf.mxu0 }
 0x567   :  { %v737_v0 = vadd.f32 %v1875_v57, %v736_v61  ;;  %v753_v4 = vsel %vm752_vm5, %v748_v62, 0.0  ;;  %v751_v5 = vmax.f32 %v745_v63, 0.0 }
 0x569   :  { %v749_v2 = vmax.f32 %v737_v0, 0.0  ;;  %v758_v14 = vsel %vm752_vm5, %v751_v5, 0.0 }
 0x56b   :  { %v754_v7 = vsel %vm752_vm5, %v749_v2, 0.0 }
 0x56c   :  { %v755_v9 = vadd.f32 %v754_v7, %v753_v4 }
 0x56e   :  { %v757_v13 = vadd.f32 %v756_v11, %v755_v9 }
 0x570   :  { %v759_v15 = vadd.f32 %v758_v14, %v757_v13 }
 0x572   :  { %v760_v16 = vrot.slane %v759_v15, 4 }
 0x574   :  { %v761_v17 = vadd.f32 %v760_v16, %v759_v15 }
 0x576   :  { %v762_v20 = vrot.slane %v761_v17, 2 }
 0x578   :  { %v763_v21 = vadd.f32 %v762_v20, %v761_v17 }
 0x57a   :  { %v764_v22 = vrot.slane %v763_v21, 1 }
 0x57c   :  { %v765_v23 = vadd.f32 %v764_v22, %v763_v21 }
 0x57e   :  { %v766_v27 = vmul.f32 0.03125, %v765_v23 }
 0x580   :  { %v767_v28 = vsub.f32 %v748_v62, %v766_v27  ;;  %v768_v31 = vsub.f32 %v749_v2, %v766_v27  ;;  %v769_v32 = vsub.f32 %v750_v1, %v766_v27  ;;  %v770_v33 = vsub.f32 %v751_v5, %v766_v27 }
 0x582   :  { %v771_v34 = vmul.f32 %v767_v28, %v767_v28  ;;  %v772_v25 = vmul.f32 %v768_v31, %v768_v31  ;;  %v773_v26 = vmul.f32 %v769_v32, %v769_v32  ;;  %v774_v29 = vmul.f32 %v770_v33, %v770_v33 }
 0x584   :  { %v775_v35 = vsel %vm752_vm5, %v771_v34, 0.0  ;;  %v776_v36 = vsel %vm752_vm5, %v772_v25, 0.0  ;;  %v778_v38 = vsel %vm752_vm5, %v773_v26, 0.0  ;;  %v780_v40 = vsel %vm752_vm5, %v774_v29, 0.0  ;;  %v799_v29 = vld [vmem:[#allocation2] sm:$0xff] }
 0x585   :  { %v777_v37 = vadd.f32 %v776_v36, %v775_v35  ;;  %v801_v35 = vld [vmem:[#allocation2 + $0x10] sm:$0xff] }
 0x587   :  { %v779_v39 = vadd.f32 %v778_v38, %v777_v37 }
 0x589   :  { %v781_v41 = vadd.f32 %v780_v40, %v779_v39 }
 0x58b   :  { %v782_v42 = vrot.slane %v781_v41, 4 }
 0x58d   :  { %v783_v43 = vadd.f32 %v782_v42, %v781_v41 }
 0x58f   :  { %v784_v44 = vrot.slane %v783_v43, 2 }
 0x590   :  { %v1048_v45 = vpop.f32.mrf.mxu0 }
 0x591   :  { %v785_v46 = vadd.f32 %v784_v44, %v783_v43  ;;  %v1049_v52 = vadd.f32 %v1881_v47, %v1048_v45  ;;  %v807_v44 = vpack.c.bf16 %v801_v35, %v799_v29 }
 0x592   :  { %v1050_v48 = vpop.f32.mrf.mxu0 }
 0x593   :  { %v786_v49 = vrot.slane %v785_v46, 1  ;;  %v1063_v24 = vmax.f32 %v1049_v52, 0.0  ;;  %v805_v52 = vld [vmem:[#allocation2 + $0x30] sm:$0xff] }
 0x594   :  { %v1051_v50 = vpop.f32.mrf.mxu0 }
 0x595   :  { %v787_v51 = vadd.f32 %v786_v49, %v785_v46  ;;  %v1052_v53 = vadd.f32 %v1881_v47, %v1051_v50  ;;  %v1067_v0 = vsel %vm264_vm1, %v1063_v24, 0.0 }
 0x596   :  { %v1053_v54 = vpop.f32.mrf.mxu0 }
 0x597   :  { %v788_v55 = vmul.f32 0.03125, %v787_v51  ;;  %v1064_v56 = vmax.f32 %v1052_v53, 0.0 }
 0x598   :  { %v1056_v57 = vpop.f32.mrf.mxu0 }
 0x599   :  { %v789_v58 = vadd.f32 1e-05, %v788_v55  ;;  %v1057_v59 = vadd.f32 %v1881_v47, %v1056_v57  ;;  %v1068_v61 = vsel %vm264_vm1, %v1064_v56, 0.0  ;;  %v803_v55 = vld [vmem:[#allocation2 + $0x20] sm:$0xff] }
 0x59a   :  { %v1058_v60 = vpop.f32.mrf.mxu0  ;;  %v1069_v4 = vadd.f32 %v1068_v61, %v1067_v0 }
 0x59b   :  { %2084 = vrsqrt.f32 %v789_v58  ;;  %v1065_v62 = vmax.f32 %v1057_v59, 0.0 }
 0x59c   :  { %v1059_v63 = vpop.f32.mrf.mxu0 }
 0x59d   :  { %v1070_v1 = vsel %vm264_vm1, %v1065_v62, 0.0  ;;  %v1060_v2 = vadd.f32 %v1881_v47, %v1059_v63 }
 0x59e   :  { %v1061_v5 = vpop.f32.mrf.mxu0  ;;  %v1071_v9 = vadd.f32 %v1070_v1, %v1069_v4 }
 0x59f   :  { %v1066_v7 = vmax.f32 %v1060_v2, 0.0 }
 0x5a1   :  { %v1072_v11 = vsel %vm264_vm1, %v1066_v7, 0.0 }
 0x5a2   :  { %v1073_v13 = vadd.f32 %v1072_v11, %v1071_v9  ;;  %v984_v11 = vld [vmem:[%s2856_s12 + $0x30] sm:$0xff] }
 0x5a4   :  { %v1074_v14 = vrot.slane %v1073_v13, 4 }
 0x5a6   :  { %v1075_v15 = vadd.f32 %v1074_v14, %v1073_v13  ;;  %v985_v13 = vld [vmem:[%s2856_s12 + $0x38] sm:$0xff] }
 0x5a7   :  { %v1118_v14 = vpack.c.bf16 %v985_v13, %v984_v11 }
 0x5a8   :  { %v2085_v16 = vpop.eup %2084  ;;  %v1076_v17 = vrot.slane %v1075_v15, 2 }
 0x5a9   :  { %v791_v20 = vmul.f32 %v2085_v16, %v767_v28  ;;  %v792_v21 = vmul.f32 %v2085_v16, %v768_v31  ;;  %v793_v22 = vmul.f32 %v2085_v16, %v769_v32  ;;  %v794_v23 = vmul.f32 %v2085_v16, %v770_v33  ;;  %v983_v16 = vld [vmem:[%s2856_s12 + $0x28] sm:$0xff] }
 0x5aa   :  { %v1077_v27 = vadd.f32 %v1076_v17, %v1075_v15  ;;  %v982_v15 = vld [vmem:[%s2856_s12 + $0x20] sm:$0xff] }
 0x5ab   :  { %795 = vst.msk [vmem:[#allocation2 + $0x8] sm:$0xff] %vm752_vm5, %v791_v20  ;;  %796 = vst.msk [vmem:[#allocation2 + $0x18] sm:$0xff] %vm752_vm5, %v792_v21  ;;  %v1117_v17 = vpack.c.bf16 %v983_v16, %v982_v15  ;;  %v980_v20 = vld [vmem:[%s2856_s12 + $0x10] sm:$0xff]  ;;  %v981_v21 = vld [vmem:[%s2856_s12 + $0x18] sm:$0xff] }
 0x5ac   :  { %797 = vst.msk [vmem:[#allocation2 + $0x28] sm:$0xff] %vm752_vm5, %v793_v22  ;;  %798 = vst.msk [vmem:[#allocation2 + $0x38] sm:$0xff] %vm752_vm5, %v794_v23  ;;  %v1078_v34 = vrot.slane %v1077_v27, 1  ;;  %v1116_v22 = vpack.c.bf16 %v981_v21, %v980_v20  ;;  %v978_v23 = vld [vmem:[%s2856_s12] sm:$0xff] }
 0x5ae   :  { %v1079_v25 = vadd.f32 %v1078_v34, %v1077_v27  ;;  %v979_v27 = vld [vmem:[%s2856_s12 + $0x8] sm:$0xff] }
 0x5af   :  { %v1115_v34 = vpack.c.bf16 %v979_v27, %v978_v23 }
 0x5b0   :  { %v1080_v26 = vmul.f32 0.03125, %v1079_v25  ;;  %v1878_v25 = vld [vmem:[%s2857_s9] ss:$0 sm:$0xff] }
 0x5b2   :  { %v1081_v36 = vsub.f32 %v1063_v24, %v1080_v26  ;;  %v1082_v37 = vsub.f32 %v1064_v56, %v1080_v26  ;;  %v1083_v28 = vsub.f32 %v1065_v62, %v1080_v26  ;;  %v1084_v31 = vsub.f32 %v1066_v7, %v1080_v26  ;;  %v800_v32 = vld [vmem:[#allocation2 + $0x8] sm:$0xff]  ;;  %v802_v33 = vld [vmem:[#allocation2 + $0x18] sm:$0xff] }
 0x5b3   :  { %v804_v38 = vld [vmem:[#allocation2 + $0x28] sm:$0xff]  ;;  %v808_v39 = vpack.c.bf16 %v802_v33, %v800_v32  ;;  %v806_v40 = vld [vmem:[#allocation2 + $0x38] sm:$0xff]  ;;  %v809_v56 = vpack.c.bf16 %v805_v52, %v803_v55 }
 0x5b4   :  { %v1085_v41 = vmul.f32 %v1081_v36, %v1081_v36  ;;  %v1086_v42 = vmul.f32 %v1082_v37, %v1082_v37  ;;  %v1087_v43 = vmul.f32 %v1083_v28, %v1083_v28  ;;  %v810_v45 = vpack.c.bf16 %v806_v40, %v804_v38 }
 0x5b5   :  { %1879 = vmatprep.mubr.msk.bf16.mxu1 %vm752_vm5, %v808_v39  ;;  %v1088_v46 = vmul.f32 %v1084_v31, %v1084_v31 }
 0x5b6   :  { %v1089_v47 = vsel %vm264_vm1, %v1085_v41, 0.0  ;;  %v1090_v48 = vsel %vm264_vm1, %v1086_v42, 0.0  ;;  %887 = vmatmul.mubr.bf16.vlgmr.msra.gmra.mxu1 %v807_v44  ;;  %v1092_v50 = vsel %vm264_vm1, %v1087_v43, 0.0 }
 0x5b7   :  { %v1091_v49 = vadd.f32 %v1090_v48, %v1089_v47  ;;  %1880 = vmatprep.mubr.msk.bf16.mxu1 %vm752_vm5, %v810_v45  ;;  %v1094_v53 = vsel %vm264_vm1, %v1088_v46, 0.0 }
 0x5b9   :  { %v1093_v51 = vadd.f32 %v1092_v50, %v1091_v49 }
 0x5bb   :  { %v1095_v54 = vadd.f32 %v1094_v53, %v1093_v51 }
 0x5bd   :  { %v1096_v57 = vrot.slane %v1095_v54, 4 }
 0x5be   :  { %895 = vmatmul.mubr.bf16.gmra.mxu1 %v809_v56 }
 0x5bf   :  { %v1097_v58 = vadd.f32 %v1096_v57, %v1095_v54  ;;  %1998 = vmatprep.mubr.msk.bf16.mxu1 %vm2110_vm2, %v2109_v30 }
 0x5c1   :  { %v1098_v24 = vrot.slane %v1097_v58, 2 }
 0x5c3   :  { %v1099_v59 = vadd.f32 %v1098_v24, %v1097_v58 }
 0x5c5   :  { %v1100_v60 = vrot.slane %v1099_v59, 1 }
 0x5c7   :  { %v1101_v61 = vadd.f32 %v1100_v60, %v1099_v59 }
 0x5c9   :  { %v1102_v62 = vmul.f32 0.03125, %v1101_v61 }
 0x5cb   :  { %v1103_v63 = vadd.f32 1e-05, %v1102_v62 }
 0x5cd   :  { %2086 = vrsqrt.f32 %v1103_v63 }
 0x5da   :  { %v2087_v0 = vpop.eup %2086 }
 0x5db   :  { %v1107_v1 = vmul.f32 %v2087_v0, %v1083_v28  ;;  %v1108_v2 = vmul.f32 %v2087_v0, %v1084_v31  ;;  %v1105_v4 = vmul.f32 %v2087_v0, %v1081_v36  ;;  %v1106_v5 = vmul.f32 %v2087_v0, %v1082_v37 }
 0x5dd   :  { %1113 = vst.msk [vmem:[#allocation3 + $0x20] sm:$0xff] %vm264_vm1, %v1107_v1  ;;  %1114 = vst.msk [vmem:[#allocation3 + $0x30] sm:$0xff] %vm264_vm1, %v1108_v2  ;;  %v1109_v7 = vpack.c.bf16 %v1106_v5, %v1105_v4  ;;  %v1110_v9 = vpack.c.bf16 %v1108_v2, %v1107_v1 }
 0x5de   :  { %1111 = vst.msk [vmem:[#allocation3] sm:$0xff] %vm264_vm1, %v1105_v4  ;;  %1112 = vst.msk [vmem:[#allocation3 + $0x10] sm:$0xff] %vm264_vm1, %v1106_v5 }
 0x5df   :  { %1997 = vmatpush3.bf16.msra.mxu1 %v1109_v7 }
 0x5e0   :  { %2002 = vmatprep.subr.bf16.mxu1 %v2109_v30 }
 0x5e2   :  { %1999 = vmatmul.mubr.msk.bf16.vlgmr.msra.gmra.mxu1 %vm74_vm0, %v2241_v18 }
 0x5e3   :  { %2003 = vmatpush3.bf16.msra.mxu1 %v1110_v9  ;;  %2004 = vmatprep.mubr.msk.bf16.mxu1 %vm2110_vm2, %v2109_v30 }
 0x5e4   :  { %2008 = vmatprep.subr.bf16.mxu1 %v1118_v14 }
 0x5ea   :  { %2005 = vmatmul.mubr.msk.bf16.vlgmr.msra.gmra.mxu1 %vm74_vm0, %v2243_v19 }
 0x5eb   :  { %2009 = vmatpush3.bf16.msra.mxu1 %v1118_v14 }
 0x5ec   :  { %2010 = vmatprep.subr.bf16.mxu1 %v1117_v17 }
 0x5ef   :  { %2011 = vmatpush3.bf16.msra.mxu1 %v1117_v17 }
 0x5f0   :  { %2012 = vmatprep.subr.bf16.mxu1 %v1116_v22 }
 0x5f3   :  { %2013 = vmatpush3.bf16.msra.mxu1 %v1116_v22 }
 0x5f4   :  { %2014 = vmatprep.subr.bf16.mxu1 %v1115_v34 }
 0x5f7   :  { %2015 = vmatpush3.bf16.msra.mxu1 %v1115_v34 }
 0x5f8   :  { %2026 = vmatprep.subr.bf16.mxu1 %v2109_v30 }
 0x676   :  { %v888_v26 = vpop.f32.mrf.mxu1 }
 0x677   :  { %v889_v29 = vadd.f32 %v1878_v25, %v888_v26 }
 0x678   :  { %v890_v35 = vpop.f32.mrf.mxu1 }
 0x679   :  { %v903_v36 = vmax.f32 %v889_v29, 0.0 }
 0x67a   :  { %v891_v37 = vpop.f32.mrf.mxu1 }
 0x67b   :  { %v892_v28 = vadd.f32 %v1878_v25, %v891_v37  ;;  %v907_v31 = vsel %vm752_vm5, %v903_v36, -inf }
 0x67c   :  { %v893_v32 = vpop.f32.mrf.mxu1  ;;  %908 = vmax.xlane.f32.xlu0 %v907_v31 }
 0x67d   :  { %v904_v33 = vmax.f32 %v892_v28, 0.0 }
 0x67e   :  { %v896_v38 = vpop.f32.mrf.mxu1 }
 0x67f   :  { %v897_v39 = vadd.f32 %v1878_v25, %v896_v38  ;;  %v910_v40 = vsel %vm752_vm5, %v904_v33, -inf }
 0x680   :  { %v898_v41 = vpop.f32.mrf.mxu1  ;;  %911 = vmax.xlane.f32.xlu1 %v910_v40 }
 0x681   :  { %v905_v42 = vmax.f32 %v897_v39, 0.0 }
 0x682   :  { %v899_v43 = vpop.f32.mrf.mxu1 }
 0x683   :  { %v900_v44 = vadd.f32 %v1878_v25, %v899_v43  ;;  %v913_v45 = vsel %vm752_vm5, %v905_v42, -inf  ;;  %v1886_v25 = vld [vmem:[%s2858_s13] ss:$0 sm:$0xff] }
 0x684   :  { %v901_v46 = vpop.f32.mrf.mxu1  ;;  %914 = vmax.xlane.f32.xlu0 %v913_v45 }
 0x685   :  { %v906_v47 = vmax.f32 %v900_v44, 0.0 }
 0x687   :  { %v916_v48 = vsel %vm752_vm5, %v906_v47, -inf }
 0x688   :  { %917 = vmax.xlane.f32.xlu0 %v916_v48 }
 0x6a2   :  { %v1153_v49 = vpop.f32.mrf.mxu1 }
 0x6a3   :  { %v1201_v52 = vmul.f32 %v2340_v10, %v1153_v49 }
 0x6a4   :  { %v2000_v50 = vpop.f32.mrf.mxu1 }
 0x6a6   :  { %v1156_v51 = vpop.f32.mrf.mxu1 }
 0x6a7   :  { %v1202_v53 = vmul.f32 %v2338_v8, %v1156_v51 }
 0x6a8   :  { %v2001_v54 = vpop.f32.mrf.mxu1 }
 0x6a9   :  { %v1205_v55 = vpack.c.bf16 %v1202_v53, %v1201_v52 }
 0x6aa   :  { %v1194_v56 = vpop.f32.mrf.mxu1 }
 0x6ab   :  { %2016 = vmatprep.mubr.msk.bf16.mxu1 %vm264_vm1, %v1205_v55  ;;  %v1203_v24 = vmul.f32 %v2336_v6, %v1194_v56 }
 0x6ac   :  { %v2006_v57 = vpop.f32.mrf.mxu1 }
 0x6ae   :  { %v1197_v58 = vpop.f32.mrf.mxu1 }
 0x6af   :  { %v1204_v59 = vmul.f32 %v2342_v12, %v1197_v58 }
 0x6b0   :  { %v2007_v60 = vpop.f32.mrf.mxu1 }
 0x6b1   :  { %v1206_v61 = vpack.c.bf16 %v1204_v59, %v1203_v24 }
 0x6b3   :  { %2017 = vmatmul.mubr.msk.bf16.vlgmr.msra.gmra.mxu1 %vm264_vm1, %v1206_v61 }
 0x6b4   :  { %2028 = vmatprep.mubr.msk.bf16.mxu1 %vm2110_vm2, %v2109_v30 }
 0x705   :  { %v909_v62 = vpop.xlane.xlu0 %908 }
 0x706   :  { %v919_v63 = vsub.f32 %v903_v36, %v909_v62 }
 0x708   :  { %v923_v0 = vmul.f32 1.442695, %v919_v63 }
 0x709   :  { %v912_v1 = vpop.xlane.xlu1 %911 }
 0x70a   :  { %2088 = vpow2.f32 %v923_v0  ;;  %v920_v2 = vsub.f32 %v904_v33, %v912_v1 }
 0x70c   :  { %v925_v4 = vmul.f32 1.442695, %v920_v2 }
 0x70d   :  { %v915_v5 = vpop.xlane.xlu0 %914 }
 0x70e   :  { %2090 = vpow2.f32 %v925_v4  ;;  %v921_v7 = vsub.f32 %v905_v42, %v915_v5 }
 0x710   :  { %v927_v9 = vmul.f32 1.442695, %v921_v7 }
 0x711   :  { %v918_v11 = vpop.xlane.xlu0 %917 }
 0x712   :  { %2092 = vpow2.f32 %v927_v9  ;;  %v922_v13 = vsub.f32 %v906_v47, %v918_v11 }
 0x714   :  { %v929_v14 = vmul.f32 1.442695, %v922_v13 }
 0x716   :  { %2094 = vpow2.f32 %v929_v14 }
 0x717   :  { %v2715_v15 = vpop.eup %2088 }
 0x718   :  { %v931_v16 = vsel %vm752_vm5, %v2715_v15, 0.0 }
 0x719   :  { %932 = vadd.xlane.f32.xlu0 %v931_v16 }
 0x71b   :  { %v2719_v17 = vpop.eup %2090 }
 0x71c   :  { %v934_v20 = vsel %vm752_vm5, %v2719_v17, 0.0 }
 0x71d   :  { %935 = vadd.xlane.f32.xlu1 %v934_v20 }
 0x71f   :  { %v2723_v21 = vpop.eup %2092 }
 0x720   :  { %v937_v22 = vsel %vm752_vm5, %v2723_v21, 0.0 }
 0x721   :  { %938 = vadd.xlane.f32.xlu0 %v937_v22  ;;  %v993_v22 = vld [vmem:[%s2859_s14 + $0x30] sm:$0xff] }
 0x723   :  { %v2727_v23 = vpop.eup %2094 }
 0x724   :  { %v940_v27 = vsel %vm752_vm5, %v2727_v23, 0.0 }
 0x725   :  { %941 = vadd.xlane.f32.xlu1 %v940_v27  ;;  %v994_v27 = vld [vmem:[%s2859_s14 + $0x38] sm:$0xff] }
 0x773   :  { %v2018_v34 = vpop.f32.mrf.mxu1 }
 0x774   :  { %v1262_v36 = vadd.f32 %v2018_v34, %v1886_v25 }
 0x775   :  { %v1253_v26 = vpop.f32.mrf.mxu1 }
 0x776   :  { %v1254_v29 = vadd.f32 %v1886_v25, %v1253_v26  ;;  %v1270_v33 = vmax.f32 %v1262_v36, 0.0  ;;  %v1339_v36 = vpack.c.bf16 %v994_v27, %v993_v22 }
 0x777   :  { %v2019_v35 = vpop.f32.mrf.mxu1 }
 0x778   :  { %v1268_v28 = vmax.f32 %v1254_v29, 0.0  ;;  %v1265_v31 = vadd.f32 %v2019_v35, %v1886_v25  ;;  %v1275_v43 = vsel %vm264_vm1, %v1270_v33, 0.0 }
 0x779   :  { %v1256_v37 = vpop.f32.mrf.mxu1 }
 0x77a   :  { %v1257_v32 = vadd.f32 %v1886_v25, %v1256_v37  ;;  %v1272_v39 = vsel %vm264_vm1, %v1268_v28, 0.0  ;;  %v1271_v40 = vmax.f32 %v1265_v31, 0.0  ;;  %v991_v31 = vld [vmem:[%s2859_s14 + $0x20] sm:$0xff] }
 0x77c   :  { %v1269_v38 = vmax.f32 %v1257_v32, 0.0  ;;  %v1277_v45 = vsel %vm264_vm1, %v1271_v40, 0.0  ;;  %v992_v32 = vld [vmem:[%s2859_s14 + $0x28] sm:$0xff] }
 0x77e   :  { %v1273_v41 = vsel %vm264_vm1, %v1269_v38, 0.0 }
 0x77f   :  { %v1274_v42 = vadd.f32 %v1273_v41, %v1272_v39 }
 0x781   :  { %v1276_v44 = vadd.f32 %v1275_v43, %v1274_v42 }
 0x783   :  { %v1278_v46 = vadd.f32 %v1277_v45, %v1276_v44 }
 0x785   :  { %v1279_v47 = vrot.slane %v1278_v46, 4 }
 0x787   :  { %v1280_v48 = vadd.f32 %v1279_v47, %v1278_v46 }
 0x789   :  { %v1281_v49 = vrot.slane %v1280_v48, 2 }
 0x78b   :  { %v1282_v50 = vadd.f32 %v1281_v49, %v1280_v48 }
 0x78d   :  { %v1283_v51 = vrot.slane %v1282_v50, 1 }
 0x78f   :  { %v1284_v52 = vadd.f32 %v1283_v51, %v1282_v50 }
 0x791   :  { %v1285_v53 = vmul.f32 0.03125, %v1284_v52  ;;  %v989_v52 = vld [vmem:[%s2859_s14 + $0x10] sm:$0xff] }
 0x793   :  { %v1287_v54 = vsub.f32 %v1269_v38, %v1285_v53  ;;  %v1289_v55 = vsub.f32 %v1271_v40, %v1285_v53  ;;  %v1286_v56 = vsub.f32 %v1268_v28, %v1285_v53  ;;  %v1288_v57 = vsub.f32 %v1270_v33, %v1285_v53 }
 0x794   :  { %v1338_v33 = vpack.c.bf16 %v992_v32, %v991_v31 }
 0x795   :  { %v1291_v58 = vmul.f32 %v1287_v54, %v1287_v54  ;;  %v1290_v24 = vmul.f32 %v1286_v56, %v1286_v56  ;;  %v1292_v59 = vmul.f32 %v1288_v57, %v1288_v57  ;;  %v1293_v61 = vmul.f32 %v1289_v55, %v1289_v55 }
 0x797   :  { %v1295_v60 = vsel %vm264_vm1, %v1291_v58, 0.0  ;;  %v1294_v62 = vsel %vm264_vm1, %v1290_v24, 0.0  ;;  %v1297_v0 = vsel %vm264_vm1, %v1292_v59, 0.0  ;;  %v1299_v2 = vsel %vm264_vm1, %v1293_v61, 0.0 }
 0x798   :  { %v1296_v63 = vadd.f32 %v1295_v60, %v1294_v62 }
 0x79a   :  { %v1298_v1 = vadd.f32 %v1297_v0, %v1296_v63 }
 0x79c   :  { %v1300_v4 = vadd.f32 %v1299_v2, %v1298_v1 }
 0x79e   :  { %v1301_v5 = vrot.slane %v1300_v4, 4 }
 0x7a0   :  { %v1302_v7 = vadd.f32 %v1301_v5, %v1300_v4 }
 0x7a2   :  { %v1303_v9 = vrot.slane %v1302_v7, 2  ;;  %v933_v39 = vpop.xlane.xlu0 %932 }
 0x7a4   :  { %v1304_v11 = vadd.f32 %v1303_v9, %v1302_v7 }
 0x7a6   :  { %v1305_v13 = vrot.slane %v1304_v11, 1  ;;  %v936_v38 = vpop.xlane.xlu1 %935 }
 0x7a8   :  { %v1306_v14 = vadd.f32 %v1305_v13, %v1304_v11 }
 0x7aa   :  { %v1307_v16 = vmul.f32 0.03125, %v1306_v14  ;;  %v939_v41 = vpop.xlane.xlu0 %938 }
 0x7ac   :  { %v1308_v20 = vadd.f32 1e-05, %v1307_v16 }
 0x7ae   :  { %2096 = vrsqrt.f32 %v1308_v20  ;;  %v942_v40 = vpop.xlane.xlu1 %941 }
 0x7af   :  { %2098 = vrcp.f32 %v936_v38 }
 0x7b0   :  { %2100 = vrcp.f32 %v933_v39 }
 0x7b1   :  { %2102 = vrcp.f32 %v942_v40 }
 0x7b2   :  { %2104 = vrcp.f32 %v939_v41 }
 0x7bb   :  { %v2097_v34 = vpop.eup %2096 }
 0x7bc   :  { %v1310_v25 = vmul.f32 %v2097_v34, %v1286_v56  ;;  %v1311_v26 = vmul.f32 %v2097_v34, %v1287_v54  ;;  %v1312_v29 = vmul.f32 %v2097_v34, %v1288_v57  ;;  %v1313_v35 = vmul.f32 %v2097_v34, %v1289_v55  ;;  %v2099_v42 = vpop.eup %2098 }
 0x7bd   :  { %v2101_v43 = vpop.eup %2100  ;;  %v946_v44 = vmul.f32 %v2099_v42, %v2719_v17 }
 0x7be   :  { %1320 = vrot.lane.b32.xlu0 %v1310_v25, %s2111_s5  ;;  %v1314_v37 = vpack.c.bf16 %v1311_v26, %v1310_v25  ;;  %1322 = vrot.lane.b32.xlu1 %v1311_v26, %s2111_s5  ;;  %v1315_v28 = vpack.c.bf16 %v1313_v35, %v1312_v29  ;;  %v944_v45 = vmul.f32 %v2101_v43, %v2715_v15  ;;  %v2103_v47 = vpop.eup %2102  ;;  %v990_v15 = vld [vmem:[%s2859_s14 + $0x18] sm:$0xff] }
 0x7bf   :  { %v2105_v48 = vpop.eup %2104  ;;  %v950_v49 = vmul.f32 %v2103_v47, %v2727_v23  ;;  %v1337_v17 = vpack.c.bf16 %v990_v15, %v989_v52  ;;  %v987_v23 = vld [vmem:[%s2859_s14] sm:$0xff] }
 0x7c0   :  { %2021 = vmatpush3.bf16.msra.mxu0 %v1314_v37  ;;  %2027 = vmatpush3.bf16.msra.mxu1 %v1315_v28  ;;  %v951_v46 = vpack.c.bf16 %v946_v44, %v944_v45  ;;  %v948_v50 = vmul.f32 %v2105_v48, %v2723_v21  ;;  %v988_v21 = vld [vmem:[%s2859_s14 + $0x8] sm:$0xff] }
 0x7c1   :  { %2032 = vmatprep.subr.bf16.mxu0 %v1339_v36  ;;  %v1336_v53 = vpack.c.bf16 %v988_v21, %v987_v23 }
 0x7c2   :  { %1324 = vrot.lane.b32.xlu1 %v1312_v29, %s2111_s5  ;;  %v2767_v51 = vpack.c.bf16 %v950_v49, %v948_v50 }
 0x7c3   :  { %2023 = vmatmul.mubr.msk.bf16.vlgmr.msra.gmra.mxu0 %vm74_vm0, %v2241_v18  ;;  %2029 = vmatmul.mubr.msk.bf16.vlgmr.msra.gmra.mxu1 %vm74_vm0, %v2243_v19 }
 0x7c4   :  { %2033 = vmatpush3.bf16.msra.mxu0 %v1339_v36  ;;  %1602 = vmatprep.mubr.bf16.mxu1 %v2108_v3 }
 0x7c5   :  { %2034 = vmatprep.subr.bf16.mxu0 %v1338_v33 }
 0x7c6   :  { %1326 = vrot.lane.b32.xlu1 %v1313_v35, %s2111_s5 }
 0x7c8   :  { %2035 = vmatpush3.bf16.msra.mxu0 %v1338_v33 }
 0x7c9   :  { %2036 = vmatprep.subr.bf16.mxu0 %v1337_v17 }
 0x7cc   :  { %2037 = vmatpush3.bf16.msra.mxu0 %v1337_v17 }
 0x7cd   :  { %2038 = vmatprep.subr.bf16.mxu0 %v1336_v53 }
 0x7d0   :  { %2039 = vmatpush3.bf16.msra.mxu0 %v1336_v53 }
 0x7d1   :  { %2044 = vmatprep.subr.bf16.mxu0 %v2109_v30 }
 0x7dc   :  { %1551 = vxpose.xlu0.c.b16.start.end [1/1] (short) (narrow) %v951_v46, 16 }
 0x7e9   :  { %1611 = vxpose.xlu1.c.b16.start.end [1/1] (short) (narrow) %v2767_v51, 16 }
 0x830   :  { %v1323_v54 = vpop.permute.xlu1 %1322  ;;  %v1321_v55 = vpop.permute.xlu0 %1320 }
 0x831   :  { %1333 = vst.msk [vmem:[#allocation3 + $0x10] sm:$0xff] %vm590_vm3, %v1323_v54  ;;  %1332 = vst.msk [vmem:[#allocation3] sm:$0xff] %vm590_vm3, %v1321_v55 }
 0x834   :  { %v1325_v56 = vpop.permute.xlu1 %1324 }
 0x835   :  { %1334 = vst.msk [vmem:[#allocation3 + $0x20] sm:$0xff] %vm590_vm3, %v1325_v56 }
 0x838   :  { %v1327_v57 = vpop.permute.xlu1 %1326 }
 0x839   :  { %1335 = vst.msk [vmem:[#allocation3 + $0x30] sm:$0xff] %vm590_vm3, %v1327_v57 }
 0x883   :  { %v1374_v58 = vpop.f32.mrf.mxu0  ;;  %v1415_v24 = vpop.f32.mrf.mxu1 }
 0x884   :  { %v1422_v63 = vmul.f32 %v2340_v10, %v1374_v58  ;;  %v1424_v0 = vmul.f32 %v2336_v6, %v1415_v24  ;;  %v2797_v6 = vpop.trf.xlu0  ;;  %v1891_v10 = vld [vmem:[%s2860_s15] ss:$0 sm:$0xff] }
 0x885   :  { %v2024_v59 = vpop.f32.mrf.mxu0  ;;  %v2030_v60 = vpop.f32.mrf.mxu1 }
 0x887   :  { %v1377_v61 = vpop.f32.mrf.mxu0  ;;  %v1418_v62 = vpop.f32.mrf.mxu1 }
 0x888   :  { %v1423_v1 = vmul.f32 %v2338_v8, %v1377_v61  ;;  %v1425_v2 = vmul.f32 %v2342_v12, %v1418_v62 }
 0x889   :  { %v2025_v4 = vpop.f32.mrf.mxu0  ;;  %v2031_v5 = vpop.f32.mrf.mxu1 }
 0x88a   :  { %v1426_v7 = vpack.c.bf16 %v1423_v1, %v1422_v63  ;;  %v1427_v9 = vpack.c.bf16 %v1425_v2, %v1424_v0  ;;  %v1539_v4 = vld [vmem:[#allocation3] sm:$0xff]  ;;  %v1541_v5 = vld [vmem:[#allocation3 + $0x10] sm:$0xff] }
 0x88c   :  { %2040 = vmatprep.mubr.msk.bf16.mxu0 %vm264_vm1, %v1426_v7 }
 0x88d   :  { %2041 = vmatmul.mubr.msk.bf16.vlgmr.msra.gmra.mxu0 %vm264_vm1, %v1427_v9 }
 0x88e   :  { %2045 = vmatpush3.bf16.msra.mxu0 %v2241_v18  ;;  %2046 = vmatprep.mubr.msk.bf16.mxu0 %vm2110_vm2, %v2109_v30 }
 0x88f   :  { %2056 = vmatprep.subr.bf16.mxu0 %v2109_v30 }
 0x895   :  { %2047 = vmatmul.mubr.msk.bf16.vlgmr.msra.gmra.mxu0 %vm74_vm0, %v2797_v6 }
 0x896   :  { %2057 = vmatpush3.bf16.msra.mxu0 %v951_v46  ;;  %2058 = vmatprep.mubr.msk.bf16.mxu0 %vm2110_vm2, %v2109_v30 }
 0x94d   :  { %v2042_v8 = vpop.f32.mrf.mxu0 }
 0x94e   :  { %v1483_v13 = vadd.f32 %v2042_v8, %v1891_v10 }
 0x94f   :  { %v1474_v18 = vpop.f32.mrf.mxu0 }
 0x950   :  { %v1475_v12 = vadd.f32 %v1891_v10, %v1474_v18  ;;  %v1491_v27 = vmax.f32 %v1483_v13, 0.0  ;;  %v1545_v13 = vld [vmem:[#allocation3 + $0x30] sm:$0xff] }
 0x951   :  { %v2043_v11 = vpop.f32.mrf.mxu0 }
 0x952   :  { %v1489_v16 = vmax.f32 %v1475_v12, 0.0  ;;  %v1486_v20 = vadd.f32 %v2043_v11, %v1891_v10  ;;  %v1496_v36 = vsel %vm264_vm1, %v1491_v27, 0.0  ;;  %v1547_v12 = vpack.c.bf16 %v1541_v5, %v1539_v4 }
 0x953   :  { %v1477_v14 = vpop.f32.mrf.mxu0 }
 0x954   :  { %v1478_v22 = vadd.f32 %v1891_v10, %v1477_v14  ;;  %v1493_v25 = vsel %vm264_vm1, %v1489_v16, 0.0  ;;  %v1492_v26 = vmax.f32 %v1486_v20, 0.0  ;;  %v1543_v14 = vld [vmem:[#allocation3 + $0x20] sm:$0xff]  ;;  %v1619_v20 = vpop.trf.xlu1 }
 0x956   :  { %v1490_v34 = vmax.f32 %v1478_v22, 0.0  ;;  %v1498_v28 = vsel %vm264_vm1, %v1492_v26, 0.0 }
 0x958   :  { %v1494_v29 = vsel %vm264_vm1, %v1490_v34, 0.0 }
 0x959   :  { %v1495_v35 = vadd.f32 %v1494_v29, %v1493_v25 }
 0x95b   :  { %v1497_v37 = vadd.f32 %v1496_v36, %v1495_v35 }
 0x95d   :  { %v1499_v31 = vadd.f32 %v1498_v28, %v1497_v37 }
 0x95f   :  { %v1500_v32 = vrot.slane %v1499_v31, 4 }
 0x961   :  { %v1501_v33 = vadd.f32 %v1500_v32, %v1499_v31 }
 0x963   :  { %v1502_v38 = vrot.slane %v1501_v33, 2 }
 0x965   :  { %v1503_v39 = vadd.f32 %v1502_v38, %v1501_v33 }
 0x967   :  { %v1504_v40 = vrot.slane %v1503_v39, 1 }
 0x969   :  { %v1505_v41 = vadd.f32 %v1504_v40, %v1503_v39 }
 0x96b   :  { %v1506_v42 = vmul.f32 0.03125, %v1505_v41 }
 0x96d   :  { %v1507_v43 = vsub.f32 %v1489_v16, %v1506_v42  ;;  %v1508_v44 = vsub.f32 %v1490_v34, %v1506_v42  ;;  %v1509_v45 = vsub.f32 %v1491_v27, %v1506_v42  ;;  %v1510_v46 = vsub.f32 %v1492_v26, %v1506_v42 }
 0x96e   :  { %v1549_v16 = vpack.c.bf16 %v1545_v13, %v1543_v14 }
 0x96f   :  { %v1511_v47 = vmul.f32 %v1507_v43, %v1507_v43  ;;  %v1512_v48 = vmul.f32 %v1508_v44, %v1508_v44  ;;  %v1513_v49 = vmul.f32 %v1509_v45, %v1509_v45  ;;  %v1514_v50 = vmul.f32 %v1510_v46, %v1510_v46 }
 0x971   :  { %v1515_v52 = vsel %vm264_vm1, %v1511_v47, 0.0  ;;  %v1516_v15 = vsel %vm264_vm1, %v1512_v48, 0.0  ;;  %v1518_v23 = vsel %vm264_vm1, %v1513_v49, 0.0  ;;  %v1520_v53 = vsel %vm264_vm1, %v1514_v50, 0.0 }
 0x972   :  { %v1517_v17 = vadd.f32 %v1516_v15, %v1515_v52 }
 0x974   :  { %v1519_v21 = vadd.f32 %v1518_v23, %v1517_v17 }
 0x976   :  { %v1521_v54 = vadd.f32 %v1520_v53, %v1519_v21 }
 0x978   :  { %v1522_v55 = vrot.slane %v1521_v54, 4 }
 0x97a   :  { %v1523_v56 = vadd.f32 %v1522_v55, %v1521_v54 }
 0x97c   :  { %v1524_v57 = vrot.slane %v1523_v56, 2 }
 0x97e   :  { %v1525_v58 = vadd.f32 %v1524_v57, %v1523_v56 }
 0x980   :  { %v1526_v24 = vrot.slane %v1525_v58, 1 }
 0x982   :  { %v1527_v59 = vadd.f32 %v1526_v24, %v1525_v58 }
 0x984   :  { %v1528_v60 = vmul.f32 0.03125, %v1527_v59 }
 0x986   :  { %v1529_v61 = vadd.f32 1e-05, %v1528_v60 }
 0x988   :  { %2106 = vrsqrt.f32 %v1529_v61 }
 0x995   :  { %v2107_v62 = vpop.eup %2106 }
 0x996   :  { %v1531_v63 = vmul.f32 %v2107_v62, %v1507_v43  ;;  %v1532_v0 = vmul.f32 %v2107_v62, %v1508_v44  ;;  %v1533_v1 = vmul.f32 %v2107_v62, %v1509_v45  ;;  %v1534_v2 = vmul.f32 %v2107_v62, %v1510_v46 }
 0x998   :  { %1535 = vst.msk [vmem:[#allocation3 + $0x8] sm:$0xff] %vm264_vm1, %v1531_v63  ;;  %1536 = vst.msk [vmem:[#allocation3 + $0x18] sm:$0xff] %vm264_vm1, %v1532_v0 }
 0x999   :  { %1537 = vst.msk [vmem:[#allocation3 + $0x28] sm:$0xff] %vm264_vm1, %v1533_v1  ;;  %1538 = vst.msk [vmem:[#allocation3 + $0x38] sm:$0xff] %vm264_vm1, %v1534_v2 }
 0x99f   :  { %v1540_v7 = vld [vmem:[#allocation3 + $0x8] sm:$0xff]  ;;  %v1542_v9 = vld [vmem:[#allocation3 + $0x18] sm:$0xff] }
 0x9a0   :  { %v1544_v8 = vld [vmem:[#allocation3 + $0x28] sm:$0xff]  ;;  %v1548_v10 = vpack.c.bf16 %v1542_v9, %v1540_v7  ;;  %v1546_v18 = vld [vmem:[#allocation3 + $0x38] sm:$0xff] }
 0x9a1   :  { %v1550_v11 = vpack.c.bf16 %v1546_v18, %v1544_v8 }
 0x9a2   :  { %1584 = vmatprep.subr.bf16.mxu1 %v1548_v10 }
 0x9a3   :  { %1585 = vmatpush1.bf16.msra.mxu1 %v1547_v12 }
 0x9a4   :  { %1644 = vmatprep.subr.bf16.mxu1 %v1550_v11 }
 0x9a6   :  { %1894 = vmatmul.mubr.msk.bf16.vlgmr.msra.gmra.mxu1 %vm74_vm0, %v2797_v6 }
 0x9a7   :  { %1645 = vmatpush1.bf16.msra.mxu1 %v1549_v16  ;;  %1662 = vmatprep.mubr.bf16.mxu1 %v2108_v3  ;;  %v1718_v3 = vpop.f32.mrf.mxu0 }
 0x9a8   :  { %2050 = vmatprep.subr.bf16.mxu1 %v2109_v30  ;;  %v1764_v6 = vpack.c.bf16 %v1718_v3, %v1718_v3 }
 0x9a9   :  { %v2048_v22 = vpop.f32.mrf.mxu0 }
 0x9aa   :  { %2059 = vmatmul.mubr.msk.bf16.vlgmr.msra.gmra.mxu0 %vm74_vm0, %v1764_v6 }
 0x9ab   :  { %v1721_v27 = vpop.f32.mrf.mxu0 }
 0x9ad   :  { %v2049_v34 = vpop.f32.mrf.mxu0 }
 0x9ae   :  { %1895 = vmatmul.mubr.msk.bf16.vlgmr.msra.gmra.mxu1 %vm74_vm0, %v1619_v20 }
 0x9af   :  { %2051 = vmatpush3.bf16.msra.mxu1 %v2243_v19  ;;  %2052 = vmatprep.mubr.msk.bf16.mxu1 %vm2110_vm2, %v2109_v30 }
 0x9b0   :  { %2062 = vmatprep.subr.bf16.mxu1 %v2109_v30 }
 0x9b6   :  { %2053 = vmatmul.mubr.msk.bf16.vlgmr.msra.gmra.mxu1 %vm74_vm0, %v1619_v20 }
 0x9b7   :  { %2063 = vmatpush3.bf16.msra.mxu1 %v2767_v51  ;;  %2064 = vmatprep.mubr.msk.bf16.mxu1 %vm2110_vm2, %v2109_v30 }
 0xa66   :  { %v1604_v19 = vpop.f32.mrf.mxu1 }
 0xa68   :  { %v1606_v25 = vpop.f32.mrf.mxu1 }
 0xa69   :  { %v1675_v26 = vcombine.low %v1604_v19, %v1606_v25 }
 0xa6a   :  { %v1608_v29 = vpop.f32.mrf.mxu1  ;;  %v1803_v40 = vpop.f32.mrf.mxu0 }
 0xa6b   :  { %1682 = vst.msk [vmem:[%s2861_s16] sm:$0xff] %vm1681_vm8, %v1675_v26 }
 0xa6c   :  { %v1609_v51 = vpop.f32.mrf.mxu1  ;;  %1853 = vst.msk [vmem:[%s2862_s17] sm:$0xf] %vm1852_vm9, %v1803_v40  ;;  %v2060_v41 = vpop.f32.mrf.mxu0 }
 0xa6e   :  { %v1664_v30 = vpop.f32.mrf.mxu1  ;;  %v1806_v42 = vpop.f32.mrf.mxu0 }
 0xa70   :  { %v1666_v35 = vpop.f32.mrf.mxu1  ;;  %v2061_v43 = vpop.f32.mrf.mxu0 }
 0xa71   :  { %v1676_v36 = vcombine.low %v1664_v30, %v1666_v35 }
 0xa72   :  { %v1668_v37 = vpop.f32.mrf.mxu1 }
 0xa73   :  { %1683 = vst.msk [vmem:[%s2861_s16 + $0x8] sm:$0xff] %vm1681_vm8, %v1676_v36 }
 0xa74   :  { %v1669_v28 = vpop.f32.mrf.mxu1 }
 0xa76   :  { %v1758_v31 = vpop.f32.mrf.mxu1 }
 0xa77   :  { %v1765_v32 = vpack.c.bf16 %v1758_v31, %v1758_v31 }
 0xa78   :  { %v2054_v33 = vpop.f32.mrf.mxu1 }
 0xa79   :  { %2065 = vmatmul.mubr.msk.bf16.vlgmr.msra.gmra.mxu1 %vm74_vm0, %v1765_v32 }
 0xa7a   :  { %v1761_v38 = vpop.f32.mrf.mxu1 }
 0xa7c   :  { %v2055_v39 = vpop.f32.mrf.mxu1 }
 0xb39   :  { %v1846_v44 = vpop.f32.mrf.mxu1 }
 0xb3a   :  { %1854 = vst.msk [vmem:[%s2862_s17 + $0x4] sm:$0xf] %vm1852_vm9, %v1846_v44 }
 0xb3b   :  { %v2066_v45 = vpop.f32.mrf.mxu1 }
 0xb3d   :  { %v1849_v46 = vpop.f32.mrf.mxu1 }
 0xb3f   :  { %v2067_v47 = vpop.f32.mrf.mxu1 }

// kernel: net_forward.5
= control target key start
LH: loop header
LB: loop body
LE: loop exit
PB: predicated region body
PF: predicated region fallthrough
CT: control target
= control target key end

     0   :  { %vm60_vm0 = vcmask 27648   ;;  %vm132_vm1 = vcmask 1041408   ;;  %v1287_v2 = vmov 0   ;;  %vm128_vm2 = vcmask 31744   ;;  %s1745_s0 = inlined_call_operand.vmem [shape: f32[2,4,192], index: 0, kind: input, shape index: {}]   ;;  %s1746_s1 = inlined_call_operand.vmem [shape: f32[2,4,4], index: 1, kind: input, shape index: {}]   ;;  %s1747_s2 = inlined_call_operand.vmem [shape: f32[192,64], index: 2, kind: input, shape index: {}]   ;;  %s1748_s3 = inlined_call_operand.vmem [shape: f32[1,64], index: 3, kind: input, shape index: {}]   ;;  %s1749_s4 = inlined_call_operand.vmem [shape: f32[64,64], index: 4, kind: input, shape index: {}]   ;;  %s1750_s6 = inlined_call_operand.vmem [shape: f32[64,64], index: 6, kind: input, shape index: {}]   ;;  %s1751_s5 = inlined_call_operand.vmem [shape: f32[1,64], index: 5, kind: input, shape index: {}]   ;;  %s1752_s8 = inlined_call_operand.vmem [shape: f32[192,64], index: 8, kind: input, shape index: {}]   ;;  %s1753_s10 = inlined_call_operand.vmem [shape: f32[64,1], index: 10, kind: input, shape index: {}]   ;;  %s1754_s7 = inlined_call_operand.vmem [shape: f32[1,64], index: 7, kind: input, shape index: {}]   ;;  %s1755_s11 = inlined_call_operand.<no memory space> [shape: f32[1,1], index: 11, kind: input, shape index: {}]   ;;  %s1756_s9 = inlined_call_operand.vmem [shape: f32[1,64], index: 9, kind: input, shape index: {}]   ;;  %s1757_s12 = inlined_call_operand.vmem [shape: f32[2,1], index: 12, kind: output, shape index: {}]  }
   0x1   :  { %v44_v0 = vld [vmem:[%s1745_s0] sm:$0xff]  ;;  %v45_v1 = vld [vmem:[%s1745_s0 + $0x8] sm:$0xff]  ;;  %171 = vmatprep.mubr.bf16.mxu1 %v1287_v2  ;;  %256 = vmatprep.subr.bf16.mxu0 %v1287_v2  ;;  %v87_v7 = vld [vmem:[%s1747_s2 + $0x70] sm:$0xff]  ;;  %vm252_vm3 = vcmask 523264   ;;  %vm1289_vm4 = vmmov 0   ;;  %vm692_vm5 = vcmask 519168  }
   0x2   :  { %v48_v3 = vcombine.high %v44_v0, %v44_v0  ;;  %v49_v4 = vcombine.high %v45_v1, %v45_v1  ;;  %v52_v5 = vpack.c.bf16 %v44_v0, %v44_v0  ;;  %v56_v6 = vld [vmem:[%s1746_s1] sm:$0xf]  ;;  %v88_v8 = vld [vmem:[%s1747_s2 + $0x78] sm:$0xff]  ;;  %v54_v9 = vpack.c.bf16 %v45_v1, %v45_v1  ;;  %v86_v12 = vld [vmem:[%s1747_s2 + $0x68] sm:$0xff] }
   0x3   :  { %v61_v10 = vsel %vm60_vm0, %v56_v6, 0.0  ;;  %v85_v11 = vld [vmem:[%s1747_s2 + $0x60] sm:$0xff]  ;;  %v123_v17 = vpack.c.bf16 %v88_v8, %v87_v7  ;;  %v1385_v19 = vpack.c.bf16 %v56_v6, %v56_v6  ;;  %v83_v21 = vld [vmem:[%s1747_s2 + $0x50] sm:$0xff]  ;;  %v84_v22 = vld [vmem:[%s1747_s2 + $0x58] sm:$0xff]  ;;  %vm728_vm6 = vcmask 1041409  }
   0x4   :  { %v53_v13 = vpack.c.bf16 %v48_v3, %v48_v3  ;;  %v55_v14 = vpack.c.bf16 %v49_v4, %v49_v4  ;;  %v134_v15 = vsel %vm132_vm1, %v52_v5, 0  ;;  %v57_v16 = vld [vmem:[%s1746_s1 + $0x4] sm:$0xf]  ;;  %62 = vadd.xlane.f32.xlu0 %v61_v10  ;;  %v122_v20 = vpack.c.bf16 %v86_v12, %v85_v11  ;;  %v82_v26 = vld [vmem:[%s1747_s2 + $0x48] sm:$0xff]  ;;  %v79_v29 = vld [vmem:[%s1747_s2 + $0x30] sm:$0xff] }
   0x5   :  { %v64_v18 = vsel %vm60_vm0, %v57_v16, 0.0  ;;  %257 = vmatpush1.bf16.msra.mxu0 %v123_v17  ;;  %v184_v23 = vsel %vm132_vm1, %v54_v9, 0  ;;  %v121_v24 = vpack.c.bf16 %v84_v22, %v83_v21  ;;  %v81_v25 = vld [vmem:[%s1747_s2 + $0x40] sm:$0xff]  ;;  %v1406_v27 = vpack.c.bf16 %v57_v16, %v57_v16  ;;  %v80_v30 = vld [vmem:[%s1747_s2 + $0x38] sm:$0xff]  ;;  %v78_v33 = vld [vmem:[%s1747_s2 + $0x28] sm:$0xff] }
   0x6   :  { %1072 = vmatprep.subr.msk.bf16.mxu1 %vm132_vm1, %v53_v13  ;;  %258 = vmatprep.subr.bf16.mxu0 %v1287_v2  ;;  %v120_v28 = vpack.c.bf16 %v82_v26, %v81_v25  ;;  %v119_v31 = vpack.c.bf16 %v80_v30, %v79_v29  ;;  %v77_v32 = vld [vmem:[%s1747_s2 + $0x20] sm:$0xff]  ;;  %v75_v35 = vld [vmem:[%s1747_s2 + $0x10] sm:$0xff]  ;;  %v76_v36 = vld [vmem:[%s1747_s2 + $0x18] sm:$0xff]  ;;  %v1288_v11 = vmov 0.0   ;;  %vm1066_vm7 = vcmask 1024  }
   0x7   :  { %154 = vmatpush1.bf16.msra.mxu1 %v134_v15  ;;  %v118_v34 = vpack.c.bf16 %v78_v33, %v77_v32  ;;  %v117_v37 = vpack.c.bf16 %v76_v36, %v75_v35  ;;  %v73_v38 = vld [vmem:[%s1747_s2] sm:$0xff]  ;;  %v74_v39 = vld [vmem:[%s1747_s2 + $0x8] sm:$0xff]  ;;  %v95_v41 = vld [vmem:[%s1747_s2 + $0xb0] sm:$0xff] }
   0x8   :  { %1074 = vmatprep.subr.msk.bf16.mxu1 %vm132_vm1, %v55_v14  ;;  %65 = vadd.xlane.f32.xlu0 %v64_v18  ;;  %v116_v40 = vpack.c.bf16 %v74_v39, %v73_v38  ;;  %v96_v42 = vld [vmem:[%s1747_s2 + $0xb8] sm:$0xff]  ;;  %v93_v44 = vld [vmem:[%s1747_s2 + $0xa0] sm:$0xff]  ;;  %v94_v45 = vld [vmem:[%s1747_s2 + $0xa8] sm:$0xff] }
   0x9   :  { %259 = vmatpush1.bf16.msra.mxu0 %v122_v20  ;;  %v127_v43 = vpack.c.bf16 %v96_v42, %v95_v41  ;;  %v126_v46 = vpack.c.bf16 %v94_v45, %v93_v44  ;;  %v91_v47 = vld [vmem:[%s1747_s2 + $0x90] sm:$0xff]  ;;  %v92_v48 = vld [vmem:[%s1747_s2 + $0x98] sm:$0xff]  ;;  %v89_v50 = vld [vmem:[%s1747_s2 + $0x80] sm:$0xff] }
   0xa   :  { %1073 = vmatmul.mubr.msk.bf16.vlgmr.msra.gmra.mxu1 %vm128_vm2, %v1385_v19  ;;  %260 = vmatprep.subr.bf16.mxu0 %v1287_v2  ;;  %v125_v49 = vpack.c.bf16 %v92_v48, %v91_v47  ;;  %v90_v51 = vld [vmem:[%s1747_s2 + $0x88] sm:$0xff]  ;;  %v1078_v12 = vld [vmem:[%s1748_s3] ss:$0 sm:$0xff] }
   0xb   :  { %204 = vmatpush1.bf16.msra.mxu1 %v184_v23  ;;  %221 = vmatprep.mubr.bf16.mxu1 %v1287_v2  ;;  %v124_v52 = vpack.c.bf16 %v90_v51, %v89_v50 }
   0xc   :  { %1148 = vmatprep.subr.bf16.mxu1 %v1288_v11 }
   0xd   :  { %261 = vmatpush1.bf16.msra.mxu0 %v121_v24 }
   0xe   :  { %262 = vmatprep.subr.bf16.mxu0 %v1287_v2 }
  0x11   :  { %263 = vmatpush1.bf16.msra.mxu0 %v120_v28 }
  0x12   :  { %1075 = vmatmul.mubr.msk.bf16.vlgmr.msra.gmra.mxu1 %vm128_vm2, %v1406_v27  ;;  %264 = vmatprep.subr.bf16.mxu0 %v1287_v2 }
  0x13   :  { %1150 = vmatprep.mubr.msk.bf16.mxu1 %vm1289_vm4, %v1288_v11 }
  0x15   :  { %265 = vmatpush1.bf16.msra.mxu0 %v119_v31 }
  0x16   :  { %266 = vmatprep.subr.bf16.mxu0 %v1287_v2 }
  0x19   :  { %267 = vmatpush1.bf16.msra.mxu0 %v118_v34 }
  0x1a   :  { %268 = vmatprep.subr.bf16.mxu0 %v1287_v2 }
  0x1d   :  { %269 = vmatpush1.bf16.msra.mxu0 %v117_v37 }
  0x1e   :  { %270 = vmatprep.subr.bf16.mxu0 %v1287_v2 }
  0x21   :  { %271 = vmatpush1.bf16.msra.mxu0 %v116_v40 }
  0x22   :  { %280 = vmatprep.subr.bf16.mxu0 %v1287_v2 }
  0x25   :  { %281 = vmatpush2.bf16.msra.mxu0 %v127_v43 }
  0x26   :  { %282 = vmatprep.subr.bf16.mxu0 %v1287_v2 }
  0x29   :  { %283 = vmatpush2.bf16.msra.mxu0 %v126_v46 }
  0x2a   :  { %284 = vmatprep.subr.bf16.mxu0 %v1287_v2 }
  0x2d   :  { %285 = vmatpush2.bf16.msra.mxu0 %v125_v49 }
  0x2e   :  { %286 = vmatprep.subr.bf16.mxu0 %v1287_v2 }
  0x31   :  { %287 = vmatpush2.bf16.msra.mxu0 %v124_v52 }
  0x32   :  { %1184 = vmatprep.subr.bf16.mxu0 %v1288_v11 }
  0x8d   :  { %v63_v53 = vpop.xlane.xlu0 %62 }
  0x8e   :  { %v67_v56 = vmax.f32 %v63_v53, 1.0 }
  0x91   :  { %v66_v54 = vpop.xlane.xlu0 %65 }
  0x92   :  { %v68_v55 = vmax.f32 %v66_v54, 1.0 }
  0x94   :  { %1277 = vrcp.f32 %v68_v55 }
  0x95   :  { %1279 = vrcp.f32 %v67_v56 }
  0xa1   :  { %v1467_v60 = vpop.eup %1277 }
  0xa2   :  { %v1469_v62 = vpop.eup %1279 }
  0xca   :  { %v173_v57 = vpop.f32.mrf.mxu1 }
  0xcb   :  { %v230_v1 = vmul.f32 %v1469_v62, %v173_v57 }
  0xcc   :  { %v175_v58 = vpop.f32.mrf.mxu1 }
  0xcd   :  { %v231_v3 = vmul.f32 %v1469_v62, %v175_v58 }
  0xce   :  { %v177_v59 = vpop.f32.mrf.mxu1 }
  0xd0   :  { %v178_v61 = vpop.f32.mrf.mxu1 }
  0xd2   :  { %v223_v63 = vpop.f32.mrf.mxu1 }
  0xd3   :  { %v232_v0 = vmul.f32 %v1467_v60, %v223_v63 }
  0xd4   :  { %v225_v2 = vpop.f32.mrf.mxu1 }
  0xd5   :  { %v233_v4 = vmul.f32 %v1467_v60, %v225_v2  ;;  %v1076_v5 = vcombine.low %v230_v1, %v232_v0  ;;  %v104_v2 = vld [vmem:[%s1749_s4 + $0x30] sm:$0xff] }
  0xd6   :  { %v227_v6 = vpop.f32.mrf.mxu1 }
  0xd7   :  { %v1077_v7 = vcombine.low %v231_v3, %v233_v4  ;;  %v244_v10 = vpack.c.bf16 %v1076_v5, %v1076_v5  ;;  %v105_v3 = vld [vmem:[%s1749_s4 + $0x38] sm:$0xff]  ;;  %v102_v5 = vld [vmem:[%s1749_s4 + $0x20] sm:$0xff]  ;;  %v103_v6 = vld [vmem:[%s1749_s4 + $0x28] sm:$0xff] }
  0xd8   :  { %v228_v8 = vpop.f32.mrf.mxu1  ;;  %v327_v4 = vpack.c.bf16 %v105_v3, %v104_v2 }
  0xd9   :  { %v245_v9 = vpack.c.bf16 %v1077_v7, %v1077_v7  ;;  %v326_v7 = vpack.c.bf16 %v103_v6, %v102_v5  ;;  %v100_v8 = vld [vmem:[%s1749_s4 + $0x10] sm:$0xff] }
  0xdb   :  { %1079 = vmatprep.mubr.msk.bf16.mxu0 %vm252_vm3, %v245_v9  ;;  %v101_v9 = vld [vmem:[%s1749_s4 + $0x18] sm:$0xff] }
  0xdc   :  { %289 = vmatmul.mubr.bf16.vlgmr.msra.gmra.mxu0 %v244_v10  ;;  %v325_v10 = vpack.c.bf16 %v101_v9, %v100_v8 }
  0xdd   :  { %1192 = vmatprep.mubr.msk.bf16.mxu0 %vm1289_vm4, %v1288_v11 }
 0x19c   :  { %v290_v13 = vpop.f32.mrf.mxu0 }
 0x19d   :  { %v291_v14 = vadd.f32 %v1078_v12, %v290_v13  ;;  %v98_v12 = vld [vmem:[%s1749_s4] sm:$0xff]  ;;  %v99_v13 = vld [vmem:[%s1749_s4 + $0x8] sm:$0xff] }
 0x19e   :  { %v292_v15 = vpop.f32.mrf.mxu0 }
 0x19f   :  { %v296_v16 = vmax.f32 %v291_v14, 0.0  ;;  %v324_v14 = vpack.c.bf16 %v99_v13, %v98_v12  ;;  %v683_v13 = vld [vmem:[%s1752_s8 + $0x78] sm:$0xff] }
 0x1a0   :  { %v293_v17 = vpop.f32.mrf.mxu0 }
 0x1a1   :  { %v297_v18 = vsel %vm252_vm3, %v296_v16, 0.0 }
 0x1a2   :  { %v298_v20 = vrot.slane %v297_v18, 4  ;;  %v294_v21 = vpop.f32.mrf.mxu0 }
 0x1a4   :  { %v299_v22 = vadd.f32 %v298_v20, %v297_v18 }
 0x1a6   :  { %v300_v23 = vrot.slane %v299_v22, 2 }
 0x1a8   :  { %v301_v24 = vadd.f32 %v300_v23, %v299_v22 }
 0x1aa   :  { %v302_v25 = vrot.slane %v301_v24, 1 }
 0x1ac   :  { %v303_v26 = vadd.f32 %v302_v25, %v301_v24 }
 0x1ae   :  { %v305_v28 = vmul.f32 0.125, %v303_v26 }
 0x1b0   :  { %v306_v29 = vsub.f32 %v296_v16, %v305_v28 }
 0x1b2   :  { %v307_v30 = vmul.f32 %v306_v29, %v306_v29 }
 0x1b4   :  { %v308_v31 = vsel %vm252_vm3, %v307_v30, 0.0  ;;  %v114_v30 = vld [vmem:[%s1750_s6 + $0x38] sm:$0xff] }
 0x1b5   :  { %v309_v32 = vrot.slane %v308_v31, 4 }
 0x1b7   :  { %v310_v33 = vadd.f32 %v309_v32, %v308_v31  ;;  %v1082_v32 = vld [vmem:[%s1751_s5] ss:$0 sm:$0xff] }
 0x1b9   :  { %v311_v34 = vrot.slane %v310_v33, 2 }
 0x1bb   :  { %v312_v35 = vadd.f32 %v311_v34, %v310_v33 }
 0x1bd   :  { %v313_v36 = vrot.slane %v312_v35, 1 }
 0x1bf   :  { %v314_v37 = vadd.f32 %v313_v36, %v312_v35 }
 0x1c1   :  { %v315_v38 = vmul.f32 0.125, %v314_v37 }
 0x1c3   :  { %v316_v39 = vadd.f32 1e-05, %v315_v38 }
 0x1c5   :  { %1281 = vrsqrt.f32 %v316_v39 }
 0x1d2   :  { %v1282_v40 = vpop.eup %1281 }
 0x1d3   :  { %v318_v41 = vmul.f32 %v1282_v40, %v306_v29  ;;  %v113_v29 = vld [vmem:[%s1750_s6 + $0x30] sm:$0xff] }
 0x1d4   :  { %v500_v31 = vpack.c.bf16 %v114_v30, %v113_v29  ;;  %v111_v30 = vld [vmem:[%s1750_s6 + $0x20] sm:$0xff] }
 0x1d5   :  { %v693_v42 = vsel %vm692_vm5, %v318_v41, 0.0  ;;  %v322_v43 = vpack.c.bf16 %v318_v41, %v318_v41  ;;  %v320_v44 = vcombine.high %v318_v41, %v318_v41 }
 0x1d6   :  { %v694_v45 = vrot.slane %v693_v42, 4  ;;  %1185 = vmatpush3.bf16.msra.mxu0 %v500_v31  ;;  %v112_v31 = vld [vmem:[%s1750_s6 + $0x28] sm:$0xff] }
 0x1d7   :  { %v329_v46 = vsel %vm132_vm1, %v322_v43, 0  ;;  %v323_v47 = vpack.c.bf16 %v320_v44, %v320_v44  ;;  %v700_v48 = vsel %vm692_vm5, %v320_v44, 0.0  ;;  %1186 = vmatprep.subr.bf16.mxu0 %v1288_v11 }
 0x1d8   :  { %v695_v49 = vadd.f32 %v694_v45, %v693_v42  ;;  %1149 = vmatpush3.bf16.msra.mxu1 %v329_v46  ;;  %v701_v50 = vrot.slane %v700_v48, 4 }
 0x1d9   :  { %1154 = vmatprep.subr.bf16.mxu1 %v1288_v11  ;;  %v372_v53 = vsel %vm132_vm1, %v323_v47, 0 }
 0x1da   :  { %v696_v51 = vrot.slane %v695_v49, 2  ;;  %v702_v52 = vadd.f32 %v701_v50, %v700_v48 }
 0x1db   :  { %1151 = vmatmul.mubr.msk.bf16.vlgmr.msra.gmra.mxu1 %vm128_vm2, %v1385_v19 }
 0x1dc   :  { %v697_v54 = vadd.f32 %v696_v51, %v695_v49  ;;  %1155 = vmatpush3.bf16.msra.mxu1 %v372_v53  ;;  %v703_v55 = vrot.slane %v702_v52, 2  ;;  %1156 = vmatprep.mubr.msk.bf16.mxu1 %vm1289_vm4, %v1288_v11 }
 0x1dd   :  { %1160 = vmatprep.subr.bf16.mxu1 %v1288_v11 }
 0x1de   :  { %v704_v56 = vadd.f32 %v703_v55, %v702_v52  ;;  %v698_v57 = vrot.slane %v697_v54, 1 }
 0x1e0   :  { %v699_v58 = vadd.f32 %v698_v57, %v697_v54  ;;  %v705_v59 = vrot.slane %v704_v56, 1 }
 0x1e2   :  { %v706_v61 = vadd.f32 %v705_v59, %v704_v56  ;;  %v708_v63 = vmul.f32 0.25, %v699_v58 }
 0x1e3   :  { %1157 = vmatmul.mubr.msk.bf16.vlgmr.msra.gmra.mxu1 %vm128_vm2, %v1406_v27 }
 0x1e4   :  { %1168 = vmatprep.mubr.msk.bf16.mxu1 %vm1289_vm4, %v1288_v11  ;;  %v709_v0 = vmul.f32 0.25, %v706_v61  ;;  %1161 = vmatpush3.bf16.msra.mxu1 %v327_v4 }
 0x1e5   :  { %1162 = vmatprep.subr.bf16.mxu1 %v1288_v11 }
 0x1e6   :  { %v1502_v1 = vsel %vm728_vm6, %v709_v0, %v708_v63 }
 0x1e8   :  { %1163 = vmatpush3.bf16.msra.mxu1 %v326_v7 }
 0x1e9   :  { %1164 = vmatprep.subr.bf16.mxu1 %v1288_v11 }
 0x1ec   :  { %1165 = vmatpush3.bf16.msra.mxu1 %v325_v10 }
 0x1ed   :  { %1166 = vmatprep.subr.bf16.mxu1 %v1288_v11 }
 0x1f0   :  { %1167 = vmatpush3.bf16.msra.mxu1 %v324_v14 }
 0x1f1   :  { %1172 = vmatprep.subr.bf16.mxu1 %v1288_v11 }
 0x29b   :  { %v365_v15 = vpop.f32.mrf.mxu1 }
 0x29c   :  { %v414_v21 = vmul.f32 %v1469_v62, %v365_v15 }
 0x29d   :  { %v1152_v16 = vpop.f32.mrf.mxu1 }
 0x29e   :  { %v681_v16 = vld [vmem:[%s1752_s8 + $0x68] sm:$0xff] }
 0x29f   :  { %v368_v17 = vpop.f32.mrf.mxu1 }
 0x2a1   :  { %v1153_v18 = vpop.f32.mrf.mxu1 }
 0x2a3   :  { %v408_v20 = vpop.f32.mrf.mxu1 }
 0x2a4   :  { %v415_v22 = vmul.f32 %v1467_v60, %v408_v20  ;;  %v679_v20 = vld [vmem:[%s1752_s8 + $0x58] sm:$0xff] }
 0x2a5   :  { %v1158_v23 = vpop.f32.mrf.mxu1 }
 0x2a6   :  { %v418_v24 = vcombine.low %v414_v21, %v415_v22  ;;  %v678_v22 = vld [vmem:[%s1752_s8 + $0x50] sm:$0xff] }
 0x2a7   :  { %v411_v25 = vpop.f32.mrf.mxu1 }
 0x2a8   :  { %v420_v26 = vpack.c.bf16 %v418_v24, %v418_v24  ;;  %v677_v24 = vld [vmem:[%s1752_s8 + $0x48] sm:$0xff] }
 0x2a9   :  { %v1159_v28 = vpop.f32.mrf.mxu1 }
 0x2aa   :  { %1169 = vmatmul.mubr.msk.bf16.vlgmr.msra.gmra.mxu1 %vm252_vm3, %v420_v26  ;;  %v676_v26 = vld [vmem:[%s1752_s8 + $0x40] sm:$0xff] }
 0x2ab   :  { %1174 = vmatprep.mubr.msk.bf16.mxu1 %vm1289_vm4, %v1288_v11 }
 0x36a   :  { %v464_v33 = vpop.f32.mrf.mxu1 }
 0x36b   :  { %v465_v34 = vadd.f32 %v1082_v32, %v464_v33  ;;  %v499_v32 = vpack.c.bf16 %v112_v31, %v111_v30  ;;  %v109_v33 = vld [vmem:[%s1750_s6 + $0x10] sm:$0xff] }
 0x36c   :  { %v1170_v35 = vpop.f32.mrf.mxu1 }
 0x36d   :  { %v470_v36 = vmax.f32 %v465_v34, 0.0  ;;  %1187 = vmatpush3.bf16.msra.mxu0 %v499_v32  ;;  %v110_v34 = vld [vmem:[%s1750_s6 + $0x18] sm:$0xff] }
 0x36e   :  { %v467_v37 = vpop.f32.mrf.mxu1  ;;  %1188 = vmatprep.subr.bf16.mxu0 %v1288_v11  ;;  %v498_v35 = vpack.c.bf16 %v110_v34, %v109_v33 }
 0x36f   :  { %v471_v38 = vsel %vm252_vm3, %v470_v36, 0.0  ;;  %v108_v37 = vld [vmem:[%s1750_s6 + $0x8] sm:$0xff] }
 0x370   :  { %v472_v39 = vrot.slane %v471_v38, 4  ;;  %v1171_v40 = vpop.f32.mrf.mxu1 }
 0x371   :  { %1189 = vmatpush3.bf16.msra.mxu0 %v498_v35 }
 0x372   :  { %v473_v41 = vadd.f32 %v472_v39, %v471_v38  ;;  %1190 = vmatprep.subr.bf16.mxu0 %v1288_v11 }
 0x374   :  { %v474_v42 = vrot.slane %v473_v41, 2 }
 0x376   :  { %v475_v43 = vadd.f32 %v474_v42, %v473_v41 }
 0x378   :  { %v476_v44 = vrot.slane %v475_v43, 1 }
 0x37a   :  { %v477_v45 = vadd.f32 %v476_v44, %v475_v43 }
 0x37c   :  { %v478_v46 = vmul.f32 0.125, %v477_v45 }
 0x37e   :  { %v479_v47 = vsub.f32 %v470_v36, %v478_v46  ;;  %v107_v36 = vld [vmem:[%s1750_s6] sm:$0xff] }
 0x37f   :  { %v497_v38 = vpack.c.bf16 %v108_v37, %v107_v36 }
 0x380   :  { %v480_v48 = vmul.f32 %v479_v47, %v479_v47 }
 0x381   :  { %1191 = vmatpush3.bf16.msra.mxu0 %v497_v38 }
 0x382   :  { %v481_v49 = vsel %vm252_vm3, %v480_v48, 0.0  ;;  %1215 = vmatprep.subr.mxu0 %v1288_v11 }
 0x383   :  { %v482_v50 = vrot.slane %v481_v49, 4 }
 0x385   :  { %v483_v51 = vadd.f32 %v482_v50, %v481_v49  ;;  %v675_v50 = vld [vmem:[%s1752_s8 + $0x38] sm:$0xff] }
 0x387   :  { %v484_v52 = vrot.slane %v483_v51, 2 }
 0x389   :  { %v485_v53 = vadd.f32 %v484_v52, %v483_v51  ;;  %v674_v52 = vld [vmem:[%s1752_s8 + $0x30] sm:$0xff] }
 0x38b   :  { %v486_v54 = vrot.slane %v485_v53, 1 }
 0x38d   :  { %v487_v55 = vadd.f32 %v486_v54, %v485_v53  ;;  %v671_v53 = vld [vmem:[%s1752_s8 + $0x18] sm:$0xff]  ;;  %v670_v54 = vld [vmem:[%s1752_s8 + $0x10] sm:$0xff] }
 0x38f   :  { %v488_v56 = vmul.f32 0.125, %v487_v55 }
 0x391   :  { %v489_v57 = vadd.f32 1e-05, %v488_v56  ;;  %v669_v56 = vld [vmem:[%s1752_s8 + $0x8] sm:$0xff] }
 0x393   :  { %1283 = vrsqrt.f32 %v489_v57 }
 0x3a0   :  { %v1284_v58 = vpop.eup %1283 }
 0x3a1   :  { %v491_v59 = vmul.f32 %v1284_v58, %v479_v47  ;;  %v668_v58 = vld [vmem:[%s1752_s8] sm:$0xff] }
 0x3a3   :  { %v710_v61 = vsel %vm692_vm5, %v491_v59, 0.0  ;;  %v495_v63 = vpack.c.bf16 %v491_v59, %v491_v59  ;;  %v493_v0 = vcombine.high %v491_v59, %v491_v59  ;;  %v691_v59 = vld [vmem:[%s1752_s8 + $0xb8] sm:$0xff] }
 0x3a4   :  { %v711_v5 = vrot.slane %v710_v61, 4 }
 0x3a5   :  { %v502_v2 = vsel %vm132_vm1, %v495_v63, 0  ;;  %v496_v3 = vpack.c.bf16 %v493_v0, %v493_v0  ;;  %v717_v4 = vsel %vm692_vm5, %v493_v0, 0.0  ;;  %v688_v63 = vld [vmem:[%s1752_s8 + $0xa0] sm:$0xff]  ;;  %v687_v0 = vld [vmem:[%s1752_s8 + $0x98] sm:$0xff] }
 0x3a6   :  { %1173 = vmatpush3.bf16.msra.mxu1 %v502_v2  ;;  %v718_v6 = vrot.slane %v717_v4, 4  ;;  %v712_v9 = vadd.f32 %v711_v5, %v710_v61  ;;  %v690_v61 = vld [vmem:[%s1752_s8 + $0xb0] sm:$0xff]  ;;  %v985_v5 = vld [vmem:[%s1753_s10 + $0x38] sm:$0xff] }
 0x3a7   :  { %1178 = vmatprep.subr.bf16.mxu1 %v1288_v11  ;;  %v545_v8 = vsel %vm132_vm1, %v496_v3, 0  ;;  %v686_v2 = vld [vmem:[%s1752_s8 + $0x90] sm:$0xff]  ;;  %v685_v3 = vld [vmem:[%s1752_s8 + $0x88] sm:$0xff] }
 0x3a8   :  { %v719_v7 = vadd.f32 %v718_v6, %v717_v4  ;;  %v713_v12 = vrot.slane %v712_v9, 2  ;;  %v684_v4 = vld [vmem:[%s1752_s8 + $0x80] sm:$0xff]  ;;  %v984_v6 = vld [vmem:[%s1753_s10 + $0x30] sm:$0xff] }
 0x3a9   :  { %1175 = vmatmul.mubr.msk.bf16.vlgmr.msra.gmra.mxu1 %vm128_vm2, %v1385_v19  ;;  %v682_v19 = vld [vmem:[%s1752_s8 + $0x70] sm:$0xff] }
 0x3aa   :  { %1179 = vmatpush3.bf16.msra.mxu1 %v545_v8  ;;  %1180 = vmatprep.mubr.msk.bf16.mxu1 %vm1289_vm4, %v1288_v11  ;;  %v720_v10 = vrot.slane %v719_v7, 2  ;;  %v714_v15 = vadd.f32 %v713_v12, %v712_v9  ;;  %v982_v8 = vld [vmem:[%s1753_s10 + $0x20] sm:$0xff] }
 0x3ab   :  { %1196 = vmatprep.subr.mxu1 %v1288_v11  ;;  %v1086_v9 = vld [vmem:[%s1754_s7] ss:$0 sm:$0xff] }
 0x3ac   :  { %v721_v14 = vadd.f32 %v720_v10, %v719_v7  ;;  %v715_v18 = vrot.slane %v714_v15, 1  ;;  %v983_v7 = vld [vmem:[%s1753_s10 + $0x28] sm:$0xff] }
 0x3ae   :  { %v722_v17 = vrot.slane %v721_v14, 1  ;;  %v716_v23 = vadd.f32 %v715_v18, %v714_v15 }
 0x3b0   :  { %v723_v21 = vadd.f32 %v722_v17, %v721_v14  ;;  %v724_v28 = vmul.f32 0.25, %v716_v23 }
 0x3b1   :  { %1181 = vmatmul.mubr.msk.bf16.vlgmr.msra.gmra.mxu1 %vm128_vm2, %v1406_v27  ;;  %v680_v27 = vld [vmem:[%s1752_s8 + $0x60] sm:$0xff] }
 0x3b2   :  { %1197 = vmatpush3.msra.mxu1 %v683_v13  ;;  %1212 = vmatprep.mubr.msk.f32.mxu1 %vm1289_vm4, %v1288_v11  ;;  %v725_v25 = vmul.f32 0.25, %v723_v21 }
 0x3b3   :  { %1198 = vmatprep.subr.mxu1 %v1288_v11 }
 0x3b4   :  { %1199 = vmatpush3.msra.mxu1 %v682_v19  ;;  %v729_v29 = vsel %vm728_vm6, %v725_v25, %v724_v28 }
 0x3b5   :  { %1200 = vmatprep.subr.mxu1 %v1288_v11 }
 0x3b6   :  { %1201 = vmatpush3.msra.mxu1 %v681_v16 }
 0x3b7   :  { %1202 = vmatprep.subr.mxu1 %v1288_v11 }
 0x3b8   :  { %1203 = vmatpush3.msra.mxu1 %v680_v27 }
 0x3b9   :  { %1204 = vmatprep.subr.mxu1 %v1288_v11 }
 0x3ba   :  { %1205 = vmatpush3.msra.mxu1 %v679_v20 }
 0x3bb   :  { %1206 = vmatprep.subr.mxu1 %v1288_v11 }
 0x3bc   :  { %1207 = vmatpush3.msra.mxu1 %v678_v22 }
 0x3bd   :  { %1208 = vmatprep.subr.mxu1 %v1288_v11 }
 0x3be   :  { %1209 = vmatpush3.msra.mxu1 %v677_v24 }
 0x3bf   :  { %1210 = vmatprep.subr.mxu1 %v1288_v11 }
 0x3c0   :  { %1211 = vmatpush3.msra.mxu1 %v676_v26 }
 0x3c1   :  { %1213 = vmatmul.mubr.msk.f32.vlgmr.msra.gmra.mxu1 %vm252_vm3, %v729_v29  ;;  %1234 = vmatprep.subr.mxu1 %v1288_v11 }
 0x3c2   :  { %1250 = vmatprep.mubr.msk.f32.mxu1 %vm1289_vm4, %v1288_v11  ;;  %1235 = vmatpush3.msra.mxu1 %v691_v59  ;;  %v979_v59 = vld [vmem:[%s1753_s10 + $0x8] sm:$0xff] }
 0x3c3   :  { %1236 = vmatprep.subr.mxu1 %v1288_v11 }
 0x3c4   :  { %1237 = vmatpush3.msra.mxu1 %v690_v61  ;;  %v978_v61 = vld [vmem:[%s1753_s10] sm:$0xff] }
 0x3c5   :  { %1238 = vmatprep.subr.mxu1 %v1288_v11 }
 0x469   :  { %v538_v39 = vpop.f32.mrf.mxu1 }
 0x46a   :  { %v587_v44 = vmul.f32 %v1469_v62, %v538_v39  ;;  %v672_v62 = vld [vmem:[%s1752_s8 + $0x20] sm:$0xff] }
 0x46b   :  { %v1176_v40 = vpop.f32.mrf.mxu1 }
 0x46d   :  { %v541_v41 = vpop.f32.mrf.mxu1 }
 0x46f   :  { %v1177_v42 = vpop.f32.mrf.mxu1 }
 0x471   :  { %v581_v43 = vpop.f32.mrf.mxu1 }
 0x472   :  { %v588_v45 = vmul.f32 %v1467_v60, %v581_v43  ;;  %v673_v60 = vld [vmem:[%s1752_s8 + $0x28] sm:$0xff] }
 0x473   :  { %v1182_v46 = vpop.f32.mrf.mxu1 }
 0x474   :  { %v591_v47 = vcombine.low %v587_v44, %v588_v45 }
 0x475   :  { %v584_v48 = vpop.f32.mrf.mxu1 }
 0x476   :  { %v593_v49 = vpack.c.bf16 %v591_v47, %v591_v47 }
 0x477   :  { %v1183_v51 = vpop.f32.mrf.mxu1 }
 0x478   :  { %1193 = vmatmul.mubr.msk.bf16.vlgmr.msra.gmra.mxu0 %vm252_vm3, %v593_v49 }
 0x479   :  { %1216 = vmatpush3.msra.mxu0 %v675_v50  ;;  %1231 = vmatprep.mubr.msk.f32.mxu0 %vm1289_vm4, %v1288_v11 }
 0x47a   :  { %1217 = vmatprep.subr.mxu0 %v1288_v11 }
 0x47b   :  { %1218 = vmatpush3.msra.mxu0 %v674_v52 }
 0x47c   :  { %1219 = vmatprep.subr.mxu0 %v1288_v11 }
 0x47d   :  { %1220 = vmatpush3.msra.mxu0 %v673_v60 }
 0x47e   :  { %1221 = vmatprep.subr.mxu0 %v1288_v11 }
 0x47f   :  { %1222 = vmatpush3.msra.mxu0 %v672_v62 }
 0x480   :  { %1223 = vmatprep.subr.mxu0 %v1288_v11 }
 0x481   :  { %v1647_v55 = vpop.f32.mrf.mxu1  ;;  %1224 = vmatpush3.msra.mxu0 %v671_v53 }
 0x482   :  { %1225 = vmatprep.subr.mxu0 %v1288_v11 }
 0x483   :  { %v1214_v57 = vpop.f32.mrf.mxu1  ;;  %1226 = vmatpush3.msra.mxu0 %v670_v54 }
 0x484   :  { %1227 = vmatprep.subr.mxu0 %v1288_v11  ;;  %v981_v57 = vld [vmem:[%s1753_s10 + $0x18] sm:$0xff] }
 0x485   :  { %1228 = vmatpush3.msra.mxu0 %v669_v56 }
 0x486   :  { %1229 = vmatprep.subr.mxu0 %v1288_v11 }
 0x487   :  { %1230 = vmatpush3.msra.mxu0 %v668_v58  ;;  %v980_v58 = vld [vmem:[%s1753_s10 + $0x10] sm:$0xff] }
 0x488   :  { %1232 = vmatmul.mubr.msk.f32.vlgmr.msra.gmra.mxu0 %vm252_vm3, %v1502_v1  ;;  %1253 = vmatprep.subr.mxu0 %v1288_v11  ;;  %v689_v1 = vld [vmem:[%s1752_s8 + $0xa8] sm:$0xff] }
 0x489   :  { %1269 = vmatprep.mubr.msk.f32.mxu0 %vm1289_vm4, %v1288_v11  ;;  %1239 = vmatpush3.msra.mxu1 %v689_v1  ;;  %v17_v1 = vstv %s1755_s11 }
 0x48a   :  { %1240 = vmatprep.subr.mxu1 %v1288_v11  ;;  %1254 = vmatpush3.msra.mxu0 %v985_v5  ;;  %18 = vst [vmem:[#allocation2] sm:$0x1] %v17_v1 }
 0x48b   :  { %1241 = vmatpush3.msra.mxu1 %v688_v63  ;;  %1255 = vmatprep.subr.mxu0 %v1288_v11 }
 0x48c   :  { %1242 = vmatprep.subr.mxu1 %v1288_v11  ;;  %1256 = vmatpush3.msra.mxu0 %v984_v6 }
 0x48d   :  { %1243 = vmatpush3.msra.mxu1 %v687_v0  ;;  %1257 = vmatprep.subr.mxu0 %v1288_v11 }
 0x48e   :  { %1244 = vmatprep.subr.mxu1 %v1288_v11  ;;  %1258 = vmatpush3.msra.mxu0 %v983_v7 }
 0x48f   :  { %1245 = vmatpush3.msra.mxu1 %v686_v2  ;;  %1259 = vmatprep.subr.mxu0 %v1288_v11  ;;  %v1091_v2 = vld [vmem:[%s1756_s9] ss:$0 sm:$0xff] }
 0x490   :  { %1246 = vmatprep.subr.mxu1 %v1288_v11  ;;  %1260 = vmatpush3.msra.mxu0 %v982_v8 }
 0x491   :  { %1247 = vmatpush3.msra.mxu1 %v685_v3  ;;  %1261 = vmatprep.subr.mxu0 %v1288_v11 }
 0x492   :  { %1248 = vmatprep.subr.mxu1 %v1288_v11  ;;  %1262 = vmatpush3.msra.mxu0 %v981_v57 }
 0x493   :  { %1249 = vmatpush3.msra.mxu1 %v684_v4  ;;  %1263 = vmatprep.subr.mxu0 %v1288_v11 }
 0x494   :  { %1264 = vmatpush3.msra.mxu0 %v980_v58 }
 0x495   :  { %1265 = vmatprep.subr.mxu0 %v1288_v11 }
 0x496   :  { %1266 = vmatpush3.msra.mxu0 %v979_v59 }
 0x497   :  { %1267 = vmatprep.subr.mxu0 %v1288_v11  ;;  %v1092_v11 = vld [vmem:[#allocation2] ss:$0 sm:$0xff] }
 0x498   :  { %1268 = vmatpush3.msra.mxu0 %v978_v61 }
 0x538   :  { %v637_v10 = vpop.f32.mrf.mxu0 }
 0x539   :  { %v638_v12 = vadd.f32 %v1086_v9, %v637_v10 }
 0x53a   :  { %v1194_v13 = vpop.f32.mrf.mxu0 }
 0x53b   :  { %v643_v14 = vmax.f32 %v638_v12, 0.0 }
 0x53c   :  { %v640_v19 = vpop.f32.mrf.mxu0 }
 0x53d   :  { %v644_v15 = vsel %vm252_vm3, %v643_v14, 0.0 }
 0x53e   :  { %v645_v16 = vrot.slane %v644_v15, 4  ;;  %v1195_v17 = vpop.f32.mrf.mxu0 }
 0x540   :  { %v646_v27 = vadd.f32 %v645_v16, %v644_v15 }
 0x542   :  { %v647_v18 = vrot.slane %v646_v27, 2 }
 0x544   :  { %v648_v20 = vadd.f32 %v647_v18, %v646_v27 }
 0x546   :  { %v649_v21 = vrot.slane %v648_v20, 1 }
 0x548   :  { %v650_v22 = vadd.f32 %v649_v21, %v648_v20  ;;  %v873_v23 = vpop.f32.mrf.mxu0 }
 0x549   :  { %v874_v63 = vadd.f32 %v873_v23, %v1647_v55 }
 0x54a   :  { %v651_v24 = vmul.f32 0.125, %v650_v22  ;;  %v1233_v25 = vpop.f32.mrf.mxu0 }
 0x54c   :  { %v652_v26 = vsub.f32 %v643_v14, %v651_v24 }
 0x54e   :  { %v653_v28 = vmul.f32 %v652_v26, %v652_v26 }
 0x550   :  { %v654_v29 = vsel %vm252_vm3, %v653_v28, 0.0 }
 0x551   :  { %v655_v30 = vrot.slane %v654_v29, 4 }
 0x553   :  { %v656_v31 = vadd.f32 %v655_v30, %v654_v29 }
 0x555   :  { %v657_v32 = vrot.slane %v656_v31, 2 }
 0x557   :  { %v658_v33 = vadd.f32 %v657_v32, %v656_v31 }
 0x559   :  { %v659_v34 = vrot.slane %v658_v33, 1 }
 0x55b   :  { %v660_v35 = vadd.f32 %v659_v34, %v658_v33 }
 0x55d   :  { %v661_v36 = vmul.f32 0.125, %v660_v35 }
 0x55f   :  { %v662_v37 = vadd.f32 1e-05, %v661_v36 }
 0x561   :  { %1285 = vrsqrt.f32 %v662_v37 }
 0x56e   :  { %v1286_v38 = vpop.eup %1285 }
 0x56f   :  { %v664_v39 = vmul.f32 %v1286_v38, %v652_v26 }
 0x571   :  { %v666_v40 = vcombine.high %v664_v39, %v664_v39  ;;  %v877_v41 = vsel %vm692_vm5, %v664_v39, 0.0 }
 0x572   :  { %v878_v42 = vrot.slane %v877_v41, 4 }
 0x573   :  { %v884_v43 = vsel %vm692_vm5, %v666_v40, 0.0 }
 0x574   :  { %v879_v44 = vadd.f32 %v878_v42, %v877_v41  ;;  %v885_v45 = vrot.slane %v884_v43, 4 }
 0x576   :  { %v880_v46 = vrot.slane %v879_v44, 2  ;;  %v886_v47 = vadd.f32 %v885_v45, %v884_v43 }
 0x578   :  { %v881_v48 = vadd.f32 %v880_v46, %v879_v44  ;;  %v887_v49 = vrot.slane %v886_v47, 2 }
 0x57a   :  { %v882_v50 = vrot.slane %v881_v48, 1  ;;  %v888_v51 = vadd.f32 %v887_v49, %v886_v47 }
 0x57c   :  { %v883_v52 = vadd.f32 %v882_v50, %v881_v48  ;;  %v889_v60 = vrot.slane %v888_v51, 1 }
 0x57e   :  { %v890_v62 = vadd.f32 %v889_v60, %v888_v51  ;;  %v891_v53 = vmul.f32 0.25, %v883_v52 }
 0x580   :  { %v892_v54 = vmul.f32 0.25, %v890_v62 }
 0x582   :  { %v895_v56 = vsel %vm728_vm6, %v892_v54, %v891_v53 }
 0x583   :  { %1251 = vmatmul.mubr.msk.f32.vlgmr.msra.gmra.mxu1 %vm252_vm3, %v895_v56 }
 0x643   :  { %v964_v0 = vpop.f32.mrf.mxu1 }
 0x644   :  { %v968_v3 = vadd.f32 %v964_v0, %v874_v63 }
 0x645   :  { %v1252_v4 = vpop.f32.mrf.mxu1 }
 0x646   :  { %v976_v5 = vadd.f32 %v1091_v2, %v968_v3 }
 0x648   :  { %v977_v6 = vmax.f32 %v976_v5, 0.0 }
 0x64a   :  { %1270 = vmatmul.mubr.msk.f32.vlgmr.msra.gmra.mxu0 %vm252_vm3, %v977_v6 }
 0x70a   :  { %v1062_v7 = vpop.f32.mrf.mxu0 }
 0x70b   :  { %v1063_v8 = vadd.f32 %v1092_v11, %v1062_v7 }
 0x70c   :  { %v1271_v9 = vpop.f32.mrf.mxu0 }
 0x70d   :  { %1067 = vst.msk [vmem:[%s1757_s12] sm:$0x3] %vm1066_vm7, %v1063_v8 }

// kernel: net_forward.3
= control target key start
LH: loop header
LB: loop body
LE: loop exit
PB: predicated region body
PF: predicated region fallthrough
CT: control target
= control target key end

     0   :  { %vm369_vm0 = vcmask 1040384   ;;  %vm370_vm1 = vcmask 1041408   ;;  %v4986_v1 = vmov 65535   ;;  %vm344_vm2 = vcmask 23552   ;;  %s7844_s2 = inlined_call_operand.vmem [shape: f32[3,64], index: 2, kind: input, shape index: {}]   ;;  %s7845_s0 = inlined_call_operand.vmem [shape: f32[2,64,3], index: 0, kind: input, shape index: {}]   ;;  %s7846_s1 = inlined_call_operand.vmem [shape: bf16[2,64,64], index: 1, kind: input, shape index: {}]   ;;  %s7847_s3 = inlined_call_operand.vmem [shape: f32[1,64], index: 3, kind: input, shape index: {}]   ;;  %s7848_s4 = inlined_call_operand.vmem [shape: f32[64,64], index: 4, kind: input, shape index: {}]   ;;  %s7849_s5 = inlined_call_operand.vmem [shape: f32[1,64], index: 5, kind: input, shape index: {}]   ;;  %s7850_s6 = inlined_call_operand.vmem [shape: f32[64,16], index: 6, kind: input, shape index: {}]   ;;  %s7851_s10 = inlined_call_operand.vmem [shape: f32[3,64], index: 10, kind: input, shape index: {}]   ;;  %s7852_s8 = inlined_call_operand.vmem [shape: f32[144,16], index: 8, kind: input, shape index: {}]   ;;  %s7853_s7 = inlined_call_operand.vmem [shape: f32[1,16], index: 7, kind: input, shape index: {}]   ;;  %s7854_s11 = inlined_call_operand.vmem [shape: f32[1,64], index: 11, kind: input, shape index: {}]   ;;  %s7855_s9 = inlined_call_operand.vmem [shape: f32[1,16], index: 9, kind: input, shape index: {}]   ;;  %s7856_s12 = inlined_call_operand.vmem [shape: f32[64,64], index: 12, kind: input, shape index: {}]   ;;  %s7857_s13 = inlined_call_operand.vmem [shape: f32[1,64], index: 13, kind: input, shape index: {}]   ;;  %s7858_s14 = inlined_call_operand.vmem [shape: f32[64,64], index: 14, kind: input, shape index: {}]   ;;  %s7859_s15 = inlined_call_operand.vmem [shape: f32[1,64], index: 15, kind: input, shape index: {}]   ;;  %s7860_s16 = inlined_call_operand.vmem [shape: f32[2,16,192], index: 16, kind: output, shape index: {0}]   ;;  %s7861_s17 = inlined_call_operand.vmem [shape: f32[2,16,16], index: 17, kind: output, shape index: {1}]  }
   0x1   :  { %7945 = sst [smem:[#allocation17_spill]] %s7844_s2  ;;  %v371_v2 = vsel %vm369_vm0, 4294967295, %v4986_v1  ;;  %v4987_v10 = vmov 1065369472   ;;  %vm137_vm3 = vcmask 523264   ;;  %v5117_v16 = vld [vmem:[%s7846_s1] sm:$0xff]  }
   0x2   :  { %7946 = sst [smem:[#allocation18_spill]] %s7845_s0  ;;  %v5088_v5 = vsel %vm370_vm1, %v371_v2, 0  ;;  %4443 = vmatprep.subr.bf16.mxu0 %v4987_v10  ;;  %4451 = vmatprep.mubr.msk.bf16.mxu0 %vm137_vm3, %v5117_v16  ;;  %v5144_v23 = vld [vmem:[%s7846_s1 + $0x8] sm:$0xff]   ;;  %v5149_v24 = vld [vmem:[%s7846_s1 + $0x10] sm:$0xff]   ;;  %v5178_v31 = vld [vmem:[%s7846_s1 + $0x18] sm:$0xff]   ;;  %v7863_v39 = vmov 0  }
   0x3   :  { %s7947_s26 = sld [smem:[#allocation17_spill]]  ;;  %4444 = vmatpush3.bf16.msra.mxu0 %v4987_v10  ;;  %v5183_v32 = vld [vmem:[%s7846_s1 + $0x20] sm:$0xff]   ;;  %v5204_v36 = vld [vmem:[%s7846_s1 + $0x28] sm:$0xff]   ;;  %v5209_v37 = vld [vmem:[%s7846_s1 + $0x30] sm:$0xff]   ;;  %4845 = vset.pattern.permute.xlu0 %v7863_v39  ;;  %vm1411_vm4 = vcmask 1048064   ;;  %vm1745_vm5 = vcmask 130048  }
   0x4   :  { %s7948_s29 = sld [smem:[#allocation18_spill]]  ;;  %4445 = vmatprep.subr.bf16.mxu0 %v4987_v10  ;;  %v5222_v38 = vld [vmem:[%s7846_s1 + $0x38] sm:$0xff]   ;;  %4846 = vset.pattern.permute.xlu1 %v7863_v39  ;;  %vm4991_vm6 = vmmov 0  }
   0x7   :  { %4446 = vmatpush3.bf16.msra.mxu0 %v4987_v10 }
   0x8   :  { %4447 = vmatprep.subr.bf16.mxu0 %v4987_v10 }
   0x9   :  { %v323_v0 = vld [vmem:[%s7947_s26] sm:$0x7] }
   0xa   :  { %v57_v3 = vld [vmem:[%s7948_s29] sm:$0xff]  ;;  %v343_v4 = vpack.c.bf16 %v323_v0, %v323_v0  ;;  %v58_v6 = vld [vmem:[%s7948_s29 + $0x8] sm:$0xff]  ;;  %v59_v8 = vld [vmem:[%s7948_s29 + $0x10] sm:$0xff] }
   0xb   :  { %v5093_v7 = vpack.c.bf16 %v58_v6, %v57_v3  ;;  %v60_v9 = vld [vmem:[%s7948_s29 + $0x18] sm:$0xff]  ;;  %v61_v12 = vld [vmem:[%s7948_s29 + $0x20] sm:$0xff]  ;;  %v62_v13 = vld [vmem:[%s7948_s29 + $0x28] sm:$0xff]  ;;  %4448 = vmatpush3.bf16.msra.mxu0 %v4987_v10 }
   0xc   :  { %v374_v11 = vand.u32 %v5088_v5, %v343_v4  ;;  %v5110_v14 = vpack.c.bf16 %v60_v9, %v59_v8  ;;  %v5112_v15 = vpack.c.bf16 %v62_v13, %v61_v12  ;;  %v63_v17 = vld [vmem:[%s7948_s29 + $0x30] sm:$0xff]  ;;  %v64_v18 = vld [vmem:[%s7948_s29 + $0x38] sm:$0xff]  ;;  %v65_v19 = vld [vmem:[%s7948_s29 + $0x40] sm:$0xff]  ;;  %4449 = vmatprep.subr.bf16.mxu0 %v4987_v10 }
   0xd   :  { %4469 = vmatprep.mubr.msk.bf16.mxu1 %vm344_vm2, %v5093_v7  ;;  %v66_v20 = vld [vmem:[%s7948_s29 + $0x48] sm:$0xff]  ;;  %v5137_v21 = vpack.c.bf16 %v64_v18, %v63_v17  ;;  %v67_v25 = vld [vmem:[%s7948_s29 + $0x50] sm:$0xff]  ;;  %v68_v26 = vld [vmem:[%s7948_s29 + $0x58] sm:$0xff] }
   0xe   :  { %4467 = vmatprep.subr.bf16.mxu1 %v374_v11  ;;  %v5139_v22 = vpack.c.bf16 %v66_v20, %v65_v19  ;;  %v69_v27 = vld [vmem:[%s7948_s29 + $0x60] sm:$0xff]  ;;  %v70_v28 = vld [vmem:[%s7948_s29 + $0x68] sm:$0xff]  ;;  %v5171_v29 = vpack.c.bf16 %v68_v26, %v67_v25  ;;  %v71_v33 = vld [vmem:[%s7948_s29 + $0x70] sm:$0xff] }
   0xf   :  { %4468 = vmatpush3.bf16.msra.mxu1 %v374_v11  ;;  %7949 = vst [vmem:[#allocation4_spill] sm:$0xff] %v5137_v21  ;;  %4450 = vmatpush3.bf16.msra.mxu0 %v4987_v10  ;;  %v5173_v30 = vpack.c.bf16 %v70_v28, %v69_v27  ;;  %v72_v34 = vld [vmem:[%s7948_s29 + $0x78] sm:$0xff] }
  0x10   :  { %7950 = vst [vmem:[#allocation5_spill] sm:$0xff] %v5139_v22  ;;  %7951 = vst [vmem:[#allocation6_spill] sm:$0xff] %v5171_v29  ;;  %v5199_v35 = vpack.c.bf16 %v72_v34, %v71_v33 }
  0x11   :  { %7952 = vst [vmem:[#allocation7_spill] sm:$0xff] %v5173_v30 }
  0x12   :  { %4470 = vmatmul.mubr.msk.bf16.vlgmr.msra.gmra.mxu1 %vm344_vm2, %v5110_v14  ;;  %4452 = vmatmul.mubr.msk.bf16.vlgmr.msra.gmra.mxu0 %vm137_vm3, %v5144_v23  ;;  %7953 = vst [vmem:[#allocation8_spill] sm:$0xff] %v5199_v35 }
  0x13   :  { %4473 = vmatprep.mubr.msk.bf16.mxu1 %vm344_vm2, %v5112_v15  ;;  %4455 = vmatprep.mubr.msk.bf16.mxu0 %vm137_vm3, %v5149_v24 }
  0x1a   :  { %4474 = vmatmul.mubr.msk.bf16.gmra.mxu1 %vm344_vm2, %v5137_v21  ;;  %4456 = vmatmul.mubr.msk.bf16.gmra.mxu0 %vm137_vm3, %v5178_v31 }
  0x1b   :  { %4477 = vmatprep.mubr.msk.bf16.mxu1 %vm344_vm2, %v5139_v22  ;;  %4459 = vmatprep.mubr.msk.bf16.mxu0 %vm137_vm3, %v5183_v32 }
  0x22   :  { %4478 = vmatmul.mubr.msk.bf16.gmra.mxu1 %vm344_vm2, %v5171_v29  ;;  %4460 = vmatmul.mubr.msk.bf16.gmra.mxu0 %vm137_vm3, %v5204_v36 }
  0x23   :  { %4481 = vmatprep.mubr.msk.bf16.mxu1 %vm344_vm2, %v5173_v30  ;;  %4463 = vmatprep.mubr.msk.bf16.mxu0 %vm137_vm3, %v5209_v37 }
  0x2a   :  { %4482 = vmatmul.mubr.msk.bf16.gmra.mxu1 %vm344_vm2, %v5199_v35  ;;  %4464 = vmatmul.mubr.msk.bf16.gmra.mxu0 %vm137_vm3, %v5222_v38 }
  0x2b   :  { %4493 = vmatprep.mubr.msk.bf16.mxu1 %vm137_vm3, %v5117_v16  ;;  %4509 = vmatprep.mubr.msk.bf16.mxu0 %vm137_vm3, %v5183_v32 }
  0xd2   :  { %v5230_v40 = vpop.f32.mrf.mxu1  ;;  %v4453_v45 = vpop.f32.mrf.mxu0 }
  0xd3   :  { %v261_v47 = vadd.f32 1.0, %v4453_v45 }
  0xd4   :  { %v5232_v41 = vpop.f32.mrf.mxu1  ;;  %v196_v48 = vpop.f32.mrf.mxu0 }
  0xd5   :  { %v277_v50 = vmax.f32 %v261_v47, 1.0  ;;  %v259_v51 = vadd.f32 1.0, %v196_v48 }
  0xd6   :  { %v5234_v42 = vpop.f32.mrf.mxu1  ;;  %v4454_v53 = vpop.f32.mrf.mxu0 }
  0xd7   :  { %4855 = vrcp.f32 %v277_v50  ;;  %v275_v55 = vmax.f32 %v259_v51, 1.0  ;;  %v262_v56 = vadd.f32 1.0, %v4454_v53  ;;  %v474_v2 = vpack.c.bf16 %v5234_v42, %v5230_v40 }
  0xd8   :  { %v5236_v43 = vpop.f32.mrf.mxu1  ;;  %v199_v58 = vpop.f32.mrf.mxu0 }
  0xd9   :  { %4857 = vrcp.f32 %v275_v55  ;;  %v278_v60 = vmax.f32 %v262_v56, 1.0  ;;  %v260_v61 = vadd.f32 1.0, %v199_v58  ;;  %v473_v13 = vpack.c.bf16 %v5236_v43, %v5232_v41 }
  0xda   :  { %v5238_v44 = vpop.f32.mrf.mxu1  ;;  %v4457_v62 = vpop.f32.mrf.mxu0 }
  0xdb   :  { %4859 = vrcp.f32 %v278_v60  ;;  %v276_v0 = vmax.f32 %v260_v61, 1.0  ;;  %v265_v1 = vadd.f32 1.0, %v4457_v62 }
  0xdc   :  { %v5240_v46 = vpop.f32.mrf.mxu1  ;;  %v212_v3 = vpop.f32.mrf.mxu0 }
  0xdd   :  { %4861 = vrcp.f32 %v276_v0  ;;  %v263_v6 = vadd.f32 1.0, %v212_v3  ;;  %v281_v10 = vmax.f32 %v265_v1, 1.0 }
  0xde   :  { %v5242_v49 = vpop.f32.mrf.mxu1  ;;  %v4458_v8 = vpop.f32.mrf.mxu0 }
  0xdf   :  { %v476_v52 = vpack.c.bf16 %v5242_v49, %v5238_v44  ;;  %v279_v11 = vmax.f32 %v263_v6, 1.0  ;;  %v266_v12 = vadd.f32 1.0, %v4458_v8 }
  0xe0   :  { %v5246_v54 = vpop.f32.mrf.mxu1  ;;  %v215_v17 = vpop.f32.mrf.mxu0 }
  0xe1   :  { %v475_v57 = vpack.c.bf16 %v5246_v54, %v5240_v46  ;;  %4485 = vmatprep.subr.bf16.mxu1 %v476_v52  ;;  %4863 = vrcp.f32 %v279_v11  ;;  %v264_v19 = vadd.f32 1.0, %v215_v17  ;;  %v282_v26 = vmax.f32 %v266_v12, 1.0 }
  0xe2   :  { %v5250_v59 = vpop.f32.mrf.mxu1  ;;  %4486 = vmatpush3.bf16.msra.mxu1 %v476_v52  ;;  %v4461_v20 = vpop.f32.mrf.mxu0  ;;  %4865 = vrcp.f32 %v281_v10 }
  0xe3   :  { %4487 = vmatprep.subr.bf16.mxu1 %v475_v57  ;;  %v280_v27 = vmax.f32 %v264_v19, 1.0  ;;  %v269_v28 = vadd.f32 1.0, %v4461_v20 }
  0xe4   :  { %v5252_v63 = vpop.f32.mrf.mxu1  ;;  %v4856_v33 = vpop.eup %4855 }
  0xe5   :  { %v228_v34 = vpop.f32.mrf.mxu0  ;;  %4867 = vrcp.f32 %v280_v27  ;;  %623 = vperm.xlu1 %4846, %v4856_v33   ;;  %v285_v53 = vmax.f32 %v269_v28, 1.0 }
  0xe6   :  { %v5256_v4 = vpop.f32.mrf.mxu1  ;;  %4488 = vmatpush3.bf16.msra.mxu1 %v475_v57  ;;  %v267_v47 = vadd.f32 1.0, %v228_v34  ;;  %v4858_v48 = vpop.eup %4857  ;;  %4869 = vrcp.f32 %v282_v26 }
  0xe7   :  { %4489 = vmatprep.subr.bf16.mxu1 %v474_v2  ;;  %v4462_v51 = vpop.f32.mrf.mxu0  ;;  %613 = vperm.xlu0 %4845, %v4858_v48   ;;  %v478_v6 = vpack.c.bf16 %v5256_v4, %v5250_v59 }
  0xe8   :  { %v5258_v9 = vpop.f32.mrf.mxu1  ;;  %v283_v55 = vmax.f32 %v267_v47, 1.0  ;;  %v270_v56 = vadd.f32 1.0, %v4462_v51  ;;  %v4860_v57 = vpop.eup %4859 }
  0xe9   :  { %v231_v60 = vpop.f32.mrf.mxu0  ;;  %628 = vperm.xlu1 %4846, %v4860_v57   ;;  %v477_v26 = vpack.c.bf16 %v5258_v9, %v5252_v63 }
  0xea   :  { %v5262_v18 = vpop.f32.mrf.mxu1  ;;  %4490 = vmatpush3.bf16.msra.mxu1 %v474_v2  ;;  %4871 = vrcp.f32 %v283_v55  ;;  %v268_v61 = vadd.f32 1.0, %v231_v60  ;;  %v4862_v62 = vpop.eup %4861  ;;  %v286_v1 = vmax.f32 %v270_v56, 1.0 }
  0xeb   :  { %4491 = vmatprep.subr.bf16.mxu1 %v473_v13  ;;  %v4465_v0 = vpop.f32.mrf.mxu0  ;;  %4873 = vrcp.f32 %v285_v53  ;;  %618 = vperm.xlu0 %4845, %v4862_v62  }
  0xec   :  { %v5264_v25 = vpop.f32.mrf.mxu1  ;;  %v284_v2 = vmax.f32 %v268_v61, 1.0  ;;  %v273_v3 = vadd.f32 1.0, %v4465_v0 }
  0xed   :  { %v244_v8 = vpop.f32.mrf.mxu0 }
  0xee   :  { %v5266_v45 = vpop.f32.mrf.mxu1  ;;  %4492 = vmatpush3.bf16.msra.mxu1 %v473_v13  ;;  %4875 = vrcp.f32 %v284_v2  ;;  %v271_v10 = vadd.f32 1.0, %v244_v8  ;;  %v4864_v11 = vpop.eup %4863  ;;  %v289_v13 = vmax.f32 %v273_v3, 1.0 }
  0xef   :  { %v480_v50 = vpack.c.bf16 %v5266_v45, %v5262_v18  ;;  %v4466_v12 = vpop.f32.mrf.mxu0  ;;  %4877 = vrcp.f32 %v286_v1  ;;  %633 = vperm.xlu0 %4845, %v4864_v11   ;;  %v4866_v20 = vpop.eup %4865 }
  0xf0   :  { %v5270_v52 = vpop.f32.mrf.mxu1  ;;  %v287_v17 = vmax.f32 %v271_v10, 1.0  ;;  %v274_v19 = vadd.f32 1.0, %v4466_v12 }
  0xf1   :  { %v479_v58 = vpack.c.bf16 %v5270_v52, %v5264_v25  ;;  %4494 = vmatmul.mubr.msk.bf16.vlgmr.msra.gmra.mxu1 %vm137_vm3, %v5144_v23  ;;  %4501 = vmatprep.subr.bf16.mxu0 %v480_v50  ;;  %v247_v27 = vpop.f32.mrf.mxu0 }
  0xf2   :  { %4502 = vmatpush3.bf16.msra.mxu0 %v480_v50  ;;  %4497 = vmatprep.mubr.msk.bf16.mxu1 %vm137_vm3, %v5149_v24  ;;  %4879 = vrcp.f32 %v287_v17  ;;  %v272_v28 = vadd.f32 1.0, %v247_v27  ;;  %v4868_v33 = vpop.eup %4867  ;;  %v290_v34 = vmax.f32 %v274_v19, 1.0  ;;  %v5314_v17 = vld [vmem:[%s7847_s3] ss:$0 sm:$0xff] }
  0xf3   :  { %4503 = vmatprep.subr.bf16.mxu0 %v479_v58  ;;  %4881 = vrcp.f32 %v289_v13  ;;  %643 = vperm.xlu0 %4845, %v4866_v20   ;;  %v4870_v48 = vpop.eup %4869 }
  0xf4   :  { %v288_v47 = vmax.f32 %v272_v28, 1.0  ;;  %638 = vperm.xlu1 %4846, %v4868_v33  }
  0xf6   :  { %4504 = vmatpush3.bf16.msra.mxu0 %v479_v58  ;;  %4883 = vrcp.f32 %v288_v47 }
  0xf7   :  { %4505 = vmatprep.subr.bf16.mxu0 %v478_v6  ;;  %v4872_v50 = vpop.eup %4871  ;;  %4885 = vrcp.f32 %v290_v34 }
  0xf8   :  { %648 = vperm.xlu1 %4846, %v4870_v48   ;;  %653 = vperm.xlu0 %4845, %v4872_v50   ;;  %v4874_v51 = vpop.eup %4873 }
  0xf9   :  { %4498 = vmatmul.mubr.msk.bf16.gmra.mxu1 %vm137_vm3, %v5178_v31 }
  0xfa   :  { %4506 = vmatpush3.bf16.msra.mxu0 %v478_v6  ;;  %4525 = vmatprep.mubr.msk.bf16.mxu1 %vm137_vm3, %v5117_v16 }
  0xfb   :  { %4507 = vmatprep.subr.bf16.mxu0 %v477_v26  ;;  %v4876_v53 = vpop.eup %4875 }
  0xfc   :  { %663 = vperm.xlu0 %4845, %v4874_v51   ;;  %658 = vperm.xlu1 %4846, %v4876_v53   ;;  %v4878_v55 = vpop.eup %4877 }
  0xfe   :  { %4508 = vmatpush3.bf16.msra.mxu0 %v477_v26 }
  0xff   :  { %v4880_v56 = vpop.eup %4879 }
 0x100   :  { %668 = vperm.xlu1 %4846, %v4878_v55   ;;  %673 = vperm.xlu0 %4845, %v4880_v56   ;;  %v4882_v57 = vpop.eup %4881 }
 0x101   :  { %4510 = vmatmul.mubr.msk.bf16.vlgmr.msra.gmra.mxu0 %vm137_vm3, %v5204_v36 }
 0x102   :  { %4513 = vmatprep.mubr.msk.bf16.mxu0 %vm137_vm3, %v5209_v37 }
 0x103   :  { %v4884_v58 = vpop.eup %4883 }
 0x104   :  { %683 = vperm.xlu0 %4845, %v4882_v57   ;;  %678 = vperm.xlu1 %4846, %v4884_v58   ;;  %v4886_v60 = vpop.eup %4885 }
 0x108   :  { %688 = vperm.xlu1 %4846, %v4886_v60  }
 0x109   :  { %4514 = vmatmul.mubr.msk.bf16.gmra.mxu0 %vm137_vm3, %v5222_v38 }
 0x10a   :  { %4541 = vmatprep.mubr.msk.bf16.mxu0 %vm137_vm3, %v5183_v32 }
 0x160   :  { %v5296_v62 = vpop.permute.xlu1 %623 }
 0x161   :  { %7955 = vst [vmem:[#allocation10_spill] sm:$0xff] %v5296_v62 }
 0x162   :  { %v5294_v61 = vpop.permute.xlu0 %613 }
 0x163   :  { %7954 = vst [vmem:[#allocation9_spill] sm:$0xff] %v5294_v61 }
 0x164   :  { %v5300_v1 = vpop.permute.xlu1 %628 }
 0x166   :  { %v5298_v0 = vpop.permute.xlu0 %618 }
 0x167   :  { %7956 = vst [vmem:[#allocation11_spill] sm:$0xff] %v5298_v0 }
 0x16a   :  { %v5302_v2 = vpop.permute.xlu0 %633 }
 0x16e   :  { %v5308_v11 = vpop.permute.xlu0 %643 }
 0x16f   :  { %v5304_v6 = vpop.permute.xlu1 %638 }
 0x173   :  { %v5318_v27 = vpop.permute.xlu1 %648  ;;  %v5329_v48 = vpop.permute.xlu0 %653 }
 0x177   :  { %v5341_v58 = vpop.permute.xlu1 %658 }
 0x178   :  { %7957 = vst [vmem:[#allocation12_spill] sm:$0xff] %v5341_v58 }
 0x1b1   :  { %v4495_v3 = vpop.f32.mrf.mxu1 }
 0x1b2   :  { %v524_v32 = vadd.f32 %v4495_v3, %v5230_v40 }
 0x1b3   :  { %v515_v8 = vpop.f32.mrf.mxu1 }
 0x1b4   :  { %v516_v10 = vadd.f32 %v515_v8, %v5232_v41  ;;  %v693_v12 = vmul.f32 %v5296_v62, %v524_v32 }
 0x1b5   :  { %v4496_v13 = vpop.f32.mrf.mxu1 }
 0x1b6   :  { %v691_v19 = vmul.f32 %v5294_v61, %v516_v10  ;;  %v527_v20 = vadd.f32 %v4496_v13, %v5234_v42  ;;  %v5326_v33 = vadd.f32 %v5314_v17, %v693_v12 }
 0x1b7   :  { %v518_v26 = vpop.f32.mrf.mxu1 }
 0x1b8   :  { %v5321_v40 = vadd.f32 %v5314_v17, %v691_v19  ;;  %v694_v41 = vmul.f32 %v5300_v1, %v527_v20  ;;  %v519_v28 = vadd.f32 %v518_v26, %v5236_v43  ;;  %v7870_v56 = vmax.f32 %v5326_v33, 0.0  ;;  %v5359_v26 = vpop.permute.xlu0 %663 }
 0x1b9   :  { %v4499_v34 = vpop.f32.mrf.mxu1 }
 0x1ba   :  { %v692_v47 = vmul.f32 %v5298_v0, %v519_v28  ;;  %v7876_v42 = vmax.f32 %v5321_v40, 0.0  ;;  %v5333_v50 = vadd.f32 %v5314_v17, %v694_v41  ;;  %v540_v51 = vadd.f32 %v4499_v34, %v5238_v44 }
 0x1bb   :  { %v531_v53 = vpop.f32.mrf.mxu1  ;;  %v7962_v35 = vmax.f32 %v5321_v40, 0.0 }
 0x1bc   :  { %v5337_v55 = vadd.f32 %v5314_v17, %v692_v47  ;;  %v532_v43 = vadd.f32 %v531_v53, %v5240_v46  ;;  %v697_v3 = vmul.f32 %v5308_v11, %v540_v51  ;;  %v745_v44 = vsel %vm137_vm3, %v7876_v42, 0.0 }
 0x1bd   :  { %v4500_v57 = vpop.f32.mrf.mxu1  ;;  %v7866_v10 = vmax.f32 %v5333_v50, 0.0 }
 0x1be   :  { %v7871_v60 = vmax.f32 %v5337_v55, 0.0  ;;  %v695_v32 = vmul.f32 %v5302_v2, %v532_v43  ;;  %v543_v8 = vadd.f32 %v4500_v57, %v5242_v49  ;;  %v748_v49 = vsel %vm137_vm3, %v7870_v56, 0.0 }
 0x1bf   :  { %v534_v46 = vpop.f32.mrf.mxu1  ;;  %v5365_v34 = vadd.f32 %v5314_v17, %v697_v3 }
 0x1c0   :  { %v746_v12 = vsel %vm137_vm3, %v7871_v60, 0.0  ;;  %v5355_v13 = vadd.f32 %v5314_v17, %v695_v32  ;;  %v698_v19 = vmul.f32 %v5318_v27, %v543_v8  ;;  %v535_v20 = vadd.f32 %v534_v46, %v5246_v54  ;;  %v5370_v54 = vpop.permute.xlu1 %668 }
 0x1c1   :  { %v747_v41 = vadd.f32 %v746_v12, %v745_v44  ;;  %v4511_v28 = vpop.f32.mrf.mxu0  ;;  %v750_v32 = vsel %vm137_vm3, %v7866_v10, 0.0 }
 0x1c2   :  { %v7865_v47 = vmax.f32 %v5355_v13, 0.0  ;;  %v696_v51 = vmul.f32 %v5304_v6, %v535_v20  ;;  %v589_v53 = vadd.f32 %v4511_v28, %v5250_v59  ;;  %v5376_v8 = vadd.f32 %v5314_v17, %v698_v19  ;;  %v5389_v28 = vpop.permute.xlu0 %673 }
 0x1c3   :  { %v749_v43 = vadd.f32 %v748_v49, %v747_v41  ;;  %v580_v57 = vpop.f32.mrf.mxu0  ;;  %v7868_v20 = vmax.f32 %v5365_v34, 0.0  ;;  %7958 = vst [vmem:[#allocation13_spill] sm:$0xff] %v5389_v28 }
 0x1c4   :  { %v5379_v3 = vadd.f32 %v5314_v17, %v696_v51  ;;  %v701_v46 = vmul.f32 %v5359_v26, %v589_v53  ;;  %v581_v12 = vadd.f32 %v580_v57, %v5252_v63  ;;  %v752_v49 = vsel %vm137_vm3, %v7865_v47, 0.0 }
 0x1c5   :  { %v751_v44 = vadd.f32 %v750_v32, %v749_v43  ;;  %v4512_v59 = vpop.f32.mrf.mxu0  ;;  %v7869_v53 = vmax.f32 %v5376_v8, 0.0 }
 0x1c6   :  { %v7867_v41 = vmax.f32 %v5379_v3, 0.0  ;;  %v592_v19 = vadd.f32 %v4512_v59, %v5256_v4  ;;  %v699_v43 = vmul.f32 %v5329_v48, %v581_v12  ;;  %v5399_v10 = vadd.f32 %v5314_v17, %v701_v46  ;;  %v5404_v12 = vpop.permute.xlu1 %678 }
 0x1c7   :  { %v753_v51 = vadd.f32 %v752_v49, %v751_v44  ;;  %v583_v32 = vpop.f32.mrf.mxu0  ;;  %7959 = vst [vmem:[#allocation14_spill] sm:$0xff] %v5404_v12  ;;  %v756_v59 = vsel %vm137_vm3, %v7868_v20, 0.0  ;;  %v758_v46 = vsel %vm137_vm3, %v7869_v53, 0.0  ;;  %v5422_v20 = vpop.permute.xlu0 %683 }
 0x1c8   :  { %v754_v63 = vsel %vm137_vm3, %v7867_v41, 0.0  ;;  %v702_v57 = vmul.f32 %v5370_v54, %v592_v19  ;;  %v584_v39 = vadd.f32 %v583_v32, %v5258_v9  ;;  %v5402_v4 = vadd.f32 %v5314_v17, %v699_v43  ;;  %7960 = vst [vmem:[#allocation15_spill] sm:$0xff] %v5422_v20 }
 0x1c9   :  { %v755_v47 = vadd.f32 %v754_v63, %v753_v51  ;;  %v4515_v44 = vpop.f32.mrf.mxu0  ;;  %v7972_v30 = vmax.f32 %v5399_v10, 0.0 }
 0x1ca   :  { %v700_v49 = vmul.f32 %v5341_v58, %v584_v39  ;;  %v605_v19 = vadd.f32 %v4515_v44, %v5262_v18  ;;  %v7872_v9 = vmax.f32 %v5402_v4, 0.0  ;;  %v5416_v43 = vadd.f32 %v5314_v17, %v702_v57 }
 0x1cb   :  { %v757_v41 = vadd.f32 %v756_v59, %v755_v47  ;;  %v596_v51 = vpop.f32.mrf.mxu0  ;;  %v7874_v39 = vmax.f32 %v5399_v10, 0.0 }
 0x1cc   :  { %v5419_v32 = vadd.f32 %v5314_v17, %v700_v49  ;;  %v597_v63 = vadd.f32 %v596_v51, %v5264_v25  ;;  %v760_v44 = vsel %vm137_vm3, %v7872_v9, 0.0  ;;  %v705_v57 = vmul.f32 %v5422_v20, %v605_v19  ;;  %v5432_v51 = vpop.permute.xlu1 %688 }
 0x1cd   :  { %v759_v18 = vadd.f32 %v758_v46, %v757_v41  ;;  %v4516_v47 = vpop.f32.mrf.mxu0  ;;  %7961 = vst [vmem:[#allocation16_spill] sm:$0xff] %v5432_v51  ;;  %v7875_v60 = vmax.f32 %v5416_v43, 0.0 }
 0x1ce   :  { %v7873_v59 = vmax.f32 %v5419_v32, 0.0  ;;  %v703_v53 = vmul.f32 %v5389_v28, %v597_v63  ;;  %v608_v56 = vadd.f32 %v4516_v47, %v5266_v45  ;;  %v764_v45 = vsel %vm137_vm3, %v7874_v39, 0.0 }
 0x1cf   :  { %v761_v49 = vadd.f32 %v760_v44, %v759_v18  ;;  %v599_v25 = vpop.f32.mrf.mxu0  ;;  %v5447_v18 = vadd.f32 %v5314_v17, %v705_v57 }
 0x1d0   :  { %v762_v41 = vsel %vm137_vm3, %v7873_v59, 0.0  ;;  %v5439_v46 = vadd.f32 %v5314_v17, %v703_v53  ;;  %v600_v9 = vadd.f32 %v599_v25, %v5270_v52  ;;  %v706_v63 = vmul.f32 %v5432_v51, %v608_v56 }
 0x1d1   :  { %v763_v19 = vadd.f32 %v762_v41, %v761_v49  ;;  %v766_v53 = vsel %vm137_vm3, %v7875_v60, 0.0  ;;  %v7878_v25 = vmax.f32 %v5447_v18, 0.0 }
 0x1d2   :  { %v741_v47 = vmax.f32 %v5439_v46, 0.0  ;;  %v704_v44 = vmul.f32 %v5404_v12, %v600_v9  ;;  %v5455_v52 = vadd.f32 %v5314_v17, %v706_v63 }
 0x1d3   :  { %v765_v59 = vadd.f32 %v764_v45, %v763_v19  ;;  %v772_v45 = vsel %vm137_vm3, %v7878_v25, 0.0 }
 0x1d4   :  { %v726_v56 = vadd.f32 %v5314_v17, %v704_v44  ;;  %v768_v57 = vsel %vm137_vm3, %v741_v47, 0.0  ;;  %v7879_v46 = vmax.f32 %v5455_v52, 0.0 }
 0x1d5   :  { %v767_v49 = vadd.f32 %v766_v53, %v765_v59 }
 0x1d6   :  { %v742_v41 = vmax.f32 %v726_v56, 0.0  ;;  %v774_v17 = vsel %vm137_vm3, %v7879_v46, 0.0 }
 0x1d7   :  { %v769_v39 = vadd.f32 %v768_v57, %v767_v49 }
 0x1d8   :  { %v770_v9 = vsel %vm137_vm3, %v742_v41, 0.0 }
 0x1d9   :  { %v771_v19 = vadd.f32 %v770_v9, %v769_v39  ;;  %v7963_v9 = vmax.f32 %v5337_v55, 0.0 }
 0x1db   :  { %v773_v63 = vadd.f32 %v772_v45, %v771_v19  ;;  %v7964_v19 = vmax.f32 %v5326_v33, 0.0  ;;  %v7967_v33 = vmax.f32 %v5379_v3, 0.0  ;;  %v7969_v3 = vmax.f32 %v5376_v8, 0.0 }
 0x1dd   :  { %v775_v59 = vadd.f32 %v774_v17, %v773_v63  ;;  %v7965_v63 = vmax.f32 %v5333_v50, 0.0 }
 0x1df   :  { %v776_v44 = vrot.slane %v775_v59, 4 }
 0x1e1   :  { %v777_v53 = vadd.f32 %v776_v44, %v775_v59 }
 0x1e3   :  { %v778_v60 = vrot.slane %v777_v53, 2 }
 0x1e5   :  { %v779_v56 = vadd.f32 %v778_v60, %v777_v53 }
 0x1e7   :  { %v780_v49 = vrot.slane %v779_v56, 1 }
 0x1e9   :  { %v781_v57 = vadd.f32 %v780_v49, %v779_v56 }
 0x1eb   :  { %v783_v42 = vmul.f32 0.0078125, %v781_v57  ;;  %v7968_v57 = vmax.f32 %v5365_v34, 0.0 }
 0x1ed   :  { %v5470_v39 = vsub.f32 %v7962_v35, %v783_v42  ;;  %v5474_v25 = vsub.f32 %v7963_v9, %v783_v42  ;;  %v5478_v45 = vsub.f32 %v7964_v19, %v783_v42  ;;  %v5482_v17 = vsub.f32 %v7965_v63, %v783_v42 }
 0x1ee   :  { %v7966_v35 = vmax.f32 %v5355_v13, 0.0  ;;  %v5496_v44 = vsub.f32 %v7967_v33, %v783_v42  ;;  %v790_v13 = vsub.f32 %v7968_v57, %v783_v42 }
 0x1ef   :  { %v800_v60 = vmul.f32 %v5470_v39, %v5470_v39  ;;  %v801_v40 = vmul.f32 %v5474_v25, %v5474_v25  ;;  %v802_v55 = vmul.f32 %v5478_v45, %v5478_v45  ;;  %v803_v50 = vmul.f32 %v5482_v17, %v5482_v17 }
 0x1f0   :  { %v5490_v59 = vsub.f32 %v7966_v35, %v783_v42  ;;  %v791_v35 = vsub.f32 %v7969_v3, %v783_v42  ;;  %v805_v33 = vmul.f32 %v5496_v44, %v5496_v44  ;;  %v806_v34 = vmul.f32 %v790_v13, %v790_v13 }
 0x1f1   :  { %v816_v53 = vsel %vm137_vm3, %v800_v60, 0.0  ;;  %v817_v56 = vsel %vm137_vm3, %v801_v40, 0.0  ;;  %v819_v19 = vsel %vm137_vm3, %v802_v55, 0.0  ;;  %v821_v60 = vsel %vm137_vm3, %v803_v50, 0.0 }
 0x1f2   :  { %v818_v49 = vadd.f32 %v817_v56, %v816_v53  ;;  %v804_v9 = vmul.f32 %v5490_v59, %v5490_v59  ;;  %v7970_v40 = vmax.f32 %v5402_v4, 0.0  ;;  %v7971_v55 = vmax.f32 %v5419_v32, 0.0 }
 0x1f3   :  { %v807_v8 = vmul.f32 %v791_v35, %v791_v35  ;;  %v794_v50 = vsub.f32 %v7972_v30, %v783_v42 }
 0x1f4   :  { %v820_v63 = vadd.f32 %v819_v19, %v818_v49  ;;  %v5514_v53 = vsub.f32 %v7970_v40, %v783_v42  ;;  %v823_v56 = vsel %vm137_vm3, %v804_v9, 0.0  ;;  %v5519_v49 = vsub.f32 %v7971_v55, %v783_v42 }
 0x1f5   :  { %v825_v19 = vsel %vm137_vm3, %v805_v33, 0.0  ;;  %v7973_v9 = vmax.f32 %v5416_v43, 0.0  ;;  %v829_v40 = vsel %vm137_vm3, %v807_v8, 0.0  ;;  %v796_v33 = vsub.f32 %v741_v47, %v783_v42 }
 0x1f6   :  { %v822_v46 = vadd.f32 %v821_v60, %v820_v63  ;;  %v808_v4 = vmul.f32 %v5514_v53, %v5514_v53  ;;  %v827_v63 = vsel %vm137_vm3, %v806_v34, 0.0  ;;  %v809_v32 = vmul.f32 %v5519_v49, %v5519_v49 }
 0x1f7   :  { %v797_v55 = vsub.f32 %v742_v41, %v783_v42  ;;  %v7975_v8 = vmax.f32 %v5455_v52, 0.0 }
 0x1f8   :  { %v824_v57 = vadd.f32 %v823_v56, %v822_v46  ;;  %v795_v46 = vsub.f32 %v7973_v9, %v783_v42  ;;  %v831_v10 = vsel %vm137_vm3, %v808_v4, 0.0  ;;  %v833_v29 = vsel %vm137_vm3, %v809_v32, 0.0 }
 0x1f9   :  { %v813_v47 = vmul.f32 %v797_v55, %v797_v55 }
 0x1fa   :  { %v826_v3 = vadd.f32 %v825_v19, %v824_v57  ;;  %v810_v57 = vmul.f32 %v794_v50, %v794_v50  ;;  %v811_v19 = vmul.f32 %v795_v46, %v795_v46 }
 0x1fc   :  { %v828_v60 = vadd.f32 %v827_v63, %v826_v3  ;;  %v7974_v3 = vmax.f32 %v5447_v18, 0.0  ;;  %v812_v63 = vmul.f32 %v796_v33, %v796_v33  ;;  %v835_v9 = vsel %vm137_vm3, %v810_v57, 0.0 }
 0x1fe   :  { %v830_v56 = vadd.f32 %v829_v40, %v828_v60  ;;  %v798_v43 = vsub.f32 %v7974_v3, %v783_v42  ;;  %v799_v60 = vsub.f32 %v7975_v8, %v783_v42  ;;  %v837_v40 = vsel %vm137_vm3, %v811_v19, 0.0 }
 0x1ff   :  { %v839_v41 = vsel %vm137_vm3, %v812_v63, 0.0 }
 0x200   :  { %v832_v30 = vadd.f32 %v831_v10, %v830_v56  ;;  %v814_v56 = vmul.f32 %v798_v43, %v798_v43  ;;  %v815_v32 = vmul.f32 %v799_v60, %v799_v60 }
 0x202   :  { %v834_v34 = vadd.f32 %v833_v29, %v832_v30  ;;  %v841_v29 = vsel %vm137_vm3, %v813_v47, 0.0  ;;  %v843_v30 = vsel %vm137_vm3, %v814_v56, 0.0  ;;  %v845_v57 = vsel %vm137_vm3, %v815_v32, 0.0 }
 0x204   :  { %v836_v22 = vadd.f32 %v835_v9, %v834_v34 }
 0x206   :  { %v838_v4 = vadd.f32 %v837_v40, %v836_v22 }
 0x208   :  { %v840_v10 = vadd.f32 %v839_v41, %v838_v4 }
 0x20a   :  { %v842_v18 = vadd.f32 %v841_v29, %v840_v10 }
 0x20c   :  { %v844_v3 = vadd.f32 %v843_v30, %v842_v18 }
 0x20e   :  { %v846_v34 = vadd.f32 %v845_v57, %v844_v3  ;;  %v326_v57 = vld [vmem:[%s7848_s4 + $0x8] sm:$0xff] }
 0x210   :  { %v847_v52 = vrot.slane %v846_v34, 4 }
 0x212   :  { %v848_v42 = vadd.f32 %v847_v52, %v846_v34 }
 0x214   :  { %v849_v9 = vrot.slane %v848_v42, 2 }
 0x216   :  { %v850_v8 = vadd.f32 %v849_v9, %v848_v42 }
 0x218   :  { %v851_v19 = vrot.slane %v850_v8, 1 }
 0x21a   :  { %v852_v22 = vadd.f32 %v851_v19, %v850_v8 }
 0x21c   :  { %v853_v40 = vmul.f32 0.0078125, %v852_v22 }
 0x21e   :  { %v854_v21 = vadd.f32 1e-05, %v853_v40 }
 0x220   :  { %4887 = vrsqrt.f32 %v854_v21 }
 0x22d   :  { %v4888_v63 = vpop.eup %4887 }
 0x22e   :  { %v869_v4 = vmul.f32 %v4888_v63, %v797_v55  ;;  %v862_v41 = vmul.f32 %v4888_v63, %v790_v13  ;;  %v863_v47 = vmul.f32 %v4888_v63, %v791_v35  ;;  %v870_v10 = vmul.f32 %v4888_v63, %v798_v43 }
 0x22f   :  { %v871_v29 = vmul.f32 %v4888_v63, %v799_v60  ;;  %v860_v56 = vmul.f32 %v4888_v63, %v5490_v59  ;;  %v861_v32 = vmul.f32 %v4888_v63, %v5496_v44  ;;  %v868_v18 = vmul.f32 %v4888_v63, %v796_v33 }
 0x230   :  { %893 = vst.msk [vmem:[#allocation2 + $0xd0] sm:$0xff] %vm137_vm3, %v869_v4  ;;  %v5547_v30 = vpack.c.bf16 %v863_v47, %v862_v41  ;;  %886 = vst.msk [vmem:[#allocation2 + $0x60] sm:$0xff] %vm137_vm3, %v862_v41  ;;  %v858_v21 = vmul.f32 %v4888_v63, %v5478_v45  ;;  %v859_v13 = vmul.f32 %v4888_v63, %v5482_v17 }
 0x231   :  { %887 = vst.msk [vmem:[#allocation2 + $0x70] sm:$0xff] %vm137_vm3, %v863_v47  ;;  %894 = vst.msk [vmem:[#allocation2 + $0xe0] sm:$0xff] %vm137_vm3, %v870_v10  ;;  %v866_v35 = vmul.f32 %v4888_v63, %v794_v50  ;;  %v5554_v55 = vpack.c.bf16 %v871_v29, %v870_v10  ;;  %v867_v59 = vmul.f32 %v4888_v63, %v795_v46 }
 0x232   :  { %895 = vst.msk [vmem:[#allocation2 + $0xf0] sm:$0xff] %vm137_vm3, %v871_v29  ;;  %884 = vst.msk [vmem:[#allocation2 + $0x40] sm:$0xff] %vm137_vm3, %v860_v56  ;;  %4517 = vmatprep.subr.bf16.mxu1 %v5547_v30  ;;  %v5561_v44 = vpack.c.bf16 %v861_v32, %v860_v56  ;;  %v856_v45 = vmul.f32 %v4888_v63, %v5470_v39  ;;  %v857_v17 = vmul.f32 %v4888_v63, %v5474_v25 }
 0x233   :  { %885 = vst.msk [vmem:[#allocation2 + $0x50] sm:$0xff] %vm137_vm3, %v861_v32  ;;  %892 = vst.msk [vmem:[#allocation2 + $0xc0] sm:$0xff] %vm137_vm3, %v868_v18  ;;  %v864_v50 = vmul.f32 %v4888_v63, %v5514_v53  ;;  %4533 = vmatprep.subr.bf16.mxu0 %v5554_v55  ;;  %4518 = vmatpush3.bf16.msra.mxu1 %v5547_v30  ;;  %v5571_v46 = vpack.c.bf16 %v869_v4, %v868_v18  ;;  %v331_v53 = vld [vmem:[%s7848_s4 + $0x30] sm:$0xff] }
 0x234   :  { %882 = vst.msk [vmem:[#allocation2 + $0x20] sm:$0xff] %vm137_vm3, %v858_v21  ;;  %883 = vst.msk [vmem:[#allocation2 + $0x30] sm:$0xff] %vm137_vm3, %v859_v13  ;;  %v865_v33 = vmul.f32 %v4888_v63, %v5519_v49  ;;  %4534 = vmatpush3.bf16.msra.mxu0 %v5554_v55  ;;  %4519 = vmatprep.subr.bf16.mxu1 %v5561_v44  ;;  %v873_v25 = vpack.c.bf16 %v859_v13, %v858_v21  ;;  %v332_v49 = vld [vmem:[%s7848_s4 + $0x38] sm:$0xff] }
 0x235   :  { %890 = vst.msk [vmem:[#allocation2 + $0xa0] sm:$0xff] %vm137_vm3, %v866_v35  ;;  %891 = vst.msk [vmem:[#allocation2 + $0xb0] sm:$0xff] %vm137_vm3, %v867_v59  ;;  %4535 = vmatprep.subr.bf16.mxu0 %v5571_v46  ;;  %v5583_v39 = vpack.c.bf16 %v867_v59, %v866_v35  ;;  %v872_v43 = vpack.c.bf16 %v857_v17, %v856_v45  ;;  %v899_v3 = vpack.c.bf16 %v332_v49, %v331_v53 }
 0x236   :  { %880 = vst.msk [vmem:[#allocation2] sm:$0xff] %vm137_vm3, %v856_v45  ;;  %881 = vst.msk [vmem:[#allocation2 + $0x10] sm:$0xff] %vm137_vm3, %v857_v17  ;;  %v5593_v60 = vpack.c.bf16 %v865_v33, %v864_v50  ;;  %v903_v22 = vunpack.c.h.bf16 %v873_v25  ;;  %v902_v40 = vunpack.c.l.bf16 %v873_v25  ;;  %v904_v53 = vunpack.c.l.bf16 %v5561_v44 }
 0x237   :  { %888 = vst.msk [vmem:[#allocation2 + $0x80] sm:$0xff] %vm137_vm3, %v864_v50  ;;  %889 = vst.msk [vmem:[#allocation2 + $0x90] sm:$0xff] %vm137_vm3, %v865_v33  ;;  %4520 = vmatpush3.bf16.msra.mxu1 %v5561_v44  ;;  %v900_v8 = vunpack.c.l.bf16 %v872_v43  ;;  %v901_v10 = vunpack.c.h.bf16 %v872_v43 }
 0x238   :  { %4536 = vmatpush3.bf16.msra.mxu0 %v5571_v46  ;;  %4521 = vmatprep.subr.bf16.mxu1 %v873_v25 }
 0x239   :  { %4537 = vmatprep.subr.bf16.mxu0 %v5583_v39 }
 0x23b   :  { %4522 = vmatpush3.bf16.msra.mxu1 %v873_v25  ;;  %v909_v25 = vunpack.c.h.bf16 %v5593_v60 }
 0x23c   :  { %4538 = vmatpush3.bf16.msra.mxu0 %v5583_v39  ;;  %4523 = vmatprep.subr.bf16.mxu1 %v872_v43 }
 0x23d   :  { %4539 = vmatprep.subr.bf16.mxu0 %v5593_v60 }
 0x23f   :  { %4524 = vmatpush3.bf16.msra.mxu1 %v872_v43  ;;  %v907_v43 = vunpack.c.h.bf16 %v5547_v30 }
 0x240   :  { %4540 = vmatpush3.bf16.msra.mxu0 %v5593_v60  ;;  %4549 = vmatprep.subr.bf16.mxu1 %v899_v3 }
 0x242   :  { %4526 = vmatmul.mubr.msk.bf16.vlgmr.msra.gmra.mxu1 %vm137_vm3, %v5144_v23  ;;  %v329_v23 = vld [vmem:[%s7848_s4 + $0x20] sm:$0xff] }
 0x243   :  { %4542 = vmatmul.mubr.msk.bf16.vlgmr.msra.gmra.mxu0 %vm137_vm3, %v5204_v36  ;;  %4529 = vmatprep.mubr.msk.bf16.mxu1 %vm137_vm3, %v5149_v24  ;;  %v330_v24 = vld [vmem:[%s7848_s4 + $0x28] sm:$0xff] }
 0x244   :  { %4545 = vmatprep.mubr.msk.bf16.mxu0 %vm137_vm3, %v5209_v37  ;;  %4550 = vmatpush3.bf16.msra.mxu1 %v899_v3  ;;  %v898_v36 = vpack.c.bf16 %v330_v24, %v329_v23  ;;  %v328_v37 = vld [vmem:[%s7848_s4 + $0x18] sm:$0xff]  ;;  %v908_v3 = vunpack.c.l.bf16 %v5593_v60  ;;  %v906_v24 = vunpack.c.l.bf16 %v5547_v30 }
 0x246   :  { %4551 = vmatprep.subr.bf16.mxu1 %v898_v36 }
 0x248   :  { %4552 = vmatpush3.bf16.msra.mxu1 %v898_v36 }
 0x24a   :  { %4530 = vmatmul.mubr.msk.bf16.gmra.mxu1 %vm137_vm3, %v5178_v31  ;;  %v327_v31 = vld [vmem:[%s7848_s4 + $0x10] sm:$0xff] }
 0x24b   :  { %4546 = vmatmul.mubr.msk.bf16.gmra.mxu0 %vm137_vm3, %v5222_v38  ;;  %v325_v38 = vld [vmem:[%s7848_s4] sm:$0xff] }
 0x24c   :  { %4581 = vmatprep.mubr.msk.bf16.mxu0 %vm137_vm3, %v5117_v16  ;;  %v897_v16 = vpack.c.bf16 %v328_v37, %v327_v31  ;;  %v896_v34 = vpack.c.bf16 %v326_v57, %v325_v38  ;;  %v905_v38 = vunpack.c.h.bf16 %v5561_v44 }
 0x24e   :  { %4553 = vmatprep.subr.bf16.mxu1 %v897_v16 }
 0x24f   :  { %4554 = vmatpush3.bf16.msra.mxu1 %v897_v16 }
 0x250   :  { %4555 = vmatprep.subr.bf16.mxu1 %v896_v34 }
 0x253   :  { %4556 = vmatpush3.bf16.msra.mxu1 %v896_v34 }
 0x302   :  { %v4527_v52 = vpop.f32.mrf.mxu1 }
 0x303   :  { %v4543_v42 = vpop.f32.mrf.mxu0  ;;  %v959_v29 = vadd.f32 %v4527_v52, %v902_v40 }
 0x304   :  { %v950_v9 = vpop.f32.mrf.mxu1 }
 0x305   :  { %v1015_v19 = vpop.f32.mrf.mxu0  ;;  %v951_v4 = vadd.f32 %v950_v9, %v900_v8  ;;  %v1048_v17 = vmul.f32 %v959_v29, %v5296_v62  ;;  %v913_v29 = vunpack.c.h.bf16 %v5571_v46 }
 0x306   :  { %v4528_v63 = vpop.f32.mrf.mxu1  ;;  %v1016_v9 = vadd.f32 %v1015_v19, %v908_v3  ;;  %v910_v19 = vunpack.c.l.bf16 %v5583_v39 }
 0x307   :  { %v962_v41 = vadd.f32 %v4528_v63, %v903_v22  ;;  %v4544_v47 = vpop.f32.mrf.mxu0  ;;  %v1046_v35 = vmul.f32 %v951_v4, %v5294_v61  ;;  %v911_v63 = vunpack.c.h.bf16 %v5583_v39 }
 0x308   :  { %v953_v56 = vpop.f32.mrf.mxu1 }
 0x309   :  { %v954_v32 = vadd.f32 %v953_v56, %v901_v10  ;;  %v1018_v18 = vpop.f32.mrf.mxu0  ;;  %v1049_v21 = vmul.f32 %v962_v41, %v5300_v1  ;;  %v1054_v41 = vmul.f32 %v1016_v9, %v5329_v48  ;;  %v1027_v56 = vadd.f32 %v4544_v47, %v911_v63 }
 0x30a   :  { %v4531_v13 = vpop.f32.mrf.mxu1  ;;  %v1019_v31 = vadd.f32 %v1018_v18, %v909_v25  ;;  %v915_v47 = vunpack.c.h.bf16 %v5554_v55  ;;  %v914_v25 = vunpack.c.l.bf16 %v5554_v55 }
 0x30b   :  { %v1047_v59 = vmul.f32 %v954_v32, %v5298_v0  ;;  %v4547_v45 = vpop.f32.mrf.mxu0  ;;  %v1063_v23 = vpack.c.bf16 %v1049_v21, %v1048_v17  ;;  %v975_v57 = vadd.f32 %v4531_v13, %v906_v24  ;;  %v912_v21 = vunpack.c.l.bf16 %v5571_v46 }
 0x30c   :  { %v966_v50 = vpop.f32.mrf.mxu1  ;;  %v1055_v22 = vmul.f32 %v1019_v31, %v5341_v58  ;;  %v1057_v17 = vmul.f32 %v1027_v56, %v5370_v54 }
 0x30d   :  { %v1062_v33 = vpack.c.bf16 %v1047_v59, %v1046_v35  ;;  %v1031_v49 = vpop.f32.mrf.mxu0  ;;  %v967_v37 = vadd.f32 %v966_v50, %v904_v53  ;;  %v1052_v4 = vmul.f32 %v975_v57, %v5308_v11  ;;  %v1024_v35 = vadd.f32 %v4543_v42, %v910_v19 }
 0x30e   :  { %v4532_v36 = vpop.f32.mrf.mxu1  ;;  %v1066_v18 = vpack.c.bf16 %v1055_v22, %v1054_v41  ;;  %v1032_v59 = vadd.f32 %v1031_v49, %v912_v21 }
 0x30f   :  { %v978_v16 = vadd.f32 %v4532_v36, %v907_v43  ;;  %4557 = vmatprep.mubr.msk.bf16.mxu1 %vm137_vm3, %v1062_v33  ;;  %v4548_v34 = vpop.f32.mrf.mxu0  ;;  %v1050_v30 = vmul.f32 %v967_v37, %v5302_v2  ;;  %v1056_v39 = vmul.f32 %v1024_v35, %v5359_v26  ;;  %v1040_v43 = vadd.f32 %v4547_v45, %v914_v25  ;;  %v5669_v36 = vld [vmem:[%s7849_s5] ss:$0 sm:$0xff]  ;;  %s4989_s5 = smov 64  }
 0x310   :  { %v969_v52 = vpop.f32.mrf.mxu1  ;;  %4558 = vmatmul.mubr.msk.bf16.vlgmr.msra.gmra.mxu1 %vm137_vm3, %v1063_v23  ;;  %v1058_v33 = vmul.f32 %v1032_v59, %v5389_v28  ;;  %v1043_v53 = vadd.f32 %v4548_v34, %v915_v47 }
 0x311   :  { %v970_v8 = vadd.f32 %v969_v52, %v905_v38  ;;  %v1053_v60 = vmul.f32 %v978_v16, %v5318_v27  ;;  %v1034_v44 = vpop.f32.mrf.mxu0  ;;  %v1067_v46 = vpack.c.bf16 %v1057_v17, %v1056_v39  ;;  %v1060_v3 = vmul.f32 %v1040_v43, %v5422_v20 }
 0x312   :  { %v1035_v13 = vadd.f32 %v1034_v44, %v913_v29  ;;  %v1061_v49 = vmul.f32 %v1043_v53, %v5432_v51 }
 0x313   :  { %v1051_v40 = vmul.f32 %v970_v8, %v5304_v6  ;;  %v1065_v32 = vpack.c.bf16 %v1053_v60, %v1052_v4 }
 0x314   :  { %v1059_v50 = vmul.f32 %v1035_v13, %v5404_v12  ;;  %v1069_v23 = vpack.c.bf16 %v1061_v49, %v1060_v3 }
 0x315   :  { %v1064_v10 = vpack.c.bf16 %v1051_v40, %v1050_v30 }
 0x316   :  { %v1068_v42 = vpack.c.bf16 %v1059_v50, %v1058_v33 }
 0x317   :  { %4561 = vmatprep.mubr.msk.bf16.mxu1 %vm137_vm3, %v1064_v10 }
 0x318   :  { %4562 = vmatmul.mubr.msk.bf16.gmra.mxu1 %vm137_vm3, %v1065_v32 }
 0x319   :  { %4565 = vmatprep.mubr.msk.bf16.mxu1 %vm137_vm3, %v1066_v18 }
 0x320   :  { %4566 = vmatmul.mubr.msk.bf16.gmra.mxu1 %vm137_vm3, %v1067_v46 }
 0x321   :  { %4569 = vmatprep.mubr.msk.bf16.mxu1 %vm137_vm3, %v1068_v42 }
 0x328   :  { %4570 = vmatmul.mubr.msk.bf16.gmra.mxu1 %vm137_vm3, %v1069_v23 }
 0x3d0   :  { %v4559_v24 = vpop.f32.mrf.mxu1 }
 0x3d1   :  { %v5675_v37 = vadd.f32 %v4559_v24, %v5669_v36 }
 0x3d2   :  { %v1134_v55 = vpop.f32.mrf.mxu1 }
 0x3d3   :  { %v5672_v45 = vadd.f32 %v5669_v36, %v1134_v55  ;;  %v1199_v9 = vmax.f32 %v5675_v37, 0.0 }
 0x3d4   :  { %v4560_v31 = vpop.f32.mrf.mxu1 }
 0x3d5   :  { %v1197_v38 = vmax.f32 %v5672_v45, 0.0  ;;  %v5679_v57 = vadd.f32 %v4560_v31, %v5669_v36  ;;  %v1216_v41 = vsel %vm137_vm3, %v1199_v9, 0.0 }
 0x3d6   :  { %v1137_v16 = vpop.f32.mrf.mxu1 }
 0x3d7   :  { %v5682_v34 = vadd.f32 %v5669_v36, %v1137_v16  ;;  %v1213_v22 = vsel %vm137_vm3, %v1197_v38, 0.0  ;;  %v1200_v30 = vmax.f32 %v5679_v57, 0.0 }
 0x3d8   :  { %v4563_v52 = vpop.f32.mrf.mxu1 }
 0x3d9   :  { %v1198_v8 = vmax.f32 %v5682_v34, 0.0  ;;  %v5700_v10 = vadd.f32 %v4563_v52, %v5669_v36  ;;  %v1218_v32 = vsel %vm137_vm3, %v1200_v30, 0.0 }
 0x3da   :  { %v1150_v60 = vpop.f32.mrf.mxu1 }
 0x3db   :  { %v1214_v40 = vsel %vm137_vm3, %v1198_v8, 0.0  ;;  %v5694_v63 = vadd.f32 %v5669_v36, %v1150_v60  ;;  %v1203_v59 = vmax.f32 %v5700_v10, 0.0 }
 0x3dc   :  { %v1215_v4 = vadd.f32 %v1214_v40, %v1213_v22  ;;  %v4564_v44 = vpop.f32.mrf.mxu1 }
 0x3dd   :  { %v1201_v29 = vmax.f32 %v5694_v63, 0.0  ;;  %v5707_v18 = vadd.f32 %v4564_v44, %v5669_v36  ;;  %v1224_v43 = vsel %vm137_vm3, %v1203_v59, 0.0 }
 0x3de   :  { %v1217_v19 = vadd.f32 %v1216_v41, %v1215_v4  ;;  %v1153_v56 = vpop.f32.mrf.mxu1 }
 0x3df   :  { %v5710_v21 = vadd.f32 %v5669_v36, %v1153_v56  ;;  %v1220_v17 = vsel %vm137_vm3, %v1201_v29, 0.0  ;;  %v1204_v33 = vmax.f32 %v5707_v18, 0.0 }
 0x3e0   :  { %v1219_v13 = vadd.f32 %v1218_v32, %v1217_v19  ;;  %v4567_v35 = vpop.f32.mrf.mxu1 }
 0x3e1   :  { %v1202_v50 = vmax.f32 %v5710_v21, 0.0  ;;  %v5728_v49 = vadd.f32 %v4567_v35, %v5669_v36  ;;  %v1226_v55 = vsel %vm137_vm3, %v1204_v33, 0.0 }
 0x3e2   :  { %v1221_v39 = vadd.f32 %v1220_v17, %v1219_v13  ;;  %v1166_v47 = vpop.f32.mrf.mxu1 }
 0x3e3   :  { %v1222_v46 = vsel %vm137_vm3, %v1202_v50, 0.0  ;;  %v5722_v25 = vadd.f32 %v5669_v36, %v1166_v47  ;;  %v1207_v22 = vmax.f32 %v5728_v49, 0.0 }
 0x3e4   :  { %v1223_v53 = vadd.f32 %v1222_v46, %v1221_v39  ;;  %v4568_v42 = vpop.f32.mrf.mxu1 }
 0x3e5   :  { %v1205_v3 = vmax.f32 %v5722_v25, 0.0  ;;  %v5735_v31 = vadd.f32 %v4568_v42, %v5669_v36  ;;  %v1232_v17 = vsel %vm137_vm3, %v1207_v22, 0.0 }
 0x3e6   :  { %v1225_v23 = vadd.f32 %v1224_v43, %v1223_v53  ;;  %v1169_v24 = vpop.f32.mrf.mxu1 }
 0x3e7   :  { %v5738_v16 = vadd.f32 %v5669_v36, %v1169_v24  ;;  %v1228_v40 = vsel %vm137_vm3, %v1205_v3, 0.0  ;;  %v1208_v19 = vmax.f32 %v5735_v31, 0.0 }
 0x3e8   :  { %v1227_v52 = vadd.f32 %v1226_v55, %v1225_v23  ;;  %v4571_v60 = vpop.f32.mrf.mxu1 }
 0x3e9   :  { %v1206_v4 = vmax.f32 %v5738_v16, 0.0  ;;  %v5754_v39 = vadd.f32 %v4571_v60, %v5669_v36  ;;  %v1234_v42 = vsel %vm137_vm3, %v1208_v19, 0.0 }
 0x3ea   :  { %v1229_v44 = vadd.f32 %v1228_v40, %v1227_v52  ;;  %v1182_v41 = vpop.f32.mrf.mxu1 }
 0x3eb   :  { %v1230_v56 = vsel %vm137_vm3, %v1206_v4, 0.0  ;;  %v5748_v32 = vadd.f32 %v5669_v36, %v1182_v41  ;;  %v1211_v55 = vmax.f32 %v5754_v39, 0.0 }
 0x3ec   :  { %v1231_v13 = vadd.f32 %v1230_v56, %v1229_v44  ;;  %v4572_v35 = vpop.f32.mrf.mxu1 }
 0x3ed   :  { %v1209_v47 = vmax.f32 %v5748_v32, 0.0  ;;  %v5761_v43 = vadd.f32 %v4572_v35, %v5669_v36  ;;  %v1240_v56 = vsel %vm137_vm3, %v1211_v55, 0.0 }
 0x3ee   :  { %v1233_v46 = vadd.f32 %v1232_v17, %v1231_v13  ;;  %v1185_v53 = vpop.f32.mrf.mxu1 }
 0x3ef   :  { %v1186_v23 = vadd.f32 %v5669_v36, %v1185_v53  ;;  %v1236_v16 = vsel %vm137_vm3, %v1209_v47, 0.0  ;;  %v1212_v40 = vmax.f32 %v5761_v43, 0.0 }
 0x3f0   :  { %v1235_v24 = vadd.f32 %v1234_v42, %v1233_v46 }
 0x3f1   :  { %v1210_v52 = vmax.f32 %v1186_v23, 0.0  ;;  %v1242_v36 = vsel %vm137_vm3, %v1212_v40, 0.0 }
 0x3f2   :  { %v1237_v60 = vadd.f32 %v1236_v16, %v1235_v24 }
 0x3f3   :  { %v1238_v44 = vsel %vm137_vm3, %v1210_v52, 0.0 }
 0x3f4   :  { %v1239_v41 = vadd.f32 %v1238_v44, %v1237_v60 }
 0x3f6   :  { %v1241_v32 = vadd.f32 %v1240_v56, %v1239_v41 }
 0x3f8   :  { %v1243_v13 = vadd.f32 %v1242_v36, %v1241_v32 }
 0x3fa   :  { %v1244_v35 = vrot.slane %v1243_v13, 4 }
 0x3fc   :  { %v1245_v17 = vadd.f32 %v1244_v35, %v1243_v13 }
 0x3fe   :  { %v1246_v46 = vrot.slane %v1245_v17, 2 }
 0x400   :  { %v1247_v53 = vadd.f32 %v1246_v46, %v1245_v17 }
 0x402   :  { %v1248_v42 = vrot.slane %v1247_v53, 1 }
 0x404   :  { %v1249_v23 = vadd.f32 %v1248_v42, %v1247_v53 }
 0x406   :  { %v1250_v24 = vmul.f32 0.0078125, %v1249_v23 }
 0x408   :  { %v5776_v16 = vsub.f32 %v1197_v38, %v1250_v24  ;;  %v5780_v60 = vsub.f32 %v1198_v8, %v1250_v24  ;;  %v5784_v44 = vsub.f32 %v1199_v9, %v1250_v24  ;;  %v5788_v41 = vsub.f32 %v1200_v30, %v1250_v24 }
 0x409   :  { %v5796_v38 = vsub.f32 %v1201_v29, %v1250_v24  ;;  %v5802_v37 = vsub.f32 %v1202_v50, %v1250_v24  ;;  %v1257_v63 = vsub.f32 %v1203_v59, %v1250_v24  ;;  %v1258_v21 = vsub.f32 %v1204_v33, %v1250_v24 }
 0x40a   :  { %v1267_v56 = vmul.f32 %v5776_v16, %v5776_v16  ;;  %v1268_v45 = vmul.f32 %v5780_v60, %v5780_v60  ;;  %v1269_v34 = vmul.f32 %v5784_v44, %v5784_v44  ;;  %v1270_v57 = vmul.f32 %v5788_v41, %v5788_v41 }
 0x40b   :  { %v1271_v29 = vmul.f32 %v5796_v38, %v5796_v38  ;;  %v1272_v50 = vmul.f32 %v5802_v37, %v5802_v37  ;;  %v5820_v17 = vsub.f32 %v1205_v3, %v1250_v24  ;;  %v1273_v10 = vmul.f32 %v1257_v63, %v1257_v63 }
 0x40c   :  { %v1283_v9 = vsel %vm137_vm3, %v1267_v56, 0.0  ;;  %v1284_v8 = vsel %vm137_vm3, %v1268_v45, 0.0  ;;  %v1286_v32 = vsel %vm137_vm3, %v1269_v34, 0.0  ;;  %v1288_v13 = vsel %vm137_vm3, %v1270_v57, 0.0 }
 0x40d   :  { %v1285_v30 = vadd.f32 %v1284_v8, %v1283_v9  ;;  %v1290_v59 = vsel %vm137_vm3, %v1271_v29, 0.0  ;;  %v5823_v53 = vsub.f32 %v1206_v4, %v1250_v24  ;;  %v1274_v42 = vmul.f32 %v1258_v21, %v1258_v21 }
 0x40e   :  { %v1292_v18 = vsel %vm137_vm3, %v1272_v50, 0.0  ;;  %v5828_v23 = vsub.f32 %v1207_v22, %v1250_v24  ;;  %v1275_v56 = vmul.f32 %v5820_v17, %v5820_v17  ;;  %v1294_v25 = vsel %vm137_vm3, %v1273_v10, 0.0 }
 0x40f   :  { %v1287_v36 = vadd.f32 %v1286_v32, %v1285_v30  ;;  %v5835_v45 = vsub.f32 %v1208_v19, %v1250_v24  ;;  %v1276_v4 = vmul.f32 %v5823_v53, %v5823_v53  ;;  %v1296_v34 = vsel %vm137_vm3, %v1274_v42, 0.0 }
 0x410   :  { %v5840_v9 = vsub.f32 %v1209_v47, %v1250_v24  ;;  %v1277_v49 = vmul.f32 %v5828_v23, %v5828_v23  ;;  %v1298_v22 = vsel %vm137_vm3, %v1275_v56, 0.0  ;;  %v5845_v30 = vsub.f32 %v1210_v52, %v1250_v24 }
 0x411   :  { %v1289_v35 = vadd.f32 %v1288_v13, %v1287_v36  ;;  %v1278_v31 = vmul.f32 %v5835_v45, %v5835_v45  ;;  %v1300_v19 = vsel %vm137_vm3, %v1276_v4, 0.0  ;;  %v1265_v32 = vsub.f32 %v1211_v55, %v1250_v24 }
 0x412   :  { %v1279_v47 = vmul.f32 %v5840_v9, %v5840_v9  ;;  %v1302_v36 = vsel %vm137_vm3, %v1277_v49, 0.0  ;;  %v1266_v13 = vsub.f32 %v1212_v40, %v1250_v24  ;;  %v1280_v52 = vmul.f32 %v5845_v30, %v5845_v30 }
 0x413   :  { %v1291_v46 = vadd.f32 %v1290_v59, %v1289_v35  ;;  %v1304_v35 = vsel %vm137_vm3, %v1278_v31, 0.0  ;;  %v1281_v59 = vmul.f32 %v1265_v32, %v1265_v32 }
 0x414   :  { %v1282_v55 = vmul.f32 %v1266_v13, %v1266_v13  ;;  %v1308_v42 = vsel %vm137_vm3, %v1280_v52, 0.0 }
 0x415   :  { %v1293_v33 = vadd.f32 %v1292_v18, %v1291_v46  ;;  %v1306_v46 = vsel %vm137_vm3, %v1279_v47, 0.0 }
 0x416   :  { %v1312_v43 = vsel %vm137_vm3, %v1282_v55, 0.0 }
 0x417   :  { %v1295_v3 = vadd.f32 %v1294_v25, %v1293_v33  ;;  %v1310_v33 = vsel %vm137_vm3, %v1281_v59, 0.0 }
 0x419   :  { %v1297_v57 = vadd.f32 %v1296_v34, %v1295_v3 }
 0x41b   :  { %v1299_v8 = vadd.f32 %v1298_v22, %v1297_v57 }
 0x41d   :  { %v1301_v29 = vadd.f32 %v1300_v19, %v1299_v8 }
 0x41f   :  { %v1303_v50 = vadd.f32 %v1302_v36, %v1301_v29 }
 0x421   :  { %v1305_v10 = vadd.f32 %v1304_v35, %v1303_v50 }
 0x423   :  { %v1307_v39 = vadd.f32 %v1306_v46, %v1305_v10 }
 0x425   :  { %v1309_v18 = vadd.f32 %v1308_v42, %v1307_v39  ;;  %v5942_v42 = vld [vmem:[%s7846_s1 + $0x18] sm:$0xff]  }
 0x427   :  { %v1311_v56 = vadd.f32 %v1310_v33, %v1309_v18  ;;  %v5953_v18 = vld [vmem:[%s7846_s1 + $0x20] sm:$0xff]   ;;  %v7976_v33 = vmov 0  }
 0x429   :  { %v1313_v40 = vadd.f32 %v1312_v43, %v1311_v56  ;;  %v5962_v56 = vld [vmem:[%s7846_s1 + $0x28] sm:$0xff]   ;;  %v5969_v43 = vld [vmem:[%s7846_s1 + $0x30] sm:$0xff]  }
 0x42b   :  { %v1314_v24 = vrot.slane %v1313_v40, 4 }
 0x42d   :  { %v1315_v25 = vadd.f32 %v1314_v24, %v1313_v40  ;;  %v5976_v40 = vld [vmem:[%s7846_s1 + $0x38] sm:$0xff]   ;;  %v338_v24 = vld [vmem:[%s7850_s6 + $0x20] sm:$0xff] }
 0x42f   :  { %v1316_v3 = vrot.slane %v1315_v25, 2 }
 0x431   :  { %v1317_v4 = vadd.f32 %v1316_v3, %v1315_v25  ;;  %v339_v25 = vld [vmem:[%s7850_s6 + $0x28] sm:$0xff] }
 0x432   :  { %v1430_v3 = vpack.c.bf16 %v339_v25, %v338_v24 }
 0x433   :  { %v1318_v34 = vrot.slane %v1317_v4, 1 }
 0x435   :  { %v1319_v57 = vadd.f32 %v1318_v34, %v1317_v4  ;;  %v2291_v4 = vld [vmem:[%s7851_s10] sm:$0x7]  ;;  %v336_v34 = vld [vmem:[%s7850_s6 + $0x10] sm:$0xff] }
 0x437   :  { %v1320_v49 = vmul.f32 0.0078125, %v1319_v57  ;;  %v337_v57 = vld [vmem:[%s7850_s6 + $0x18] sm:$0xff] }
 0x439   :  { %v1321_v22 = vadd.f32 1e-05, %v1320_v49  ;;  %v2311_v49 = vpack.c.bf16 %v2291_v4, %v2291_v4 }
 0x43b   :  { %4889 = vrsqrt.f32 %v1321_v22  ;;  %v1429_v22 = vpack.c.bf16 %v337_v57, %v336_v34 }
 0x448   :  { %v4890_v8 = vpop.eup %4889 }
 0x449   :  { %v1324_v31 = vmul.f32 %v4890_v8, %v5780_v60  ;;  %v1323_v19 = vmul.f32 %v4890_v8, %v5776_v16  ;;  %v1329_v29 = vmul.f32 %v4890_v8, %v1257_v63  ;;  %v1330_v47 = vmul.f32 %v4890_v8, %v1258_v21 }
 0x44a   :  { %v1327_v36 = vmul.f32 %v4890_v8, %v5796_v38  ;;  %v1328_v50 = vmul.f32 %v4890_v8, %v5802_v37  ;;  %v1326_v10 = vmul.f32 %v4890_v8, %v5788_v41  ;;  %v1325_v60 = vmul.f32 %v4890_v8, %v5784_v44 }
 0x44b   :  { %1365 = vrot.lane.b32.xlu1 %v1324_v31, %s4989_s5  ;;  %1363 = vrot.lane.b32.xlu0 %v1323_v19, %s4989_s5  ;;  %v5870_v52 = vpack.c.bf16 %v1324_v31, %v1323_v19  ;;  %v5872_v35 = vpack.c.bf16 %v1330_v47, %v1329_v29  ;;  %v1337_v41 = vmul.f32 %v4890_v8, %v1265_v32  ;;  %v335_v31 = vld [vmem:[%s7850_s6 + $0x8] sm:$0xff] }
 0x44c   :  { %v5876_v16 = vpack.c.bf16 %v1328_v50, %v1327_v36  ;;  %v5883_v38 = vpack.c.bf16 %v1326_v10, %v1325_v60  ;;  %v1338_v44 = vmul.f32 %v4890_v8, %v1266_v13  ;;  %v1332_v37 = vmul.f32 %v4890_v8, %v5823_v53  ;;  %v340_v53 = vld [vmem:[%s7850_s6 + $0x30] sm:$0xff]  ;;  %v5915_v13 = vld [vmem:[%s7846_s1 + $0x8] sm:$0xff]  }
 0x44d   :  { %4573 = vmatprep.subr.bf16.mxu0 %v5872_v35  ;;  %v1335_v63 = vmul.f32 %v4890_v8, %v5840_v9  ;;  %v1336_v21 = vmul.f32 %v4890_v8, %v5845_v30  ;;  %v1331_v59 = vmul.f32 %v4890_v8, %v5820_v17  ;;  %v341_v9 = vld [vmem:[%s7850_s6 + $0x38] sm:$0xff]  ;;  %v1334_v17 = vmul.f32 %v4890_v8, %v5835_v45  ;;  %v5927_v45 = vld [vmem:[%s7846_s1 + $0x10] sm:$0xff]  }
 0x44e   :  { %4574 = vmatpush3.bf16.msra.mxu0 %v5872_v35  ;;  %v5897_v46 = vpack.c.bf16 %v1338_v44, %v1337_v41  ;;  %v1431_v30 = vpack.c.bf16 %v341_v9, %v340_v53  ;;  %v1333_v39 = vmul.f32 %v4890_v8, %v5828_v23  ;;  %v334_v8 = vld [vmem:[%s7850_s6] sm:$0xff]  ;;  %v6002_v19 = vand.u32 %v2311_v49, %v5088_v5 }
 0x44f   :  { %1369 = vrot.lane.b32.xlu1 %v1326_v10, %s4989_s5  ;;  %4575 = vmatprep.subr.bf16.mxu0 %v5876_v16  ;;  %v5910_v32 = vpack.c.bf16 %v1336_v21, %v1335_v63  ;;  %v5937_v23 = vpack.c.bf16 %v1332_v37, %v1331_v59  ;;  %v1432_v25 = vunpack.c.l.bf16 %v5870_v52  ;;  %v1434_v4 = vunpack.c.l.bf16 %v5883_v38 }
 0x450   :  { %1367 = vrot.lane.b32.xlu0 %v1325_v60, %s4989_s5  ;;  %4605 = vmatprep.subr.bf16.mxu1 %v1431_v30  ;;  %v5931_v55 = vpack.c.bf16 %v1334_v17, %v1333_v39 }
 0x451   :  { %4606 = vmatpush3.bf16.msra.mxu1 %v1431_v30 }
 0x452   :  { %4576 = vmatpush3.bf16.msra.mxu0 %v5876_v16  ;;  %4607 = vmatprep.subr.bf16.mxu1 %v1430_v3 }
 0x453   :  { %1373 = vrot.lane.b32.xlu1 %v1328_v50, %s4989_s5  ;;  %4577 = vmatprep.subr.bf16.mxu0 %v5883_v38 }
 0x454   :  { %1371 = vrot.lane.b32.xlu0 %v1327_v36, %s4989_s5 }
 0x455   :  { %4608 = vmatpush3.bf16.msra.mxu1 %v1430_v3  ;;  %v1435_v3 = vunpack.c.h.bf16 %v5883_v38 }
 0x456   :  { %4578 = vmatpush3.bf16.msra.mxu0 %v5883_v38  ;;  %4609 = vmatprep.subr.bf16.mxu1 %v1429_v22  ;;  %v1436_v38 = vunpack.c.l.bf16 %v5876_v16 }
 0x457   :  { %1377 = vrot.lane.b32.xlu1 %v1330_v47, %s4989_s5  ;;  %4579 = vmatprep.subr.bf16.mxu0 %v5870_v52 }
 0x458   :  { %1375 = vrot.lane.b32.xlu0 %v1329_v29, %s4989_s5  ;;  %v1428_v29 = vpack.c.bf16 %v335_v31, %v334_v8 }
 0x459   :  { %4610 = vmatpush3.bf16.msra.mxu1 %v1429_v22  ;;  %v1433_v22 = vunpack.c.h.bf16 %v5870_v52 }
 0x45a   :  { %4580 = vmatpush3.bf16.msra.mxu0 %v5870_v52  ;;  %4611 = vmatprep.subr.bf16.mxu1 %v1428_v29  ;;  %v1438_v52 = vunpack.c.l.bf16 %v5872_v35 }
 0x45b   :  { %1381 = vrot.lane.b32.xlu1 %v1332_v37, %s4989_s5  ;;  %4589 = vmatprep.subr.bf16.mxu0 %v5897_v46 }
 0x45c   :  { %1379 = vrot.lane.b32.xlu0 %v1331_v59, %s4989_s5 }
 0x45d   :  { %4582 = vmatmul.mubr.msk.bf16.vlgmr.msra.gmra.mxu0 %vm137_vm3, %v5915_v13  ;;  %4612 = vmatpush3.bf16.msra.mxu1 %v1428_v29 }
 0x45e   :  { %4590 = vmatpush3.bf16.msra.mxu0 %v5897_v46  ;;  %4585 = vmatprep.mubr.msk.bf16.mxu0 %vm137_vm3, %v5927_v45 }
 0x45f   :  { %1385 = vrot.lane.b32.xlu1 %v1334_v17, %s4989_s5  ;;  %4591 = vmatprep.subr.bf16.mxu0 %v5910_v32 }
 0x460   :  { %1383 = vrot.lane.b32.xlu0 %v1333_v39, %s4989_s5  ;;  %4629 = vmatprep.subr.bf16.mxu1 %v6002_v19 }
 0x462   :  { %4592 = vmatpush3.bf16.msra.mxu0 %v5910_v32 }
 0x463   :  { %1389 = vrot.lane.b32.xlu1 %v1336_v21, %s4989_s5  ;;  %4593 = vmatprep.subr.bf16.mxu0 %v5931_v55 }
 0x464   :  { %1387 = vrot.lane.b32.xlu0 %v1335_v63, %s4989_s5 }
 0x465   :  { %4586 = vmatmul.mubr.msk.bf16.gmra.mxu0 %vm137_vm3, %v5942_v42 }
 0x466   :  { %4594 = vmatpush3.bf16.msra.mxu0 %v5931_v55  ;;  %4597 = vmatprep.mubr.msk.bf16.mxu0 %vm137_vm3, %v5953_v18 }
 0x467   :  { %1393 = vrot.lane.b32.xlu1 %v1338_v44, %s4989_s5  ;;  %4595 = vmatprep.subr.bf16.mxu0 %v5937_v23 }
 0x468   :  { %1391 = vrot.lane.b32.xlu0 %v1337_v41, %s4989_s5 }
 0x46a   :  { %4596 = vmatpush3.bf16.msra.mxu0 %v5937_v23 }
 0x46b   :  { %1994 = vmatprep.subr.bf16.mxu0 %v7976_v33 }
 0x46d   :  { %4598 = vmatmul.mubr.msk.bf16.vlgmr.msra.gmra.mxu0 %vm137_vm3, %v5962_v56 }
 0x46e   :  { %4601 = vmatprep.mubr.msk.bf16.mxu0 %vm137_vm3, %v5969_v43 }
 0x475   :  { %4602 = vmatmul.mubr.msk.bf16.gmra.mxu0 %vm137_vm3, %v5976_v40 }
 0x4bd   :  { %v1366_v47 = vpop.permute.xlu1 %1365  ;;  %v1364_v36 = vpop.permute.xlu0 %1363 }
 0x4be   :  { %1413 = vst.msk [vmem:[#allocation2 + $0x10] sm:$0xff] %vm1411_vm4, %v1366_v47  ;;  %1412 = vst.msk [vmem:[#allocation2] sm:$0xff] %vm1411_vm4, %v1364_v36 }
 0x4c1   :  { %v1370_v50 = vpop.permute.xlu1 %1369 }
 0x4c2   :  { %1415 = vst.msk [vmem:[#allocation2 + $0x30] sm:$0xff] %vm1411_vm4, %v1370_v50  ;;  %v1368_v10 = vpop.permute.xlu0 %1367 }
 0x4c3   :  { %1414 = vst.msk [vmem:[#allocation2 + $0x20] sm:$0xff] %vm1411_vm4, %v1368_v10 }
 0x4c5   :  { %v1374_v5 = vpop.permute.xlu1 %1373 }
 0x4c6   :  { %1417 = vst.msk [vmem:[#allocation2 + $0x50] sm:$0xff] %vm1411_vm4, %v1374_v5  ;;  %v1372_v60 = vpop.permute.xlu0 %1371 }
 0x4c7   :  { %1416 = vst.msk [vmem:[#allocation2 + $0x40] sm:$0xff] %vm1411_vm4, %v1372_v60 }
 0x4c9   :  { %v1378_v41 = vpop.permute.xlu1 %1377 }
 0x4ca   :  { %1419 = vst.msk [vmem:[#allocation2 + $0x70] sm:$0xff] %vm1411_vm4, %v1378_v41  ;;  %v1376_v44 = vpop.permute.xlu0 %1375 }
 0x4cb   :  { %1418 = vst.msk [vmem:[#allocation2 + $0x60] sm:$0xff] %vm1411_vm4, %v1376_v44  ;;  %v1439_v44 = vunpack.c.h.bf16 %v5872_v35 }
 0x4cd   :  { %v1382_v37 = vpop.permute.xlu1 %1381 }
 0x4ce   :  { %1421 = vst.msk [vmem:[#allocation2 + $0x90] sm:$0xff] %vm1411_vm4, %v1382_v37  ;;  %v1380_v63 = vpop.permute.xlu0 %1379 }
 0x4cf   :  { %1420 = vst.msk [vmem:[#allocation2 + $0x80] sm:$0xff] %vm1411_vm4, %v1380_v63 }
 0x4d1   :  { %v1386_v21 = vpop.permute.xlu1 %1385 }
 0x4d2   :  { %1423 = vst.msk [vmem:[#allocation2 + $0xb0] sm:$0xff] %vm1411_vm4, %v1386_v21  ;;  %v1384_v59 = vpop.permute.xlu0 %1383 }
 0x4d3   :  { %1422 = vst.msk [vmem:[#allocation2 + $0xa0] sm:$0xff] %vm1411_vm4, %v1384_v59 }
 0x4d5   :  { %v1390_v53 = vpop.permute.xlu1 %1389 }
 0x4d6   :  { %1425 = vst.msk [vmem:[#allocation2 + $0xd0] sm:$0xff] %vm1411_vm4, %v1390_v53  ;;  %v1388_v9 = vpop.permute.xlu0 %1387  ;;  %v1437_v53 = vunpack.c.h.bf16 %v5876_v16  ;;  %v1440_v16 = vunpack.c.l.bf16 %v5937_v23 }
 0x4d7   :  { %1424 = vst.msk [vmem:[#allocation2 + $0xc0] sm:$0xff] %vm1411_vm4, %v1388_v9 }
 0x4d9   :  { %v1394_v17 = vpop.permute.xlu1 %1393 }
 0x4da   :  { %1427 = vst.msk [vmem:[#allocation2 + $0xf0] sm:$0xff] %vm1411_vm4, %v1394_v17  ;;  %v1392_v30 = vpop.permute.xlu0 %1391 }
 0x4db   :  { %1426 = vst.msk [vmem:[#allocation2 + $0xe0] sm:$0xff] %vm1411_vm4, %v1392_v30 }
 0x51d   :  { %v4583_v39 = vpop.f32.mrf.mxu0 }
 0x51e   :  { %v1491_v8 = vadd.f32 %v4583_v39, %v1434_v4 }
 0x51f   :  { %v1482_v24 = vpop.f32.mrf.mxu0 }
 0x520   :  { %v1483_v57 = vadd.f32 %v1482_v24, %v1432_v25  ;;  %v1580_v5 = vmul.f32 %v1491_v8, %v5296_v62 }
 0x521   :  { %v4584_v34 = vpop.f32.mrf.mxu0 }
 0x522   :  { %v1494_v49 = vadd.f32 %v4584_v34, %v1435_v3  ;;  %v1578_v50 = vmul.f32 %v1483_v57, %v5294_v61  ;;  %v1443_v57 = vunpack.c.h.bf16 %v5931_v55 }
 0x523   :  { %v1485_v31 = vpop.f32.mrf.mxu0 }
 0x524   :  { %v1486_v29 = vadd.f32 %v1485_v31, %v1433_v22  ;;  %v1581_v47 = vmul.f32 %v1494_v49, %v5300_v1  ;;  %v1442_v22 = vunpack.c.l.bf16 %v5931_v55 }
 0x525   :  { %v4587_v36 = vpop.f32.mrf.mxu0 }
 0x526   :  { %v1579_v10 = vmul.f32 %v1486_v29, %v5298_v0  ;;  %v1595_v37 = vpack.c.bf16 %v1581_v47, %v1580_v5  ;;  %v1507_v9 = vadd.f32 %v4587_v36, %v1438_v52  ;;  %v1441_v29 = vunpack.c.h.bf16 %v5937_v23 }
 0x527   :  { %v1498_v60 = vpop.f32.mrf.mxu0  ;;  %v1447_v23 = vunpack.c.h.bf16 %v5897_v46 }
 0x528   :  { %v1594_v41 = vpack.c.bf16 %v1579_v10, %v1578_v50  ;;  %v1499_v21 = vadd.f32 %v1498_v60, %v1436_v38  ;;  %v1584_v3 = vmul.f32 %v1507_v9, %v5308_v11  ;;  %v1445_v9 = vunpack.c.h.bf16 %v5910_v32 }
 0x529   :  { %v4588_v63 = vpop.f32.mrf.mxu0 }
 0x52a   :  { %v1510_v59 = vadd.f32 %v4588_v63, %v1439_v44  ;;  %4613 = vmatprep.mubr.msk.bf16.mxu1 %vm137_vm3, %v1594_v41  ;;  %v1582_v25 = vmul.f32 %v1499_v21, %v5302_v2  ;;  %v1446_v63 = vunpack.c.l.bf16 %v5897_v46 }
 0x52b   :  { %v1501_v17 = vpop.f32.mrf.mxu0  ;;  %4614 = vmatmul.mubr.msk.bf16.vlgmr.msra.gmra.mxu1 %vm137_vm3, %v1595_v37  ;;  %v1444_v37 = vunpack.c.l.bf16 %v5910_v32  ;;  %v7977_v32 = vld [vmem:[#allocation4_spill] sm:$0xff] }
 0x52c   :  { %v1502_v30 = vadd.f32 %v1501_v17, %v1437_v53  ;;  %4630 = vmatpush3.bf16.msra.mxu1 %v6002_v19  ;;  %v1585_v39 = vmul.f32 %v1510_v59, %v5318_v27 }
 0x52d   :  { %v4599_v24 = vpop.f32.mrf.mxu0 }
 0x52e   :  { %v1583_v35 = vmul.f32 %v1502_v30, %v5304_v6  ;;  %v1597_v49 = vpack.c.bf16 %v1585_v39, %v1584_v3  ;;  %v1556_v47 = vadd.f32 %v4599_v24, %v1442_v22 }
 0x52f   :  { %v1547_v4 = vpop.f32.mrf.mxu0 }
 0x530   :  { %v1596_v34 = vpack.c.bf16 %v1583_v35, %v1582_v25  ;;  %v1548_v19 = vadd.f32 %v1547_v4, %v1440_v16  ;;  %v1588_v55 = vmul.f32 %v1556_v47, %v5359_v26  ;;  %v7979_v16 = vld [vmem:[#allocation6_spill] sm:$0xff]  ;;  %v1947_v47 = vld [vmem:[%s7852_s8 + $0x58] sm:$0xff] }
 0x531   :  { %v4600_v8 = vpop.f32.mrf.mxu0 }
 0x532   :  { %v1559_v31 = vadd.f32 %v4600_v8, %v1443_v57  ;;  %4617 = vmatprep.mubr.msk.bf16.mxu1 %vm137_vm3, %v1596_v34  ;;  %v1586_v60 = vmul.f32 %v1548_v19, %v5329_v48  ;;  %v7978_v34 = vld [vmem:[#allocation5_spill] sm:$0xff]  ;;  %v7980_v57 = vld [vmem:[#allocation7_spill] sm:$0xff]  ;;  %v1948_v8 = vld [vmem:[%s7852_s8 + $0x60] sm:$0xff] }
 0x533   :  { %v1550_v36 = vpop.f32.mrf.mxu0  ;;  %4618 = vmatmul.mubr.msk.bf16.gmra.mxu1 %vm137_vm3, %v1597_v49  ;;  %v7981_v49 = vld [vmem:[#allocation8_spill] sm:$0xff]  ;;  %v1949_v19 = vld [vmem:[%s7852_s8 + $0x68] sm:$0xff] }
 0x534   :  { %v1551_v50 = vadd.f32 %v1550_v36, %v1441_v29  ;;  %v1589_v10 = vmul.f32 %v1559_v31, %v5370_v54  ;;  %v1960_v31 = vpack.c.bf16 %v1949_v19, %v1948_v8  ;;  %v1946_v29 = vld [vmem:[%s7852_s8 + $0x50] sm:$0xff] }
 0x535   :  { %v4603_v5 = vpop.f32.mrf.mxu0  ;;  %v1959_v36 = vpack.c.bf16 %v1947_v47, %v1946_v29 }
 0x536   :  { %v1587_v41 = vmul.f32 %v1551_v50, %v5341_v58  ;;  %v1599_v52 = vpack.c.bf16 %v1589_v10, %v1588_v55  ;;  %v1572_v17 = vadd.f32 %v4603_v5, %v1446_v63  ;;  %v1944_v50 = vld [vmem:[%s7852_s8 + $0x40] sm:$0xff]  ;;  %v1945_v10 = vld [vmem:[%s7852_s8 + $0x48] sm:$0xff]  ;;  %v1939_v63 = vld [vmem:[%s7852_s8 + $0x18] sm:$0xff] }
 0x537   :  { %v1563_v38 = vpop.f32.mrf.mxu0  ;;  %v1958_v5 = vpack.c.bf16 %v1945_v10, %v1944_v50 }
 0x538   :  { %v1598_v44 = vpack.c.bf16 %v1587_v41, %v1586_v60  ;;  %v1564_v59 = vadd.f32 %v1563_v38, %v1444_v37  ;;  %v1592_v46 = vmul.f32 %v1572_v17, %v5422_v20  ;;  %v1942_v60 = vld [vmem:[%s7852_s8 + $0x30] sm:$0xff]  ;;  %v1943_v41 = vld [vmem:[%s7852_s8 + $0x38] sm:$0xff]  ;;  %v1940_v38 = vld [vmem:[%s7852_s8 + $0x20] sm:$0xff] }
 0x539   :  { %v4604_v21 = vpop.f32.mrf.mxu0  ;;  %v1957_v55 = vpack.c.bf16 %v1943_v41, %v1942_v60  ;;  %v1937_v17 = vld [vmem:[%s7852_s8 + $0x8] sm:$0xff] }
 0x53a   :  { %v1575_v53 = vadd.f32 %v4604_v21, %v1447_v23  ;;  %4621 = vmatprep.mubr.msk.bf16.mxu1 %vm137_vm3, %v1598_v44  ;;  %v1590_v25 = vmul.f32 %v1564_v59, %v5389_v28  ;;  %v1941_v44 = vld [vmem:[%s7852_s8 + $0x28] sm:$0xff]  ;;  %v6136_v59 = vld [vmem:[%s7853_s7] ss:$0 sm:$0xff] }
 0x53b   :  { %v1566_v30 = vpop.f32.mrf.mxu0  ;;  %4622 = vmatmul.mubr.msk.bf16.gmra.mxu1 %vm137_vm3, %v1599_v52  ;;  %v1956_v37 = vpack.c.bf16 %v1941_v44, %v1940_v38  ;;  %v1938_v52 = vld [vmem:[%s7852_s8 + $0x10] sm:$0xff] }
 0x53c   :  { %v1567_v39 = vadd.f32 %v1566_v30, %v1445_v9  ;;  %v1593_v24 = vmul.f32 %v1575_v53, %v5432_v51  ;;  %v1955_v21 = vpack.c.bf16 %v1939_v63, %v1938_v52  ;;  %v1936_v9 = vld [vmem:[%s7852_s8] sm:$0xff] }
 0x53e   :  { %v1591_v35 = vmul.f32 %v1567_v39, %v5404_v12  ;;  %v1601_v4 = vpack.c.bf16 %v1593_v24, %v1592_v46  ;;  %v1954_v39 = vpack.c.bf16 %v1937_v17, %v1936_v9 }
 0x540   :  { %v1600_v3 = vpack.c.bf16 %v1591_v35, %v1590_v25  ;;  %v1952_v25 = vld [vmem:[%s7852_s8 + $0x80] sm:$0xff]  ;;  %v1953_v35 = vld [vmem:[%s7852_s8 + $0x88] sm:$0xff] }
 0x542   :  { %4625 = vmatprep.mubr.msk.bf16.mxu1 %vm137_vm3, %v1600_v3 }
 0x543   :  { %4626 = vmatmul.mubr.msk.bf16.gmra.mxu1 %vm137_vm3, %v1601_v4 }
 0x544   :  { %4631 = vmatprep.mubr.msk.bf16.mxu1 %vm344_vm2, %v5093_v7  ;;  %v6081_v7 = vld [vmem:[%s7846_s1] sm:$0xff]  }
 0x54b   :  { %4632 = vmatmul.mubr.msk.bf16.vlgmr.msra.gmra.mxu1 %vm344_vm2, %v5110_v14  ;;  %v1950_v14 = vld [vmem:[%s7852_s8 + $0x70] sm:$0xff] }
 0x54c   :  { %4635 = vmatprep.mubr.msk.bf16.mxu1 %vm344_vm2, %v5112_v15  ;;  %v1951_v15 = vld [vmem:[%s7852_s8 + $0x78] sm:$0xff] }
 0x54d   :  { %v1961_v22 = vpack.c.bf16 %v1951_v15, %v1950_v14 }
 0x54f   :  { %1995 = vmatpush1.bf16.msra.mxu0 %v1961_v22 }
 0x550   :  { %1996 = vmatprep.subr.bf16.mxu0 %v7976_v33 }
 0x553   :  { %4636 = vmatmul.mubr.msk.bf16.gmra.mxu1 %vm344_vm2, %v7977_v32  ;;  %1997 = vmatpush1.bf16.msra.mxu0 %v1960_v31 }
 0x554   :  { %4639 = vmatprep.mubr.msk.bf16.mxu1 %vm344_vm2, %v7978_v34  ;;  %1998 = vmatprep.subr.bf16.mxu0 %v7976_v33 }
 0x557   :  { %1999 = vmatpush1.bf16.msra.mxu0 %v1959_v36 }
 0x558   :  { %2000 = vmatprep.subr.bf16.mxu0 %v7976_v33 }
 0x55b   :  { %4640 = vmatmul.mubr.msk.bf16.gmra.mxu1 %vm344_vm2, %v7979_v16  ;;  %2001 = vmatpush1.bf16.msra.mxu0 %v1958_v5  ;;  %v1962_v16 = vpack.c.bf16 %v1953_v35, %v1952_v25 }
 0x55c   :  { %4643 = vmatprep.mubr.msk.bf16.mxu1 %vm344_vm2, %v7980_v57  ;;  %2002 = vmatprep.subr.bf16.mxu0 %v7976_v33 }
 0x55f   :  { %2003 = vmatpush1.bf16.msra.mxu0 %v1957_v55 }
 0x560   :  { %2004 = vmatprep.subr.bf16.mxu0 %v7976_v33 }
 0x563   :  { %4644 = vmatmul.mubr.msk.bf16.gmra.mxu1 %vm344_vm2, %v7981_v49  ;;  %2005 = vmatpush1.bf16.msra.mxu0 %v1956_v37 }
 0x564   :  { %4655 = vmatprep.mubr.msk.bf16.mxu1 %vm137_vm3, %v6081_v7  ;;  %2006 = vmatprep.subr.bf16.mxu0 %v7976_v33 }
 0x567   :  { %2007 = vmatpush1.bf16.msra.mxu0 %v1955_v21 }
 0x568   :  { %2008 = vmatprep.subr.bf16.mxu0 %v7976_v33 }
 0x56b   :  { %2009 = vmatpush1.bf16.msra.mxu0 %v1954_v39 }
 0x56c   :  { %2024 = vmatprep.subr.bf16.mxu0 %v7976_v33 }
 0x56f   :  { %2025 = vmatpush2.bf16.msra.mxu0 %v1962_v16 }
 0x5eb   :  { %v4615_v23 = vpop.f32.mrf.mxu1 }
 0x5ec   :  { %v6155_v46 = vadd.f32 %v4615_v23, %v6136_v59 }
 0x5ed   :  { %v1666_v53 = vpop.f32.mrf.mxu1 }
 0x5ee   :  { %v6145_v30 = vadd.f32 %v6136_v59, %v1666_v53  ;;  %v7897_v49 = vmax.f32 %v6155_v46, 0.0 }
 0x5ef   :  { %v4616_v24 = vpop.f32.mrf.mxu1 }
 0x5f0   :  { %v1729_v4 = vmax.f32 %v6145_v30, 0.0  ;;  %v6159_v32 = vadd.f32 %v4616_v24, %v6136_v59  ;;  %v1749_v36 = vsel %vm1745_vm5, %v7897_v49, 0.0 }
 0x5f1   :  { %v1669_v3 = vpop.f32.mrf.mxu1 }
 0x5f2   :  { %v6162_v34 = vadd.f32 %v6136_v59, %v1669_v3  ;;  %v1746_v22 = vsel %vm1745_vm5, %v1729_v4, 0.0  ;;  %v7896_v8 = vmax.f32 %v6159_v32, 0.0  ;;  %v7983_v30 = vmax.f32 %v6159_v32, 0.0 }
 0x5f3   :  { %v4619_v57 = vpop.f32.mrf.mxu1 }
 0x5f4   :  { %v1730_v14 = vmax.f32 %v6162_v34, 0.0  ;;  %v6181_v50 = vadd.f32 %v4619_v57, %v6136_v59  ;;  %v1751_v41 = vsel %vm1745_vm5, %v7896_v8, 0.0 }
 0x5f5   :  { %v1682_v15 = vpop.f32.mrf.mxu1 }
 0x5f6   :  { %v1747_v19 = vsel %vm1745_vm5, %v1730_v14, 0.0  ;;  %v6175_v31 = vadd.f32 %v6136_v59, %v1682_v15  ;;  %v7890_v23 = vmax.f32 %v6181_v50, 0.0 }
 0x5f7   :  { %v1748_v29 = vadd.f32 %v1747_v19, %v1746_v22  ;;  %v4620_v47 = vpop.f32.mrf.mxu1 }
 0x5f8   :  { %v7895_v10 = vmax.f32 %v6175_v31, 0.0  ;;  %v6188_v55 = vadd.f32 %v4620_v47, %v6136_v59  ;;  %v1757_v35 = vsel %vm1745_vm5, %v7890_v23, 0.0 }
 0x5f9   :  { %v1750_v5 = vadd.f32 %v1749_v36, %v1748_v29  ;;  %v1685_v60 = vpop.f32.mrf.mxu1 }
 0x5fa   :  { %v6191_v38 = vadd.f32 %v6136_v59, %v1685_v60  ;;  %v1753_v52 = vsel %vm1745_vm5, %v7895_v10, 0.0  ;;  %v7889_v9 = vmax.f32 %v6188_v55, 0.0 }
 0x5fb   :  { %v1752_v44 = vadd.f32 %v1751_v41, %v1750_v5  ;;  %v4623_v37 = vpop.f32.mrf.mxu1 }
 0x5fc   :  { %v7894_v63 = vmax.f32 %v6191_v38, 0.0  ;;  %v6209_v3 = vadd.f32 %v4623_v37, %v6136_v59  ;;  %v1759_v22 = vsel %vm1745_vm5, %v7889_v9, 0.0  ;;  %v7986_v32 = vmax.f32 %v6191_v38, 0.0 }
 0x5fd   :  { %v1754_v21 = vadd.f32 %v1753_v52, %v1752_v44  ;;  %v1698_v53 = vpop.f32.mrf.mxu1 }
 0x5fe   :  { %v1755_v17 = vsel %vm1745_vm5, %v7894_v63, 0.0  ;;  %v6203_v39 = vadd.f32 %v6136_v59, %v1698_v53  ;;  %v7884_v5 = vmax.f32 %v6209_v3, 0.0 }
 0x5ff   :  { %v1756_v24 = vadd.f32 %v1755_v17, %v1754_v21  ;;  %v4624_v25 = vpop.f32.mrf.mxu1 }
 0x600   :  { %v7888_v16 = vmax.f32 %v6203_v39, 0.0  ;;  %v6216_v19 = vadd.f32 %v4624_v25, %v6136_v59  ;;  %v1765_v25 = vsel %vm1745_vm5, %v7884_v5, 0.0 }
 0x601   :  { %v1758_v57 = vadd.f32 %v1757_v35, %v1756_v24  ;;  %v1701_v15 = vpop.f32.mrf.mxu1 }
 0x602   :  { %v6219_v29 = vadd.f32 %v6136_v59, %v1701_v15  ;;  %v1761_v60 = vsel %vm1745_vm5, %v7888_v16, 0.0  ;;  %v7886_v52 = vmax.f32 %v6216_v19, 0.0 }
 0x603   :  { %v1760_v47 = vadd.f32 %v1759_v22, %v1758_v57  ;;  %v4627_v36 = vpop.f32.mrf.mxu1 }
 0x604   :  { %v7885_v41 = vmax.f32 %v6219_v29, 0.0  ;;  %v6237_v35 = vadd.f32 %v4627_v36, %v6136_v59 }
 0x605   :  { %v1762_v44 = vadd.f32 %v1761_v60, %v1760_v47  ;;  %v1714_v37 = vpop.f32.mrf.mxu1  ;;  %v1767_v47 = vsel %vm1745_vm5, %v7886_v52, 0.0 }
 0x606   :  { %v1763_v21 = vsel %vm1745_vm5, %v7885_v41, 0.0  ;;  %v6231_v53 = vadd.f32 %v6136_v59, %v1714_v37  ;;  %v7892_v36 = vmax.f32 %v6237_v35, 0.0 }
 0x607   :  { %v1764_v17 = vadd.f32 %v1763_v21, %v1762_v44  ;;  %v4628_v24 = vpop.f32.mrf.mxu1 }
 0x608   :  { %v7887_v57 = vmax.f32 %v6231_v53, 0.0  ;;  %v6244_v60 = vadd.f32 %v4628_v24, %v6136_v59 }
 0x609   :  { %v1766_v15 = vadd.f32 %v1765_v25, %v1764_v17  ;;  %v1717_v22 = vpop.f32.mrf.mxu1 }
 0x60a   :  { %v6247_v44 = vadd.f32 %v6136_v59, %v1717_v22  ;;  %v1769_v17 = vsel %vm1745_vm5, %v7887_v57, 0.0  ;;  %v7893_v24 = vmax.f32 %v6244_v60, 0.0 }
 0x60b   :  { %v1768_v37 = vadd.f32 %v1767_v47, %v1766_v15  ;;  %v6249_v21 = vpop.f32.mrf.mxu1  ;;  %v1773_v47 = vsel %vm1745_vm5, %v7892_v36, 0.0 }
 0x60c   :  { %v7891_v25 = vmax.f32 %v6247_v44, 0.0 }
 0x60d   :  { %v1770_v5 = vadd.f32 %v1769_v17, %v1768_v37  ;;  %v6256_v41 = vpop.f32.mrf.mxu1  ;;  %v1775_v37 = vsel %vm1745_vm5, %v7893_v24, 0.0 }
 0x60e   :  { %v1771_v59 = vsel %vm1745_vm5, %v7891_v25, 0.0 }
 0x60f   :  { %v1772_v15 = vadd.f32 %v1771_v59, %v1770_v5  ;;  %v6262_v22 = vpop.f32.mrf.mxu1 }
 0x611   :  { %v1774_v52 = vadd.f32 %v1773_v47, %v1772_v15  ;;  %v6267_v57 = vpop.f32.mrf.mxu1 }
 0x613   :  { %v1776_v17 = vadd.f32 %v1775_v37, %v1774_v52  ;;  %v6272_v16 = vpop.f32.mrf.mxu1 }
 0x615   :  { %v1777_v9 = vrot.slane %v1776_v17, 4  ;;  %v6274_v23 = vpop.f32.mrf.mxu1 }
 0x617   :  { %v1778_v5 = vadd.f32 %v1777_v9, %v1776_v17  ;;  %v6276_v59 = vpop.f32.mrf.mxu1  ;;  %v2413_v9 = vpack.c.bf16 %v6262_v22, %v6249_v21 }
 0x618   :  { %v2415_v25 = vpack.c.bf16 %v6276_v59, %v6272_v16 }
 0x619   :  { %v1779_v36 = vrot.slane %v1778_v5, 2  ;;  %v6280_v15 = vpop.f32.mrf.mxu1 }
 0x61a   :  { %v2414_v47 = vpack.c.bf16 %v6280_v15, %v6274_v23  ;;  %4647 = vmatprep.subr.bf16.mxu1 %v2415_v25 }
 0x61b   :  { %v1780_v24 = vadd.f32 %v1779_v36, %v1778_v5  ;;  %v6284_v52 = vpop.f32.mrf.mxu1  ;;  %4648 = vmatpush3.bf16.msra.mxu1 %v2415_v25  ;;  %v2412_v36 = vpack.c.bf16 %v6267_v57, %v6256_v41 }
 0x61c   :  { %4649 = vmatprep.subr.bf16.mxu1 %v2414_v47 }
 0x61d   :  { %v1781_v37 = vrot.slane %v1780_v24, 1  ;;  %v6286_v63 = vpop.f32.mrf.mxu1 }
 0x61f   :  { %v1782_v17 = vadd.f32 %v1781_v37, %v1780_v24  ;;  %v6290_v10 = vpop.f32.mrf.mxu1  ;;  %4650 = vmatpush3.bf16.msra.mxu1 %v2414_v47  ;;  %v7982_v47 = vmax.f32 %v6155_v46, 0.0  ;;  %v7985_v46 = vmax.f32 %v6175_v31, 0.0 }
 0x620   :  { %4651 = vmatprep.subr.bf16.mxu1 %v2413_v9 }
 0x621   :  { %v6292_v8 = vmul.f32 0.0078125, %v1782_v17  ;;  %v6294_v49 = vpop.f32.mrf.mxu1 }
 0x623   :  { %v6301_v25 = vsub.f32 %v1729_v4, %v6292_v8  ;;  %v6306_v24 = vsub.f32 %v1730_v14, %v6292_v8  ;;  %v6308_v5 = vpop.f32.mrf.mxu1  ;;  %4652 = vmatpush3.bf16.msra.mxu1 %v2413_v9  ;;  %v6313_v37 = vsub.f32 %v7982_v47, %v6292_v8  ;;  %v6320_v4 = vsub.f32 %v7983_v30, %v6292_v8 }
 0x624   :  { %4653 = vmatprep.subr.bf16.mxu1 %v2412_v36  ;;  %v6331_v47 = vsub.f32 %v7985_v46, %v6292_v8  ;;  %v6340_v30 = vsub.f32 %v7986_v32, %v6292_v8 }
 0x625   :  { %v6315_v17 = vpop.f32.mrf.mxu1  ;;  %v1800_v34 = vmul.f32 %v6301_v25, %v6301_v25  ;;  %v1801_v14 = vmul.f32 %v6306_v24, %v6306_v24  ;;  %v1802_v33 = vmul.f32 %v6313_v37, %v6313_v37 }
 0x626   :  { %v1804_v38 = vmul.f32 %v6331_v47, %v6331_v47 }
 0x627   :  { %4654 = vmatpush3.bf16.msra.mxu1 %v2412_v36  ;;  %v6326_v9 = vpop.f32.mrf.mxu1  ;;  %v1803_v36 = vmul.f32 %v6320_v4, %v6320_v4  ;;  %v1816_v12 = vsel %vm1745_vm5, %v1800_v34, 0.0  ;;  %v1817_v31 = vsel %vm1745_vm5, %v1801_v14, 0.0  ;;  %v1819_v32 = vsel %vm1745_vm5, %v1802_v33, 0.0 }
 0x628   :  { %7984 = vst [vmem:[#allocation4_spill] sm:$0xff] %v6326_v9  ;;  %v1818_v46 = vadd.f32 %v1817_v31, %v1816_v12  ;;  %v7989_v34 = vmax.f32 %v6188_v55, 0.0  ;;  %v1805_v12 = vmul.f32 %v6340_v30, %v6340_v30  ;;  %v7990_v33 = vmax.f32 %v6203_v39, 0.0 }
 0x629   :  { %v6348_v51 = vpop.f32.mrf.mxu1 }
 0x62a   :  { %4656 = vmatmul.mubr.msk.bf16.vlgmr.msra.gmra.mxu1 %vm137_vm3, %v5915_v13  ;;  %7987 = vst [vmem:[#allocation5_spill] sm:$0xff] %v6348_v51  ;;  %v7988_v13 = vmax.f32 %v6181_v50, 0.0  ;;  %v6361_v14 = vsub.f32 %v7989_v34, %v6292_v8  ;;  %v1820_v28 = vadd.f32 %v1819_v32, %v1818_v46  ;;  %v2419_v50 = vpack.c.bf16 %v6326_v9, %v6308_v5 }
 0x62b   :  { %4659 = vmatprep.mubr.msk.bf16.mxu1 %vm137_vm3, %v5927_v45  ;;  %v1821_v45 = vsel %vm1745_vm5, %v1803_v36, 0.0  ;;  %v2418_v31 = vpack.c.bf16 %v6348_v51, %v6315_v17  ;;  %v6373_v58 = vsub.f32 %v7990_v33, %v6292_v8  ;;  %v1823_v46 = vsel %vm1745_vm5, %v1804_v38, 0.0 }
 0x62c   :  { %v6353_v20 = vsub.f32 %v7988_v13, %v6292_v8  ;;  %v1822_v13 = vadd.f32 %v1821_v45, %v1820_v28  ;;  %4663 = vmatprep.subr.bf16.mxu1 %v2419_v50  ;;  %v7991_v36 = vmax.f32 %v6219_v29, 0.0  ;;  %v1807_v28 = vmul.f32 %v6361_v14, %v6361_v14 }
 0x62d   :  { %4664 = vmatpush3.bf16.msra.mxu1 %v2419_v50  ;;  %v1825_v39 = vsel %vm1745_vm5, %v1805_v12, 0.0  ;;  %v7992_v38 = vmax.f32 %v6209_v3, 0.0  ;;  %v1808_v29 = vmul.f32 %v6373_v58, %v6373_v58  ;;  %v2417_v12 = vpack.c.bf16 %v6290_v10, %v6284_v52 }
 0x62e   :  { %v1806_v55 = vmul.f32 %v6353_v20, %v6353_v20  ;;  %v1824_v32 = vadd.f32 %v1823_v46, %v1822_v13  ;;  %v6381_v34 = vsub.f32 %v7991_v36, %v6292_v8  ;;  %4665 = vmatprep.subr.bf16.mxu1 %v2418_v31  ;;  %v1829_v3 = vsel %vm1745_vm5, %v1807_v28, 0.0 }
 0x62f   :  { %v6393_v50 = vsub.f32 %v7992_v38, %v6292_v8 }
 0x630   :  { %v1826_v45 = vadd.f32 %v1825_v39, %v1824_v32  ;;  %v1827_v13 = vsel %vm1745_vm5, %v1806_v55, 0.0  ;;  %v1809_v32 = vmul.f32 %v6381_v34, %v6381_v34  ;;  %v7994_v39 = vmax.f32 %v6231_v53, 0.0 }
 0x631   :  { %4666 = vmatpush3.bf16.msra.mxu1 %v2418_v31  ;;  %v1810_v38 = vmul.f32 %v6393_v50, %v6393_v50  ;;  %v1831_v31 = vsel %vm1745_vm5, %v1808_v29, 0.0 }
 0x632   :  { %4660 = vmatmul.mubr.msk.bf16.gmra.mxu1 %vm137_vm3, %v5942_v42  ;;  %v1828_v33 = vadd.f32 %v1827_v13, %v1826_v45  ;;  %v7993_v42 = vmax.f32 %v6216_v19, 0.0  ;;  %4667 = vmatprep.subr.bf16.mxu1 %v2417_v12  ;;  %v1796_v55 = vsub.f32 %v7994_v39, %v6292_v8  ;;  %v2416_v19 = vpack.c.bf16 %v6294_v49, %v6286_v63 }
 0x633   :  { %4671 = vmatprep.mubr.msk.bf16.mxu1 %vm137_vm3, %v5953_v18  ;;  %v7995_v13 = vmax.f32 %v6247_v44, 0.0  ;;  %v1835_v29 = vsel %vm1745_vm5, %v1810_v38, 0.0 }
 0x634   :  { %v1795_v46 = vsub.f32 %v7993_v42, %v6292_v8  ;;  %v1830_v36 = vadd.f32 %v1829_v3, %v1828_v33  ;;  %v1833_v33 = vsel %vm1745_vm5, %v1809_v32, 0.0  ;;  %v7996_v3 = vmax.f32 %v6237_v35, 0.0 }
 0x635   :  { %4668 = vmatpush3.bf16.msra.mxu1 %v2417_v12  ;;  %v1797_v28 = vsub.f32 %v7995_v13, %v6292_v8  ;;  %v1812_v51 = vmul.f32 %v1796_v55, %v1796_v55  ;;  %v7997_v12 = vmax.f32 %v6244_v60, 0.0 }
 0x636   :  { %v1832_v45 = vadd.f32 %v1831_v31, %v1830_v36  ;;  %v1811_v42 = vmul.f32 %v1795_v46, %v1795_v46  ;;  %4669 = vmatprep.subr.bf16.mxu1 %v2416_v19  ;;  %v1798_v39 = vsub.f32 %v7996_v3, %v6292_v8 }
 0x637   :  { %v1799_v36 = vsub.f32 %v7997_v12, %v6292_v8  ;;  %v1813_v44 = vmul.f32 %v1797_v28, %v1797_v28 }
 0x638   :  { %v1834_v53 = vadd.f32 %v1833_v33, %v1832_v45  ;;  %v1837_v31 = vsel %vm1745_vm5, %v1811_v42, 0.0  ;;  %v1814_v32 = vmul.f32 %v1798_v39, %v1798_v39  ;;  %v1839_v45 = vsel %vm1745_vm5, %v1812_v51, 0.0 }
 0x639   :  { %4670 = vmatpush3.bf16.msra.mxu1 %v2416_v19  ;;  %v1815_v38 = vmul.f32 %v1799_v36, %v1799_v36  ;;  %v1841_v19 = vsel %vm1745_vm5, %v1813_v44, 0.0 }
 0x63a   :  { %v1836_v9 = vadd.f32 %v1835_v29, %v1834_v53  ;;  %v1843_v8 = vsel %vm1745_vm5, %v1814_v32, 0.0 }
 0x63b   :  { %v1845_v42 = vsel %vm1745_vm5, %v1815_v38, 0.0 }
 0x63c   :  { %v1838_v13 = vadd.f32 %v1837_v31, %v1836_v9  ;;  %4672 = vmatmul.mubr.msk.bf16.vlgmr.msra.gmra.mxu1 %vm137_vm3, %v5962_v56 }
 0x63d   :  { %4675 = vmatprep.mubr.msk.bf16.mxu1 %vm137_vm3, %v5969_v43 }
 0x63e   :  { %v1840_v35 = vadd.f32 %v1839_v45, %v1838_v13 }
 0x640   :  { %v1842_v33 = vadd.f32 %v1841_v19, %v1840_v35 }
 0x642   :  { %v1844_v60 = vadd.f32 %v1843_v8, %v1842_v33 }
 0x644   :  { %v1846_v9 = vadd.f32 %v1845_v42, %v1844_v60  ;;  %4676 = vmatmul.mubr.msk.bf16.gmra.mxu1 %vm137_vm3, %v5976_v40 }
 0x645   :  { %4703 = vmatprep.mubr.msk.bf16.mxu1 %vm137_vm3, %v5953_v18 }
 0x646   :  { %v1847_v51 = vrot.slane %v1846_v9, 4 }
 0x648   :  { %v1848_v56 = vadd.f32 %v1847_v51, %v1846_v9 }
 0x64a   :  { %v1849_v53 = vrot.slane %v1848_v56, 2 }
 0x64c   :  { %v1850_v43 = vadd.f32 %v1849_v53, %v1848_v56  ;;  %v1896_v53 = vld [vmem:[#allocation2 + $0x40] sm:$0xff] }
 0x64e   :  { %v1851_v3 = vrot.slane %v1850_v43, 1 }
 0x650   :  { %v1852_v29 = vadd.f32 %v1851_v3, %v1850_v43  ;;  %v1898_v43 = vld [vmem:[#allocation2 + $0x50] sm:$0xff] }
 0x652   :  { %v1853_v12 = vmul.f32 0.0078125, %v1852_v29 }
 0x654   :  { %v1854_v44 = vadd.f32 1e-05, %v1853_v12  ;;  %v1924_v12 = vpack.c.bf16 %v1898_v43, %v1896_v53 }
 0x656   :  { %4891 = vrsqrt.f32 %v1854_v44 }
 0x663   :  { %v4892_v31 = vpop.eup %4891 }
 0x664   :  { %v1856_v13 = vmul.f32 %v4892_v31, %v6301_v25  ;;  %v1857_v32 = vmul.f32 %v4892_v31, %v6306_v24  ;;  %v1858_v45 = vmul.f32 %v4892_v31, %v6313_v37  ;;  %v1859_v40 = vmul.f32 %v4892_v31, %v6320_v4 }
 0x665   :  { %v1860_v35 = vmul.f32 %v4892_v31, %v6331_v47  ;;  %v1861_v18 = vmul.f32 %v4892_v31, %v6340_v30  ;;  %v1862_v38 = vmul.f32 %v4892_v31, %v6353_v20  ;;  %v1863_v19 = vmul.f32 %v4892_v31, %v6361_v14  ;;  %v1890_v47 = vld [vmem:[#allocation2 + $0x10] sm:$0xff] }
 0x666   :  { %v1864_v33 = vmul.f32 %v4892_v31, %v6373_v58  ;;  %v1865_v8 = vmul.f32 %v4892_v31, %v6381_v34  ;;  %v1866_v25 = vmul.f32 %v4892_v31, %v6393_v50  ;;  %v1867_v60 = vmul.f32 %v4892_v31, %v1795_v46  ;;  %1874 = vst.msk [vmem:[#allocation2 + $0x28] sm:$0xff] %vm1745_vm5, %v1858_v45  ;;  %v1888_v58 = vld [vmem:[#allocation2] sm:$0xff] }
 0x667   :  { %1875 = vst.msk [vmem:[#allocation2 + $0x38] sm:$0xff] %vm1745_vm5, %v1859_v40  ;;  %1872 = vst.msk [vmem:[#allocation2 + $0x8] sm:$0xff] %vm1745_vm5, %v1856_v13  ;;  %v1868_v24 = vmul.f32 %v4892_v31, %v1796_v55  ;;  %v1869_v37 = vmul.f32 %v4892_v31, %v1797_v28  ;;  %v1870_v20 = vmul.f32 %v4892_v31, %v1798_v39  ;;  %v1892_v39 = vld [vmem:[#allocation2 + $0x20] sm:$0xff]  ;;  %v1902_v13 = vld [vmem:[#allocation2 + $0x70] sm:$0xff] }
 0x668   :  { %1873 = vst.msk [vmem:[#allocation2 + $0x18] sm:$0xff] %vm1745_vm5, %v1857_v32  ;;  %v1871_v4 = vmul.f32 %v4892_v31, %v1799_v36  ;;  %1876 = vst.msk [vmem:[#allocation2 + $0x48] sm:$0xff] %vm1745_vm5, %v1860_v35  ;;  %v1920_v55 = vpack.c.bf16 %v1890_v47, %v1888_v58  ;;  %v1894_v36 = vld [vmem:[#allocation2 + $0x30] sm:$0xff]  ;;  %v1900_v31 = vld [vmem:[#allocation2 + $0x60] sm:$0xff] }
 0x669   :  { %1877 = vst.msk [vmem:[#allocation2 + $0x58] sm:$0xff] %vm1745_vm5, %v1861_v18  ;;  %1878 = vst.msk [vmem:[#allocation2 + $0x68] sm:$0xff] %vm1745_vm5, %v1862_v38  ;;  %v1922_v51 = vpack.c.bf16 %v1894_v36, %v1892_v39  ;;  %v1926_v40 = vpack.c.bf16 %v1902_v13, %v1900_v31  ;;  %v1904_v18 = vld [vmem:[#allocation2 + $0x80] sm:$0xff]  ;;  %v1906_v38 = vld [vmem:[#allocation2 + $0x90] sm:$0xff] }
 0x66a   :  { %1879 = vst.msk [vmem:[#allocation2 + $0x78] sm:$0xff] %vm1745_vm5, %v1863_v19  ;;  %1880 = vst.msk [vmem:[#allocation2 + $0x88] sm:$0xff] %vm1745_vm5, %v1864_v33  ;;  %v1912_v47 = vld [vmem:[#allocation2 + $0xc0] sm:$0xff] }
 0x66b   :  { %1881 = vst.msk [vmem:[#allocation2 + $0x98] sm:$0xff] %vm1745_vm5, %v1865_v8  ;;  %1882 = vst.msk [vmem:[#allocation2 + $0xa8] sm:$0xff] %vm1745_vm5, %v1866_v25  ;;  %v1928_v8 = vpack.c.bf16 %v1906_v38, %v1904_v18 }
 0x66c   :  { %1883 = vst.msk [vmem:[#allocation2 + $0xb8] sm:$0xff] %vm1745_vm5, %v1867_v60  ;;  %1884 = vst.msk [vmem:[#allocation2 + $0xc8] sm:$0xff] %vm1745_vm5, %v1868_v24  ;;  %v1908_v60 = vld [vmem:[#allocation2 + $0xa0] sm:$0xff]  ;;  %v1910_v24 = vld [vmem:[#allocation2 + $0xb0] sm:$0xff] }
 0x66d   :  { %1885 = vst.msk [vmem:[#allocation2 + $0xd8] sm:$0xff] %vm1745_vm5, %v1869_v37  ;;  %1886 = vst.msk [vmem:[#allocation2 + $0xe8] sm:$0xff] %vm1745_vm5, %v1870_v20  ;;  %v1893_v34 = vld [vmem:[#allocation2 + $0x28] sm:$0xff] }
 0x66e   :  { %1887 = vst.msk [vmem:[#allocation2 + $0xf8] sm:$0xff] %vm1745_vm5, %v1871_v4  ;;  %v1889_v30 = vld [vmem:[#allocation2 + $0x8] sm:$0xff]  ;;  %v1895_v46 = vld [vmem:[#allocation2 + $0x38] sm:$0xff]  ;;  %v1930_v4 = vpack.c.bf16 %v1910_v24, %v1908_v60 }
 0x66f   :  { %v1891_v14 = vld [vmem:[#allocation2 + $0x18] sm:$0xff]  ;;  %v1923_v28 = vpack.c.bf16 %v1895_v46, %v1893_v34  ;;  %v1897_v42 = vld [vmem:[#allocation2 + $0x48] sm:$0xff] }
 0x670   :  { %v1921_v50 = vpack.c.bf16 %v1891_v14, %v1889_v30  ;;  %v1899_v9 = vld [vmem:[#allocation2 + $0x58] sm:$0xff]  ;;  %v1901_v3 = vld [vmem:[#allocation2 + $0x68] sm:$0xff]  ;;  %v1914_v30 = vld [vmem:[#allocation2 + $0xd0] sm:$0xff] }
 0x671   :  { %v1925_v56 = vpack.c.bf16 %v1899_v9, %v1897_v42  ;;  %v1903_v29 = vld [vmem:[#allocation2 + $0x78] sm:$0xff]  ;;  %v1905_v32 = vld [vmem:[#allocation2 + $0x88] sm:$0xff] }
 0x672   :  { %4184 = vmatprep.mubr.msk.bf16.mxu0 %vm1745_vm5, %v1921_v50  ;;  %v1927_v44 = vpack.c.bf16 %v1903_v29, %v1901_v3  ;;  %v1907_v45 = vld [vmem:[#allocation2 + $0x98] sm:$0xff]  ;;  %v1909_v19 = vld [vmem:[#allocation2 + $0xa8] sm:$0xff]  ;;  %v1932_v50 = vpack.c.bf16 %v1914_v30, %v1912_v47  ;;  %v6483_v29 = vld [vmem:[%s7854_s11] ss:$0 sm:$0xff] }
 0x673   :  { %2027 = vmatmul.mubr.bf16.vlgmr.msra.gmra.mxu0 %v1920_v55  ;;  %v1929_v35 = vpack.c.bf16 %v1907_v45, %v1905_v32  ;;  %v1911_v33 = vld [vmem:[#allocation2 + $0xb8] sm:$0xff]  ;;  %v1913_v37 = vld [vmem:[#allocation2 + $0xc8] sm:$0xff]  ;;  %v1916_v55 = vld [vmem:[#allocation2 + $0xe0] sm:$0xff] }
 0x674   :  { %4185 = vmatprep.mubr.msk.bf16.mxu0 %vm1745_vm5, %v1923_v28  ;;  %v1931_v25 = vpack.c.bf16 %v1911_v33, %v1909_v19  ;;  %v1915_v20 = vld [vmem:[#allocation2 + $0xd8] sm:$0xff]  ;;  %v1917_v14 = vld [vmem:[#allocation2 + $0xe8] sm:$0xff]  ;;  %v1918_v28 = vld [vmem:[#allocation2 + $0xf0] sm:$0xff] }
 0x675   :  { %v1933_v58 = vpack.c.bf16 %v1915_v20, %v1913_v37  ;;  %v1919_v34 = vld [vmem:[#allocation2 + $0xf8] sm:$0xff]  ;;  %v1934_v39 = vpack.c.bf16 %v1918_v28, %v1916_v55 }
 0x676   :  { %v1935_v46 = vpack.c.bf16 %v1919_v34, %v1917_v14 }
 0x67b   :  { %2035 = vmatmul.mubr.bf16.gmra.mxu0 %v1922_v51 }
 0x67c   :  { %4186 = vmatprep.mubr.msk.bf16.mxu0 %vm1745_vm5, %v1925_v56 }
 0x683   :  { %2043 = vmatmul.mubr.bf16.gmra.mxu0 %v1924_v12 }
 0x684   :  { %4187 = vmatprep.mubr.msk.bf16.mxu0 %vm1745_vm5, %v1927_v44 }
 0x68b   :  { %2051 = vmatmul.mubr.bf16.gmra.mxu0 %v1926_v40 }
 0x68c   :  { %4188 = vmatprep.mubr.msk.bf16.mxu0 %vm1745_vm5, %v1929_v35 }
 0x693   :  { %2059 = vmatmul.mubr.bf16.gmra.mxu0 %v1928_v8 }
 0x694   :  { %4189 = vmatprep.mubr.msk.bf16.mxu0 %vm1745_vm5, %v1931_v25 }
 0x69b   :  { %2067 = vmatmul.mubr.bf16.gmra.mxu0 %v1930_v4 }
 0x69c   :  { %4190 = vmatprep.mubr.msk.bf16.mxu0 %vm1745_vm5, %v1933_v58 }
 0x6a3   :  { %2075 = vmatmul.mubr.bf16.gmra.mxu0 %v1932_v50 }
 0x6a4   :  { %4191 = vmatprep.mubr.msk.bf16.mxu0 %vm1745_vm5, %v1935_v46 }
 0x6ab   :  { %2083 = vmatmul.mubr.bf16.gmra.mxu0 %v1934_v39 }
 0x6ac   :  { %4687 = vmatprep.mubr.msk.bf16.mxu0 %vm137_vm3, %v6081_v7 }
 0x6ea   :  { %v4657_v36 = vpop.f32.mrf.mxu1 }
 0x6eb   :  { %v2463_v42 = vadd.f32 %v4657_v36, %v6249_v21 }
 0x6ec   :  { %v2454_v9 = vpop.f32.mrf.mxu1 }
 0x6ed   :  { %v2455_v51 = vadd.f32 %v2454_v9, %v6256_v41  ;;  %v2552_v53 = vmul.f32 %v2463_v42, %v5296_v62 }
 0x6ee   :  { %v4658_v56 = vpop.f32.mrf.mxu1 }
 0x6ef   :  { %v2550_v43 = vmul.f32 %v2455_v51, %v5294_v61  ;;  %v2466_v3 = vadd.f32 %v4658_v56, %v6262_v22  ;;  %v6491_v44 = vadd.f32 %v6483_v29, %v2552_v53 }
 0x6f0   :  { %v2457_v12 = vpop.f32.mrf.mxu1 }
 0x6f1   :  { %v6486_v7 = vadd.f32 %v6483_v29, %v2550_v43  ;;  %v2553_v21 = vmul.f32 %v2466_v3, %v5300_v1  ;;  %v2458_v41 = vadd.f32 %v2457_v12, %v6267_v57  ;;  %v2590_v57 = vmax.f32 %v6491_v44, 0.0 }
 0x6f2   :  { %v4661_v13 = vpop.f32.mrf.mxu1 }
 0x6f3   :  { %v2551_v31 = vmul.f32 %v2458_v41, %v5298_v0  ;;  %v2588_v22 = vmax.f32 %v6486_v7, 0.0  ;;  %v6496_v32 = vadd.f32 %v6483_v29, %v2553_v21  ;;  %v2479_v40 = vadd.f32 %v4661_v13, %v6272_v16 }
 0x6f4   :  { %v2470_v35 = vpop.f32.mrf.mxu1  ;;  %v2607_v4 = vsel %vm137_vm3, %v2590_v57, 0.0 }
 0x6f5   :  { %v6499_v45 = vadd.f32 %v6483_v29, %v2551_v31  ;;  %v2471_v18 = vadd.f32 %v2470_v35, %v6274_v23  ;;  %v2604_v33 = vsel %vm137_vm3, %v2588_v22, 0.0  ;;  %v2591_v25 = vmax.f32 %v6496_v32, 0.0 }
 0x6f6   :  { %v4662_v19 = vpop.f32.mrf.mxu1  ;;  %v2556_v60 = vmul.f32 %v2479_v40, %v5308_v11 }
 0x6f7   :  { %v2589_v38 = vmax.f32 %v6499_v45, 0.0  ;;  %v2554_v8 = vmul.f32 %v2471_v18, %v5302_v2  ;;  %v2482_v23 = vadd.f32 %v4662_v19, %v6276_v59  ;;  %v2609_v14 = vsel %vm137_vm3, %v2591_v25, 0.0 }
 0x6f8   :  { %v2473_v24 = vpop.f32.mrf.mxu1  ;;  %v6527_v59 = vadd.f32 %v6483_v29, %v2556_v60 }
 0x6f9   :  { %v2605_v16 = vsel %vm137_vm3, %v2589_v38, 0.0  ;;  %v6516_v20 = vadd.f32 %v6483_v29, %v2554_v8  ;;  %v2474_v58 = vadd.f32 %v2473_v24, %v6280_v15  ;;  %v2557_v34 = vmul.f32 %v2482_v23, %v5318_v27  ;;  %v7998_v23 = vld [vmem:[#allocation12_spill] sm:$0xff] }
 0x6fa   :  { %v2606_v37 = vadd.f32 %v2605_v16, %v2604_v33  ;;  %v2594_v39 = vmax.f32 %v6527_v59, 0.0 }
 0x6fb   :  { %v2592_v30 = vmax.f32 %v6516_v20, 0.0  ;;  %v2555_v50 = vmul.f32 %v2474_v58, %v5304_v6  ;;  %v6539_v36 = vadd.f32 %v6483_v29, %v2557_v34  ;;  %v6669_v20 = vld [vmem:[%s7855_s9] ss:$0 sm:$0xff] }
 0x6fc   :  { %v2608_v47 = vadd.f32 %v2607_v4, %v2606_v37  ;;  %v4673_v9 = vpop.f32.mrf.mxu1  ;;  %v2615_v12 = vsel %vm137_vm3, %v2594_v39, 0.0 }
 0x6fd   :  { %v2611_v55 = vsel %vm137_vm3, %v2592_v30, 0.0  ;;  %v6535_v15 = vadd.f32 %v6483_v29, %v2555_v50  ;;  %v2528_v56 = vadd.f32 %v4673_v9, %v6284_v52  ;;  %v2595_v21 = vmax.f32 %v6539_v36, 0.0 }
 0x6fe   :  { %v2610_v46 = vadd.f32 %v2609_v14, %v2608_v47  ;;  %v2519_v53 = vpop.f32.mrf.mxu1 }
 0x6ff   :  { %v2593_v42 = vmax.f32 %v6535_v15, 0.0  ;;  %v2520_v3 = vadd.f32 %v2519_v53, %v6286_v63  ;;  %v2560_v35 = vmul.f32 %v2528_v56, %v5359_v26  ;;  %v2617_v63 = vsel %vm137_vm3, %v2595_v21, 0.0 }
 0x700   :  { %v2612_v28 = vadd.f32 %v2611_v55, %v2610_v46  ;;  %v4674_v41 = vpop.f32.mrf.mxu1  ;;  %v7999_v46 = vld [vmem:[#allocation13_spill] sm:$0xff] }
 0x701   :  { %v2613_v51 = vsel %vm137_vm3, %v2593_v42, 0.0  ;;  %v2558_v13 = vmul.f32 %v2520_v3, %v5329_v48  ;;  %v2531_v40 = vadd.f32 %v4674_v41, %v6290_v10  ;;  %v6564_v10 = vadd.f32 %v6483_v29, %v2560_v35  ;;  %v8002_v3 = vld [vmem:[#allocation5_spill] sm:$0xff] }
 0x702   :  { %v2614_v43 = vadd.f32 %v2613_v51, %v2612_v28  ;;  %v2522_v18 = vpop.f32.mrf.mxu1  ;;  %v8000_v28 = vld [vmem:[#allocation4_spill] sm:$0xff]  ;;  %v8001_v51 = vld [vmem:[#allocation15_spill] sm:$0xff] }
 0x703   :  { %v6555_v52 = vadd.f32 %v6483_v29, %v2558_v13  ;;  %v2561_v19 = vmul.f32 %v2531_v40, %v5370_v54  ;;  %v2523_v33 = vadd.f32 %v2522_v18, %v6294_v49  ;;  %v8003_v13 = vld [vmem:[#allocation16_spill] sm:$0xff] }
 0x704   :  { %v2616_v31 = vadd.f32 %v2615_v12, %v2614_v43  ;;  %v4677_v8 = vpop.f32.mrf.mxu1 }
 0x705   :  { %v2596_v16 = vmax.f32 %v6555_v52, 0.0  ;;  %v2559_v24 = vmul.f32 %v2523_v33, %v7998_v23  ;;  %v2544_v37 = vadd.f32 %v4677_v8, %v6308_v5  ;;  %v6573_v49 = vadd.f32 %v6483_v29, %v2561_v19  ;;  %v8004_v33 = vld [vmem:[#allocation14_spill] sm:$0xff] }
 0x706   :  { %v2618_v60 = vadd.f32 %v2617_v63, %v2616_v31  ;;  %v2535_v4 = vpop.f32.mrf.mxu1  ;;  %v2598_v5 = vmax.f32 %v6564_v10, 0.0 }
 0x707   :  { %v2536_v58 = vadd.f32 %v2535_v4, %v6315_v17  ;;  %v2619_v47 = vsel %vm137_vm3, %v2596_v16, 0.0  ;;  %v6576_v14 = vadd.f32 %v6483_v29, %v2559_v24  ;;  %v2564_v56 = vmul.f32 %v2544_v37, %v8001_v51 }
 0x708   :  { %v4678_v34 = vpop.f32.mrf.mxu1  ;;  %v2620_v50 = vadd.f32 %v2619_v47, %v2618_v60  ;;  %v2599_v41 = vmax.f32 %v6573_v49, 0.0  ;;  %v2623_v18 = vsel %vm137_vm3, %v2598_v5, 0.0 }
 0x709   :  { %v2562_v55 = vmul.f32 %v2536_v58, %v7999_v46  ;;  %v2547_v9 = vadd.f32 %v4678_v34, %v8000_v28  ;;  %v2597_v17 = vmax.f32 %v6576_v14, 0.0  ;;  %v6596_v63 = vadd.f32 %v6483_v29, %v2564_v56 }
 0x70a   :  { %v2538_v53 = vpop.f32.mrf.mxu1  ;;  %v2625_v24 = vsel %vm137_vm3, %v2599_v41, 0.0 }
 0x70b   :  { %v6584_v43 = vadd.f32 %v6483_v29, %v2562_v55  ;;  %v2539_v12 = vadd.f32 %v2538_v53, %v8002_v3  ;;  %v2621_v31 = vsel %vm137_vm3, %v2597_v17, 0.0  ;;  %v2565_v40 = vmul.f32 %v2547_v9, %v8003_v13 }
 0x70c   :  { %v2622_v35 = vadd.f32 %v2621_v31, %v2620_v50  ;;  %v2602_v47 = vmax.f32 %v6596_v63, 0.0 }
 0x70d   :  { %v2600_v19 = vmax.f32 %v6584_v43, 0.0  ;;  %v2563_v8 = vmul.f32 %v2539_v12, %v8004_v33  ;;  %v6604_v37 = vadd.f32 %v6483_v29, %v2565_v40 }
 0x70e   :  { %v2624_v60 = vadd.f32 %v2623_v18, %v2622_v35 }
 0x70f   :  { %v6607_v4 = vadd.f32 %v6483_v29, %v2563_v8  ;;  %v2627_v34 = vsel %vm137_vm3, %v2600_v19, 0.0  ;;  %v2603_v28 = vmax.f32 %v6604_v37, 0.0  ;;  %v2631_v29 = vsel %vm137_vm3, %v2602_v47, 0.0 }
 0x710   :  { %v2626_v58 = vadd.f32 %v2625_v24, %v2624_v60 }
 0x711   :  { %v2601_v50 = vmax.f32 %v6607_v4, 0.0  ;;  %v2633_v3 = vsel %vm137_vm3, %v2603_v28, 0.0 }
 0x712   :  { %v2628_v55 = vadd.f32 %v2627_v34, %v2626_v58 }
 0x713   :  { %v2629_v9 = vsel %vm137_vm3, %v2601_v50, 0.0 }
 0x714   :  { %v2630_v56 = vadd.f32 %v2629_v9, %v2628_v55 }
 0x716   :  { %v2632_v53 = vadd.f32 %v2631_v29, %v2630_v56 }
 0x718   :  { %v2634_v12 = vadd.f32 %v2633_v3, %v2632_v53 }
 0x71a   :  { %v2635_v31 = vrot.slane %v2634_v12, 4 }
 0x71c   :  { %v2636_v40 = vadd.f32 %v2635_v31, %v2634_v12 }
 0x71e   :  { %v2637_v35 = vrot.slane %v2636_v40, 2 }
 0x720   :  { %v2638_v18 = vadd.f32 %v2637_v35, %v2636_v40 }
 0x722   :  { %v2639_v8 = vrot.slane %v2638_v18, 1 }
 0x724   :  { %v2640_v60 = vadd.f32 %v2639_v8, %v2638_v18 }
 0x726   :  { %v6624_v24 = vmul.f32 0.0078125, %v2640_v60 }
 0x728   :  { %v6629_v58 = vsub.f32 %v2588_v22, %v6624_v24  ;;  %v6634_v34 = vsub.f32 %v2589_v38, %v6624_v24  ;;  %v6639_v55 = vsub.f32 %v2590_v57, %v6624_v24  ;;  %v6644_v9 = vsub.f32 %v2591_v25, %v6624_v24 }
 0x729   :  { %v6653_v45 = vsub.f32 %v2592_v30, %v6624_v24  ;;  %v6660_v32 = vsub.f32 %v2593_v42, %v6624_v24  ;;  %v6674_v15 = vsub.f32 %v2594_v39, %v6624_v24  ;;  %v6682_v3 = vsub.f32 %v2595_v21, %v6624_v24 }
 0x72a   :  { %v2658_v7 = vmul.f32 %v6629_v58, %v6629_v58  ;;  %v2659_v22 = vmul.f32 %v6634_v34, %v6634_v34  ;;  %v2660_v44 = vmul.f32 %v6639_v55, %v6639_v55  ;;  %v2661_v38 = vmul.f32 %v6644_v9, %v6644_v9 }
 0x72b   :  { %v2662_v42 = vmul.f32 %v6653_v45, %v6653_v45  ;;  %v2663_v40 = vmul.f32 %v6660_v32, %v6660_v32  ;;  %v6696_v18 = vsub.f32 %v2596_v16, %v6624_v24  ;;  %v2664_v8 = vmul.f32 %v6674_v15, %v6674_v15 }
 0x72c   :  { %v2674_v25 = vsel %vm137_vm3, %v2658_v7, 0.0  ;;  %v2675_v56 = vsel %vm137_vm3, %v2659_v22, 0.0  ;;  %v2677_v53 = vsel %vm137_vm3, %v2660_v44, 0.0  ;;  %v2679_v35 = vsel %vm137_vm3, %v2661_v38, 0.0 }
 0x72d   :  { %v2676_v29 = vadd.f32 %v2675_v56, %v2674_v25  ;;  %v2681_v60 = vsel %vm137_vm3, %v2662_v42, 0.0  ;;  %v6706_v44 = vsub.f32 %v2597_v17, %v6624_v24  ;;  %v2665_v52 = vmul.f32 %v6682_v3, %v6682_v3 }
 0x72e   :  { %v2683_v38 = vsel %vm137_vm3, %v2663_v40, 0.0  ;;  %v2666_v42 = vmul.f32 %v6696_v18, %v6696_v18  ;;  %v6746_v49 = vsub.f32 %v2600_v19, %v6624_v24  ;;  %v6769_v4 = vsub.f32 %v2602_v47, %v6624_v24 }
 0x72f   :  { %v2678_v12 = vadd.f32 %v2677_v53, %v2676_v29  ;;  %v2685_v53 = vsel %vm137_vm3, %v2664_v8, 0.0  ;;  %v2687_v10 = vsel %vm137_vm3, %v2665_v52, 0.0 }
 0x730   :  { %v2689_v52 = vsel %vm137_vm3, %v2666_v42, 0.0  ;;  %v2672_v37 = vmul.f32 %v6769_v4, %v6769_v4 }
 0x731   :  { %v2680_v36 = vadd.f32 %v2679_v35, %v2678_v12 }
 0x733   :  { %v2028_v57 = vpop.f32.mrf.mxu0  ;;  %v2682_v16 = vadd.f32 %v2681_v60, %v2680_v36  ;;  %v2667_v36 = vmul.f32 %v6706_v44, %v6706_v44 }
 0x734   :  { %v6688_v59 = vadd.f32 %v6669_v20, %v2028_v57 }
 0x735   :  { %v2030_v30 = vpop.f32.mrf.mxu0  ;;  %v2684_v17 = vadd.f32 %v2683_v38, %v2682_v16  ;;  %v2691_v43 = vsel %vm137_vm3, %v2667_v36, 0.0 }
 0x736   :  { %v2091_v7 = vmax.f32 %v6688_v59, 0.0  ;;  %v6723_v30 = vsub.f32 %v2598_v5, %v6624_v24 }
 0x737   :  { %v2031_v31 = vpop.f32.mrf.mxu0  ;;  %v2686_v40 = vadd.f32 %v2685_v53, %v2684_v17 }
 0x738   :  { %v6691_v39 = vadd.f32 %v6669_v20, %v2031_v31  ;;  %v2107_v25 = vsel %vm1745_vm5, %v2091_v7, -inf  ;;  %v6732_v31 = vsub.f32 %v2599_v41, %v6624_v24  ;;  %v2668_v41 = vmul.f32 %v6723_v30, %v6723_v30 }
 0x739   :  { %v2033_v21 = vpop.f32.mrf.mxu0  ;;  %2108 = vmax.xlane.f32.xlu0 %v2107_v25  ;;  %v2688_v8 = vadd.f32 %v2687_v10, %v2686_v40 }
 0x73a   :  { %v2092_v22 = vmax.f32 %v6691_v39, 0.0  ;;  %v2693_v53 = vsel %vm137_vm3, %v2668_v41, 0.0 }
 0x73b   :  { %v2036_v57 = vpop.f32.mrf.mxu0  ;;  %v2690_v38 = vadd.f32 %v2689_v52, %v2688_v8 }
 0x73c   :  { %v6715_v56 = vadd.f32 %v6669_v20, %v2036_v57  ;;  %v2110_v14 = vsel %vm1745_vm5, %v2092_v22, -inf  ;;  %v6755_v57 = vsub.f32 %v2601_v50, %v6624_v24  ;;  %v2670_v50 = vmul.f32 %v6746_v49, %v6746_v49 }
 0x73d   :  { %v2038_v29 = vpop.f32.mrf.mxu0  ;;  %2111 = vmax.xlane.f32.xlu1 %v2110_v14  ;;  %v2669_v14 = vmul.f32 %v6732_v31, %v6732_v31 }
 0x73e   :  { %v2093_v12 = vmax.f32 %v6715_v56, 0.0  ;;  %v2692_v29 = vadd.f32 %v2691_v43, %v2690_v38 }
 0x73f   :  { %v2039_v35 = vpop.f32.mrf.mxu0  ;;  %v2695_v63 = vsel %vm137_vm3, %v2669_v14, 0.0 }
 0x740   :  { %v6738_v5 = vadd.f32 %v6669_v20, %v2039_v35  ;;  %v2113_v21 = vsel %vm1745_vm5, %v2093_v12, -inf  ;;  %v6778_v35 = vsub.f32 %v2603_v28, %v6624_v24  ;;  %v2694_v36 = vadd.f32 %v2693_v53, %v2692_v29 }
 0x741   :  { %v2041_v60 = vpop.f32.mrf.mxu0  ;;  %2114 = vmax.xlane.f32.xlu0 %v2113_v21  ;;  %v2671_v21 = vmul.f32 %v6755_v57, %v6755_v57  ;;  %v2697_v28 = vsel %vm137_vm3, %v2670_v50, 0.0  ;;  %v2701_v50 = vsel %vm137_vm3, %v2672_v37, 0.0 }
 0x742   :  { %v2094_v16 = vmax.f32 %v6738_v5, 0.0  ;;  %v2696_v60 = vadd.f32 %v2695_v63, %v2694_v36 }
 0x743   :  { %v2044_v25 = vpop.f32.mrf.mxu0  ;;  %v2699_v14 = vsel %vm137_vm3, %v2671_v21, 0.0 }
 0x744   :  { %v6761_v19 = vadd.f32 %v6669_v20, %v2044_v25  ;;  %v2116_v17 = vsel %vm1745_vm5, %v2094_v16, -inf  ;;  %v2698_v52 = vadd.f32 %v2697_v28, %v2696_v60  ;;  %v2673_v25 = vmul.f32 %v6778_v35, %v6778_v35 }
 0x745   :  { %v2046_v42 = vpop.f32.mrf.mxu0  ;;  %2117 = vmax.xlane.f32.xlu0 %v2116_v17 }
 0x746   :  { %v7920_v40 = vmax.f32 %v6761_v19, 0.0  ;;  %v2700_v29 = vadd.f32 %v2699_v14, %v2698_v52  ;;  %v2703_v63 = vsel %vm137_vm3, %v2673_v25, 0.0 }
 0x747   :  { %v2047_v10 = vpop.f32.mrf.mxu0 }
 0x748   :  { %v6784_v47 = vadd.f32 %v6669_v20, %v2047_v10  ;;  %v2119_v8 = vsel %vm1745_vm5, %v7920_v40, -inf  ;;  %v2702_v36 = vadd.f32 %v2701_v50, %v2700_v29 }
 0x749   :  { %v2049_v41 = vpop.f32.mrf.mxu0  ;;  %2120 = vmax.xlane.f32.xlu1 %v2119_v8 }
 0x74a   :  { %v7918_v24 = vmax.f32 %v6784_v47, 0.0  ;;  %v2704_v60 = vadd.f32 %v2703_v63, %v2702_v36 }
 0x74b   :  { %v2052_v38 = vpop.f32.mrf.mxu0 }
 0x74c   :  { %v6797_v43 = vadd.f32 %v6669_v20, %v2052_v38  ;;  %v2122_v17 = vsel %vm1745_vm5, %v7918_v24, -inf  ;;  %v2705_v52 = vrot.slane %v2704_v60, 4 }
 0x74d   :  { %v2054_v42 = vpop.f32.mrf.mxu0  ;;  %2123 = vmax.xlane.f32.xlu0 %v2122_v17 }
 0x74e   :  { %v7913_v53 = vmax.f32 %v6797_v43, 0.0  ;;  %v2706_v14 = vadd.f32 %v2705_v52, %v2704_v60 }
 0x74f   :  { %v2055_v10 = vpop.f32.mrf.mxu0 }
 0x750   :  { %v6806_v21 = vadd.f32 %v6669_v20, %v2055_v10  ;;  %v2125_v8 = vsel %vm1745_vm5, %v7913_v53, -inf  ;;  %v2707_v42 = vrot.slane %v2706_v14, 2 }
 0x751   :  { %v2057_v41 = vpop.f32.mrf.mxu0  ;;  %2126 = vmax.xlane.f32.xlu1 %v2125_v8 }
 0x752   :  { %v7911_v28 = vmax.f32 %v6806_v21, 0.0  ;;  %v2708_v63 = vadd.f32 %v2707_v42, %v2706_v14 }
 0x753   :  { %v2060_v37 = vpop.f32.mrf.mxu0 }
 0x754   :  { %v6813_v38 = vadd.f32 %v6669_v20, %v2060_v37  ;;  %v2128_v25 = vsel %vm1745_vm5, %v7911_v28, -inf  ;;  %v2709_v37 = vrot.slane %v2708_v63, 1 }
 0x755   :  { %v2062_v17 = vpop.f32.mrf.mxu0  ;;  %2129 = vmax.xlane.f32.xlu0 %v2128_v25 }
 0x756   :  { %v7912_v29 = vmax.f32 %v6813_v38, 0.0  ;;  %v2710_v17 = vadd.f32 %v2709_v37, %v2708_v63 }
 0x757   :  { %v2063_v50 = vpop.f32.mrf.mxu0 }
 0x758   :  { %v6820_v36 = vadd.f32 %v6669_v20, %v2063_v50  ;;  %v2131_v10 = vsel %vm1745_vm5, %v7912_v29, -inf  ;;  %v2711_v29 = vmul.f32 0.0078125, %v2710_v17 }
 0x759   :  { %v2065_v8 = vpop.f32.mrf.mxu0  ;;  %2132 = vmax.xlane.f32.xlu1 %v2131_v10 }
 0x75a   :  { %v7916_v41 = vmax.f32 %v6820_v36, 0.0  ;;  %v2712_v8 = vadd.f32 1e-05, %v2711_v29 }
 0x75b   :  { %v2068_v60 = vpop.f32.mrf.mxu0 }
 0x75c   :  { %v6827_v52 = vadd.f32 %v6669_v20, %v2068_v60  ;;  %v2134_v25 = vsel %vm1745_vm5, %v7916_v41, -inf  ;;  %4893 = vrsqrt.f32 %v2712_v8 }
 0x75d   :  { %v2070_v50 = vpop.f32.mrf.mxu0  ;;  %2135 = vmax.xlane.f32.xlu0 %v2134_v25 }
 0x75e   :  { %v7914_v28 = vmax.f32 %v6827_v52, 0.0 }
 0x75f   :  { %v2071_v14 = vpop.f32.mrf.mxu0 }
 0x760   :  { %v6834_v42 = vadd.f32 %v6669_v20, %v2071_v14  ;;  %v2137_v10 = vsel %vm1745_vm5, %v7914_v28, -inf }
 0x761   :  { %v2073_v60 = vpop.f32.mrf.mxu0  ;;  %2138 = vmax.xlane.f32.xlu1 %v2137_v10 }
 0x762   :  { %v7915_v53 = vmax.f32 %v6834_v42, 0.0 }
 0x763   :  { %v2076_v63 = vpop.f32.mrf.mxu0 }
 0x764   :  { %v6841_v37 = vadd.f32 %v6669_v20, %v2076_v63  ;;  %v2140_v25 = vsel %vm1745_vm5, %v7915_v53, -inf }
 0x765   :  { %v2078_v17 = vpop.f32.mrf.mxu0  ;;  %2141 = vmax.xlane.f32.xlu0 %v2140_v25 }
 0x766   :  { %v7917_v50 = vmax.f32 %v6841_v37, 0.0 }
 0x767   :  { %v2079_v14 = vpop.f32.mrf.mxu0 }
 0x768   :  { %v6848_v29 = vadd.f32 %v6669_v20, %v2079_v14  ;;  %v2143_v10 = vsel %vm1745_vm5, %v7917_v50, -inf }
 0x769   :  { %v2081_v8 = vpop.f32.mrf.mxu0  ;;  %2144 = vmax.xlane.f32.xlu1 %v2143_v10  ;;  %v4894_v41 = vpop.eup %4893 }
 0x76a   :  { %v7919_v60 = vmax.f32 %v6848_v29, 0.0  ;;  %v2727_v8 = vmul.f32 %v4894_v41, %v6755_v57  ;;  %v2721_v24 = vmul.f32 %v4894_v41, %v6682_v3  ;;  %v2716_v3 = vmul.f32 %v4894_v41, %v6639_v55 }
 0x76b   :  { %v2084_v63 = vpop.f32.mrf.mxu0  ;;  %v2717_v57 = vmul.f32 %v4894_v41, %v6644_v9  ;;  %v2714_v9 = vmul.f32 %v4894_v41, %v6629_v58  ;;  %v2723_v58 = vmul.f32 %v4894_v41, %v6706_v44 }
 0x76c   :  { %v6855_v28 = vadd.f32 %v6669_v20, %v2084_v63  ;;  %v2146_v25 = vsel %vm1745_vm5, %v7919_v60, -inf  ;;  %v2720_v63 = vmul.f32 %v4894_v41, %v6674_v15  ;;  %v2729_v60 = vmul.f32 %v4894_v41, %v6778_v35  ;;  %2751 = vst.msk [vmem:[#allocation3 + $0xd0] sm:$0xff] %vm137_vm3, %v2727_v8  ;;  %2745 = vst.msk [vmem:[#allocation3 + $0x70] sm:$0xff] %vm137_vm3, %v2721_v24 }
 0x76d   :  { %v2086_v17 = vpop.f32.mrf.mxu0  ;;  %2147 = vmax.xlane.f32.xlu0 %v2146_v25  ;;  %v2726_v15 = vmul.f32 %v4894_v41, %v6746_v49  ;;  %2740 = vst.msk [vmem:[#allocation3 + $0x20] sm:$0xff] %vm137_vm3, %v2716_v3  ;;  %2741 = vst.msk [vmem:[#allocation3 + $0x30] sm:$0xff] %vm137_vm3, %v2717_v57  ;;  %v2722_v49 = vmul.f32 %v4894_v41, %v6696_v18 }
 0x76e   :  { %v7921_v14 = vmax.f32 %v6855_v28, 0.0  ;;  %v2728_v17 = vmul.f32 %v4894_v41, %v6769_v4  ;;  %2744 = vst.msk [vmem:[#allocation3 + $0x60] sm:$0xff] %vm137_vm3, %v2720_v63  ;;  %2753 = vst.msk [vmem:[#allocation3 + $0xf0] sm:$0xff] %vm137_vm3, %v2729_v60 }
 0x76f   :  { %v2087_v53 = vpop.f32.mrf.mxu0  ;;  %2750 = vst.msk [vmem:[#allocation3 + $0xc0] sm:$0xff] %vm137_vm3, %v2726_v15  ;;  %2738 = vst.msk [vmem:[#allocation3] sm:$0xff] %vm137_vm3, %v2714_v9  ;;  %v6928_v44 = vpack.c.bf16 %v2723_v58, %v2722_v49 }
 0x770   :  { %v6862_v50 = vadd.f32 %v6669_v20, %v2087_v53  ;;  %v2149_v10 = vsel %vm1745_vm5, %v7921_v14, -inf  ;;  %v2718_v20 = vmul.f32 %v4894_v41, %v6653_v45  ;;  %v2719_v53 = vmul.f32 %v4894_v41, %v6660_v32  ;;  %2752 = vst.msk [vmem:[#allocation3 + $0xe0] sm:$0xff] %vm137_vm3, %v2728_v17  ;;  %2746 = vst.msk [vmem:[#allocation3 + $0x80] sm:$0xff] %vm137_vm3, %v2722_v49  ;;  %v2297_v49 = vld [vmem:[%s7856_s12 + $0x20] sm:$0xff] }
 0x771   :  { %v2089_v25 = vpop.f32.mrf.mxu0  ;;  %2150 = vmax.xlane.f32.xlu1 %v2149_v10  ;;  %v6876_v14 = vpack.c.bf16 %v2721_v24, %v2720_v63  ;;  %v6884_v4 = vpack.c.bf16 %v2729_v60, %v2728_v17  ;;  %v2724_v45 = vmul.f32 %v4894_v41, %v6723_v30  ;;  %v2725_v32 = vmul.f32 %v4894_v41, %v6732_v31  ;;  %v6945_v60 = vld [vmem:[%s7846_s1 + $0x28] sm:$0xff]   ;;  %v6952_v10 = vld [vmem:[%s7846_s1 + $0x10] sm:$0xff]   ;;  %v6966_v63 = vld [vmem:[%s7846_s1 + $0x18] sm:$0xff]  }
 0x772   :  { %v2106_v40 = vmax.f32 %v6862_v50, 0.0  ;;  %2742 = vst.msk [vmem:[#allocation3 + $0x40] sm:$0xff] %vm137_vm3, %v2718_v20  ;;  %2743 = vst.msk [vmem:[#allocation3 + $0x50] sm:$0xff] %vm137_vm3, %v2719_v53  ;;  %v6892_v35 = vpack.c.bf16 %v2719_v53, %v2718_v20  ;;  %v6903_v30 = vpack.c.bf16 %v2727_v8, %v2726_v15  ;;  %v2715_v31 = vmul.f32 %v4894_v41, %v6634_v34  ;;  %v6938_v41 = vld [vmem:[%s7846_s1 + $0x8] sm:$0xff]   ;;  %v6959_v8 = vld [vmem:[%s7846_s1 + $0x30] sm:$0xff]  }
 0x773   :  { %4679 = vmatprep.subr.bf16.mxu0 %v6876_v14  ;;  %4695 = vmatprep.subr.bf16.mxu1 %v6884_v4  ;;  %2748 = vst.msk [vmem:[#allocation3 + $0xa0] sm:$0xff] %vm137_vm3, %v2724_v45  ;;  %2749 = vst.msk [vmem:[#allocation3 + $0xb0] sm:$0xff] %vm137_vm3, %v2725_v32  ;;  %v6916_v24 = vpack.c.bf16 %v2717_v57, %v2716_v3  ;;  %v6920_v34 = vpack.c.bf16 %v2725_v32, %v2724_v45  ;;  %v6973_v17 = vld [vmem:[%s7846_s1 + $0x38] sm:$0xff]   ;;  %v4977_v25 = vld [vmem:[%s7846_s1] sm:$0xff]  }
 0x774   :  { %v2152_v55 = vsel %vm1745_vm5, %v2106_v40, -inf  ;;  %4680 = vmatpush3.bf16.msra.mxu0 %v6876_v14  ;;  %4696 = vmatpush3.bf16.msra.mxu1 %v6884_v4  ;;  %2739 = vst.msk [vmem:[#allocation3 + $0x10] sm:$0xff] %vm137_vm3, %v2715_v31  ;;  %2747 = vst.msk [vmem:[#allocation3 + $0x90] sm:$0xff] %vm137_vm3, %v2723_v58  ;;  %v6925_v18 = vpack.c.bf16 %v2715_v31, %v2714_v9  ;;  %v2299_v20 = vld [vmem:[%s7856_s12 + $0x30] sm:$0xff]  ;;  %v2300_v53 = vld [vmem:[%s7856_s12 + $0x38] sm:$0xff] }
 0x775   :  { %4681 = vmatprep.subr.bf16.mxu0 %v6892_v35  ;;  %4697 = vmatprep.subr.bf16.mxu1 %v6903_v30  ;;  %v2757_v15 = vpack.c.bf16 %v2300_v53, %v2299_v20  ;;  %v2298_v58 = vld [vmem:[%s7856_s12 + $0x28] sm:$0xff]  ;;  %v2296_v20 = vld [vmem:[%s7856_s12 + $0x18] sm:$0xff] }
 0x776   :  { %2153 = vmax.xlane.f32.xlu0 %v2152_v55  ;;  %v2756_v59 = vpack.c.bf16 %v2298_v58, %v2297_v49 }
 0x778   :  { %4682 = vmatpush3.bf16.msra.mxu0 %v6892_v35  ;;  %4698 = vmatpush3.bf16.msra.mxu1 %v6903_v30 }
 0x779   :  { %4683 = vmatprep.subr.bf16.mxu0 %v6916_v24  ;;  %4699 = vmatprep.subr.bf16.mxu1 %v6920_v34 }
 0x77c   :  { %4684 = vmatpush3.bf16.msra.mxu0 %v6916_v24  ;;  %4700 = vmatpush3.bf16.msra.mxu1 %v6920_v34 }
 0x77d   :  { %4685 = vmatprep.subr.bf16.mxu0 %v6925_v18  ;;  %4701 = vmatprep.subr.bf16.mxu1 %v6928_v44 }
 0x780   :  { %4686 = vmatpush3.bf16.msra.mxu0 %v6925_v18  ;;  %4702 = vmatpush3.bf16.msra.mxu1 %v6928_v44 }
 0x781   :  { %4711 = vmatprep.subr.bf16.mxu0 %v2757_v15 }
 0x783   :  { %4688 = vmatmul.mubr.msk.bf16.vlgmr.msra.gmra.mxu0 %vm137_vm3, %v6938_v41  ;;  %4704 = vmatmul.mubr.msk.bf16.vlgmr.msra.gmra.mxu1 %vm137_vm3, %v6945_v60 }
 0x784   :  { %4691 = vmatprep.mubr.msk.bf16.mxu0 %vm137_vm3, %v6952_v10  ;;  %4707 = vmatprep.mubr.msk.bf16.mxu1 %vm137_vm3, %v6959_v8 }
 0x785   :  { %4712 = vmatpush3.bf16.msra.mxu0 %v2757_v15 }
 0x786   :  { %4713 = vmatprep.subr.bf16.mxu0 %v2756_v59 }
 0x789   :  { %4714 = vmatpush3.bf16.msra.mxu0 %v2756_v59 }
 0x78b   :  { %4692 = vmatmul.mubr.msk.bf16.gmra.mxu0 %vm137_vm3, %v6966_v63  ;;  %4708 = vmatmul.mubr.msk.bf16.gmra.mxu1 %vm137_vm3, %v6973_v17 }
 0x78c   :  { %4743 = vmatprep.mubr.msk.bf16.mxu1 %vm137_vm3, %v4977_v25 }
 0x7c2   :  { %v2109_v3 = vpop.xlane.xlu0 %2108 }
 0x7c3   :  { %v2155_v45 = vsub.f32 %v2091_v7, %v2109_v3  ;;  %v2293_v3 = vld [vmem:[%s7856_s12] sm:$0xff] }
 0x7c5   :  { %v2171_v55 = vmul.f32 1.442695, %v2155_v45  ;;  %v8005_v45 = vmax.f32 %v6761_v19, 0.0 }
 0x7c6   :  { %v2112_v57 = vpop.xlane.xlu1 %2111 }
 0x7c7   :  { %v2156_v32 = vsub.f32 %v2092_v22, %v2112_v57  ;;  %4895 = vpow2.f32 %v2171_v55  ;;  %v2295_v22 = vld [vmem:[%s7856_s12 + $0x10] sm:$0xff]  ;;  %v2294_v57 = vld [vmem:[%s7856_s12 + $0x8] sm:$0xff] }
 0x7c8   :  { %v2755_v56 = vpack.c.bf16 %v2296_v20, %v2295_v22  ;;  %v2754_v55 = vpack.c.bf16 %v2294_v57, %v2293_v3 }
 0x7c9   :  { %v2173_v9 = vmul.f32 1.442695, %v2156_v32 }
 0x7ca   :  { %v2115_v31 = vpop.xlane.xlu0 %2114  ;;  %4715 = vmatprep.subr.bf16.mxu0 %v2755_v56 }
 0x7cb   :  { %v2157_v25 = vsub.f32 %v2093_v12, %v2115_v31  ;;  %4897 = vpow2.f32 %v2173_v9  ;;  %4716 = vmatpush3.bf16.msra.mxu0 %v2755_v56  ;;  %v8006_v9 = vmax.f32 %v6784_v47, 0.0 }
 0x7cc   :  { %4717 = vmatprep.subr.bf16.mxu0 %v2754_v55 }
 0x7cd   :  { %v2175_v7 = vmul.f32 1.442695, %v2157_v25 }
 0x7ce   :  { %v2118_v39 = vpop.xlane.xlu0 %2117 }
 0x7cf   :  { %4899 = vpow2.f32 %v2175_v7  ;;  %v2158_v53 = vsub.f32 %v2094_v16, %v2118_v39  ;;  %4718 = vmatpush3.bf16.msra.mxu0 %v2754_v55  ;;  %v8007_v39 = vmax.f32 %v6797_v43, 0.0 }
 0x7d1   :  { %v2177_v12 = vmul.f32 1.442695, %v2158_v53 }
 0x7d2   :  { %v2121_v15 = vpop.xlane.xlu1 %2120 }
 0x7d3   :  { %4901 = vpow2.f32 %v2177_v12  ;;  %v2159_v32 = vsub.f32 %v8005_v45, %v2121_v15  ;;  %v8008_v12 = vmax.f32 %v6806_v21, 0.0 }
 0x7d4   :  { %v7017_v49 = vpop.eup %4895 }
 0x7d5   :  { %v2179_v5 = vmul.f32 1.442695, %v2159_v32  ;;  %v2203_v25 = vsel %vm1745_vm5, %v7017_v49, 0.0  ;;  %v8009_v32 = vmax.f32 %v6813_v38, 0.0 }
 0x7d6   :  { %v2124_v16 = vpop.xlane.xlu0 %2123  ;;  %2204 = vadd.xlane.f32.xlu1 %v2203_v25 }
 0x7d7   :  { %4903 = vpow2.f32 %v2179_v5  ;;  %v2160_v31 = vsub.f32 %v8006_v9, %v2124_v16 }
 0x7d8   :  { %v7019_v58 = vpop.eup %4897 }
 0x7d9   :  { %v2181_v59 = vmul.f32 1.442695, %v2160_v31  ;;  %v2206_v7 = vsel %vm1745_vm5, %v7019_v58, 0.0  ;;  %v8010_v31 = vmax.f32 %v6820_v36, 0.0 }
 0x7da   :  { %v2127_v19 = vpop.xlane.xlu1 %2126  ;;  %2207 = vadd.xlane.f32.xlu0 %v2206_v7 }
 0x7db   :  { %4905 = vpow2.f32 %v2181_v59  ;;  %v2161_v22 = vsub.f32 %v8007_v39, %v2127_v19  ;;  %v8011_v39 = vmax.f32 %v6827_v52, 0.0 }
 0x7dc   :  { %v7027_v47 = vpop.eup %4899 }
 0x7dd   :  { %v2183_v20 = vmul.f32 1.442695, %v2161_v22  ;;  %v2209_v53 = vsel %vm1745_vm5, %v7027_v47, 0.0 }
 0x7de   :  { %2210 = vadd.xlane.f32.xlu1 %v2209_v53  ;;  %v2130_v56 = vpop.xlane.xlu0 %2129 }
 0x7df   :  { %4907 = vpow2.f32 %v2183_v20  ;;  %v2162_v15 = vsub.f32 %v8008_v12, %v2130_v56  ;;  %v8012_v12 = vmax.f32 %v6834_v42, 0.0 }
 0x7e0   :  { %v7033_v3 = vpop.eup %4901 }
 0x7e1   :  { %v2185_v57 = vmul.f32 1.442695, %v2162_v15  ;;  %v2212_v43 = vsel %vm1745_vm5, %v7033_v3, 0.0 }
 0x7e2   :  { %v2133_v45 = vpop.xlane.xlu1 %2132  ;;  %2213 = vadd.xlane.f32.xlu0 %v2212_v43 }
 0x7e3   :  { %4909 = vpow2.f32 %v2185_v57  ;;  %v2163_v55 = vsub.f32 %v8009_v32, %v2133_v45  ;;  %v8013_v32 = vmax.f32 %v6841_v37, 0.0 }
 0x7e4   :  { %v7039_v5 = vpop.eup %4903 }
 0x7e5   :  { %v2187_v16 = vmul.f32 1.442695, %v2163_v55  ;;  %v2215_v9 = vsel %vm1745_vm5, %v7039_v5, 0.0 }
 0x7e6   :  { %2216 = vadd.xlane.f32.xlu1 %v2215_v9  ;;  %v2136_v21 = vpop.xlane.xlu0 %2135 }
 0x7e7   :  { %4911 = vpow2.f32 %v2187_v16  ;;  %v2164_v25 = vsub.f32 %v8010_v31, %v2136_v21  ;;  %v8014_v31 = vmax.f32 %v6848_v29, 0.0 }
 0x7e8   :  { %v7045_v59 = vpop.eup %4905 }
 0x7e9   :  { %v2189_v19 = vmul.f32 1.442695, %v2164_v25  ;;  %v2218_v7 = vsel %vm1745_vm5, %v7045_v59, 0.0 }
 0x7ea   :  { %v2139_v38 = vpop.xlane.xlu1 %2138  ;;  %2219 = vadd.xlane.f32.xlu0 %v2218_v7 }
 0x7eb   :  { %4913 = vpow2.f32 %v2189_v19  ;;  %v2165_v22 = vsub.f32 %v8011_v39, %v2139_v38  ;;  %v8015_v39 = vmax.f32 %v6855_v28, 0.0 }
 0x7ec   :  { %v7051_v20 = vpop.eup %4907 }
 0x7ed   :  { %v2191_v53 = vmul.f32 1.442695, %v2165_v22  ;;  %v2221_v56 = vsel %vm1745_vm5, %v7051_v20, 0.0 }
 0x7ee   :  { %2222 = vadd.xlane.f32.xlu1 %v2221_v56  ;;  %v2142_v36 = vpop.xlane.xlu0 %2141 }
 0x7ef   :  { %4915 = vpow2.f32 %v2191_v53  ;;  %v2166_v15 = vsub.f32 %v8012_v12, %v2142_v36 }
 0x7f0   :  { %v7057_v57 = vpop.eup %4909 }
 0x7f1   :  { %v2193_v43 = vmul.f32 1.442695, %v2166_v15  ;;  %v2224_v45 = vsel %vm1745_vm5, %v7057_v57, 0.0 }
 0x7f2   :  { %v2145_v52 = vpop.xlane.xlu1 %2144  ;;  %2225 = vadd.xlane.f32.xlu0 %v2224_v45 }
 0x7f3   :  { %4917 = vpow2.f32 %v2193_v43  ;;  %v2167_v55 = vsub.f32 %v8013_v32, %v2145_v52 }
 0x7f4   :  { %v7063_v16 = vpop.eup %4911 }
 0x7f5   :  { %v2195_v9 = vmul.f32 1.442695, %v2167_v55  ;;  %v2227_v21 = vsel %vm1745_vm5, %v7063_v16, 0.0 }
 0x7f6   :  { %2228 = vadd.xlane.f32.xlu1 %v2227_v21  ;;  %v2148_v42 = vpop.xlane.xlu0 %2147 }
 0x7f7   :  { %4919 = vpow2.f32 %v2195_v9  ;;  %v2168_v25 = vsub.f32 %v8014_v31, %v2148_v42 }
 0x7f8   :  { %v7069_v19 = vpop.eup %4913 }
 0x7f9   :  { %v2197_v7 = vmul.f32 1.442695, %v2168_v25  ;;  %v2230_v38 = vsel %vm1745_vm5, %v7069_v19, 0.0 }
 0x7fa   :  { %v2151_v37 = vpop.xlane.xlu1 %2150  ;;  %2231 = vadd.xlane.f32.xlu0 %v2230_v38 }
 0x7fb   :  { %4921 = vpow2.f32 %v2197_v7  ;;  %v2169_v22 = vsub.f32 %v8015_v39, %v2151_v37  ;;  %v2758_v7 = vunpack.c.l.bf16 %v6925_v18  ;;  %v2761_v37 = vunpack.c.h.bf16 %v6916_v24 }
 0x7fc   :  { %v7075_v53 = vpop.eup %4915  ;;  %v2760_v39 = vunpack.c.l.bf16 %v6916_v24 }
 0x7fd   :  { %v2199_v56 = vmul.f32 1.442695, %v2169_v22  ;;  %v2233_v36 = vsel %vm1745_vm5, %v7075_v53, 0.0 }
 0x7fe   :  { %2234 = vadd.xlane.f32.xlu1 %v2233_v36 }
 0x7ff   :  { %4923 = vpow2.f32 %v2199_v56  ;;  %v2154_v12 = vpop.xlane.xlu0 %2153 }
 0x800   :  { %v7079_v29 = vpop.eup %4917  ;;  %v2170_v43 = vsub.f32 %v2106_v40, %v2154_v12 }
 0x801   :  { %v2236_v15 = vsel %vm1745_vm5, %v7079_v29, 0.0 }
 0x802   :  { %2237 = vadd.xlane.f32.xlu0 %v2236_v15  ;;  %v2201_v45 = vmul.f32 1.442695, %v2170_v43  ;;  %v2759_v15 = vunpack.c.h.bf16 %v6925_v18  ;;  %v2762_v18 = vunpack.c.l.bf16 %v6892_v35 }
 0x804   :  { %v7085_v28 = vpop.eup %4919  ;;  %4925 = vpow2.f32 %v2201_v45 }
 0x805   :  { %8016 = vst [vmem:[#allocation6_spill] sm:$0xff] %v7085_v28  ;;  %v2239_v52 = vsel %vm1745_vm5, %v7085_v28, 0.0 }
 0x806   :  { %2240 = vadd.xlane.f32.xlu1 %v2239_v52 }
 0x808   :  { %v7089_v32 = vpop.eup %4921 }
 0x809   :  { %8017 = vst [vmem:[#allocation7_spill] sm:$0xff] %v7089_v32  ;;  %v2242_v55 = vsel %vm1745_vm5, %v7089_v32, 0.0 }
 0x80a   :  { %2243 = vadd.xlane.f32.xlu0 %v2242_v55 }
 0x80c   :  { %v7093_v9 = vpop.eup %4923 }
 0x80d   :  { %8018 = vst [vmem:[#allocation8_spill] sm:$0xff] %v7093_v9  ;;  %v2245_v40 = vsel %vm1745_vm5, %v7093_v9, 0.0 }
 0x80e   :  { %2246 = vadd.xlane.f32.xlu1 %v2245_v40 }
 0x811   :  { %v7097_v50 = vpop.eup %4925 }
 0x812   :  { %8019 = vst [vmem:[#allocation12_spill] sm:$0xff] %v7097_v50  ;;  %v2248_v21 = vsel %vm1745_vm5, %v7097_v50, 0.0 }
 0x813   :  { %2249 = vadd.xlane.f32.xlu0 %v2248_v21 }
 0x843   :  { %v4689_v42 = vpop.f32.mrf.mxu0  ;;  %v4705_v31 = vpop.f32.mrf.mxu1 }
 0x844   :  { %v2817_v43 = vadd.f32 %v4689_v42, %v2760_v39 }
 0x845   :  { %v2808_v25 = vpop.f32.mrf.mxu0  ;;  %v2873_v38 = vpop.f32.mrf.mxu1 }
 0x846   :  { %v2809_v56 = vadd.f32 %v2808_v25, %v2758_v7  ;;  %v2906_v24 = vmul.f32 %v2817_v43, %v5296_v62  ;;  %v2767_v7 = vunpack.c.h.bf16 %v6928_v44 }
 0x847   :  { %v4690_v22 = vpop.f32.mrf.mxu0  ;;  %v4706_v12 = vpop.f32.mrf.mxu1 }
 0x848   :  { %v2820_v36 = vadd.f32 %v4690_v22, %v2761_v37  ;;  %v2904_v9 = vmul.f32 %v2809_v56, %v5294_v61  ;;  %v2765_v37 = vunpack.c.h.bf16 %v6876_v14  ;;  %v2764_v22 = vunpack.c.l.bf16 %v6876_v14 }
 0x849   :  { %v2811_v45 = vpop.f32.mrf.mxu0  ;;  %v2876_v55 = vpop.f32.mrf.mxu1  ;;  %v2763_v56 = vunpack.c.h.bf16 %v6892_v35 }
 0x84a   :  { %v2812_v52 = vadd.f32 %v2811_v45, %v2759_v15  ;;  %v2907_v40 = vmul.f32 %v2820_v36, %v5300_v1  ;;  %v2766_v15 = vunpack.c.l.bf16 %v6928_v44  ;;  %v2877_v45 = vadd.f32 %v2876_v55, %v2767_v7 }
 0x84b   :  { %v4693_v21 = vpop.f32.mrf.mxu0  ;;  %v4709_v28 = vpop.f32.mrf.mxu1  ;;  %v2771_v7 = vunpack.c.h.bf16 %v6903_v30 }
 0x84c   :  { %v2905_v50 = vmul.f32 %v2812_v52, %v5298_v0  ;;  %v2921_v39 = vpack.c.bf16 %v2907_v40, %v2906_v24  ;;  %v2874_v0 = vadd.f32 %v2873_v38, %v2766_v15  ;;  %v2913_v14 = vmul.f32 %v2877_v45, %v7998_v23 }
 0x84d   :  { %v2824_v32 = vpop.f32.mrf.mxu0  ;;  %v2889_v42 = vpop.f32.mrf.mxu1  ;;  %v2772_v45 = vunpack.c.l.bf16 %v6884_v4 }
 0x84e   :  { %v2920_v25 = vpack.c.bf16 %v2905_v50, %v2904_v9  ;;  %v2825_v52 = vadd.f32 %v2824_v32, %v2762_v18  ;;  %v2833_v9 = vadd.f32 %v4693_v21, %v2764_v22  ;;  %v2769_v32 = vunpack.c.h.bf16 %v6920_v34 }
 0x84f   :  { %v4694_v36 = vpop.f32.mrf.mxu0  ;;  %v4710_v50 = vpop.f32.mrf.mxu1  ;;  %v2912_v21 = vmul.f32 %v2874_v0, %v5329_v48 }
 0x850   :  { %v2836_v43 = vadd.f32 %v4694_v36, %v2765_v37  ;;  %4719 = vmatprep.mubr.msk.bf16.mxu0 %vm137_vm3, %v2920_v25  ;;  %v2908_v35 = vmul.f32 %v2825_v52, %v5302_v2  ;;  %v2910_v55 = vmul.f32 %v2833_v9, %v5308_v11  ;;  %v2885_v38 = vadd.f32 %v4706_v12, %v2769_v32 }
 0x851   :  { %v2827_v62 = vpop.f32.mrf.mxu0  ;;  %4720 = vmatmul.mubr.msk.bf16.vlgmr.msra.gmra.mxu0 %vm137_vm3, %v2921_v39  ;;  %v2892_v24 = vpop.f32.mrf.mxu1  ;;  %v2924_v37 = vpack.c.bf16 %v2913_v14, %v2912_v21  ;;  %v2770_v39 = vunpack.c.l.bf16 %v6903_v30  ;;  %v2773_v12 = vunpack.c.h.bf16 %v6884_v4 }
 0x852   :  { %v2828_v61 = vadd.f32 %v2827_v62, %v2763_v56  ;;  %v2911_v40 = vmul.f32 %v2836_v43, %v5318_v27  ;;  %v2768_v62 = vunpack.c.l.bf16 %v6920_v34  ;;  %v2893_v22 = vadd.f32 %v2892_v24, %v2771_v7 }
 0x853   :  { %v2890_v36 = vadd.f32 %v2889_v42, %v2770_v39  ;;  %v2915_v0 = vmul.f32 %v2885_v38, %v5370_v54  ;;  %v2901_v52 = vadd.f32 %v4710_v50, %v2773_v12  ;;  %v2898_v43 = vadd.f32 %v4709_v28, %v2772_v45 }
 0x854   :  { %v2909_v44 = vmul.f32 %v2828_v61, %v5304_v6  ;;  %v2923_v18 = vpack.c.bf16 %v2911_v40, %v2910_v55  ;;  %v2882_v61 = vadd.f32 %v4705_v31, %v2768_v62  ;;  %v2917_v56 = vmul.f32 %v2893_v22, %v8004_v33 }
 0x855   :  { %v2916_v15 = vmul.f32 %v2890_v36, %v7999_v46  ;;  %v2919_v42 = vmul.f32 %v2901_v52, %v8003_v13  ;;  %v2918_v9 = vmul.f32 %v2898_v43, %v8001_v51 }
 0x856   :  { %v2922_v25 = vpack.c.bf16 %v2909_v44, %v2908_v35  ;;  %v2914_v34 = vmul.f32 %v2882_v61, %v5359_v26  ;;  %v7144_v35 = vld [vmem:[%s7857_s13] ss:$0 sm:$0xff] }
 0x857   :  { %v2926_v31 = vpack.c.bf16 %v2917_v56, %v2916_v15  ;;  %v2927_v40 = vpack.c.bf16 %v2919_v42, %v2918_v9 }
 0x858   :  { %4723 = vmatprep.mubr.msk.bf16.mxu0 %vm137_vm3, %v2922_v25  ;;  %v2925_v30 = vpack.c.bf16 %v2915_v0, %v2914_v34 }
 0x859   :  { %4724 = vmatmul.mubr.msk.bf16.gmra.mxu0 %vm137_vm3, %v2923_v18 }
 0x85a   :  { %4727 = vmatprep.mubr.msk.bf16.mxu0 %vm137_vm3, %v2924_v37 }
 0x861   :  { %4728 = vmatmul.mubr.msk.bf16.gmra.mxu0 %vm137_vm3, %v2925_v30 }
 0x862   :  { %4731 = vmatprep.mubr.msk.bf16.mxu0 %vm137_vm3, %v2926_v31 }
 0x869   :  { %4732 = vmatmul.mubr.msk.bf16.gmra.mxu0 %vm137_vm3, %v2927_v40 }
 0x911   :  { %v4721_v14 = vpop.f32.mrf.mxu0 }
 0x912   :  { %v7150_v44 = vadd.f32 %v4721_v14, %v7144_v35 }
 0x913   :  { %v2992_v4 = vpop.f32.mrf.mxu0 }
 0x914   :  { %v7147_v28 = vadd.f32 %v7144_v35, %v2992_v4  ;;  %v7937_v7 = vmax.f32 %v7150_v44, 0.0 }
 0x915   :  { %v4722_v50 = vpop.f32.mrf.mxu0 }
 0x916   :  { %v3055_v55 = vmax.f32 %v7147_v28, 0.0  ;;  %v7154_v24 = vadd.f32 %v4722_v50, %v7144_v35  ;;  %v3074_v0 = vsel %vm137_vm3, %v7937_v7, 0.0 }
 0x917   :  { %v2995_v32 = vpop.f32.mrf.mxu0 }
 0x918   :  { %v7157_v21 = vadd.f32 %v7144_v35, %v2995_v32  ;;  %v3071_v18 = vsel %vm137_vm3, %v3055_v55, 0.0  ;;  %v7935_v37 = vmax.f32 %v7154_v24, 0.0 }
 0x919   :  { %v4725_v25 = vpop.f32.mrf.mxu0 }
 0x91a   :  { %v7938_v62 = vmax.f32 %v7157_v21, 0.0  ;;  %v7175_v56 = vadd.f32 %v4725_v25, %v7144_v35  ;;  %v3076_v30 = vsel %vm137_vm3, %v7935_v37, 0.0 }
 0x91b   :  { %v3008_v38 = vpop.f32.mrf.mxu0 }
 0x91c   :  { %v3072_v39 = vsel %vm137_vm3, %v7938_v62, 0.0  ;;  %v7169_v22 = vadd.f32 %v7144_v35, %v3008_v38  ;;  %v7930_v42 = vmax.f32 %v7175_v56, 0.0 }
 0x91d   :  { %v3073_v61 = vadd.f32 %v3072_v39, %v3071_v18  ;;  %v4726_v36 = vpop.f32.mrf.mxu0 }
 0x91e   :  { %v7933_v34 = vmax.f32 %v7169_v22, 0.0  ;;  %v7182_v45 = vadd.f32 %v4726_v36, %v7144_v35  ;;  %v3082_v39 = vsel %vm137_vm3, %v7930_v42, 0.0 }
 0x91f   :  { %v3075_v12 = vadd.f32 %v3074_v0, %v3073_v61  ;;  %v3011_v15 = vpop.f32.mrf.mxu0 }
 0x920   :  { %v7185_v52 = vadd.f32 %v7144_v35, %v3011_v15  ;;  %v3078_v9 = vsel %vm137_vm3, %v7933_v34, 0.0  ;;  %v7929_v50 = vmax.f32 %v7182_v45, 0.0 }
 0x921   :  { %v3077_v31 = vadd.f32 %v3076_v30, %v3075_v12  ;;  %v4729_v43 = vpop.f32.mrf.mxu0 }
 0x922   :  { %v7931_v40 = vmax.f32 %v7185_v52, 0.0  ;;  %v7203_v61 = vadd.f32 %v4729_v43, %v7144_v35  ;;  %v3084_v15 = vsel %vm137_vm3, %v7929_v50, 0.0 }
 0x923   :  { %v3079_v14 = vadd.f32 %v3078_v9, %v3077_v31  ;;  %v3024_v4 = vpop.f32.mrf.mxu0 }
 0x924   :  { %v3080_v32 = vsel %vm137_vm3, %v7931_v40, 0.0  ;;  %v7197_v25 = vadd.f32 %v7144_v35, %v3024_v4  ;;  %v7934_v4 = vmax.f32 %v7203_v61, 0.0 }
 0x925   :  { %v3081_v38 = vadd.f32 %v3080_v32, %v3079_v14  ;;  %v4730_v18 = vpop.f32.mrf.mxu0 }
 0x926   :  { %v7932_v36 = vmax.f32 %v7197_v25, 0.0  ;;  %v7210_v30 = vadd.f32 %v4730_v18, %v7144_v35 }
 0x927   :  { %v3083_v0 = vadd.f32 %v3082_v39, %v3081_v38  ;;  %v3027_v12 = vpop.f32.mrf.mxu0 }
 0x928   :  { %v7213_v31 = vadd.f32 %v7144_v35, %v3027_v12  ;;  %v3086_v43 = vsel %vm137_vm3, %v7932_v36, 0.0  ;;  %v7936_v50 = vmax.f32 %v7210_v30, 0.0 }
 0x929   :  { %v3085_v9 = vadd.f32 %v3084_v15, %v3083_v0  ;;  %v4733_v14 = vpop.f32.mrf.mxu0  ;;  %v3090_v15 = vsel %vm137_vm3, %v7934_v4, 0.0 }
 0x92a   :  { %v3064_v32 = vmax.f32 %v7213_v31, 0.0  ;;  %v7229_v40 = vadd.f32 %v4733_v14, %v7144_v35  ;;  %v3092_v36 = vsel %vm137_vm3, %v7936_v50, 0.0 }
 0x92b   :  { %v3087_v38 = vadd.f32 %v3086_v43, %v3085_v9  ;;  %v3040_v39 = vpop.f32.mrf.mxu0 }
 0x92c   :  { %v3088_v18 = vsel %vm137_vm3, %v3064_v32, 0.0  ;;  %v7223_v42 = vadd.f32 %v7144_v35, %v3040_v39  ;;  %v7939_v34 = vmax.f32 %v7229_v40, 0.0 }
 0x92d   :  { %v3089_v12 = vadd.f32 %v3088_v18, %v3087_v38  ;;  %v4734_v0 = vpop.f32.mrf.mxu0 }
 0x92e   :  { %v3067_v31 = vmax.f32 %v7223_v42, 0.0  ;;  %v7236_v39 = vadd.f32 %v4734_v0, %v7144_v35  ;;  %v3098_v50 = vsel %vm137_vm3, %v7939_v34, 0.0 }
 0x92f   :  { %v3091_v9 = vadd.f32 %v3090_v15, %v3089_v12  ;;  %v3043_v43 = vpop.f32.mrf.mxu0 }
 0x930   :  { %v3044_v38 = vadd.f32 %v7144_v35, %v3043_v43  ;;  %v3094_v4 = vsel %vm137_vm3, %v3067_v31, 0.0  ;;  %v7940_v42 = vmax.f32 %v7236_v39, 0.0 }
 0x931   :  { %v3093_v18 = vadd.f32 %v3092_v36, %v3091_v9 }
 0x932   :  { %v3068_v14 = vmax.f32 %v3044_v38, 0.0  ;;  %v3100_v35 = vsel %vm137_vm3, %v7940_v42, 0.0 }
 0x933   :  { %v3095_v37 = vadd.f32 %v3094_v4, %v3093_v18 }
 0x934   :  { %v3096_v12 = vsel %vm137_vm3, %v3068_v14, 0.0 }
 0x935   :  { %v3097_v15 = vadd.f32 %v3096_v12, %v3095_v37  ;;  %v8020_v12 = vmax.f32 %v7157_v21, 0.0 }
 0x937   :  { %v3099_v0 = vadd.f32 %v3098_v50, %v3097_v15  ;;  %v8021_v50 = vmax.f32 %v7150_v44, 0.0  ;;  %v8024_v44 = vmax.f32 %v7185_v52, 0.0  ;;  %v8026_v52 = vmax.f32 %v7182_v45, 0.0 }
 0x939   :  { %v3101_v36 = vadd.f32 %v3100_v35, %v3099_v0  ;;  %v8022_v0 = vmax.f32 %v7154_v24, 0.0 }
 0x93b   :  { %v3102_v9 = vrot.slane %v3101_v36, 4 }
 0x93d   :  { %v3103_v43 = vadd.f32 %v3102_v9, %v3101_v36 }
 0x93f   :  { %v3104_v7 = vrot.slane %v3103_v43, 2 }
 0x941   :  { %v3105_v38 = vadd.f32 %v3104_v7, %v3103_v43 }
 0x943   :  { %v3106_v4 = vrot.slane %v3105_v38, 1 }
 0x945   :  { %v3107_v18 = vadd.f32 %v3106_v4, %v3105_v38 }
 0x947   :  { %v3108_v62 = vmul.f32 0.0078125, %v3107_v18  ;;  %v8025_v18 = vmax.f32 %v7175_v56, 0.0 }
 0x949   :  { %v7251_v37 = vsub.f32 %v3055_v55, %v3108_v62  ;;  %v7255_v34 = vsub.f32 %v8020_v12, %v3108_v62  ;;  %v7259_v15 = vsub.f32 %v8021_v50, %v3108_v62  ;;  %v7263_v35 = vsub.f32 %v8022_v0, %v3108_v62 }
 0x94a   :  { %v8023_v55 = vmax.f32 %v7169_v22, 0.0  ;;  %v7277_v9 = vsub.f32 %v8024_v44, %v3108_v62  ;;  %v3115_v22 = vsub.f32 %v8025_v18, %v3108_v62  ;;  %v7298_v51 = vsub.f32 %v3064_v32, %v3108_v62 }
 0x94b   :  { %v3125_v7 = vmul.f32 %v7251_v37, %v7251_v37  ;;  %v3126_v28 = vmul.f32 %v7255_v34, %v7255_v34  ;;  %v3127_v21 = vmul.f32 %v7259_v15, %v7259_v15  ;;  %v3128_v24 = vmul.f32 %v7263_v35, %v7263_v35 }
 0x94c   :  { %v7271_v36 = vsub.f32 %v8023_v55, %v3108_v62  ;;  %v3116_v55 = vsub.f32 %v8026_v52, %v3108_v62  ;;  %v3130_v44 = vmul.f32 %v7277_v9, %v7277_v9  ;;  %v3131_v56 = vmul.f32 %v3115_v22, %v3115_v22 }
 0x94d   :  { %v3141_v43 = vsel %vm137_vm3, %v3125_v7, 0.0  ;;  %v3142_v38 = vsel %vm137_vm3, %v3126_v28, 0.0  ;;  %v3144_v50 = vsel %vm137_vm3, %v3127_v21, 0.0  ;;  %v3146_v7 = vsel %vm137_vm3, %v3128_v24, 0.0 }
 0x94e   :  { %v3143_v4 = vadd.f32 %v3142_v38, %v3141_v43  ;;  %v3129_v12 = vmul.f32 %v7271_v36, %v7271_v36  ;;  %v8027_v28 = vmax.f32 %v7197_v25, 0.0  ;;  %v3132_v21 = vmul.f32 %v3116_v55, %v3116_v55 }
 0x94f   :  { %v3150_v45 = vsel %vm137_vm3, %v3130_v44, 0.0  ;;  %v3152_v25 = vsel %vm137_vm3, %v3131_v56, 0.0  ;;  %v3134_v32 = vmul.f32 %v7298_v51, %v7298_v51  ;;  %v3122_v56 = vsub.f32 %v3068_v14, %v3108_v62 }
 0x950   :  { %v3145_v0 = vadd.f32 %v3144_v50, %v3143_v4  ;;  %v7295_v43 = vsub.f32 %v8027_v28, %v3108_v62  ;;  %v3148_v38 = vsel %vm137_vm3, %v3129_v12, 0.0  ;;  %v8028_v50 = vmax.f32 %v7203_v61, 0.0 }
 0x951   :  { %v7315_v28 = vsub.f32 %v3067_v31, %v3108_v62 }
 0x952   :  { %v3147_v42 = vadd.f32 %v3146_v7, %v3145_v0  ;;  %v7303_v52 = vsub.f32 %v8028_v50, %v3108_v62  ;;  %v3133_v24 = vmul.f32 %v7295_v43, %v7295_v43  ;;  %v8029_v7 = vmax.f32 %v7210_v30, 0.0 }
 0x953   :  { %v8030_v50 = vmax.f32 %v7229_v40, 0.0  ;;  %v3137_v31 = vmul.f32 %v7315_v28, %v7315_v28 }
 0x954   :  { %v3149_v18 = vadd.f32 %v3148_v38, %v3147_v42  ;;  %v7310_v12 = vsub.f32 %v8029_v7, %v3108_v62  ;;  %v3154_v42 = vsel %vm137_vm3, %v3132_v21, 0.0  ;;  %v3135_v61 = vmul.f32 %v7303_v52, %v7303_v52 }
 0x955   :  { %v3156_v38 = vsel %vm137_vm3, %v3133_v24, 0.0  ;;  %v8031_v7 = vmax.f32 %v7236_v39, 0.0 }
 0x956   :  { %v3151_v4 = vadd.f32 %v3150_v45, %v3149_v18  ;;  %v3136_v30 = vmul.f32 %v7310_v12, %v7310_v12  ;;  %v3158_v45 = vsel %vm137_vm3, %v3134_v32, 0.0  ;;  %v3160_v21 = vsel %vm137_vm3, %v3135_v61, 0.0 }
 0x957   :  { %v3124_v24 = vsub.f32 %v8031_v7, %v3108_v62  ;;  %v3164_v32 = vsel %vm137_vm3, %v3137_v31, 0.0 }
 0x958   :  { %v3153_v0 = vadd.f32 %v3152_v25, %v3151_v4  ;;  %v3123_v25 = vsub.f32 %v8030_v50, %v3108_v62  ;;  %v3162_v14 = vsel %vm137_vm3, %v3136_v30, 0.0 }
 0x95a   :  { %v3155_v44 = vadd.f32 %v3154_v42, %v3153_v0  ;;  %v3138_v42 = vmul.f32 %v3122_v56, %v3122_v56 }
 0x95c   :  { %v3157_v18 = vadd.f32 %v3156_v38, %v3155_v44  ;;  %v3139_v38 = vmul.f32 %v3123_v25, %v3123_v25  ;;  %v3166_v40 = vsel %vm137_vm3, %v3138_v42, 0.0 }
 0x95e   :  { %v3159_v4 = vadd.f32 %v3158_v45, %v3157_v18  ;;  %v3140_v45 = vmul.f32 %v3124_v24, %v3124_v24  ;;  %v3168_v33 = vsel %vm137_vm3, %v3139_v38, 0.0 }
 0x960   :  { %v3161_v0 = vadd.f32 %v3160_v21, %v3159_v4  ;;  %v3170_v61 = vsel %vm137_vm3, %v3140_v45, 0.0 }
 0x962   :  { %v3163_v44 = vadd.f32 %v3162_v14, %v3161_v0 }
 0x964   :  { %v3165_v18 = vadd.f32 %v3164_v32, %v3163_v44 }
 0x966   :  { %v3167_v50 = vadd.f32 %v3166_v40, %v3165_v18 }
 0x968   :  { %v3169_v46 = vadd.f32 %v3168_v33, %v3167_v50  ;;  %v2208_v50 = vpop.xlane.xlu0 %2207 }
 0x96a   :  { %v3171_v4 = vadd.f32 %v3170_v61, %v3169_v46 }
 0x96c   :  { %v3172_v39 = vrot.slane %v3171_v4, 4 }
 0x96e   :  { %v3173_v62 = vadd.f32 %v3172_v39, %v3171_v4  ;;  %v2214_v4 = vpop.xlane.xlu0 %2213 }
 0x970   :  { %v3174_v21 = vrot.slane %v3173_v62, 2 }
 0x972   :  { %v3175_v7 = vadd.f32 %v3174_v21, %v3173_v62 }
 0x974   :  { %v3176_v30 = vrot.slane %v3175_v7, 1 }
 0x976   :  { %v3177_v0 = vadd.f32 %v3176_v30, %v3175_v7 }
 0x978   :  { %v3178_v14 = vmul.f32 0.0078125, %v3177_v0  ;;  %v8032_v0 = vmov 0  }
 0x97a   :  { %v3179_v13 = vadd.f32 1e-05, %v3178_v14 }
 0x97c   :  { %4927 = vrsqrt.f32 %v3179_v13 }
 0x97d   :  { %4929 = vrcp.f32 %v2208_v50 }
 0x989   :  { %v4928_v31 = vpop.eup %4927 }
 0x98a   :  { %v3187_v44 = vmul.f32 %v4928_v31, %v3115_v22  ;;  %v3188_v32 = vmul.f32 %v4928_v31, %v3116_v55  ;;  %v3185_v42 = vmul.f32 %v4928_v31, %v7271_v36  ;;  %v3186_v38 = vmul.f32 %v4928_v31, %v7277_v9 }
 0x98b   :  { %v3183_v18 = vmul.f32 %v4928_v31, %v7259_v15  ;;  %v3184_v13 = vmul.f32 %v4928_v31, %v7263_v35  ;;  %v3181_v9 = vmul.f32 %v4928_v31, %v7251_v37  ;;  %v3182_v22 = vmul.f32 %v4928_v31, %v7255_v34 }
 0x98c   :  { %3233 = vrot.lane.b32.xlu1 %v3187_v44, %s4989_s5  ;;  %v7338_v33 = vpack.c.bf16 %v3188_v32, %v3187_v44  ;;  %3235 = vrot.lane.b32.xlu0 %v3188_v32, %s4989_s5  ;;  %v7342_v46 = vpack.c.bf16 %v3186_v38, %v3185_v42  ;;  %v3195_v35 = vmul.f32 %v4928_v31, %v3123_v25 }
 0x98d   :  { %v7350_v36 = vpack.c.bf16 %v3184_v13, %v3183_v18  ;;  %v7358_v15 = vpack.c.bf16 %v3182_v22, %v3181_v9  ;;  %v3196_v55 = vmul.f32 %v4928_v31, %v3124_v24  ;;  %v3194_v34 = vmul.f32 %v4928_v31, %v3122_v56 }
 0x98e   :  { %4735 = vmatprep.subr.bf16.mxu1 %v7338_v33  ;;  %v3193_v45 = vmul.f32 %v4928_v31, %v7315_v28  ;;  %v3191_v24 = vmul.f32 %v4928_v31, %v7303_v52  ;;  %v3192_v56 = vmul.f32 %v4928_v31, %v7310_v12  ;;  %v2308_v28 = vld [vmem:[%s7858_s14 + $0x30] sm:$0xff]  ;;  %v3189_v40 = vmul.f32 %v4928_v31, %v7295_v43  ;;  %v2205_v43 = vpop.xlane.xlu1 %2204 }
 0x98f   :  { %4736 = vmatpush3.bf16.msra.mxu1 %v7338_v33  ;;  %v7364_v37 = vpack.c.bf16 %v3196_v55, %v3195_v35  ;;  %4931 = vrcp.f32 %v2205_v43 }
 0x990   :  { %4737 = vmatprep.subr.bf16.mxu1 %v7342_v46  ;;  %3229 = vrot.lane.b32.xlu1 %v3185_v42, %s4989_s5  ;;  %v7371_v25 = vpack.c.bf16 %v3194_v34, %v3193_v45  ;;  %v7389_v12 = vpack.c.bf16 %v3192_v56, %v3191_v24  ;;  %4933 = vrcp.f32 %v2214_v4 }
 0x991   :  { %3225 = vrot.lane.b32.xlu0 %v3183_v18, %s4989_s5 }
 0x992   :  { %v2211_v39 = vpop.xlane.xlu1 %2210 }
 0x993   :  { %4738 = vmatpush3.bf16.msra.mxu1 %v7342_v46  ;;  %4935 = vrcp.f32 %v2211_v39 }
 0x994   :  { %4739 = vmatprep.subr.bf16.mxu1 %v7350_v36  ;;  %3231 = vrot.lane.b32.xlu1 %v3186_v38, %s4989_s5 }
 0x995   :  { %3221 = vrot.lane.b32.xlu0 %v3181_v9, %s4989_s5 }
 0x996   :  { %v2217_v62 = vpop.xlane.xlu1 %2216 }
 0x997   :  { %4740 = vmatpush3.bf16.msra.mxu1 %v7350_v36 }
 0x998   :  { %4741 = vmatprep.subr.bf16.mxu1 %v7358_v15  ;;  %3227 = vrot.lane.b32.xlu1 %v3184_v13, %s4989_s5 }
 0x999   :  { %3249 = vrot.lane.b32.xlu0 %v3195_v35, %s4989_s5 }
 0x99a   :  { %v2223_v7 = vpop.xlane.xlu1 %2222 }
 0x99b   :  { %4742 = vmatpush3.bf16.msra.mxu1 %v7358_v15 }
 0x99c   :  { %4751 = vmatprep.subr.bf16.mxu1 %v7364_v37  ;;  %3223 = vrot.lane.b32.xlu1 %v3182_v22, %s4989_s5 }
 0x99d   :  { %3245 = vrot.lane.b32.xlu0 %v3193_v45, %s4989_s5 }
 0x99e   :  { %4744 = vmatmul.mubr.msk.bf16.vlgmr.msra.gmra.mxu1 %vm137_vm3, %v6938_v41  ;;  %v2309_v41 = vld [vmem:[%s7858_s14 + $0x38] sm:$0xff]  ;;  %v2229_v14 = vpop.xlane.xlu1 %2228 }
 0x99f   :  { %4752 = vmatpush3.bf16.msra.mxu1 %v7364_v37  ;;  %4747 = vmatprep.mubr.msk.bf16.mxu1 %vm137_vm3, %v6952_v10  ;;  %v3288_v52 = vpack.c.bf16 %v2309_v41, %v2308_v28  ;;  %v3190_v10 = vmul.f32 %v4928_v31, %v7298_v51  ;;  %v7405_v51 = vld [vmem:[%s7846_s1 + $0x20] sm:$0xff]  }
 0x9a0   :  { %4753 = vmatprep.subr.bf16.mxu1 %v7371_v25  ;;  %3251 = vrot.lane.b32.xlu1 %v3196_v55, %s4989_s5 }
 0x9a1   :  { %3241 = vrot.lane.b32.xlu0 %v3191_v24, %s4989_s5  ;;  %4767 = vmatprep.subr.bf16.mxu0 %v3288_v52  ;;  %v7397_v61 = vpack.c.bf16 %v3190_v10, %v3189_v40 }
 0x9a2   :  { %4768 = vmatpush3.bf16.msra.mxu0 %v3288_v52  ;;  %v2235_v44 = vpop.xlane.xlu1 %2234 }
 0x9a3   :  { %4754 = vmatpush3.bf16.msra.mxu1 %v7371_v25 }
 0x9a4   :  { %4755 = vmatprep.subr.bf16.mxu1 %v7389_v12  ;;  %3247 = vrot.lane.b32.xlu1 %v3194_v34, %s4989_s5 }
 0x9a5   :  { %3237 = vrot.lane.b32.xlu0 %v3189_v40, %s4989_s5 }
 0x9a6   :  { %4748 = vmatmul.mubr.msk.bf16.gmra.mxu1 %vm137_vm3, %v6966_v63  ;;  %v2220_v63 = vpop.xlane.xlu0 %2219  ;;  %v2241_v13 = vpop.xlane.xlu1 %2240 }
 0x9a7   :  { %4756 = vmatpush3.bf16.msra.mxu1 %v7389_v12  ;;  %4759 = vmatprep.mubr.msk.bf16.mxu1 %vm137_vm3, %v7405_v51  ;;  %4937 = vrcp.f32 %v2220_v63 }
 0x9a8   :  { %4757 = vmatprep.subr.bf16.mxu1 %v7397_v61  ;;  %3243 = vrot.lane.b32.xlu1 %v3192_v56, %s4989_s5  ;;  %4939 = vrcp.f32 %v2217_v62 }
 0x9aa   :  { %v2226_v21 = vpop.xlane.xlu0 %2225  ;;  %v2247_v45 = vpop.xlane.xlu1 %2246 }
 0x9ab   :  { %4758 = vmatpush3.bf16.msra.mxu1 %v7397_v61  ;;  %4941 = vrcp.f32 %v2226_v21 }
 0x9ac   :  { %3239 = vrot.lane.b32.xlu1 %v3190_v10, %s4989_s5 }
 0x9ae   :  { %4760 = vmatmul.mubr.msk.bf16.vlgmr.msra.gmra.mxu1 %vm137_vm3, %v6945_v60  ;;  %v2232_v30 = vpop.xlane.xlu0 %2231  ;;  %v4930_v60 = vpop.eup %4929 }
 0x9af   :  { %4763 = vmatprep.mubr.msk.bf16.mxu1 %vm137_vm3, %v6959_v8  ;;  %4943 = vrcp.f32 %v2232_v30  ;;  %v4932_v8 = vpop.eup %4931  ;;  %v2254_v32 = vmul.f32 %v4930_v60, %v7019_v58  ;;  %v8034_v30 = vld [vmem:[#allocation6_spill] sm:$0xff] }
 0x9b0   :  { %4945 = vrcp.f32 %v2223_v7  ;;  %v4934_v42 = vpop.eup %4933 }
 0x9b1   :  { %4947 = vrcp.f32 %v2229_v14  ;;  %v4936_v18 = vpop.eup %4935  ;;  %v2258_v22 = vmul.f32 %v4934_v42, %v7033_v3  ;;  %v2306_v42 = vld [vmem:[%s7858_s14 + $0x20] sm:$0xff] }
 0x9b2   :  { %v2238_v31 = vpop.xlane.xlu0 %2237  ;;  %v2256_v34 = vmul.f32 %v4936_v18, %v7027_v47  ;;  %v2304_v18 = vld [vmem:[%s7858_s14 + $0x10] sm:$0xff] }
 0x9b3   :  { %4949 = vrcp.f32 %v2238_v31 }
 0x9b4   :  { %4951 = vrcp.f32 %v2235_v44  ;;  %v4938_v35 = vpop.eup %4937  ;;  %v7427_v56 = vpack.c.bf16 %v2258_v22, %v2256_v34  ;;  %v8036_v44 = vld [vmem:[#allocation8_spill] sm:$0xff] }
 0x9b5   :  { %v4940_v58 = vpop.eup %4939 }
 0x9b6   :  { %4764 = vmatmul.mubr.msk.bf16.gmra.mxu1 %vm137_vm3, %v6973_v17  ;;  %v2244_v38 = vpop.xlane.xlu0 %2243  ;;  %v2252_v17 = vmul.f32 %v4932_v8, %v7017_v49  ;;  %v2262_v49 = vmul.f32 %v4938_v35, %v7045_v59  ;;  %v2260_v3 = vmul.f32 %v4940_v58, %v7039_v5  ;;  %v2302_v35 = vld [vmem:[%s7858_s14] sm:$0xff] }
 0x9b7   :  { %3843 = vmatprep.mubr.bf16.mxu1 %v8032_v0  ;;  %4953 = vrcp.f32 %v2244_v38  ;;  %v2307_v38 = vld [vmem:[%s7858_s14 + $0x28] sm:$0xff] }
 0x9b8   :  { %v7422_v9 = vpack.c.bf16 %v2254_v32, %v2252_v17  ;;  %4955 = vrcp.f32 %v2241_v13  ;;  %v4942_v24 = vpop.eup %4941  ;;  %v7432_v40 = vpack.c.bf16 %v2262_v49, %v2260_v3  ;;  %v3287_v17 = vpack.c.bf16 %v2307_v38, %v2306_v42  ;;  %v2305_v13 = vld [vmem:[%s7858_s14 + $0x18] sm:$0xff] }
 0x9b9   :  { %v2266_v47 = vmul.f32 %v4942_v24, %v7057_v57  ;;  %v3286_v22 = vpack.c.bf16 %v2305_v13, %v2304_v18  ;;  %v4990_v24 = vmov 0.0   ;;  %v8037_v18 = vld [vmem:[#allocation9_spill] sm:$0xff] }
 0x9ba   :  { %v2250_v55 = vpop.xlane.xlu0 %2249  ;;  %4769 = vmatprep.subr.bf16.mxu0 %v3287_v17 }
 0x9bb   :  { %4957 = vrcp.f32 %v2250_v55  ;;  %4770 = vmatpush3.bf16.msra.mxu0 %v3287_v17  ;;  %v2303_v55 = vld [vmem:[%s7858_s14 + $0x8] sm:$0xff] }
 0x9bc   :  { %v4944_v28 = vpop.eup %4943  ;;  %4959 = vrcp.f32 %v2247_v45  ;;  %4771 = vmatprep.subr.bf16.mxu0 %v3286_v22  ;;  %v3285_v34 = vpack.c.bf16 %v2303_v55, %v2302_v35  ;;  %v8039_v55 = vld [vmem:[#allocation10_spill] sm:$0xff] }
 0x9bd   :  { %v4946_v41 = vpop.eup %4945  ;;  %v2270_v10 = vmul.f32 %v4944_v28, %v7069_v19 }
 0x9be   :  { %v4948_v52 = vpop.eup %4947  ;;  %v2264_v43 = vmul.f32 %v4946_v41, %v7051_v20  ;;  %v8033_v20 = vld [vmem:[#allocation7_spill] sm:$0xff] }
 0x9bf   :  { %v2268_v59 = vmul.f32 %v4948_v52, %v7063_v16  ;;  %4772 = vmatpush3.bf16.msra.mxu0 %v3286_v22  ;;  %v8038_v22 = vld [vmem:[#allocation11_spill] sm:$0xff] }
 0x9c0   :  { %v4950_v50 = vpop.eup %4949  ;;  %v7439_v39 = vpack.c.bf16 %v2266_v47, %v2264_v43  ;;  %4773 = vmatprep.subr.bf16.mxu0 %v3285_v34 }
 0x9c1   :  { %v4952_v4 = vpop.eup %4951  ;;  %v7441_v63 = vpack.c.bf16 %v2270_v10, %v2268_v59  ;;  %v2274_v5 = vmul.f32 %v4950_v50, %v7079_v29  ;;  %v8035_v29 = vld [vmem:[#allocation12_spill] sm:$0xff] }
 0x9c2   :  { %v2272_v57 = vmul.f32 %v4952_v4, %v7075_v53 }
 0x9c3   :  { %3792 = vxpose.xlu0.c.b16.start [1/4] (short) (narrow) %v7422_v9, 16  ;;  %4774 = vmatpush3.bf16.msra.mxu0 %v3285_v34 }
 0x9c4   :  { %v4954_v62 = vpop.eup %4953  ;;  %v7447_v21 = vpack.c.bf16 %v2274_v5, %v2272_v57  ;;  %4791 = vmatprep.subr.bf16.mxu0 %v4990_v24 }
 0x9c5   :  { %v4956_v19 = vpop.eup %4955  ;;  %v2278_v7 = vmul.f32 %v4954_v62, %v8033_v20 }
 0x9c6   :  { %v2276_v14 = vmul.f32 %v4956_v19, %v8034_v30  ;;  %v3291_v30 = vunpack.c.l.bf16 %v7350_v36 }
 0x9c7   :  { %3793 = vxpose.xlu0.c.b16.cont [2/4] (short) (narrow) %v7427_v56, 16 }
 0x9c8   :  { %v4958_v16 = vpop.eup %4957  ;;  %v7452_v31 = vpack.c.bf16 %v2278_v7, %v2276_v14  ;;  %v3289_v7 = vunpack.c.l.bf16 %v7358_v15 }
 0x9c9   :  { %v4960_v60 = vpop.eup %4959  ;;  %v2282_v8 = vmul.f32 %v4958_v16, %v8035_v29  ;;  %v3292_v16 = vunpack.c.h.bf16 %v7350_v36  ;;  %v3293_v36 = vunpack.c.l.bf16 %v7342_v46 }
 0x9ca   :  { %v2280_v32 = vmul.f32 %v4960_v60, %v8036_v44 }
 0x9cb   :  { %3794 = vxpose.xlu0.c.b16.cont [3/4] (short) (narrow) %v7432_v40, 16 }
 0x9cc   :  { %v7457_v53 = vpack.c.bf16 %v2282_v8, %v2280_v32  ;;  %v3290_v8 = vunpack.c.h.bf16 %v7358_v15  ;;  %v3295_v15 = vunpack.c.l.bf16 %v7338_v33 }
 0x9cf   :  { %3795 = vxpose.xlu0.c.b16.end [4/4] (short) (narrow) %v7439_v39, 16  ;;  %3854 = vxpose.xlu1.c.b16.start [1/4] (short) (narrow) %v7441_v63, 16 }
 0x9d3   :  { %3855 = vxpose.xlu1.c.b16.cont [2/4] (short) (narrow) %v7447_v21, 16 }
 0x9d7   :  { %3856 = vxpose.xlu1.c.b16.cont [3/4] (short) (narrow) %v7452_v31, 16 }
 0x9db   :  { %3857 = vxpose.xlu1.c.b16.end [4/4] (short) (narrow) %v7457_v53, 16 }
 0x9fe   :  { %v3234_v58 = vpop.permute.xlu1 %3233  ;;  %v3236_v45 = vpop.permute.xlu0 %3235 }
 0x9ff   :  { %3275 = vst.msk [vmem:[#allocation3 + $0x60] sm:$0xff] %vm1411_vm4, %v3234_v58  ;;  %3276 = vst.msk [vmem:[#allocation3 + $0x70] sm:$0xff] %vm1411_vm4, %v3236_v45 }
 0xa02   :  { %v3230_v49 = vpop.permute.xlu1 %3229 }
 0xa03   :  { %3273 = vst.msk [vmem:[#allocation3 + $0x40] sm:$0xff] %vm1411_vm4, %v3230_v49  ;;  %v3226_v28 = vpop.permute.xlu0 %3225  ;;  %v3296_v49 = vunpack.c.h.bf16 %v7338_v33 }
 0xa04   :  { %3271 = vst.msk [vmem:[#allocation3 + $0x20] sm:$0xff] %vm1411_vm4, %v3226_v28 }
 0xa06   :  { %v3232_v41 = vpop.permute.xlu1 %3231 }
 0xa07   :  { %3274 = vst.msk [vmem:[#allocation3 + $0x50] sm:$0xff] %vm1411_vm4, %v3232_v41  ;;  %v3222_v3 = vpop.permute.xlu0 %3221 }
 0xa08   :  { %3269 = vst.msk [vmem:[#allocation3] sm:$0xff] %vm1411_vm4, %v3222_v3 }
 0xa0a   :  { %v3228_v52 = vpop.permute.xlu1 %3227 }
 0xa0b   :  { %3272 = vst.msk [vmem:[#allocation3 + $0x30] sm:$0xff] %vm1411_vm4, %v3228_v52  ;;  %v3250_v47 = vpop.permute.xlu0 %3249 }
 0xa0c   :  { %3283 = vst.msk [vmem:[#allocation3 + $0xe0] sm:$0xff] %vm1411_vm4, %v3250_v47 }
 0xa0e   :  { %v3224_v10 = vpop.permute.xlu1 %3223 }
 0xa0f   :  { %3270 = vst.msk [vmem:[#allocation3 + $0x10] sm:$0xff] %vm1411_vm4, %v3224_v10  ;;  %v3246_v50 = vpop.permute.xlu0 %3245 }
 0xa10   :  { %3281 = vst.msk [vmem:[#allocation3 + $0xc0] sm:$0xff] %vm1411_vm4, %v3246_v50 }
 0xa12   :  { %v3252_v43 = vpop.permute.xlu1 %3251 }
 0xa13   :  { %3284 = vst.msk [vmem:[#allocation3 + $0xf0] sm:$0xff] %vm1411_vm4, %v3252_v43  ;;  %v3242_v59 = vpop.permute.xlu0 %3241  ;;  %v4979_v43 = vld [vmem:[%s7846_s1 + $0x18] sm:$0xff]  }
 0xa14   :  { %3279 = vst.msk [vmem:[#allocation3 + $0xa0] sm:$0xff] %vm1411_vm4, %v3242_v59 }
 0xa16   :  { %v3248_v4 = vpop.permute.xlu1 %3247 }
 0xa17   :  { %3282 = vst.msk [vmem:[#allocation3 + $0xd0] sm:$0xff] %vm1411_vm4, %v3248_v4  ;;  %v3238_v5 = vpop.permute.xlu0 %3237 }
 0xa18   :  { %3277 = vst.msk [vmem:[#allocation3 + $0x80] sm:$0xff] %vm1411_vm4, %v3238_v5 }
 0xa1a   :  { %v3244_v62 = vpop.permute.xlu1 %3243 }
 0xa1b   :  { %3280 = vst.msk [vmem:[#allocation3 + $0xb0] sm:$0xff] %vm1411_vm4, %v3244_v62 }
 0xa1e   :  { %v3240_v57 = vpop.permute.xlu1 %3239 }
 0xa1f   :  { %3278 = vst.msk [vmem:[#allocation3 + $0x90] sm:$0xff] %vm1411_vm4, %v3240_v57 }
 0xa5e   :  { %v4745_v19 = vpop.f32.mrf.mxu1 }
 0xa5f   :  { %v3348_v44 = vadd.f32 %v4745_v19, %v3291_v30  ;;  %v3297_v19 = vunpack.c.l.bf16 %v7397_v61 }
 0xa60   :  { %v3339_v20 = vpop.f32.mrf.mxu1 }
 0xa61   :  { %v3340_v60 = vadd.f32 %v3339_v20, %v3289_v7  ;;  %v3437_v34 = vmul.f32 %v3348_v44, %v8039_v55  ;;  %v3300_v20 = vunpack.c.h.bf16 %v7389_v12  ;;  %v4980_v7 = vld [vmem:[%s7846_s1 + $0x10] sm:$0xff]  }
 0xa62   :  { %v4746_v14 = vpop.f32.mrf.mxu1 }
 0xa63   :  { %v3351_v29 = vadd.f32 %v4746_v14, %v3292_v16  ;;  %v3435_v13 = vmul.f32 %v3340_v60, %v8037_v18  ;;  %v3299_v16 = vunpack.c.l.bf16 %v7389_v12  ;;  %v3301_v18 = vunpack.c.l.bf16 %v7371_v25 }
 0xa64   :  { %v3342_v32 = vpop.f32.mrf.mxu1 }
 0xa65   :  { %v3343_v42 = vadd.f32 %v3342_v32, %v3290_v8  ;;  %v3438_v38 = vmul.f32 %v3351_v29, %v5300_v1  ;;  %v3294_v1 = vunpack.c.h.bf16 %v7342_v46  ;;  %v4981_v8 = vld [vmem:[%s7846_s1 + $0x8] sm:$0xff]  }
 0xa66   :  { %v4749_v17 = vpop.f32.mrf.mxu1 }
 0xa67   :  { %v3436_v35 = vmul.f32 %v3343_v42, %v8038_v22  ;;  %v3452_v28 = vpack.c.bf16 %v3438_v38, %v3437_v34  ;;  %v3364_v47 = vadd.f32 %v4749_v17, %v3295_v15  ;;  %v4982_v22 = vld [vmem:[%s7846_s1] sm:$0xff]  }
 0xa68   :  { %v3355_v58 = vpop.f32.mrf.mxu1 }
 0xa69   :  { %v3451_v45 = vpack.c.bf16 %v3436_v35, %v3435_v13  ;;  %v3356_v3 = vadd.f32 %v3355_v58, %v3293_v36  ;;  %v3441_v46 = vmul.f32 %v3364_v47, %v5308_v11  ;;  %v3298_v11 = vunpack.c.h.bf16 %v7397_v61  ;;  %v8040_v36 = vld [vmem:[#allocation16_spill] sm:$0xff] }
 0xa6a   :  { %v4750_v41 = vpop.f32.mrf.mxu1  ;;  %v3304_v13 = vunpack.c.h.bf16 %v7364_v37  ;;  %v3303_v35 = vunpack.c.l.bf16 %v7364_v37 }
 0xa6b   :  { %v3367_v52 = vadd.f32 %v4750_v41, %v3296_v49  ;;  %4775 = vmatprep.mubr.msk.bf16.mxu0 %vm137_vm3, %v3451_v45  ;;  %v3439_v4 = vmul.f32 %v3356_v3, %v5302_v2  ;;  %v8042_v41 = vld [vmem:[#allocation14_spill] sm:$0xff]  ;;  %v8043_v3 = vld [vmem:[#allocation15_spill] sm:$0xff] }
 0xa6c   :  { %v3358_v10 = vpop.f32.mrf.mxu1  ;;  %4776 = vmatmul.mubr.msk.bf16.vlgmr.msra.gmra.mxu0 %vm137_vm3, %v3452_v28  ;;  %v8041_v28 = vld [vmem:[#allocation13_spill] sm:$0xff] }
 0xa6d   :  { %v3359_v50 = vadd.f32 %v3358_v10, %v3294_v1  ;;  %4792 = vmatpush3.bf16.msra.mxu0 %v4979_v43  ;;  %v3442_v59 = vmul.f32 %v3367_v52, %v5318_v27 }
 0xa6e   :  { %v4761_v33 = vpop.f32.mrf.mxu1  ;;  %4793 = vmatprep.subr.bf16.mxu0 %v4990_v24 }
 0xa6f   :  { %v3440_v5 = vmul.f32 %v3359_v50, %v5304_v6  ;;  %v3454_v27 = vpack.c.bf16 %v3442_v59, %v3441_v46  ;;  %v3413_v14 = vadd.f32 %v4761_v33, %v3299_v16 }
 0xa70   :  { %v3404_v62 = vpop.f32.mrf.mxu1 }
 0xa71   :  { %v3453_v57 = vpack.c.bf16 %v3440_v5, %v3439_v4  ;;  %4794 = vmatpush3.bf16.msra.mxu0 %v4980_v7  ;;  %v3405_v2 = vadd.f32 %v3404_v62, %v3297_v19  ;;  %v3445_v61 = vmul.f32 %v3413_v14, %v5359_v26  ;;  %v3302_v26 = vunpack.c.h.bf16 %v7371_v25  ;;  %v7553_v25 = vpop.trf.xlu0 }
 0xa72   :  { %v4762_v30 = vpop.f32.mrf.mxu1  ;;  %4795 = vmatprep.subr.bf16.mxu0 %v4990_v24 }
 0xa73   :  { %v3416_v6 = vadd.f32 %v4762_v30, %v3300_v20  ;;  %4779 = vmatprep.mubr.msk.bf16.mxu0 %vm137_vm3, %v3453_v57  ;;  %v3443_v32 = vmul.f32 %v3405_v2, %v5329_v48 }
 0xa74   :  { %v3407_v60 = vpop.f32.mrf.mxu1  ;;  %4780 = vmatmul.mubr.msk.bf16.gmra.mxu0 %vm137_vm3, %v3454_v27 }
 0xa75   :  { %v3408_v29 = vadd.f32 %v3407_v60, %v3298_v11  ;;  %4796 = vmatpush3.bf16.msra.mxu0 %v4981_v8  ;;  %v3446_v12 = vmul.f32 %v3416_v6, %v5370_v54 }
 0xa76   :  { %v4765_v44 = vpop.f32.mrf.mxu1  ;;  %4797 = vmatprep.subr.bf16.mxu0 %v4990_v24 }
 0xa77   :  { %v3444_v42 = vmul.f32 %v3408_v29, %v7998_v23  ;;  %v3456_v54 = vpack.c.bf16 %v3446_v12, %v3445_v61  ;;  %v3429_v34 = vadd.f32 %v4765_v44, %v3303_v35 }
 0xa78   :  { %v3420_v38 = vpop.f32.mrf.mxu1 }
 0xa79   :  { %v3455_v17 = vpack.c.bf16 %v3444_v42, %v3443_v32  ;;  %4798 = vmatpush3.bf16.msra.mxu0 %v4982_v22  ;;  %v3421_v48 = vadd.f32 %v3420_v38, %v3301_v18  ;;  %v3449_v52 = vmul.f32 %v3429_v34, %v8043_v3 }
 0xa7a   :  { %v4766_v55 = vpop.f32.mrf.mxu1  ;;  %4815 = vmatprep.subr.bf16.mxu0 %v4990_v24 }
 0xa7b   :  { %v3432_v23 = vadd.f32 %v4766_v55, %v3304_v13  ;;  %4783 = vmatprep.mubr.msk.bf16.mxu0 %vm137_vm3, %v3455_v17  ;;  %v3447_v15 = vmul.f32 %v3421_v48, %v8041_v28 }
 0xa7c   :  { %v3423_v58 = vpop.f32.mrf.mxu1  ;;  %4784 = vmatmul.mubr.msk.bf16.gmra.mxu0 %vm137_vm3, %v3456_v54 }
 0xa7d   :  { %v3424_v45 = vadd.f32 %v3423_v58, %v3302_v26  ;;  %v3450_v49 = vmul.f32 %v3432_v23, %v8040_v36 }
 0xa7f   :  { %v3448_v37 = vmul.f32 %v3424_v45, %v8042_v41  ;;  %v3458_v47 = vpack.c.bf16 %v3450_v49, %v3449_v52 }
 0xa81   :  { %v3457_v1 = vpack.c.bf16 %v3448_v37, %v3447_v15 }
 0xa83   :  { %4787 = vmatprep.mubr.msk.bf16.mxu0 %vm137_vm3, %v3457_v1 }
 0xa84   :  { %4788 = vmatmul.mubr.msk.bf16.gmra.mxu0 %vm137_vm3, %v3458_v47 }
 0xa85   :  { %4799 = vmatprep.mubr.msk.bf16.mxu0 %vm4991_vm6, %v4990_v24 }
 0xa8c   :  { %4800 = vmatmul.mubr.msk.bf16.vlgmr.msra.gmra.mxu0 %vm137_vm3, %v7553_v25 }
 0xa8d   :  { %4816 = vmatpush3.bf16.msra.mxu0 %v7439_v39  ;;  %4823 = vmatprep.mubr.msk.bf16.mxu0 %vm4991_vm6, %v4990_v24  ;;  %v7569_v39 = vld [vmem:[%s7859_s15] ss:$0 sm:$0xff] }
 0xa8e   :  { %4817 = vmatprep.subr.bf16.mxu0 %v4990_v24 }
 0xa91   :  { %4818 = vmatpush3.bf16.msra.mxu0 %v7432_v40 }
 0xa92   :  { %4819 = vmatprep.subr.bf16.mxu0 %v4990_v24 }
 0xa95   :  { %4820 = vmatpush3.bf16.msra.mxu0 %v7427_v56 }
 0xa96   :  { %4821 = vmatprep.subr.bf16.mxu0 %v4990_v24 }
 0xa99   :  { %4822 = vmatpush3.bf16.msra.mxu0 %v7422_v9 }
 0xb2c   :  { %v4777_v10 = vpop.f32.mrf.mxu0 }
 0xb2d   :  { %v7575_v40 = vadd.f32 %v4777_v10, %v7569_v39 }
 0xb2e   :  { %v3523_v50 = vpop.f32.mrf.mxu0 }
 0xb2f   :  { %v7572_v43 = vadd.f32 %v7569_v39, %v3523_v50  ;;  %v3588_v46 = vmax.f32 %v7575_v40, 0.0 }
 0xb30   :  { %v4778_v59 = vpop.f32.mrf.mxu0 }
 0xb31   :  { %v3586_v56 = vmax.f32 %v7572_v43, 0.0  ;;  %v7579_v4 = vadd.f32 %v4778_v59, %v7569_v39  ;;  %v3605_v2 = vsel %vm137_vm3, %v3588_v46, 0.0 }
 0xb32   :  { %v3526_v33 = vpop.f32.mrf.mxu0 }
 0xb33   :  { %v7582_v9 = vadd.f32 %v7569_v39, %v3526_v33  ;;  %v3602_v19 = vsel %vm137_vm3, %v3586_v56, 0.0  ;;  %v3589_v20 = vmax.f32 %v7579_v4, 0.0 }
 0xb34   :  { %v4781_v5 = vpop.f32.mrf.mxu0 }
 0xb35   :  { %v3587_v62 = vmax.f32 %v7582_v9, 0.0  ;;  %v7600_v6 = vadd.f32 %v4781_v5, %v7569_v39  ;;  %v3607_v29 = vsel %vm137_vm3, %v3589_v20, 0.0 }
 0xb36   :  { %v3539_v57 = vpop.f32.mrf.mxu0 }
 0xb37   :  { %v3603_v7 = vsel %vm137_vm3, %v3587_v62, 0.0  ;;  %v7594_v27 = vadd.f32 %v7569_v39, %v3539_v57  ;;  %v3592_v42 = vmax.f32 %v7600_v6, 0.0 }
 0xb38   :  { %v3604_v16 = vadd.f32 %v3603_v7, %v3602_v19  ;;  %v4782_v30 = vpop.f32.mrf.mxu0 }
 0xb39   :  { %v3590_v11 = vmax.f32 %v7594_v27, 0.0  ;;  %v7607_v8 = vadd.f32 %v4782_v30, %v7569_v39  ;;  %v3613_v48 = vsel %vm137_vm3, %v3592_v42, 0.0 }
 0xb3a   :  { %v3606_v14 = vadd.f32 %v3605_v2, %v3604_v16  ;;  %v3542_v60 = vpop.f32.mrf.mxu0 }
 0xb3b   :  { %v7610_v12 = vadd.f32 %v7569_v39, %v3542_v60  ;;  %v3609_v61 = vsel %vm137_vm3, %v3590_v11, 0.0  ;;  %v3593_v13 = vmax.f32 %v7607_v8, 0.0 }
 0xb3c   :  { %v3608_v44 = vadd.f32 %v3607_v29, %v3606_v14  ;;  %v4785_v32 = vpop.f32.mrf.mxu0 }
 0xb3d   :  { %v3591_v38 = vmax.f32 %v7610_v12, 0.0  ;;  %v7628_v23 = vadd.f32 %v4785_v32, %v7569_v39  ;;  %v3615_v45 = vsel %vm137_vm3, %v3593_v13, 0.0 }
 0xb3e   :  { %v3610_v17 = vadd.f32 %v3609_v61, %v3608_v44  ;;  %v3555_v18 = vpop.f32.mrf.mxu0 }
 0xb3f   :  { %v3611_v22 = vsel %vm137_vm3, %v3591_v38, 0.0  ;;  %v7622_v54 = vadd.f32 %v7569_v39, %v3555_v18  ;;  %v3596_v41 = vmax.f32 %v7628_v23, 0.0 }
 0xb40   :  { %v3612_v35 = vadd.f32 %v3611_v22, %v3610_v17  ;;  %v4786_v55 = vpop.f32.mrf.mxu0 }
 0xb41   :  { %v3594_v26 = vmax.f32 %v7622_v54, 0.0  ;;  %v7635_v36 = vadd.f32 %v4786_v55, %v7569_v39  ;;  %v3621_v5 = vsel %vm137_vm3, %v3596_v41, 0.0 }
 0xb42   :  { %v3614_v34 = vadd.f32 %v3613_v48, %v3612_v35  ;;  %v3558_v58 = vpop.f32.mrf.mxu0 }
 0xb43   :  { %v7638_v49 = vadd.f32 %v7569_v39, %v3558_v58  ;;  %v3617_v37 = vsel %vm137_vm3, %v3594_v26, 0.0  ;;  %v3597_v47 = vmax.f32 %v7635_v36, 0.0 }
 0xb44   :  { %v3616_v28 = vadd.f32 %v3615_v45, %v3614_v34  ;;  %v4789_v15 = vpop.f32.mrf.mxu0 }
 0xb45   :  { %v3595_v3 = vmax.f32 %v7638_v49, 0.0  ;;  %v7654_v57 = vadd.f32 %v4789_v15, %v7569_v39  ;;  %v3623_v30 = vsel %vm137_vm3, %v3597_v47, 0.0 }
 0xb46   :  { %v3618_v52 = vadd.f32 %v3617_v37, %v3616_v28  ;;  %v3571_v1 = vpop.f32.mrf.mxu0 }
 0xb47   :  { %v3619_v10 = vsel %vm137_vm3, %v3595_v3, 0.0  ;;  %v7648_v50 = vadd.f32 %v7569_v39, %v3571_v1  ;;  %v3600_v29 = vmax.f32 %v7654_v57, 0.0 }
 0xb48   :  { %v3620_v59 = vadd.f32 %v3619_v10, %v3618_v52  ;;  %v4790_v33 = vpop.f32.mrf.mxu0 }
 0xb49   :  { %v3598_v19 = vmax.f32 %v7648_v50, 0.0  ;;  %v7661_v2 = vadd.f32 %v4790_v33, %v7569_v39  ;;  %v3629_v35 = vsel %vm137_vm3, %v3600_v29, 0.0 }
 0xb4a   :  { %v3622_v7 = vadd.f32 %v3621_v5, %v3620_v59  ;;  %v3574_v16 = vpop.f32.mrf.mxu0 }
 0xb4b   :  { %v3575_v14 = vadd.f32 %v7569_v39, %v3574_v16  ;;  %v3625_v44 = vsel %vm137_vm3, %v3598_v19, 0.0  ;;  %v3601_v17 = vmax.f32 %v7661_v2, 0.0 }
 0xb4c   :  { %v3624_v60 = vadd.f32 %v3623_v30, %v3622_v7 }
 0xb4d   :  { %v3599_v32 = vmax.f32 %v3575_v14, 0.0  ;;  %v3631_v39 = vsel %vm137_vm3, %v3601_v17, 0.0 }
 0xb4e   :  { %v3626_v61 = vadd.f32 %v3625_v44, %v3624_v60 }
 0xb4f   :  { %v3627_v18 = vsel %vm137_vm3, %v3599_v32, 0.0 }
 0xb50   :  { %v3628_v22 = vadd.f32 %v3627_v18, %v3626_v61 }
 0xb52   :  { %v3630_v55 = vadd.f32 %v3629_v35, %v3628_v22 }
 0xb54   :  { %v3632_v48 = vadd.f32 %v3631_v39, %v3630_v55 }
 0xb56   :  { %v3633_v34 = vrot.slane %v3632_v48, 4 }
 0xb58   :  { %v3634_v58 = vadd.f32 %v3633_v34, %v3632_v48 }
 0xb5a   :  { %v3635_v45 = vrot.slane %v3634_v58, 2 }
 0xb5c   :  { %v3636_v49 = vadd.f32 %v3635_v45, %v3634_v58 }
 0xb5e   :  { %v3637_v28 = vrot.slane %v3636_v49, 1 }
 0xb60   :  { %v3638_v15 = vadd.f32 %v3637_v28, %v3636_v49 }
 0xb62   :  { %v3639_v37 = vmul.f32 0.0078125, %v3638_v15 }
 0xb64   :  { %v7676_v52 = vsub.f32 %v3586_v56, %v3639_v37  ;;  %v7680_v1 = vsub.f32 %v3587_v62, %v3639_v37  ;;  %v7684_v10 = vsub.f32 %v3588_v46, %v3639_v37  ;;  %v7688_v50 = vsub.f32 %v3589_v20, %v3639_v37 }
 0xb65   :  { %v7696_v56 = vsub.f32 %v3590_v11, %v3639_v37  ;;  %v7702_v40 = vsub.f32 %v3591_v38, %v3639_v37  ;;  %v7710_v27 = vsub.f32 %v3592_v42, %v3639_v37  ;;  %v3647_v38 = vsub.f32 %v3593_v13, %v3639_v37 }
 0xb66   :  { %v3656_v59 = vmul.f32 %v7676_v52, %v7676_v52  ;;  %v3657_v43 = vmul.f32 %v7680_v1, %v7680_v1  ;;  %v3658_v9 = vmul.f32 %v7684_v10, %v7684_v10  ;;  %v3659_v4 = vmul.f32 %v7688_v50, %v7688_v50 }
 0xb67   :  { %v3660_v11 = vmul.f32 %v7696_v56, %v7696_v56  ;;  %v3661_v5 = vmul.f32 %v7702_v40, %v7702_v40  ;;  %v3648_v6 = vsub.f32 %v3594_v26, %v3639_v37  ;;  %v3662_v42 = vmul.f32 %v7710_v27, %v7710_v27 }
 0xb68   :  { %v3672_v46 = vsel %vm137_vm3, %v3656_v59, 0.0  ;;  %v3673_v62 = vsel %vm137_vm3, %v3657_v43, 0.0  ;;  %v3675_v33 = vsel %vm137_vm3, %v3658_v9, 0.0  ;;  %v3677_v7 = vsel %vm137_vm3, %v3659_v4, 0.0 }
 0xb69   :  { %v3674_v20 = vadd.f32 %v3673_v62, %v3672_v46  ;;  %v3679_v30 = vsel %vm137_vm3, %v3660_v11, 0.0  ;;  %v3649_v60 = vsub.f32 %v3595_v3, %v3639_v37  ;;  %v3663_v44 = vmul.f32 %v3647_v38, %v3647_v38 }
 0xb6a   :  { %v3681_v8 = vsel %vm137_vm3, %v3661_v5, 0.0  ;;  %v3650_v61 = vsub.f32 %v3596_v41, %v3639_v37  ;;  %v3664_v18 = vmul.f32 %v3648_v6, %v3648_v6  ;;  %v3683_v22 = vsel %vm137_vm3, %v3662_v42, 0.0 }
 0xb6b   :  { %v3676_v12 = vadd.f32 %v3675_v33, %v3674_v20  ;;  %v3651_v54 = vsub.f32 %v3597_v47, %v3639_v37  ;;  %v3665_v26 = vmul.f32 %v3649_v60, %v3649_v60  ;;  %v3685_v55 = vsel %vm137_vm3, %v3663_v44, 0.0 }
 0xb6c   :  { %v3652_v48 = vsub.f32 %v3598_v19, %v3639_v37  ;;  %v3666_v3 = vmul.f32 %v3650_v61, %v3650_v61  ;;  %v3687_v34 = vsel %vm137_vm3, %v3664_v18, 0.0  ;;  %v3653_v45 = vsub.f32 %v3599_v32, %v3639_v37 }
 0xb6d   :  { %v3678_v16 = vadd.f32 %v3677_v7, %v3676_v12  ;;  %v3667_v49 = vmul.f32 %v3651_v54, %v3651_v54  ;;  %v3689_v23 = vsel %vm137_vm3, %v3665_v26, 0.0  ;;  %v3654_v28 = vsub.f32 %v3600_v29, %v3639_v37 }
 0xb6e   :  { %v3668_v15 = vmul.f32 %v3652_v48, %v3652_v48  ;;  %v3691_v36 = vsel %vm137_vm3, %v3666_v3, 0.0  ;;  %v3655_v59 = vsub.f32 %v3601_v17, %v3639_v37  ;;  %v3669_v19 = vmul.f32 %v3653_v45, %v3653_v45 }
 0xb6f   :  { %v3680_v14 = vadd.f32 %v3679_v30, %v3678_v16  ;;  %v3693_v43 = vsel %vm137_vm3, %v3667_v49, 0.0  ;;  %v3670_v4 = vmul.f32 %v3654_v28, %v3654_v28 }
 0xb70   :  { %v3695_v32 = vsel %vm137_vm3, %v3668_v15, 0.0  ;;  %v3671_v62 = vmul.f32 %v3655_v59, %v3655_v59  ;;  %v3697_v20 = vsel %vm137_vm3, %v3669_v19, 0.0  ;;  %v3748_v19 = vld [vmem:[#allocation3 + $0x20] sm:$0xff] }
 0xb71   :  { %v3682_v13 = vadd.f32 %v3681_v8, %v3680_v14  ;;  %v3699_v29 = vsel %vm137_vm3, %v3670_v4, 0.0  ;;  %v3746_v4 = vld [vmem:[#allocation3 + $0x10] sm:$0xff] }
 0xb72   :  { %v3701_v33 = vsel %vm137_vm3, %v3671_v62, 0.0  ;;  %v3744_v62 = vld [vmem:[#allocation3] sm:$0xff] }
 0xb73   :  { %v3684_v35 = vadd.f32 %v3683_v22, %v3682_v13 }
 0xb75   :  { %v3686_v39 = vadd.f32 %v3685_v55, %v3684_v35 }
 0xb77   :  { %v3688_v58 = vadd.f32 %v3687_v34, %v3686_v39 }
 0xb79   :  { %v3690_v41 = vadd.f32 %v3689_v23, %v3688_v58 }
 0xb7b   :  { %v3692_v47 = vadd.f32 %v3691_v36, %v3690_v41  ;;  %v3752_v41 = vld [vmem:[#allocation3 + $0x40] sm:$0xff]  ;;  %v3750_v36 = vld [vmem:[#allocation3 + $0x30] sm:$0xff] }
 0xb7d   :  { %v3694_v9 = vadd.f32 %v3693_v43, %v3692_v47  ;;  %v3778_v43 = vpack.c.bf16 %v3750_v36, %v3748_v19 }
 0xb7f   :  { %v3696_v46 = vadd.f32 %v3695_v32, %v3694_v9 }
 0xb81   :  { %v3698_v57 = vadd.f32 %v3697_v20, %v3696_v46  ;;  %v3776_v20 = vpack.c.bf16 %v3746_v4, %v3744_v62 }
 0xb83   :  { %v3700_v11 = vadd.f32 %v3699_v29, %v3698_v57  ;;  %v3774_v29 = vld [vmem:[#allocation3 + $0xf0] sm:$0xff] }
 0xb85   :  { %v3702_v12 = vadd.f32 %v3701_v33, %v3700_v11 }
 0xb87   :  { %v3703_v2 = vrot.slane %v3702_v12, 4 }
 0xb89   :  { %v3704_v17 = vadd.f32 %v3703_v2, %v3702_v12  ;;  %v3772_v12 = vld [vmem:[#allocation3 + $0xe0] sm:$0xff] }
 0xb8a   :  { %v3790_v2 = vpack.c.bf16 %v3774_v29, %v3772_v12 }
 0xb8b   :  { %v3705_v37 = vrot.slane %v3704_v17, 2 }
 0xb8d   :  { %v3706_v5 = vadd.f32 %v3705_v37, %v3704_v17  ;;  %v3770_v37 = vld [vmem:[#allocation3 + $0xd0] sm:$0xff] }
 0xb8f   :  { %v3707_v7 = vrot.slane %v3706_v5, 1 }
 0xb91   :  { %v3708_v16 = vadd.f32 %v3707_v7, %v3706_v5 }
 0xb93   :  { %v3709_v42 = vmul.f32 0.0078125, %v3708_v16  ;;  %v3768_v16 = vld [vmem:[#allocation3 + $0xc0] sm:$0xff] }
 0xb95   :  { %v3710_v30 = vadd.f32 1e-05, %v3709_v42  ;;  %v3788_v42 = vpack.c.bf16 %v3770_v37, %v3768_v16 }
 0xb97   :  { %4961 = vrsqrt.f32 %v3710_v30 }
 0xba4   :  { %v4962_v14 = vpop.eup %4961 }
 0xba5   :  { %v3714_v44 = vmul.f32 %v4962_v14, %v7684_v10  ;;  %v3715_v8 = vmul.f32 %v4962_v14, %v7688_v50  ;;  %v3716_v13 = vmul.f32 %v4962_v14, %v7696_v56  ;;  %v3717_v18 = vmul.f32 %v4962_v14, %v7702_v40 }
 0xba6   :  { %v3718_v22 = vmul.f32 %v4962_v14, %v7710_v27  ;;  %v3719_v35 = vmul.f32 %v4962_v14, %v3647_v38  ;;  %v3720_v26 = vmul.f32 %v4962_v14, %v3648_v6  ;;  %v3721_v55 = vmul.f32 %v4962_v14, %v3649_v60  ;;  %v3756_v27 = vld [vmem:[#allocation3 + $0x60] sm:$0xff] }
 0xba7   :  { %v3722_v39 = vmul.f32 %v4962_v14, %v3650_v61  ;;  %v3723_v3 = vmul.f32 %v4962_v14, %v3651_v54  ;;  %v3724_v34 = vmul.f32 %v4962_v14, %v3652_v48  ;;  %v3725_v58 = vmul.f32 %v4962_v14, %v3653_v45  ;;  %3732 = vst.msk [vmem:[#allocation3 + $0x48] sm:$0xff] %vm137_vm3, %v3716_v13  ;;  %v3754_v45 = vld [vmem:[#allocation3 + $0x50] sm:$0xff]  ;;  %v3764_v13 = vld [vmem:[#allocation3 + $0xa0] sm:$0xff] }
 0xba8   :  { %3733 = vst.msk [vmem:[#allocation3 + $0x58] sm:$0xff] %vm137_vm3, %v3717_v18  ;;  %3730 = vst.msk [vmem:[#allocation3 + $0x28] sm:$0xff] %vm137_vm3, %v3714_v44  ;;  %v3726_v10 = vmul.f32 %v4962_v14, %v3654_v28  ;;  %v3727_v50 = vmul.f32 %v4962_v14, %v3655_v59  ;;  %v3712_v56 = vmul.f32 %v4962_v14, %v7676_v52  ;;  %v3758_v52 = vld [vmem:[#allocation3 + $0x70] sm:$0xff] }
 0xba9   :  { %3731 = vst.msk [vmem:[#allocation3 + $0x38] sm:$0xff] %vm137_vm3, %v3715_v8  ;;  %3734 = vst.msk [vmem:[#allocation3 + $0x68] sm:$0xff] %vm137_vm3, %v3718_v22  ;;  %v3713_v40 = vmul.f32 %v4962_v14, %v7680_v1  ;;  %v3782_v54 = vpack.c.bf16 %v3758_v52, %v3756_v27  ;;  %v3780_v28 = vpack.c.bf16 %v3754_v45, %v3752_v41  ;;  %v3766_v14 = vld [vmem:[#allocation3 + $0xb0] sm:$0xff] }
 0xbaa   :  { %3735 = vst.msk [vmem:[#allocation3 + $0x78] sm:$0xff] %vm137_vm3, %v3719_v35  ;;  %3736 = vst.msk [vmem:[#allocation3 + $0x88] sm:$0xff] %vm137_vm3, %v3720_v26  ;;  %v3786_v18 = vpack.c.bf16 %v3766_v14, %v3764_v13  ;;  %v3760_v35 = vld [vmem:[#allocation3 + $0x80] sm:$0xff] }
 0xbab   :  { %3737 = vst.msk [vmem:[#allocation3 + $0x98] sm:$0xff] %vm137_vm3, %v3721_v55  ;;  %3738 = vst.msk [vmem:[#allocation3 + $0xa8] sm:$0xff] %vm137_vm3, %v3722_v39  ;;  %v3862_v55 = vpop.trf.xlu1  ;;  %v4984_v39 = vld [vmem:[%s7846_s1 + $0x30] sm:$0xff]  }
 0xbac   :  { %3739 = vst.msk [vmem:[#allocation3 + $0xb8] sm:$0xff] %vm137_vm3, %v3723_v3  ;;  %3740 = vst.msk [vmem:[#allocation3 + $0xc8] sm:$0xff] %vm137_vm3, %v3724_v34  ;;  %v4985_v3 = vld [vmem:[%s7846_s1 + $0x28] sm:$0xff]  }
 0xbad   :  { %3741 = vst.msk [vmem:[#allocation3 + $0xd8] sm:$0xff] %vm137_vm3, %v3725_v58  ;;  %3742 = vst.msk [vmem:[#allocation3 + $0xe8] sm:$0xff] %vm137_vm3, %v3726_v10 }
 0xbae   :  { %3743 = vst.msk [vmem:[#allocation3 + $0xf8] sm:$0xff] %vm137_vm3, %v3727_v50  ;;  %3728 = vst.msk [vmem:[#allocation3 + $0x8] sm:$0xff] %vm137_vm3, %v3712_v56  ;;  %v3753_v38 = vld [vmem:[#allocation3 + $0x48] sm:$0xff] }
 0xbaf   :  { %3729 = vst.msk [vmem:[#allocation3 + $0x18] sm:$0xff] %vm137_vm3, %v3713_v40  ;;  %v3755_v60 = vld [vmem:[#allocation3 + $0x58] sm:$0xff]  ;;  %v3749_v49 = vld [vmem:[#allocation3 + $0x28] sm:$0xff] }
 0xbb0   :  { %v3757_v1 = vld [vmem:[#allocation3 + $0x68] sm:$0xff]  ;;  %v3781_v48 = vpack.c.bf16 %v3755_v60, %v3753_v38  ;;  %v3751_v23 = vld [vmem:[#allocation3 + $0x38] sm:$0xff] }
 0xbb1   :  { %v3759_v6 = vld [vmem:[#allocation3 + $0x78] sm:$0xff]  ;;  %v3779_v15 = vpack.c.bf16 %v3751_v23, %v3749_v49  ;;  %v3761_v44 = vld [vmem:[#allocation3 + $0x88] sm:$0xff] }
 0xbb2   :  { %v3783_v61 = vpack.c.bf16 %v3759_v6, %v3757_v1  ;;  %v3765_v5 = vld [vmem:[#allocation3 + $0xa8] sm:$0xff]  ;;  %v3763_v8 = vld [vmem:[#allocation3 + $0x98] sm:$0xff] }
 0xbb3   :  { %v3769_v11 = vld [vmem:[#allocation3 + $0xc8] sm:$0xff]  ;;  %v3767_v7 = vld [vmem:[#allocation3 + $0xb8] sm:$0xff]  ;;  %v3785_v22 = vpack.c.bf16 %v3763_v8, %v3761_v44 }
 0xbb4   :  { %3819 = vmatprep.subr.bf16.mxu1 %v3783_v61  ;;  %v3773_v32 = vld [vmem:[#allocation3 + $0xe8] sm:$0xff]  ;;  %v3771_v33 = vld [vmem:[#allocation3 + $0xd8] sm:$0xff]  ;;  %v3787_v30 = vpack.c.bf16 %v3767_v7, %v3765_v5 }
 0xbb5   :  { %3820 = vmatpush1.bf16.msra.mxu1 %v3782_v54  ;;  %v3745_v47 = vld [vmem:[#allocation3 + $0x8] sm:$0xff]  ;;  %v3775_v46 = vld [vmem:[#allocation3 + $0xf8] sm:$0xff]  ;;  %v3789_v17 = vpack.c.bf16 %v3771_v33, %v3769_v11 }
 0xbb6   :  { %3821 = vmatprep.subr.bf16.mxu1 %v3781_v48  ;;  %v3747_v59 = vld [vmem:[#allocation3 + $0x18] sm:$0xff]  ;;  %v3791_v57 = vpack.c.bf16 %v3775_v46, %v3773_v32 }
 0xbb7   :  { %v3777_v9 = vpack.c.bf16 %v3747_v59, %v3745_v47 }
 0xbb9   :  { %3822 = vmatpush1.bf16.msra.mxu1 %v3780_v28 }
 0xbba   :  { %3823 = vmatprep.subr.bf16.mxu1 %v3779_v15 }
 0xbbd   :  { %3824 = vmatpush1.bf16.msra.mxu1 %v3778_v43 }
 0xbbe   :  { %3825 = vmatprep.subr.bf16.mxu1 %v3777_v9 }
 0xbc1   :  { %3826 = vmatpush1.bf16.msra.mxu1 %v3776_v20 }
 0xbc2   :  { %3881 = vmatprep.subr.bf16.mxu1 %v3791_v57 }
 0xbc4   :  { %4243 = vmatmul.mubr.msk.bf16.vlgmr.msra.gmra.mxu1 %vm137_vm3, %v7553_v25  ;;  %v3762_v25 = vld [vmem:[#allocation3 + $0x90] sm:$0xff] }
 0xbc5   :  { %3882 = vmatpush1.bf16.msra.mxu1 %v3790_v2  ;;  %3905 = vmatprep.mubr.bf16.mxu1 %v8032_v0  ;;  %v3784_v26 = vpack.c.bf16 %v3762_v25, %v3760_v35  ;;  %v4983_v0 = vld [vmem:[%s7846_s1 + $0x38] sm:$0xff]  }
 0xbc6   :  { %3883 = vmatprep.subr.bf16.mxu1 %v3789_v17 }
 0xbc9   :  { %3884 = vmatpush1.bf16.msra.mxu1 %v3788_v42 }
 0xbca   :  { %3885 = vmatprep.subr.bf16.mxu1 %v3787_v30 }
 0xbcd   :  { %3886 = vmatpush1.bf16.msra.mxu1 %v3786_v18 }
 0xbce   :  { %3887 = vmatprep.subr.bf16.mxu1 %v3785_v22 }
 0xbd1   :  { %3888 = vmatpush1.bf16.msra.mxu1 %v3784_v26 }
 0xbd2   :  { %4803 = vmatprep.subr.bf16.mxu1 %v4990_v24 }
 0xbd4   :  { %4244 = vmatmul.mubr.msk.bf16.vlgmr.msra.gmra.mxu1 %vm137_vm3, %v3862_v55 }
 0xbd5   :  { %4804 = vmatpush3.bf16.msra.mxu1 %v4983_v0  ;;  %4811 = vmatprep.mubr.msk.bf16.mxu1 %vm4991_vm6, %v4990_v24 }
 0xbd6   :  { %4805 = vmatprep.subr.bf16.mxu1 %v4990_v24 }
 0xbd9   :  { %4806 = vmatpush3.bf16.msra.mxu1 %v4984_v39 }
 0xbda   :  { %4807 = vmatprep.subr.bf16.mxu1 %v4990_v24 }
 0xbdd   :  { %4808 = vmatpush3.bf16.msra.mxu1 %v4985_v3 }
 0xbde   :  { %4809 = vmatprep.subr.bf16.mxu1 %v4990_v24 }
 0xbe1   :  { %4810 = vmatpush3.bf16.msra.mxu1 %v7405_v51  ;;  %v3962_v51 = vpop.f32.mrf.mxu0 }
 0xbe2   :  { %4827 = vmatprep.subr.bf16.mxu1 %v4990_v24 }
 0xbe3   :  { %v4801_v34 = vpop.f32.mrf.mxu0 }
 0xbe4   :  { %4812 = vmatmul.mubr.msk.bf16.vlgmr.msra.gmra.mxu1 %vm137_vm3, %v3862_v55 }
 0xbe5   :  { %4828 = vmatpush3.bf16.msra.mxu1 %v7457_v53  ;;  %4835 = vmatprep.mubr.msk.bf16.mxu1 %vm4991_vm6, %v4990_v24  ;;  %v3965_v58 = vpop.f32.mrf.mxu0 }
 0xbe6   :  { %4829 = vmatprep.subr.bf16.mxu1 %v4990_v24  ;;  %v4014_v10 = vpack.c.bf16 %v3965_v58, %v3962_v51 }
 0xbe7   :  { %v4802_v53 = vpop.f32.mrf.mxu0 }
 0xbe8   :  { %4824 = vmatmul.mubr.msk.bf16.vlgmr.msra.gmra.mxu0 %vm137_vm3, %v4014_v10 }
 0xbe9   :  { %4830 = vmatpush3.bf16.msra.mxu1 %v7452_v31 }
 0xbea   :  { %4831 = vmatprep.subr.bf16.mxu1 %v4990_v24 }
 0xbed   :  { %4832 = vmatpush3.bf16.msra.mxu1 %v7447_v21 }
 0xbee   :  { %4833 = vmatprep.subr.bf16.mxu1 %v4990_v24 }
 0xbf1   :  { %4834 = vmatpush3.bf16.msra.mxu1 %v7441_v63 }
 0xc84   :  { %v3845_v50 = vpop.f32.mrf.mxu1 }
 0xc85   :  { %3916 = vst [vmem:[%s7860_s16] sm:$0xff] %v3845_v50 }
 0xc86   :  { %v3847_v31 = vpop.f32.mrf.mxu1 }
 0xc87   :  { %3917 = vst.msk [vmem:[%s7860_s16 + $0x8] sm:$0xff] %vm137_vm3, %v3847_v31 }
 0xc88   :  { %v3849_v21 = vpop.f32.mrf.mxu1 }
 0xc89   :  { %3918 = vst [vmem:[%s7860_s16 + $0x10] sm:$0xff] %v3849_v21 }
 0xc8a   :  { %v3851_v63 = vpop.f32.mrf.mxu1 }
 0xc8b   :  { %3919 = vst.msk [vmem:[%s7860_s16 + $0x18] sm:$0xff] %vm137_vm3, %v3851_v63 }
 0xc94   :  { %v3907_v24 = vpop.f32.mrf.mxu1 }
 0xc95   :  { %3920 = vst [vmem:[%s7860_s16 + $0x20] sm:$0xff] %v3907_v24 }
 0xc96   :  { %v3909_v56 = vpop.f32.mrf.mxu1 }
 0xc97   :  { %3921 = vst.msk [vmem:[%s7860_s16 + $0x28] sm:$0xff] %vm137_vm3, %v3909_v56 }
 0xc98   :  { %v3911_v40 = vpop.f32.mrf.mxu1 }
 0xc99   :  { %3922 = vst [vmem:[%s7860_s16 + $0x30] sm:$0xff] %v3911_v40 }
 0xc9a   :  { %v3913_v27 = vpop.f32.mrf.mxu1 }
 0xc9b   :  { %3923 = vst.msk [vmem:[%s7860_s16 + $0x38] sm:$0xff] %vm137_vm3, %v3913_v27 }
 0xca4   :  { %v4007_v52 = vpop.f32.mrf.mxu1 }
 0xca6   :  { %v4813_v38 = vpop.f32.mrf.mxu1 }
 0xca8   :  { %v4010_v1 = vpop.f32.mrf.mxu1  ;;  %v4053_v61 = vpop.f32.mrf.mxu0 }
 0xca9   :  { %v4015_v6 = vpack.c.bf16 %v4010_v1, %v4007_v52  ;;  %4104 = vst.msk [vmem:[%s7861_s17] sm:$0xff] %vm1745_vm5, %v4053_v61 }
 0xcaa   :  { %v4814_v60 = vpop.f32.mrf.mxu1  ;;  %v4825_v54 = vpop.f32.mrf.mxu0 }
 0xcab   :  { %4836 = vmatmul.mubr.msk.bf16.vlgmr.msra.gmra.mxu1 %vm137_vm3, %v4015_v6 }
 0xcac   :  { %v4056_v48 = vpop.f32.mrf.mxu0 }
 0xcad   :  { %4105 = vst.msk [vmem:[%s7861_s17 + $0x8] sm:$0xff] %vm1745_vm5, %v4056_v48 }
 0xcae   :  { %v4826_v45 = vpop.f32.mrf.mxu0 }
 0xd6b   :  { %v4097_v49 = vpop.f32.mrf.mxu1 }
 0xd6c   :  { %4106 = vst.msk [vmem:[%s7861_s17 + $0x10] sm:$0xff] %vm1745_vm5, %v4097_v49 }
 0xd6d   :  { %v4837_v23 = vpop.f32.mrf.mxu1 }
 0xd6f   :  { %v4100_v41 = vpop.f32.mrf.mxu1 }
 0xd70   :  { %4107 = vst.msk [vmem:[%s7861_s17 + $0x18] sm:$0xff] %vm1745_vm5, %v4100_v41 }
 0xd71   :  { %v4838_v28 = vpop.f32.mrf.mxu1 }

</bundles_post_ra>
